<compile_context>
chip_gen: v6e
topology: v6e:2x2x1
jax: 0.10.0
libtpu: 0.0.40
codegen_flags: <defaults>
</compile_context>

<pallas_src>
import functools

import jax
import jax.numpy as jnp
from jax.experimental import pallas as pl
from jax.experimental.pallas import tpu as pltpu

NEG_SLOPE = 0.2
LANE = 128


def _round_up(x, m):
    return (x + m - 1) // m * m


# ----------------------------------------------------------------------------
# Pallas direct-conv kernel (stride 1, spatial halo pre-padded, fused epilogue)
# ----------------------------------------------------------------------------
def _conv_kernel(*refs, kh, kw, oh, ow, lrelu, has_post, has_skip):
    """Processes one batch image per grid step.

    refs = (x, w, b, [post], [skip], out)
      x    : (HP, WP, CIN)       spatially padded input, f32
      w    : (kh*kw, CIN, COUT)  packed weights, bf16
      b    : (1, COUT)           bias (zeros if the conv has none), f32
      post : (OH2*OW2, oh*ow)    optional fused post-matmul (bilinear upsample)
      skip : (OH2, OW2, COUT)    optional residual added after LeakyReLU
      out  : (OH2, OW2, COUT)
    """
    it = iter(refs)
    x_ref = next(it)
    w_ref = next(it)
    b_ref = next(it)
    post_ref = next(it) if has_post else None
    skip_ref = next(it) if has_skip else None
    o_ref = next(it)

    cin = x_ref.shape[-1]

    # Direct conv: accumulate one MXU matmul per kernel tap over shifted
    # windows of the VMEM-resident input block (im2col never materialized).
    acc = None
    for ky in range(kh):
        for kx in range(kw):
            a = x_ref[ky:ky + oh, kx:kx + ow, :].reshape(oh * ow, cin)
            part = jnp.dot(a.astype(jnp.bfloat16), w_ref[ky * kw + kx],
                           preferred_element_type=jnp.float32)
            acc = part if acc is None else acc + part

    acc = acc + b_ref[...]
    if lrelu:
        acc = jnp.where(acc >= 0, acc, acc * NEG_SLOPE)
    if has_post:
        # Fused bilinear 2x upsample: (OH2*OW2, oh*ow) @ (oh*ow, COUT) on MXU.
        acc = jnp.dot(post_ref[...], acc.astype(jnp.bfloat16),
                      preferred_element_type=jnp.float32)
    if has_skip:
        acc = acc + skip_ref[...].reshape(acc.shape)
    o_ref[...] = acc.reshape(o_ref.shape).astype(o_ref.dtype)


def pallas_conv(x_pad, w_packed, bias, *, kh, kw, oh, ow, lrelu,
                post=None, skip=None, out_hw=None, out_dtype=jnp.float32):
    B, HP, WP, CIN = x_pad.shape
    taps, cin_p, cout = w_packed.shape
    assert taps == kh * kw and cin_p == CIN
    out_h, out_w = out_hw if out_hw is not None else (oh, ow)

    in_specs = [
        pl.BlockSpec((None, HP, WP, CIN), lambda b: (b, 0, 0, 0)),
        pl.BlockSpec((taps, CIN, cout), lambda b: (0, 0, 0)),
        pl.BlockSpec((1, cout), lambda b: (0, 0)),
    ]
    args = [x_pad, w_packed, bias]
    if post is not None:
        in_specs.append(pl.BlockSpec(post.shape, lambda b: (0, 0)))
        args.append(post)
    if skip is not None:
        in_specs.append(pl.BlockSpec((None, out_h, out_w, cout),
                                     lambda b: (b, 0, 0, 0)))
        args.append(skip)

    kernel = functools.partial(
        _conv_kernel, kh=kh, kw=kw, oh=oh, ow=ow, lrelu=lrelu,
        has_post=post is not None, has_skip=skip is not None)

    return pl.pallas_call(
        kernel,
        out_shape=jax.ShapeDtypeStruct((B, out_h, out_w, cout), out_dtype),
        grid=(B,),
        in_specs=in_specs,
        out_specs=pl.BlockSpec((None, out_h, out_w, cout),
                               lambda b: (b, 0, 0, 0)),
        compiler_params=pltpu.CompilerParams(
            dimension_semantics=("parallel",),
            vmem_limit_bytes=32 * 1024 * 1024,
        ),
    )(*args)


# ----------------------------------------------------------------------------
# Parameter construction / packing (plain-JAX glue, runs once)
# ----------------------------------------------------------------------------
def _bilinear_matrix(out_size, in_size):
    """PyTorch F.interpolate(mode='bilinear', align_corners=False) as a matrix."""
    i = jnp.arange(out_size, dtype=jnp.float32)
    src = jnp.maximum((i + 0.5) * (in_size / out_size) - 0.5, 0.0)
    i0 = jnp.clip(jnp.floor(src).astype(jnp.int32), 0, in_size - 1)
    i1 = jnp.minimum(i0 + 1, in_size - 1)
    lam = src - i0.astype(jnp.float32)
    rows = jnp.arange(out_size)
    m = jnp.zeros((out_size, in_size), jnp.float32)
    m = m.at[rows, i0].add(1.0 - lam)
    m = m.at[rows, i1].add(lam)
    return m


def _spectral_normalize(key, w, eps=1e-12):
    """One power iteration (PyTorch spectral_norm training-forward default)."""
    wmat = w.reshape(w.shape[0], -1)
    u = jax.random.normal(key, (wmat.shape[0],), jnp.float32)
    u = u / (jnp.linalg.norm(u) + eps)
    v = wmat.T @ u
    v = v / (jnp.linalg.norm(v) + eps)
    u = wmat @ v
    u = u / (jnp.linalg.norm(u) + eps)
    sigma = jnp.dot(u, wmat @ v)
    return w / sigma


def _pack_conv3x3(w, cp):
    cout, cin, kh, kw = w.shape
    wk = jnp.transpose(w, (2, 3, 1, 0)).reshape(kh * kw, cin, cout)
    out = jnp.zeros((kh * kw, cp, cp), jnp.float32)
    out = out.at[:, :cin, :cout].set(wk)
    return out.astype(jnp.bfloat16)


def _pack_conv4x4_s2d(w, cp):
    """4x4 stride-2 conv -> 2x2 stride-1 conv over a 4-phase space-to-depth input."""
    cout, cin, kh, kw = w.shape
    assert kh == 4 and kw == 4
    out = jnp.zeros((4, 4 * cp, cp), jnp.float32)
    for j in range(2):
        for i in range(2):
            tap = j * 2 + i
            for py in range(2):
                for px in range(2):
                    p = py * 2 + px
                    blk = jnp.transpose(w[:, :, 2 * j + py, 2 * i + px])
                    out = out.at[tap, p * cp:p * cp + cin, :cout].set(blk)
    return out.astype(jnp.bfloat16)


def _pack_bias(b, cp):
    out = jnp.zeros((1, cp), jnp.float32)
    if b is not None:
        out = out.at[0, :b.shape[0]].set(b)
    return out


def init_raw_params(key, num_in_ch, num_feat):
    nf = num_feat
    ks = jax.random.split(key, 10)

    def conv_w(k, cout, cin, kh, kw):
        return (jax.random.normal(k, (cout, cin, kh, kw), jnp.float32)
                / jnp.sqrt(cin * kh * kw))

    return {
        "w0": conv_w(ks[0], nf, num_in_ch, 3, 3),
        "b0": jax.random.normal(ks[1], (nf,), jnp.float32) * 0.01,
        "w1": _spectral_normalize(ks[5], conv_w(ks[2], nf * 2, nf, 4, 4)),
        "w2": _spectral_normalize(ks[6], conv_w(ks[3], nf, nf * 2, 3, 3)),
        "w3": _spectral_normalize(ks[7], conv_w(ks[4], nf, nf, 3, 3)),
        "w4": conv_w(ks[8], 1, nf, 3, 3),
        "b4": jax.random.normal(ks[9], (1,), jnp.float32) * 0.01,
    }


def pack_params(raw, num_in_ch, num_feat, H, W):
    cp = _round_up(max(num_in_ch, num_feat * 2, 1), LANE)
    up = jnp.kron(_bilinear_matrix(H, H // 2),
                  _bilinear_matrix(W, W // 2)).astype(jnp.bfloat16)
    return {
        "w0": _pack_conv3x3(raw["w0"], cp), "b0": _pack_bias(raw["b0"], cp),
        "w1": _pack_conv4x4_s2d(raw["w1"], cp), "b1": _pack_bias(None, cp),
        "w2": _pack_conv3x3(raw["w2"], cp), "b2": _pack_bias(None, cp),
        "w3": _pack_conv3x3(raw["w3"], cp), "b3": _pack_bias(None, cp),
        "w4": _pack_conv3x3(raw["w4"], cp), "b4": _pack_bias(raw["b4"], cp),
        "up": up,
    }


# ----------------------------------------------------------------------------
# Forward pass (5 pallas_calls, one per conv layer)
# ----------------------------------------------------------------------------
def unet_disc_forward(packed, x_nchw):
    B, cin, H, W = x_nchw.shape
    cp = packed["w0"].shape[1]

    def spad(t):  # 1-px spatial halo
        return jnp.pad(t, ((0, 0), (1, 1), (1, 1), (0, 0)))

    x = jnp.transpose(x_nchw, (0, 2, 3, 1)).astype(jnp.float32)
    x = jnp.pad(x, ((0, 0), (0, 0), (0, 0), (0, cp - cin)))  # pad channels once

    # conv0 (3x3, bias) + LReLU
    x0 = pallas_conv(spad(x), packed["w0"], packed["b0"],
                     kh=3, kw=3, oh=H, ow=W, lrelu=True)

    # conv1 (SN, 4x4 stride 2, no bias) + LReLU + fused bilinear 2x upsample
    xp = spad(x0)
    phases = [xp[:, py::2, px::2, :] for py in (0, 1) for px in (0, 1)]
    x_s2d = jnp.concatenate(phases, axis=-1)  # (B, H/2+1, W/2+1, 4*cp)
    x1u = pallas_conv(x_s2d, packed["w1"], packed["b1"],
                      kh=2, kw=2, oh=H // 2, ow=W // 2, lrelu=True,
                      post=packed["up"], out_hw=(H, W))

    # conv2 (SN, 3x3, no bias) + LReLU + fused skip(x0)
    x2 = pallas_conv(spad(x1u), packed["w2"], packed["b2"],
                     kh=3, kw=3, oh=H, ow=W, lrelu=True, skip=x0)

    # conv3 (SN, 3x3, no bias) + LReLU
    x3 = pallas_conv(spad(x2), packed["w3"], packed["b3"],
                     kh=3, kw=3, oh=H, ow=W, lrelu=True)

    # conv4 (3x3, bias), no activation
    y = pallas_conv(spad(x3), packed["w4"], packed["b4"],
                    kh=3, kw=3, oh=H, ow=W, lrelu=False)

    return jnp.transpose(y[..., :1], (0, 3, 1, 2))  # (B, 1, H, W)


# ----------------------------------------------------------------------------
# Pure-JAX reference (f32) for a sanity check
# ----------------------------------------------------------------------------
def reference_forward(raw, x_nchw):
    H, W = x_nchw.shape[2], x_nchw.shape[3]
    hp = jax.lax.Precision.HIGHEST
    dn = ("NCHW", "OIHW", "NCHW")

    def conv(t, w, b=None, stride=1):
        y = jax.lax.conv_general_dilated(
            t, w, (stride, stride), ((1, 1), (1, 1)),
            dimension_numbers=dn, precision=hp)
        if b is not None:
            y = y + b[None, :, None, None]
        return y

    def lrelu(t):
        return jnp.where(t >= 0, t, t * NEG_SLOPE)

    x0 = lrelu(conv(x_nchw, raw["w0"], raw["b0"]))
    x1 = lrelu(conv(x0, raw["w1"], stride=2))
    ah = _bilinear_matrix(H, H // 2)
    aw = _bilinear_matrix(W, W // 2)
    x1 = jnp.einsum("ih,jw,bchw->bcij", ah, aw, x1, precision=hp)
    x2 = lrelu(conv(x1, raw["w2"])) + x0
    x3 = lrelu(conv(x2, raw["w3"]))
    return conv(x3, raw["w4"], raw["b4"])


# ----------------------------------------------------------------------------
if __name__ == "__main__":
    num_in_ch, num_feat = 3, 32
    B, H, W = 2, 16, 16

    key = jax.random.PRNGKey(0)
    kx, kp = jax.random.split(key)
    x = jax.random.normal(kx, (B, num_in_ch, H, W), jnp.float32)

    raw = init_raw_params(kp, num_in_ch, num_feat)
    packed = pack_params(raw, num_in_ch, num_feat, H, W)

    fwd = jax.jit(unet_disc_forward)
    out = fwd(packed, x)
    jax.block_until_ready(out)

    assert out.shape == (B, 1, H, W)
    assert bool(jnp.all(jnp.isfinite(out)))

    # Loose check vs f32 reference (Pallas path uses bf16 MXU operands).
    ref = reference_forward(raw, x)
    err = float(jnp.max(jnp.abs(out - ref)))
    scale = float(jnp.max(jnp.abs(ref)))
    assert err <= 0.05 * scale + 0.02, f"kernel/reference mismatch: {err} vs {scale}"

    print("KERNEL_OK")
</pallas_src>

<mosaic_0001>
module attributes {stable_mosaic.version = 11 : i64} {
  func.func @_conv_kernel(%arg0: i32, %arg1: memref<1x18x18x128xf32, #tpu.memory_space<vmem>>, %arg2: memref<9x128x128xbf16, #tpu.memory_space<vmem>>, %arg3: memref<1x128xf32, #tpu.memory_space<vmem>>, %arg4: memref<1x16x16x128xf32, #tpu.memory_space<vmem>>) attributes {dimension_semantics = [#tpu.dimension_semantics<parallel>], iteration_bounds = array<i64: 2>, scalar_prefetch = 0 : i64, scratch_operands = 0 : i64, tpu.core_type = #tpu.core_type<tc>, window_params = [{transform_indices = @transform_0, window_bounds = array<i64: 1, 18, 18, 128>}, {pipeline_mode = #tpu.pipeline_mode<synchronous>, transform_indices = @transform_1, window_bounds = array<i64: 9, 128, 128>}, {pipeline_mode = #tpu.pipeline_mode<synchronous>, transform_indices = @transform_2, window_bounds = array<i64: 1, 128>}, {transform_indices = @transform_3, window_bounds = array<i64: 1, 16, 16, 128>}]} {
    %c0 = arith.constant 0 : index
    %c0_0 = arith.constant 0 : index
    %c0_1 = arith.constant 0 : index
    %c0_2 = arith.constant 0 : index
    %0 = vector.load %arg1[%c0, %c0_0, %c0_1, %c0_2] : memref<1x18x18x128xf32, #tpu.memory_space<vmem>>, vector<1x16x16x128xf32>
    %1 = vector.shape_cast %0 : vector<1x16x16x128xf32> to vector<16x16x128xf32>
    %2 = vector.shape_cast %1 : vector<16x16x128xf32> to vector<256x128xf32>
    %3 = arith.truncf %2 : vector<256x128xf32> to vector<256x128xbf16>
    %c0_3 = arith.constant 0 : index
    %c0_4 = arith.constant 0 : index
    %c0_5 = arith.constant 0 : index
    %4 = vector.load %arg2[%c0_3, %c0_4, %c0_5] : memref<9x128x128xbf16, #tpu.memory_space<vmem>>, vector<1x128x128xbf16>
    %5 = vector.shape_cast %4 : vector<1x128x128xbf16> to vector<128x128xbf16>
    %cst = arith.constant dense<0.000000e+00> : vector<256x128xf32>
    %6 = tpu.matmul %3, %5, %cst {dimension_numbers = #tpu.dot_dimension_numbers<[1], [0], [0], [1], [0, 0, 1, 1], [], []>} : vector<256x128xbf16>, vector<128x128xbf16>, vector<256x128xf32> -> vector<256x128xf32>
    %c0_6 = arith.constant 0 : index
    %c0_7 = arith.constant 0 : index
    %c1 = arith.constant 1 : index
    %c0_8 = arith.constant 0 : index
    %7 = vector.load %arg1[%c0_6, %c0_7, %c1, %c0_8] : memref<1x18x18x128xf32, #tpu.memory_space<vmem>>, vector<1x16x16x128xf32>
    %8 = vector.shape_cast %7 : vector<1x16x16x128xf32> to vector<16x16x128xf32>
    %9 = vector.shape_cast %8 : vector<16x16x128xf32> to vector<256x128xf32>
    %10 = arith.truncf %9 : vector<256x128xf32> to vector<256x128xbf16>
    %c1_9 = arith.constant 1 : index
    %c0_10 = arith.constant 0 : index
    %c0_11 = arith.constant 0 : index
    %11 = vector.load %arg2[%c1_9, %c0_10, %c0_11] : memref<9x128x128xbf16, #tpu.memory_space<vmem>>, vector<1x128x128xbf16>
    %12 = vector.shape_cast %11 : vector<1x128x128xbf16> to vector<128x128xbf16>
    %cst_12 = arith.constant dense<0.000000e+00> : vector<256x128xf32>
    %13 = tpu.matmul %10, %12, %cst_12 {dimension_numbers = #tpu.dot_dimension_numbers<[1], [0], [0], [1], [0, 0, 1, 1], [], []>} : vector<256x128xbf16>, vector<128x128xbf16>, vector<256x128xf32> -> vector<256x128xf32>
    %14 = arith.addf %6, %13 : vector<256x128xf32>
    %c0_13 = arith.constant 0 : index
    %c0_14 = arith.constant 0 : index
    %c2 = arith.constant 2 : index
    %c0_15 = arith.constant 0 : index
    %15 = vector.load %arg1[%c0_13, %c0_14, %c2, %c0_15] : memref<1x18x18x128xf32, #tpu.memory_space<vmem>>, vector<1x16x16x128xf32>
    %16 = vector.shape_cast %15 : vector<1x16x16x128xf32> to vector<16x16x128xf32>
    %17 = vector.shape_cast %16 : vector<16x16x128xf32> to vector<256x128xf32>
    %18 = arith.truncf %17 : vector<256x128xf32> to vector<256x128xbf16>
    %c2_16 = arith.constant 2 : index
    %c0_17 = arith.constant 0 : index
    %c0_18 = arith.constant 0 : index
    %19 = vector.load %arg2[%c2_16, %c0_17, %c0_18] : memref<9x128x128xbf16, #tpu.memory_space<vmem>>, vector<1x128x128xbf16>
    %20 = vector.shape_cast %19 : vector<1x128x128xbf16> to vector<128x128xbf16>
    %cst_19 = arith.constant dense<0.000000e+00> : vector<256x128xf32>
    %21 = tpu.matmul %18, %20, %cst_19 {dimension_numbers = #tpu.dot_dimension_numbers<[1], [0], [0], [1], [0, 0, 1, 1], [], []>} : vector<256x128xbf16>, vector<128x128xbf16>, vector<256x128xf32> -> vector<256x128xf32>
    %22 = arith.addf %14, %21 : vector<256x128xf32>
    %c0_20 = arith.constant 0 : index
    %c1_21 = arith.constant 1 : index
    %c0_22 = arith.constant 0 : index
    %c0_23 = arith.constant 0 : index
    %23 = vector.load %arg1[%c0_20, %c1_21, %c0_22, %c0_23] : memref<1x18x18x128xf32, #tpu.memory_space<vmem>>, vector<1x16x16x128xf32>
    %24 = vector.shape_cast %23 : vector<1x16x16x128xf32> to vector<16x16x128xf32>
    %25 = vector.shape_cast %24 : vector<16x16x128xf32> to vector<256x128xf32>
    %26 = arith.truncf %25 : vector<256x128xf32> to vector<256x128xbf16>
    %c3 = arith.constant 3 : index
    %c0_24 = arith.constant 0 : index
    %c0_25 = arith.constant 0 : index
    %27 = vector.load %arg2[%c3, %c0_24, %c0_25] : memref<9x128x128xbf16, #tpu.memory_space<vmem>>, vector<1x128x128xbf16>
    %28 = vector.shape_cast %27 : vector<1x128x128xbf16> to vector<128x128xbf16>
    %cst_26 = arith.constant dense<0.000000e+00> : vector<256x128xf32>
    %29 = tpu.matmul %26, %28, %cst_26 {dimension_numbers = #tpu.dot_dimension_numbers<[1], [0], [0], [1], [0, 0, 1, 1], [], []>} : vector<256x128xbf16>, vector<128x128xbf16>, vector<256x128xf32> -> vector<256x128xf32>
    %30 = arith.addf %22, %29 : vector<256x128xf32>
    %c0_27 = arith.constant 0 : index
    %c1_28 = arith.constant 1 : index
    %c1_29 = arith.constant 1 : index
    %c0_30 = arith.constant 0 : index
    %31 = vector.load %arg1[%c0_27, %c1_28, %c1_29, %c0_30] : memref<1x18x18x128xf32, #tpu.memory_space<vmem>>, vector<1x16x16x128xf32>
    %32 = vector.shape_cast %31 : vector<1x16x16x128xf32> to vector<16x16x128xf32>
    %33 = vector.shape_cast %32 : vector<16x16x128xf32> to vector<256x128xf32>
    %34 = arith.truncf %33 : vector<256x128xf32> to vector<256x128xbf16>
    %c4 = arith.constant 4 : index
    %c0_31 = arith.constant 0 : index
    %c0_32 = arith.constant 0 : index
    %35 = vector.load %arg2[%c4, %c0_31, %c0_32] : memref<9x128x128xbf16, #tpu.memory_space<vmem>>, vector<1x128x128xbf16>
    %36 = vector.shape_cast %35 : vector<1x128x128xbf16> to vector<128x128xbf16>
    %cst_33 = arith.constant dense<0.000000e+00> : vector<256x128xf32>
    %37 = tpu.matmul %34, %36, %cst_33 {dimension_numbers = #tpu.dot_dimension_numbers<[1], [0], [0], [1], [0, 0, 1, 1], [], []>} : vector<256x128xbf16>, vector<128x128xbf16>, vector<256x128xf32> -> vector<256x128xf32>
    %38 = arith.addf %30, %37 : vector<256x128xf32>
    %c0_34 = arith.constant 0 : index
    %c1_35 = arith.constant 1 : index
    %c2_36 = arith.constant 2 : index
    %c0_37 = arith.constant 0 : index
    %39 = vector.load %arg1[%c0_34, %c1_35, %c2_36, %c0_37] : memref<1x18x18x128xf32, #tpu.memory_space<vmem>>, vector<1x16x16x128xf32>
    %40 = vector.shape_cast %39 : vector<1x16x16x128xf32> to vector<16x16x128xf32>
    %41 = vector.shape_cast %40 : vector<16x16x128xf32> to vector<256x128xf32>
    %42 = arith.truncf %41 : vector<256x128xf32> to vector<256x128xbf16>
    %c5 = arith.constant 5 : index
    %c0_38 = arith.constant 0 : index
    %c0_39 = arith.constant 0 : index
    %43 = vector.load %arg2[%c5, %c0_38, %c0_39] : memref<9x128x128xbf16, #tpu.memory_space<vmem>>, vector<1x128x128xbf16>
    %44 = vector.shape_cast %43 : vector<1x128x128xbf16> to vector<128x128xbf16>
    %cst_40 = arith.constant dense<0.000000e+00> : vector<256x128xf32>
    %45 = tpu.matmul %42, %44, %cst_40 {dimension_numbers = #tpu.dot_dimension_numbers<[1], [0], [0], [1], [0, 0, 1, 1], [], []>} : vector<256x128xbf16>, vector<128x128xbf16>, vector<256x128xf32> -> vector<256x128xf32>
    %46 = arith.addf %38, %45 : vector<256x128xf32>
    %c0_41 = arith.constant 0 : index
    %c2_42 = arith.constant 2 : index
    %c0_43 = arith.constant 0 : index
    %c0_44 = arith.constant 0 : index
    %47 = vector.load %arg1[%c0_41, %c2_42, %c0_43, %c0_44] : memref<1x18x18x128xf32, #tpu.memory_space<vmem>>, vector<1x16x16x128xf32>
    %48 = vector.shape_cast %47 : vector<1x16x16x128xf32> to vector<16x16x128xf32>
    %49 = vector.shape_cast %48 : vector<16x16x128xf32> to vector<256x128xf32>
    %50 = arith.truncf %49 : vector<256x128xf32> to vector<256x128xbf16>
    %c6 = arith.constant 6 : index
    %c0_45 = arith.constant 0 : index
    %c0_46 = arith.constant 0 : index
    %51 = vector.load %arg2[%c6, %c0_45, %c0_46] : memref<9x128x128xbf16, #tpu.memory_space<vmem>>, vector<1x128x128xbf16>
    %52 = vector.shape_cast %51 : vector<1x128x128xbf16> to vector<128x128xbf16>
    %cst_47 = arith.constant dense<0.000000e+00> : vector<256x128xf32>
    %53 = tpu.matmul %50, %52, %cst_47 {dimension_numbers = #tpu.dot_dimension_numbers<[1], [0], [0], [1], [0, 0, 1, 1], [], []>} : vector<256x128xbf16>, vector<128x128xbf16>, vector<256x128xf32> -> vector<256x128xf32>
    %54 = arith.addf %46, %53 : vector<256x128xf32>
    %c0_48 = arith.constant 0 : index
    %c2_49 = arith.constant 2 : index
    %c1_50 = arith.constant 1 : index
    %c0_51 = arith.constant 0 : index
    %55 = vector.load %arg1[%c0_48, %c2_49, %c1_50, %c0_51] : memref<1x18x18x128xf32, #tpu.memory_space<vmem>>, vector<1x16x16x128xf32>
    %56 = vector.shape_cast %55 : vector<1x16x16x128xf32> to vector<16x16x128xf32>
    %57 = vector.shape_cast %56 : vector<16x16x128xf32> to vector<256x128xf32>
    %58 = arith.truncf %57 : vector<256x128xf32> to vector<256x128xbf16>
    %c7 = arith.constant 7 : index
    %c0_52 = arith.constant 0 : index
    %c0_53 = arith.constant 0 : index
    %59 = vector.load %arg2[%c7, %c0_52, %c0_53] : memref<9x128x128xbf16, #tpu.memory_space<vmem>>, vector<1x128x128xbf16>
    %60 = vector.shape_cast %59 : vector<1x128x128xbf16> to vector<128x128xbf16>
    %cst_54 = arith.constant dense<0.000000e+00> : vector<256x128xf32>
    %61 = tpu.matmul %58, %60, %cst_54 {dimension_numbers = #tpu.dot_dimension_numbers<[1], [0], [0], [1], [0, 0, 1, 1], [], []>} : vector<256x128xbf16>, vector<128x128xbf16>, vector<256x128xf32> -> vector<256x128xf32>
    %62 = arith.addf %54, %61 : vector<256x128xf32>
    %c0_55 = arith.constant 0 : index
    %c2_56 = arith.constant 2 : index
    %c2_57 = arith.constant 2 : index
    %c0_58 = arith.constant 0 : index
    %63 = vector.load %arg1[%c0_55, %c2_56, %c2_57, %c0_58] : memref<1x18x18x128xf32, #tpu.memory_space<vmem>>, vector<1x16x16x128xf32>
    %64 = vector.shape_cast %63 : vector<1x16x16x128xf32> to vector<16x16x128xf32>
    %65 = vector.shape_cast %64 : vector<16x16x128xf32> to vector<256x128xf32>
    %66 = arith.truncf %65 : vector<256x128xf32> to vector<256x128xbf16>
    %c8 = arith.constant 8 : index
    %c0_59 = arith.constant 0 : index
    %c0_60 = arith.constant 0 : index
    %67 = vector.load %arg2[%c8, %c0_59, %c0_60] : memref<9x128x128xbf16, #tpu.memory_space<vmem>>, vector<1x128x128xbf16>
    %68 = vector.shape_cast %67 : vector<1x128x128xbf16> to vector<128x128xbf16>
    %cst_61 = arith.constant dense<0.000000e+00> : vector<256x128xf32>
    %69 = tpu.matmul %66, %68, %cst_61 {dimension_numbers = #tpu.dot_dimension_numbers<[1], [0], [0], [1], [0, 0, 1, 1], [], []>} : vector<256x128xbf16>, vector<128x128xbf16>, vector<256x128xf32> -> vector<256x128xf32>
    %70 = arith.addf %62, %69 : vector<256x128xf32>
    %c0_62 = arith.constant 0 : index
    %c0_63 = arith.constant 0 : index
    %71 = vector.load %arg3[%c0_62, %c0_63] : memref<1x128xf32, #tpu.memory_space<vmem>>, vector<1x128xf32>
    %72 = vector.broadcast %71 : vector<1x128xf32> to vector<256x128xf32>
    %73 = arith.addf %70, %72 : vector<256x128xf32>
    %cst_64 = arith.constant 0.000000e+00 : f32
    %74 = vector.broadcast %cst_64 : f32 to vector<256x128xf32>
    %75 = arith.cmpf oge, %73, %74 : vector<256x128xf32>
    %cst_65 = arith.constant 2.000000e-01 : f32
    %76 = vector.broadcast %cst_65 : f32 to vector<256x128xf32>
    %77 = arith.mulf %73, %76 : vector<256x128xf32>
    %78 = arith.select %75, %73, %77 : vector<256x128xi1>, vector<256x128xf32>
    %79 = vector.shape_cast %78 : vector<256x128xf32> to vector<16x16x128xf32>
    %c0_66 = arith.constant 0 : index
    %c0_67 = arith.constant 0 : index
    %c0_68 = arith.constant 0 : index
    %c0_69 = arith.constant 0 : index
    %80 = vector.load %arg4[%c0_66, %c0_67, %c0_68, %c0_69] : memref<1x16x16x128xf32, #tpu.memory_space<vmem>>, vector<1x16x16x128xf32>
    %81 = vector.shape_cast %80 : vector<1x16x16x128xf32> to vector<16x16x128xf32>
    %82 = vector.shape_cast %79 : vector<16x16x128xf32> to vector<1x16x16x128xf32>
    tpu.vector_store %arg4[%c0_66, %c0_67, %c0_68, %c0_69], %82 {strides = array<i32>} : memref<1x16x16x128xf32, #tpu.memory_space<vmem>>, vector<1x16x16x128xf32>,
    return
  }
  func.func @transform_0(%arg0: i32) -> (i32, i32, i32, i32) {
    %c0_i32 = arith.constant 0 : i32
    %c0_i32_0 = arith.constant 0 : i32
    %c0_i32_1 = arith.constant 0 : i32
    %c0_i32_2 = arith.constant 0 : i32
    return %arg0, %c0_i32, %c0_i32_0, %c0_i32_1 : i32, i32, i32, i32
  }
  func.func @transform_1(%arg0: i32) -> (i32, i32, i32) {
    %c0_i32 = arith.constant 0 : i32
    %c0_i32_0 = arith.constant 0 : i32
    %c0_i32_1 = arith.constant 0 : i32
    %c0_i32_2 = arith.constant 0 : i32
    return %c0_i32, %c0_i32_0, %c0_i32_1 : i32, i32, i32
  }
  func.func @transform_2(%arg0: i32) -> (i32, i32) {
    %c0_i32 = arith.constant 0 : i32
    %c0_i32_0 = arith.constant 0 : i32
    %c0_i32_1 = arith.constant 0 : i32
    return %c0_i32, %c0_i32_0 : i32, i32
  }
  func.func @transform_3(%arg0: i32) -> (i32, i32, i32, i32) {
    %c0_i32 = arith.constant 0 : i32
    %c0_i32_0 = arith.constant 0 : i32
    %c0_i32_1 = arith.constant 0 : i32
    %c0_i32_2 = arith.constant 0 : i32
    return %arg0, %c0_i32, %c0_i32_0, %c0_i32_1 : i32, i32, i32, i32
  }
}

module attributes {stable_mosaic.version = 11 : i64} {
  func.func @_conv_kernel(%arg0: i32, %arg1: memref<1x18x18x128xf32, #tpu.memory_space<vmem>>, %arg2: memref<9x128x128xbf16, #tpu.memory_space<vmem>>, %arg3: memref<1x128xf32, #tpu.memory_space<vmem>>, %arg4: memref<1x16x16x128xf32, #tpu.memory_space<vmem>>, %arg5: memref<1x16x16x128xf32, #tpu.memory_space<vmem>>) attributes {dimension_semantics = [#tpu.dimension_semantics<parallel>], iteration_bounds = array<i64: 2>, scalar_prefetch = 0 : i64, scratch_operands = 0 : i64, tpu.core_type = #tpu.core_type<tc>, window_params = [{transform_indices = @transform_0, window_bounds = array<i64: 1, 18, 18, 128>}, {pipeline_mode = #tpu.pipeline_mode<synchronous>, transform_indices = @transform_1, window_bounds = array<i64: 9, 128, 128>}, {pipeline_mode = #tpu.pipeline_mode<synchronous>, transform_indices = @transform_2, window_bounds = array<i64: 1, 128>}, {transform_indices = @transform_3, window_bounds = array<i64: 1, 16, 16, 128>}, {transform_indices = @transform_4, window_bounds = array<i64: 1, 16, 16, 128>}]} {
    %c0 = arith.constant 0 : index
    %c0_0 = arith.constant 0 : index
    %c0_1 = arith.constant 0 : index
    %c0_2 = arith.constant 0 : index
    %0 = vector.load %arg1[%c0, %c0_0, %c0_1, %c0_2] : memref<1x18x18x128xf32, #tpu.memory_space<vmem>>, vector<1x16x16x128xf32>
    %1 = vector.shape_cast %0 : vector<1x16x16x128xf32> to vector<16x16x128xf32>
    %2 = vector.shape_cast %1 : vector<16x16x128xf32> to vector<256x128xf32>
    %3 = arith.truncf %2 : vector<256x128xf32> to vector<256x128xbf16>
    %c0_3 = arith.constant 0 : index
    %c0_4 = arith.constant 0 : index
    %c0_5 = arith.constant 0 : index
    %4 = vector.load %arg2[%c0_3, %c0_4, %c0_5] : memref<9x128x128xbf16, #tpu.memory_space<vmem>>, vector<1x128x128xbf16>
    %5 = vector.shape_cast %4 : vector<1x128x128xbf16> to vector<128x128xbf16>
    %cst = arith.constant dense<0.000000e+00> : vector<256x128xf32>
    %6 = tpu.matmul %3, %5, %cst {dimension_numbers = #tpu.dot_dimension_numbers<[1], [0], [0], [1], [0, 0, 1, 1], [], []>} : vector<256x128xbf16>, vector<128x128xbf16>, vector<256x128xf32> -> vector<256x128xf32>
    %c0_6 = arith.constant 0 : index
    %c0_7 = arith.constant 0 : index
    %c1 = arith.constant 1 : index
    %c0_8 = arith.constant 0 : index
    %7 = vector.load %arg1[%c0_6, %c0_7, %c1, %c0_8] : memref<1x18x18x128xf32, #tpu.memory_space<vmem>>, vector<1x16x16x128xf32>
    %8 = vector.shape_cast %7 : vector<1x16x16x128xf32> to vector<16x16x128xf32>
    %9 = vector.shape_cast %8 : vector<16x16x128xf32> to vector<256x128xf32>
    %10 = arith.truncf %9 : vector<256x128xf32> to vector<256x128xbf16>
    %c1_9 = arith.constant 1 : index
    %c0_10 = arith.constant 0 : index
    %c0_11 = arith.constant 0 : index
    %11 = vector.load %arg2[%c1_9, %c0_10, %c0_11] : memref<9x128x128xbf16, #tpu.memory_space<vmem>>, vector<1x128x128xbf16>
    %12 = vector.shape_cast %11 : vector<1x128x128xbf16> to vector<128x128xbf16>
    %cst_12 = arith.constant dense<0.000000e+00> : vector<256x128xf32>
    %13 = tpu.matmul %10, %12, %cst_12 {dimension_numbers = #tpu.dot_dimension_numbers<[1], [0], [0], [1], [0, 0, 1, 1], [], []>} : vector<256x128xbf16>, vector<128x128xbf16>, vector<256x128xf32> -> vector<256x128xf32>
    %14 = arith.addf %6, %13 : vector<256x128xf32>
    %c0_13 = arith.constant 0 : index
    %c0_14 = arith.constant 0 : index
    %c2 = arith.constant 2 : index
    %c0_15 = arith.constant 0 : index
    %15 = vector.load %arg1[%c0_13, %c0_14, %c2, %c0_15] : memref<1x18x18x128xf32, #tpu.memory_space<vmem>>, vector<1x16x16x128xf32>
    %16 = vector.shape_cast %15 : vector<1x16x16x128xf32> to vector<16x16x128xf32>
    %17 = vector.shape_cast %16 : vector<16x16x128xf32> to vector<256x128xf32>
    %18 = arith.truncf %17 : vector<256x128xf32> to vector<256x128xbf16>
    %c2_16 = arith.constant 2 : index
    %c0_17 = arith.constant 0 : index
    %c0_18 = arith.constant 0 : index
    %19 = vector.load %arg2[%c2_16, %c0_17, %c0_18] : memref<9x128x128xbf16, #tpu.memory_space<vmem>>, vector<1x128x128xbf16>
    %20 = vector.shape_cast %19 : vector<1x128x128xbf16> to vector<128x128xbf16>
    %cst_19 = arith.constant dense<0.000000e+00> : vector<256x128xf32>
    %21 = tpu.matmul %18, %20, %cst_19 {dimension_numbers = #tpu.dot_dimension_numbers<[1], [0], [0], [1], [0, 0, 1, 1], [], []>} : vector<256x128xbf16>, vector<128x128xbf16>, vector<256x128xf32> -> vector<256x128xf32>
    %22 = arith.addf %14, %21 : vector<256x128xf32>
    %c0_20 = arith.constant 0 : index
    %c1_21 = arith.constant 1 : index
    %c0_22 = arith.constant 0 : index
    %c0_23 = arith.constant 0 : index
    %23 = vector.load %arg1[%c0_20, %c1_21, %c0_22, %c0_23] : memref<1x18x18x128xf32, #tpu.memory_space<vmem>>, vector<1x16x16x128xf32>
    %24 = vector.shape_cast %23 : vector<1x16x16x128xf32> to vector<16x16x128xf32>
    %25 = vector.shape_cast %24 : vector<16x16x128xf32> to vector<256x128xf32>
    %26 = arith.truncf %25 : vector<256x128xf32> to vector<256x128xbf16>
    %c3 = arith.constant 3 : index
    %c0_24 = arith.constant 0 : index
    %c0_25 = arith.constant 0 : index
    %27 = vector.load %arg2[%c3, %c0_24, %c0_25] : memref<9x128x128xbf16, #tpu.memory_space<vmem>>, vector<1x128x128xbf16>
    %28 = vector.shape_cast %27 : vector<1x128x128xbf16> to vector<128x128xbf16>
    %cst_26 = arith.constant dense<0.000000e+00> : vector<256x128xf32>
    %29 = tpu.matmul %26, %28, %cst_26 {dimension_numbers = #tpu.dot_dimension_numbers<[1], [0], [0], [1], [0, 0, 1, 1], [], []>} : vector<256x128xbf16>, vector<128x128xbf16>, vector<256x128xf32> -> vector<256x128xf32>
    %30 = arith.addf %22, %29 : vector<256x128xf32>
    %c0_27 = arith.constant 0 : index
    %c1_28 = arith.constant 1 : index
    %c1_29 = arith.constant 1 : index
    %c0_30 = arith.constant 0 : index
    %31 = vector.load %arg1[%c0_27, %c1_28, %c1_29, %c0_30] : memref<1x18x18x128xf32, #tpu.memory_space<vmem>>, vector<1x16x16x128xf32>
    %32 = vector.shape_cast %31 : vector<1x16x16x128xf32> to vector<16x16x128xf32>
    %33 = vector.shape_cast %32 : vector<16x16x128xf32> to vector<256x128xf32>
    %34 = arith.truncf %33 : vector<256x128xf32> to vector<256x128xbf16>
    %c4 = arith.constant 4 : index
    %c0_31 = arith.constant 0 : index
    %c0_32 = arith.constant 0 : index
    %35 = vector.load %arg2[%c4, %c0_31, %c0_32] : memref<9x128x128xbf16, #tpu.memory_space<vmem>>, vector<1x128x128xbf16>
    %36 = vector.shape_cast %35 : vector<1x128x128xbf16> to vector<128x128xbf16>
    %cst_33 = arith.constant dense<0.000000e+00> : vector<256x128xf32>
    %37 = tpu.matmul %34, %36, %cst_33 {dimension_numbers = #tpu.dot_dimension_numbers<[1], [0], [0], [1], [0, 0, 1, 1], [], []>} : vector<256x128xbf16>, vector<128x128xbf16>, vector<256x128xf32> -> vector<256x128xf32>
    %38 = arith.addf %30, %37 : vector<256x128xf32>
    %c0_34 = arith.constant 0 : index
    %c1_35 = arith.constant 1 : index
    %c2_36 = arith.constant 2 : index
    %c0_37 = arith.constant 0 : index
    %39 = vector.load %arg1[%c0_34, %c1_35, %c2_36, %c0_37] : memref<1x18x18x128xf32, #tpu.memory_space<vmem>>, vector<1x16x16x128xf32>
    %40 = vector.shape_cast %39 : vector<1x16x16x128xf32> to vector<16x16x128xf32>
    %41 = vector.shape_cast %40 : vector<16x16x128xf32> to vector<256x128xf32>
    %42 = arith.truncf %41 : vector<256x128xf32> to vector<256x128xbf16>
    %c5 = arith.constant 5 : index
    %c0_38 = arith.constant 0 : index
    %c0_39 = arith.constant 0 : index
    %43 = vector.load %arg2[%c5, %c0_38, %c0_39] : memref<9x128x128xbf16, #tpu.memory_space<vmem>>, vector<1x128x128xbf16>
    %44 = vector.shape_cast %43 : vector<1x128x128xbf16> to vector<128x128xbf16>
    %cst_40 = arith.constant dense<0.000000e+00> : vector<256x128xf32>
    %45 = tpu.matmul %42, %44, %cst_40 {dimension_numbers = #tpu.dot_dimension_numbers<[1], [0], [0], [1], [0, 0, 1, 1], [], []>} : vector<256x128xbf16>, vector<128x128xbf16>, vector<256x128xf32> -> vector<256x128xf32>
    %46 = arith.addf %38, %45 : vector<256x128xf32>
    %c0_41 = arith.constant 0 : index
    %c2_42 = arith.constant 2 : index
    %c0_43 = arith.constant 0 : index
    %c0_44 = arith.constant 0 : index
    %47 = vector.load %arg1[%c0_41, %c2_42, %c0_43, %c0_44] : memref<1x18x18x128xf32, #tpu.memory_space<vmem>>, vector<1x16x16x128xf32>
    %48 = vector.shape_cast %47 : vector<1x16x16x128xf32> to vector<16x16x128xf32>
    %49 = vector.shape_cast %48 : vector<16x16x128xf32> to vector<256x128xf32>
    %50 = arith.truncf %49 : vector<256x128xf32> to vector<256x128xbf16>
    %c6 = arith.constant 6 : index
    %c0_45 = arith.constant 0 : index
    %c0_46 = arith.constant 0 : index
    %51 = vector.load %arg2[%c6, %c0_45, %c0_46] : memref<9x128x128xbf16, #tpu.memory_space<vmem>>, vector<1x128x128xbf16>
    %52 = vector.shape_cast %51 : vector<1x128x128xbf16> to vector<128x128xbf16>
    %cst_47 = arith.constant dense<0.000000e+00> : vector<256x128xf32>
    %53 = tpu.matmul %50, %52, %cst_47 {dimension_numbers = #tpu.dot_dimension_numbers<[1], [0], [0], [1], [0, 0, 1, 1], [], []>} : vector<256x128xbf16>, vector<128x128xbf16>, vector<256x128xf32> -> vector<256x128xf32>
    %54 = arith.addf %46, %53 : vector<256x128xf32>
    %c0_48 = arith.constant 0 : index
    %c2_49 = arith.constant 2 : index
    %c1_50 = arith.constant 1 : index
    %c0_51 = arith.constant 0 : index
    %55 = vector.load %arg1[%c0_48, %c2_49, %c1_50, %c0_51] : memref<1x18x18x128xf32, #tpu.memory_space<vmem>>, vector<1x16x16x128xf32>
    %56 = vector.shape_cast %55 : vector<1x16x16x128xf32> to vector<16x16x128xf32>
    %57 = vector.shape_cast %56 : vector<16x16x128xf32> to vector<256x128xf32>
    %58 = arith.truncf %57 : vector<256x128xf32> to vector<256x128xbf16>
    %c7 = arith.constant 7 : index
    %c0_52 = arith.constant 0 : index
    %c0_53 = arith.constant 0 : index
    %59 = vector.load %arg2[%c7, %c0_52, %c0_53] : memref<9x128x128xbf16, #tpu.memory_space<vmem>>, vector<1x128x128xbf16>
    %60 = vector.shape_cast %59 : vector<1x128x128xbf16> to vector<128x128xbf16>
    %cst_54 = arith.constant dense<0.000000e+00> : vector<256x128xf32>
    %61 = tpu.matmul %58, %60, %cst_54 {dimension_numbers = #tpu.dot_dimension_numbers<[1], [0], [0], [1], [0, 0, 1, 1], [], []>} : vector<256x128xbf16>, vector<128x128xbf16>, vector<256x128xf32> -> vector<256x128xf32>
    %62 = arith.addf %54, %61 : vector<256x128xf32>
    %c0_55 = arith.constant 0 : index
    %c2_56 = arith.constant 2 : index
    %c2_57 = arith.constant 2 : index
    %c0_58 = arith.constant 0 : index
    %63 = vector.load %arg1[%c0_55, %c2_56, %c2_57, %c0_58] : memref<1x18x18x128xf32, #tpu.memory_space<vmem>>, vector<1x16x16x128xf32>
    %64 = vector.shape_cast %63 : vector<1x16x16x128xf32> to vector<16x16x128xf32>
    %65 = vector.shape_cast %64 : vector<16x16x128xf32> to vector<256x128xf32>
    %66 = arith.truncf %65 : vector<256x128xf32> to vector<256x128xbf16>
    %c8 = arith.constant 8 : index
    %c0_59 = arith.constant 0 : index
    %c0_60 = arith.constant 0 : index
    %67 = vector.load %arg2[%c8, %c0_59, %c0_60] : memref<9x128x128xbf16, #tpu.memory_space<vmem>>, vector<1x128x128xbf16>
    %68 = vector.shape_cast %67 : vector<1x128x128xbf16> to vector<128x128xbf16>
    %cst_61 = arith.constant dense<0.000000e+00> : vector<256x128xf32>
    %69 = tpu.matmul %66, %68, %cst_61 {dimension_numbers = #tpu.dot_dimension_numbers<[1], [0], [0], [1], [0, 0, 1, 1], [], []>} : vector<256x128xbf16>, vector<128x128xbf16>, vector<256x128xf32> -> vector<256x128xf32>
    %70 = arith.addf %62, %69 : vector<256x128xf32>
    %c0_62 = arith.constant 0 : index
    %c0_63 = arith.constant 0 : index
    %71 = vector.load %arg3[%c0_62, %c0_63] : memref<1x128xf32, #tpu.memory_space<vmem>>, vector<1x128xf32>
    %72 = vector.broadcast %71 : vector<1x128xf32> to vector<256x128xf32>
    %73 = arith.addf %70, %72 : vector<256x128xf32>
    %cst_64 = arith.constant 0.000000e+00 : f32
    %74 = vector.broadcast %cst_64 : f32 to vector<256x128xf32>
    %75 = arith.cmpf oge, %73, %74 : vector<256x128xf32>
    %cst_65 = arith.constant 2.000000e-01 : f32
    %76 = vector.broadcast %cst_65 : f32 to vector<256x128xf32>
    %77 = arith.mulf %73, %76 : vector<256x128xf32>
    %78 = arith.select %75, %73, %77 : vector<256x128xi1>, vector<256x128xf32>
    %c0_66 = arith.constant 0 : index
    %c0_67 = arith.constant 0 : index
    %c0_68 = arith.constant 0 : index
    %c0_69 = arith.constant 0 : index
    %79 = vector.load %arg4[%c0_66, %c0_67, %c0_68, %c0_69] : memref<1x16x16x128xf32, #tpu.memory_space<vmem>>, vector<1x16x16x128xf32>
    %80 = vector.shape_cast %79 : vector<1x16x16x128xf32> to vector<16x16x128xf32>
    %81 = vector.shape_cast %80 : vector<16x16x128xf32> to vector<256x128xf32>
    %82 = arith.addf %78, %81 : vector<256x128xf32>
    %83 = vector.shape_cast %82 : vector<256x128xf32> to vector<16x16x128xf32>
    %c0_70 = arith.constant 0 : index
    %c0_71 = arith.constant 0 : index
    %c0_72 = arith.constant 0 : index
    %c0_73 = arith.constant 0 : index
    %84 = vector.load %arg5[%c0_70, %c0_71, %c0_72, %c0_73] : memref<1x16x16x128xf32, #tpu.memory_space<vmem>>, vector<1x16x16x128xf32>
    %85 = vector.shape_cast %84 : vector<1x16x16x128xf32> to vector<16x16x128xf32>
    %86 = vector.shape_cast %83 : vector<16x16x128xf32> to vector<1x16x16x128xf32>
    tpu.vector_store %arg5[%c0_70, %c0_71, %c0_72, %c0_73], %86 {strides = array<i32>} : memref<1x16x16x128xf32, #tpu.memory_space<vmem>>, vector<1x16x16x128xf32>,
    return
  }
  func.func @transform_0(%arg0: i32) -> (i32, i32, i32, i32) {
    %c0_i32 = arith.constant 0 : i32
    %c0_i32_0 = arith.constant 0 : i32
    %c0_i32_1 = arith.constant 0 : i32
    %c0_i32_2 = arith.constant 0 : i32
    return %arg0, %c0_i32, %c0_i32_0, %c0_i32_1 : i32, i32, i32, i32
  }
  func.func @transform_1(%arg0: i32) -> (i32, i32, i32) {
    %c0_i32 = arith.constant 0 : i32
    %c0_i32_0 = arith.constant 0 : i32
    %c0_i32_1 = arith.constant 0 : i32
    %c0_i32_2 = arith.constant 0 : i32
    return %c0_i32, %c0_i32_0, %c0_i32_1 : i32, i32, i32
  }
  func.func @transform_2(%arg0: i32) -> (i32, i32) {
    %c0_i32 = arith.constant 0 : i32
    %c0_i32_0 = arith.constant 0 : i32
    %c0_i32_1 = arith.constant 0 : i32
    return %c0_i32, %c0_i32_0 : i32, i32
  }
  func.func @transform_3(%arg0: i32) -> (i32, i32, i32, i32) {
    %c0_i32 = arith.constant 0 : i32
    %c0_i32_0 = arith.constant 0 : i32
    %c0_i32_1 = arith.constant 0 : i32
    %c0_i32_2 = arith.constant 0 : i32
    return %arg0, %c0_i32, %c0_i32_0, %c0_i32_1 : i32, i32, i32, i32
  }
  func.func @transform_4(%arg0: i32) -> (i32, i32, i32, i32) {
    %c0_i32 = arith.constant 0 : i32
    %c0_i32_0 = arith.constant 0 : i32
    %c0_i32_1 = arith.constant 0 : i32
    %c0_i32_2 = arith.constant 0 : i32
    return %arg0, %c0_i32, %c0_i32_0, %c0_i32_1 : i32, i32, i32, i32
  }
}

module attributes {stable_mosaic.version = 11 : i64} {
  func.func @_conv_kernel(%arg0: i32, %arg1: memref<1x9x9x512xf32, #tpu.memory_space<vmem>>, %arg2: memref<4x512x128xbf16, #tpu.memory_space<vmem>>, %arg3: memref<1x128xf32, #tpu.memory_space<vmem>>, %arg4: memref<256x64xbf16, #tpu.memory_space<vmem>>, %arg5: memref<1x16x16x128xf32, #tpu.memory_space<vmem>>) attributes {dimension_semantics = [#tpu.dimension_semantics<parallel>], iteration_bounds = array<i64: 2>, scalar_prefetch = 0 : i64, scratch_operands = 0 : i64, tpu.core_type = #tpu.core_type<tc>, window_params = [{transform_indices = @transform_0, window_bounds = array<i64: 1, 9, 9, 512>}, {pipeline_mode = #tpu.pipeline_mode<synchronous>, transform_indices = @transform_1, window_bounds = array<i64: 4, 512, 128>}, {pipeline_mode = #tpu.pipeline_mode<synchronous>, transform_indices = @transform_2, window_bounds = array<i64: 1, 128>}, {pipeline_mode = #tpu.pipeline_mode<synchronous>, transform_indices = @transform_3, window_bounds = array<i64: 256, 64>}, {transform_indices = @transform_4, window_bounds = array<i64: 1, 16, 16, 128>}]} {
    %c0 = arith.constant 0 : index
    %c0_0 = arith.constant 0 : index
    %c0_1 = arith.constant 0 : index
    %c0_2 = arith.constant 0 : index
    %0 = vector.load %arg1[%c0, %c0_0, %c0_1, %c0_2] : memref<1x9x9x512xf32, #tpu.memory_space<vmem>>, vector<1x8x8x512xf32>
    %1 = vector.shape_cast %0 : vector<1x8x8x512xf32> to vector<8x8x512xf32>
    %2 = vector.shape_cast %1 : vector<8x8x512xf32> to vector<64x512xf32>
    %3 = arith.truncf %2 : vector<64x512xf32> to vector<64x512xbf16>
    %c0_3 = arith.constant 0 : index
    %c0_4 = arith.constant 0 : index
    %c0_5 = arith.constant 0 : index
    %4 = vector.load %arg2[%c0_3, %c0_4, %c0_5] : memref<4x512x128xbf16, #tpu.memory_space<vmem>>, vector<1x512x128xbf16>
    %5 = vector.shape_cast %4 : vector<1x512x128xbf16> to vector<512x128xbf16>
    %cst = arith.constant dense<0.000000e+00> : vector<64x128xf32>
    %6 = tpu.matmul %3, %5, %cst {dimension_numbers = #tpu.dot_dimension_numbers<[1], [0], [0], [1], [0, 0, 1, 1], [], []>} : vector<64x512xbf16>, vector<512x128xbf16>, vector<64x128xf32> -> vector<64x128xf32>
    %c0_6 = arith.constant 0 : index
    %c0_7 = arith.constant 0 : index
    %c1 = arith.constant 1 : index
    %c0_8 = arith.constant 0 : index
    %7 = vector.load %arg1[%c0_6, %c0_7, %c1, %c0_8] : memref<1x9x9x512xf32, #tpu.memory_space<vmem>>, vector<1x8x8x512xf32>
    %8 = vector.shape_cast %7 : vector<1x8x8x512xf32> to vector<8x8x512xf32>
    %9 = vector.shape_cast %8 : vector<8x8x512xf32> to vector<64x512xf32>
    %10 = arith.truncf %9 : vector<64x512xf32> to vector<64x512xbf16>
    %c1_9 = arith.constant 1 : index
    %c0_10 = arith.constant 0 : index
    %c0_11 = arith.constant 0 : index
    %11 = vector.load %arg2[%c1_9, %c0_10, %c0_11] : memref<4x512x128xbf16, #tpu.memory_space<vmem>>, vector<1x512x128xbf16>
    %12 = vector.shape_cast %11 : vector<1x512x128xbf16> to vector<512x128xbf16>
    %cst_12 = arith.constant dense<0.000000e+00> : vector<64x128xf32>
    %13 = tpu.matmul %10, %12, %cst_12 {dimension_numbers = #tpu.dot_dimension_numbers<[1], [0], [0], [1], [0, 0, 1, 1], [], []>} : vector<64x512xbf16>, vector<512x128xbf16>, vector<64x128xf32> -> vector<64x128xf32>
    %14 = arith.addf %6, %13 : vector<64x128xf32>
    %c0_13 = arith.constant 0 : index
    %c1_14 = arith.constant 1 : index
    %c0_15 = arith.constant 0 : index
    %c0_16 = arith.constant 0 : index
    %15 = vector.load %arg1[%c0_13, %c1_14, %c0_15, %c0_16] : memref<1x9x9x512xf32, #tpu.memory_space<vmem>>, vector<1x8x8x512xf32>
    %16 = vector.shape_cast %15 : vector<1x8x8x512xf32> to vector<8x8x512xf32>
    %17 = vector.shape_cast %16 : vector<8x8x512xf32> to vector<64x512xf32>
    %18 = arith.truncf %17 : vector<64x512xf32> to vector<64x512xbf16>
    %c2 = arith.constant 2 : index
    %c0_17 = arith.constant 0 : index
    %c0_18 = arith.constant 0 : index
    %19 = vector.load %arg2[%c2, %c0_17, %c0_18] : memref<4x512x128xbf16, #tpu.memory_space<vmem>>, vector<1x512x128xbf16>
    %20 = vector.shape_cast %19 : vector<1x512x128xbf16> to vector<512x128xbf16>
    %cst_19 = arith.constant dense<0.000000e+00> : vector<64x128xf32>
    %21 = tpu.matmul %18, %20, %cst_19 {dimension_numbers = #tpu.dot_dimension_numbers<[1], [0], [0], [1], [0, 0, 1, 1], [], []>} : vector<64x512xbf16>, vector<512x128xbf16>, vector<64x128xf32> -> vector<64x128xf32>
    %22 = arith.addf %14, %21 : vector<64x128xf32>
    %c0_20 = arith.constant 0 : index
    %c1_21 = arith.constant 1 : index
    %c1_22 = arith.constant 1 : index
    %c0_23 = arith.constant 0 : index
    %23 = vector.load %arg1[%c0_20, %c1_21, %c1_22, %c0_23] : memref<1x9x9x512xf32, #tpu.memory_space<vmem>>, vector<1x8x8x512xf32>
    %24 = vector.shape_cast %23 : vector<1x8x8x512xf32> to vector<8x8x512xf32>
    %25 = vector.shape_cast %24 : vector<8x8x512xf32> to vector<64x512xf32>
    %26 = arith.truncf %25 : vector<64x512xf32> to vector<64x512xbf16>
    %c3 = arith.constant 3 : index
    %c0_24 = arith.constant 0 : index
    %c0_25 = arith.constant 0 : index
    %27 = vector.load %arg2[%c3, %c0_24, %c0_25] : memref<4x512x128xbf16, #tpu.memory_space<vmem>>, vector<1x512x128xbf16>
    %28 = vector.shape_cast %27 : vector<1x512x128xbf16> to vector<512x128xbf16>
    %cst_26 = arith.constant dense<0.000000e+00> : vector<64x128xf32>
    %29 = tpu.matmul %26, %28, %cst_26 {dimension_numbers = #tpu.dot_dimension_numbers<[1], [0], [0], [1], [0, 0, 1, 1], [], []>} : vector<64x512xbf16>, vector<512x128xbf16>, vector<64x128xf32> -> vector<64x128xf32>
    %30 = arith.addf %22, %29 : vector<64x128xf32>
    %c0_27 = arith.constant 0 : index
    %c0_28 = arith.constant 0 : index
    %31 = vector.load %arg3[%c0_27, %c0_28] : memref<1x128xf32, #tpu.memory_space<vmem>>, vector<1x128xf32>
    %32 = vector.broadcast %31 : vector<1x128xf32> to vector<64x128xf32>
    %33 = arith.addf %30, %32 : vector<64x128xf32>
    %cst_29 = arith.constant 0.000000e+00 : f32
    %34 = vector.broadcast %cst_29 : f32 to vector<64x128xf32>
    %35 = arith.cmpf oge, %33, %34 : vector<64x128xf32>
    %cst_30 = arith.constant 2.000000e-01 : f32
    %36 = vector.broadcast %cst_30 : f32 to vector<64x128xf32>
    %37 = arith.mulf %33, %36 : vector<64x128xf32>
    %38 = arith.select %35, %33, %37 : vector<64x128xi1>, vector<64x128xf32>
    %c0_31 = arith.constant 0 : index
    %c0_32 = arith.constant 0 : index
    %39 = vector.load %arg4[%c0_31, %c0_32] : memref<256x64xbf16, #tpu.memory_space<vmem>>, vector<256x64xbf16>
    %40 = arith.truncf %38 : vector<64x128xf32> to vector<64x128xbf16>
    %cst_33 = arith.constant dense<0.000000e+00> : vector<256x128xf32>
    %41 = tpu.matmul %39, %40, %cst_33 {dimension_numbers = #tpu.dot_dimension_numbers<[1], [0], [0], [1], [0, 0, 1, 1], [], []>} : vector<256x64xbf16>, vector<64x128xbf16>, vector<256x128xf32> -> vector<256x128xf32>
    %42 = vector.shape_cast %41 : vector<256x128xf32> to vector<16x16x128xf32>
    %c0_34 = arith.constant 0 : index
    %c0_35 = arith.constant 0 : index
    %c0_36 = arith.constant 0 : index
    %c0_37 = arith.constant 0 : index
    %43 = vector.load %arg5[%c0_34, %c0_35, %c0_36, %c0_37] : memref<1x16x16x128xf32, #tpu.memory_space<vmem>>, vector<1x16x16x128xf32>
    %44 = vector.shape_cast %43 : vector<1x16x16x128xf32> to vector<16x16x128xf32>
    %45 = vector.shape_cast %42 : vector<16x16x128xf32> to vector<1x16x16x128xf32>
    tpu.vector_store %arg5[%c0_34, %c0_35, %c0_36, %c0_37], %45 {strides = array<i32>} : memref<1x16x16x128xf32, #tpu.memory_space<vmem>>, vector<1x16x16x128xf32>,
    return
  }
  func.func @transform_0(%arg0: i32) -> (i32, i32, i32, i32) {
    %c0_i32 = arith.constant 0 : i32
    %c0_i32_0 = arith.constant 0 : i32
    %c0_i32_1 = arith.constant 0 : i32
    %c0_i32_2 = arith.constant 0 : i32
    return %arg0, %c0_i32, %c0_i32_0, %c0_i32_1 : i32, i32, i32, i32
  }
  func.func @transform_1(%arg0: i32) -> (i32, i32, i32) {
    %c0_i32 = arith.constant 0 : i32
    %c0_i32_0 = arith.constant 0 : i32
    %c0_i32_1 = arith.constant 0 : i32
    %c0_i32_2 = arith.constant 0 : i32
    return %c0_i32, %c0_i32_0, %c0_i32_1 : i32, i32, i32
  }
  func.func @transform_2(%arg0: i32) -> (i32, i32) {
    %c0_i32 = arith.constant 0 : i32
    %c0_i32_0 = arith.constant 0 : i32
    %c0_i32_1 = arith.constant 0 : i32
    return %c0_i32, %c0_i32_0 : i32, i32
  }
  func.func @transform_3(%arg0: i32) -> (i32, i32) {
    %c0_i32 = arith.constant 0 : i32
    %c0_i32_0 = arith.constant 0 : i32
    %c0_i32_1 = arith.constant 0 : i32
    return %c0_i32, %c0_i32_0 : i32, i32
  }
  func.func @transform_4(%arg0: i32) -> (i32, i32, i32, i32) {
    %c0_i32 = arith.constant 0 : i32
    %c0_i32_0 = arith.constant 0 : i32
    %c0_i32_1 = arith.constant 0 : i32
    %c0_i32_2 = arith.constant 0 : i32
    return %arg0, %c0_i32, %c0_i32_0, %c0_i32_1 : i32, i32, i32, i32
  }
}

module attributes {stable_mosaic.version = 11 : i64} {
  func.func @_conv_kernel(%arg0: i32, %arg1: memref<1x18x18x128xf32, #tpu.memory_space<vmem>>, %arg2: memref<9x128x128xbf16, #tpu.memory_space<vmem>>, %arg3: memref<1x128xf32, #tpu.memory_space<vmem>>, %arg4: memref<1x16x16x128xf32, #tpu.memory_space<vmem>>) attributes {dimension_semantics = [#tpu.dimension_semantics<parallel>], iteration_bounds = array<i64: 2>, scalar_prefetch = 0 : i64, scratch_operands = 0 : i64, tpu.core_type = #tpu.core_type<tc>, window_params = [{transform_indices = @transform_0, window_bounds = array<i64: 1, 18, 18, 128>}, {pipeline_mode = #tpu.pipeline_mode<synchronous>, transform_indices = @transform_1, window_bounds = array<i64: 9, 128, 128>}, {pipeline_mode = #tpu.pipeline_mode<synchronous>, transform_indices = @transform_2, window_bounds = array<i64: 1, 128>}, {transform_indices = @transform_3, window_bounds = array<i64: 1, 16, 16, 128>}]} {
    %c0 = arith.constant 0 : index
    %c0_0 = arith.constant 0 : index
    %c0_1 = arith.constant 0 : index
    %c0_2 = arith.constant 0 : index
    %0 = vector.load %arg1[%c0, %c0_0, %c0_1, %c0_2] : memref<1x18x18x128xf32, #tpu.memory_space<vmem>>, vector<1x16x16x128xf32>
    %1 = vector.shape_cast %0 : vector<1x16x16x128xf32> to vector<16x16x128xf32>
    %2 = vector.shape_cast %1 : vector<16x16x128xf32> to vector<256x128xf32>
    %3 = arith.truncf %2 : vector<256x128xf32> to vector<256x128xbf16>
    %c0_3 = arith.constant 0 : index
    %c0_4 = arith.constant 0 : index
    %c0_5 = arith.constant 0 : index
    %4 = vector.load %arg2[%c0_3, %c0_4, %c0_5] : memref<9x128x128xbf16, #tpu.memory_space<vmem>>, vector<1x128x128xbf16>
    %5 = vector.shape_cast %4 : vector<1x128x128xbf16> to vector<128x128xbf16>
    %cst = arith.constant dense<0.000000e+00> : vector<256x128xf32>
    %6 = tpu.matmul %3, %5, %cst {dimension_numbers = #tpu.dot_dimension_numbers<[1], [0], [0], [1], [0, 0, 1, 1], [], []>} : vector<256x128xbf16>, vector<128x128xbf16>, vector<256x128xf32> -> vector<256x128xf32>
    %c0_6 = arith.constant 0 : index
    %c0_7 = arith.constant 0 : index
    %c1 = arith.constant 1 : index
    %c0_8 = arith.constant 0 : index
    %7 = vector.load %arg1[%c0_6, %c0_7, %c1, %c0_8] : memref<1x18x18x128xf32, #tpu.memory_space<vmem>>, vector<1x16x16x128xf32>
    %8 = vector.shape_cast %7 : vector<1x16x16x128xf32> to vector<16x16x128xf32>
    %9 = vector.shape_cast %8 : vector<16x16x128xf32> to vector<256x128xf32>
    %10 = arith.truncf %9 : vector<256x128xf32> to vector<256x128xbf16>
    %c1_9 = arith.constant 1 : index
    %c0_10 = arith.constant 0 : index
    %c0_11 = arith.constant 0 : index
    %11 = vector.load %arg2[%c1_9, %c0_10, %c0_11] : memref<9x128x128xbf16, #tpu.memory_space<vmem>>, vector<1x128x128xbf16>
    %12 = vector.shape_cast %11 : vector<1x128x128xbf16> to vector<128x128xbf16>
    %cst_12 = arith.constant dense<0.000000e+00> : vector<256x128xf32>
    %13 = tpu.matmul %10, %12, %cst_12 {dimension_numbers = #tpu.dot_dimension_numbers<[1], [0], [0], [1], [0, 0, 1, 1], [], []>} : vector<256x128xbf16>, vector<128x128xbf16>, vector<256x128xf32> -> vector<256x128xf32>
    %14 = arith.addf %6, %13 : vector<256x128xf32>
    %c0_13 = arith.constant 0 : index
    %c0_14 = arith.constant 0 : index
    %c2 = arith.constant 2 : index
    %c0_15 = arith.constant 0 : index
    %15 = vector.load %arg1[%c0_13, %c0_14, %c2, %c0_15] : memref<1x18x18x128xf32, #tpu.memory_space<vmem>>, vector<1x16x16x128xf32>
    %16 = vector.shape_cast %15 : vector<1x16x16x128xf32> to vector<16x16x128xf32>
    %17 = vector.shape_cast %16 : vector<16x16x128xf32> to vector<256x128xf32>
    %18 = arith.truncf %17 : vector<256x128xf32> to vector<256x128xbf16>
    %c2_16 = arith.constant 2 : index
    %c0_17 = arith.constant 0 : index
    %c0_18 = arith.constant 0 : index
    %19 = vector.load %arg2[%c2_16, %c0_17, %c0_18] : memref<9x128x128xbf16, #tpu.memory_space<vmem>>, vector<1x128x128xbf16>
    %20 = vector.shape_cast %19 : vector<1x128x128xbf16> to vector<128x128xbf16>
    %cst_19 = arith.constant dense<0.000000e+00> : vector<256x128xf32>
    %21 = tpu.matmul %18, %20, %cst_19 {dimension_numbers = #tpu.dot_dimension_numbers<[1], [0], [0], [1], [0, 0, 1, 1], [], []>} : vector<256x128xbf16>, vector<128x128xbf16>, vector<256x128xf32> -> vector<256x128xf32>
    %22 = arith.addf %14, %21 : vector<256x128xf32>
    %c0_20 = arith.constant 0 : index
    %c1_21 = arith.constant 1 : index
    %c0_22 = arith.constant 0 : index
    %c0_23 = arith.constant 0 : index
    %23 = vector.load %arg1[%c0_20, %c1_21, %c0_22, %c0_23] : memref<1x18x18x128xf32, #tpu.memory_space<vmem>>, vector<1x16x16x128xf32>
    %24 = vector.shape_cast %23 : vector<1x16x16x128xf32> to vector<16x16x128xf32>
    %25 = vector.shape_cast %24 : vector<16x16x128xf32> to vector<256x128xf32>
    %26 = arith.truncf %25 : vector<256x128xf32> to vector<256x128xbf16>
    %c3 = arith.constant 3 : index
    %c0_24 = arith.constant 0 : index
    %c0_25 = arith.constant 0 : index
    %27 = vector.load %arg2[%c3, %c0_24, %c0_25] : memref<9x128x128xbf16, #tpu.memory_space<vmem>>, vector<1x128x128xbf16>
    %28 = vector.shape_cast %27 : vector<1x128x128xbf16> to vector<128x128xbf16>
    %cst_26 = arith.constant dense<0.000000e+00> : vector<256x128xf32>
    %29 = tpu.matmul %26, %28, %cst_26 {dimension_numbers = #tpu.dot_dimension_numbers<[1], [0], [0], [1], [0, 0, 1, 1], [], []>} : vector<256x128xbf16>, vector<128x128xbf16>, vector<256x128xf32> -> vector<256x128xf32>
    %30 = arith.addf %22, %29 : vector<256x128xf32>
    %c0_27 = arith.constant 0 : index
    %c1_28 = arith.constant 1 : index
    %c1_29 = arith.constant 1 : index
    %c0_30 = arith.constant 0 : index
    %31 = vector.load %arg1[%c0_27, %c1_28, %c1_29, %c0_30] : memref<1x18x18x128xf32, #tpu.memory_space<vmem>>, vector<1x16x16x128xf32>
    %32 = vector.shape_cast %31 : vector<1x16x16x128xf32> to vector<16x16x128xf32>
    %33 = vector.shape_cast %32 : vector<16x16x128xf32> to vector<256x128xf32>
    %34 = arith.truncf %33 : vector<256x128xf32> to vector<256x128xbf16>
    %c4 = arith.constant 4 : index
    %c0_31 = arith.constant 0 : index
    %c0_32 = arith.constant 0 : index
    %35 = vector.load %arg2[%c4, %c0_31, %c0_32] : memref<9x128x128xbf16, #tpu.memory_space<vmem>>, vector<1x128x128xbf16>
    %36 = vector.shape_cast %35 : vector<1x128x128xbf16> to vector<128x128xbf16>
    %cst_33 = arith.constant dense<0.000000e+00> : vector<256x128xf32>
    %37 = tpu.matmul %34, %36, %cst_33 {dimension_numbers = #tpu.dot_dimension_numbers<[1], [0], [0], [1], [0, 0, 1, 1], [], []>} : vector<256x128xbf16>, vector<128x128xbf16>, vector<256x128xf32> -> vector<256x128xf32>
    %38 = arith.addf %30, %37 : vector<256x128xf32>
    %c0_34 = arith.constant 0 : index
    %c1_35 = arith.constant 1 : index
    %c2_36 = arith.constant 2 : index
    %c0_37 = arith.constant 0 : index
    %39 = vector.load %arg1[%c0_34, %c1_35, %c2_36, %c0_37] : memref<1x18x18x128xf32, #tpu.memory_space<vmem>>, vector<1x16x16x128xf32>
    %40 = vector.shape_cast %39 : vector<1x16x16x128xf32> to vector<16x16x128xf32>
    %41 = vector.shape_cast %40 : vector<16x16x128xf32> to vector<256x128xf32>
    %42 = arith.truncf %41 : vector<256x128xf32> to vector<256x128xbf16>
    %c5 = arith.constant 5 : index
    %c0_38 = arith.constant 0 : index
    %c0_39 = arith.constant 0 : index
    %43 = vector.load %arg2[%c5, %c0_38, %c0_39] : memref<9x128x128xbf16, #tpu.memory_space<vmem>>, vector<1x128x128xbf16>
    %44 = vector.shape_cast %43 : vector<1x128x128xbf16> to vector<128x128xbf16>
    %cst_40 = arith.constant dense<0.000000e+00> : vector<256x128xf32>
    %45 = tpu.matmul %42, %44, %cst_40 {dimension_numbers = #tpu.dot_dimension_numbers<[1], [0], [0], [1], [0, 0, 1, 1], [], []>} : vector<256x128xbf16>, vector<128x128xbf16>, vector<256x128xf32> -> vector<256x128xf32>
    %46 = arith.addf %38, %45 : vector<256x128xf32>
    %c0_41 = arith.constant 0 : index
    %c2_42 = arith.constant 2 : index
    %c0_43 = arith.constant 0 : index
    %c0_44 = arith.constant 0 : index
    %47 = vector.load %arg1[%c0_41, %c2_42, %c0_43, %c0_44] : memref<1x18x18x128xf32, #tpu.memory_space<vmem>>, vector<1x16x16x128xf32>
    %48 = vector.shape_cast %47 : vector<1x16x16x128xf32> to vector<16x16x128xf32>
    %49 = vector.shape_cast %48 : vector<16x16x128xf32> to vector<256x128xf32>
    %50 = arith.truncf %49 : vector<256x128xf32> to vector<256x128xbf16>
    %c6 = arith.constant 6 : index
    %c0_45 = arith.constant 0 : index
    %c0_46 = arith.constant 0 : index
    %51 = vector.load %arg2[%c6, %c0_45, %c0_46] : memref<9x128x128xbf16, #tpu.memory_space<vmem>>, vector<1x128x128xbf16>
    %52 = vector.shape_cast %51 : vector<1x128x128xbf16> to vector<128x128xbf16>
    %cst_47 = arith.constant dense<0.000000e+00> : vector<256x128xf32>
    %53 = tpu.matmul %50, %52, %cst_47 {dimension_numbers = #tpu.dot_dimension_numbers<[1], [0], [0], [1], [0, 0, 1, 1], [], []>} : vector<256x128xbf16>, vector<128x128xbf16>, vector<256x128xf32> -> vector<256x128xf32>
    %54 = arith.addf %46, %53 : vector<256x128xf32>
    %c0_48 = arith.constant 0 : index
    %c2_49 = arith.constant 2 : index
    %c1_50 = arith.constant 1 : index
    %c0_51 = arith.constant 0 : index
    %55 = vector.load %arg1[%c0_48, %c2_49, %c1_50, %c0_51] : memref<1x18x18x128xf32, #tpu.memory_space<vmem>>, vector<1x16x16x128xf32>
    %56 = vector.shape_cast %55 : vector<1x16x16x128xf32> to vector<16x16x128xf32>
    %57 = vector.shape_cast %56 : vector<16x16x128xf32> to vector<256x128xf32>
    %58 = arith.truncf %57 : vector<256x128xf32> to vector<256x128xbf16>
    %c7 = arith.constant 7 : index
    %c0_52 = arith.constant 0 : index
    %c0_53 = arith.constant 0 : index
    %59 = vector.load %arg2[%c7, %c0_52, %c0_53] : memref<9x128x128xbf16, #tpu.memory_space<vmem>>, vector<1x128x128xbf16>
    %60 = vector.shape_cast %59 : vector<1x128x128xbf16> to vector<128x128xbf16>
    %cst_54 = arith.constant dense<0.000000e+00> : vector<256x128xf32>
    %61 = tpu.matmul %58, %60, %cst_54 {dimension_numbers = #tpu.dot_dimension_numbers<[1], [0], [0], [1], [0, 0, 1, 1], [], []>} : vector<256x128xbf16>, vector<128x128xbf16>, vector<256x128xf32> -> vector<256x128xf32>
    %62 = arith.addf %54, %61 : vector<256x128xf32>
    %c0_55 = arith.constant 0 : index
    %c2_56 = arith.constant 2 : index
    %c2_57 = arith.constant 2 : index
    %c0_58 = arith.constant 0 : index
    %63 = vector.load %arg1[%c0_55, %c2_56, %c2_57, %c0_58] : memref<1x18x18x128xf32, #tpu.memory_space<vmem>>, vector<1x16x16x128xf32>
    %64 = vector.shape_cast %63 : vector<1x16x16x128xf32> to vector<16x16x128xf32>
    %65 = vector.shape_cast %64 : vector<16x16x128xf32> to vector<256x128xf32>
    %66 = arith.truncf %65 : vector<256x128xf32> to vector<256x128xbf16>
    %c8 = arith.constant 8 : index
    %c0_59 = arith.constant 0 : index
    %c0_60 = arith.constant 0 : index
    %67 = vector.load %arg2[%c8, %c0_59, %c0_60] : memref<9x128x128xbf16, #tpu.memory_space<vmem>>, vector<1x128x128xbf16>
    %68 = vector.shape_cast %67 : vector<1x128x128xbf16> to vector<128x128xbf16>
    %cst_61 = arith.constant dense<0.000000e+00> : vector<256x128xf32>
    %69 = tpu.matmul %66, %68, %cst_61 {dimension_numbers = #tpu.dot_dimension_numbers<[1], [0], [0], [1], [0, 0, 1, 1], [], []>} : vector<256x128xbf16>, vector<128x128xbf16>, vector<256x128xf32> -> vector<256x128xf32>
    %70 = arith.addf %62, %69 : vector<256x128xf32>
    %c0_62 = arith.constant 0 : index
    %c0_63 = arith.constant 0 : index
    %71 = vector.load %arg3[%c0_62, %c0_63] : memref<1x128xf32, #tpu.memory_space<vmem>>, vector<1x128xf32>
    %72 = vector.broadcast %71 : vector<1x128xf32> to vector<256x128xf32>
    %73 = arith.addf %70, %72 : vector<256x128xf32>
    %74 = vector.shape_cast %73 : vector<256x128xf32> to vector<16x16x128xf32>
    %c0_64 = arith.constant 0 : index
    %c0_65 = arith.constant 0 : index
    %c0_66 = arith.constant 0 : index
    %c0_67 = arith.constant 0 : index
    %75 = vector.load %arg4[%c0_64, %c0_65, %c0_66, %c0_67] : memref<1x16x16x128xf32, #tpu.memory_space<vmem>>, vector<1x16x16x128xf32>
    %76 = vector.shape_cast %75 : vector<1x16x16x128xf32> to vector<16x16x128xf32>
    %77 = vector.shape_cast %74 : vector<16x16x128xf32> to vector<1x16x16x128xf32>
    tpu.vector_store %arg4[%c0_64, %c0_65, %c0_66, %c0_67], %77 {strides = array<i32>} : memref<1x16x16x128xf32, #tpu.memory_space<vmem>>, vector<1x16x16x128xf32>,
    return
  }
  func.func @transform_0(%arg0: i32) -> (i32, i32, i32, i32) {
    %c0_i32 = arith.constant 0 : i32
    %c0_i32_0 = arith.constant 0 : i32
    %c0_i32_1 = arith.constant 0 : i32
    %c0_i32_2 = arith.constant 0 : i32
    return %arg0, %c0_i32, %c0_i32_0, %c0_i32_1 : i32, i32, i32, i32
  }
  func.func @transform_1(%arg0: i32) -> (i32, i32, i32) {
    %c0_i32 = arith.constant 0 : i32
    %c0_i32_0 = arith.constant 0 : i32
    %c0_i32_1 = arith.constant 0 : i32
    %c0_i32_2 = arith.constant 0 : i32
    return %c0_i32, %c0_i32_0, %c0_i32_1 : i32, i32, i32
  }
  func.func @transform_2(%arg0: i32) -> (i32, i32) {
    %c0_i32 = arith.constant 0 : i32
    %c0_i32_0 = arith.constant 0 : i32
    %c0_i32_1 = arith.constant 0 : i32
    return %c0_i32, %c0_i32_0 : i32, i32
  }
  func.func @transform_3(%arg0: i32) -> (i32, i32, i32, i32) {
    %c0_i32 = arith.constant 0 : i32
    %c0_i32_0 = arith.constant 0 : i32
    %c0_i32_1 = arith.constant 0 : i32
    %c0_i32_2 = arith.constant 0 : i32
    return %arg0, %c0_i32, %c0_i32_0, %c0_i32_1 : i32, i32, i32, i32
  }
}

</mosaic_0001>

<bundles_post_ra>
// kernel: unet_disc_forward.5
= control target key start
LH: loop header
LB: loop body
LE: loop exit
PB: predicated region body
PF: predicated region fallthrough
CT: control target
= control target key end

     0   :  { %s4262_s12 = smov 0   ;;  %s5416_s0 = inlined_call_operand.vmem [shape: f32[2,18,18,128], index: 0, kind: input, shape index: {}]   ;;  %s5417_s1 = inlined_call_operand.vmem [shape: bf16[9,128,128], index: 1, kind: input, shape index: {}]   ;;  %s5418_s2 = inlined_call_operand.vmem [shape: f32[1,128], index: 2, kind: input, shape index: {}]   ;;  %s5419_s3 = inlined_call_operand.vmem [shape: f32[2,16,16,128], index: 3, kind: output, shape index: {}]  }
   0x1 LB: > { %s3085_s13 = sadd.s32 4294967295, %s4240_s12   ;;  %p3089_p0 = scmp.ge.s32.totalorder %s4240_s12, 1  ;;  %s4240_s12 = sphi %s4262_s12, %s13_s12  }
   0x2   : > { %p137_p1 = scmp.lt.s32.totalorder %s4240_s12, 3 }
   0x4   : > { %p138_p2 = pnand %p3089_p0, %p137_p1 }
   0x6   : > { %141 = sbr.rel (%p138_p2) target bundleno = 533 (0x215), region = 32 }
   0xb   : > { %v4162_v0 = vld [vmem:[%s5417_s1 + $0x78] sm:$0xff]   ;;  %p161_p3 = scmp.lt.s32.totalorder %s3085_s13, 1  ;;  %v4163_v1 = vld [vmem:[%s5417_s1 + $0x70] sm:$0xff]   ;;  %v4164_v2 = vld [vmem:[%s5417_s1 + $0x68] sm:$0xff]  }
   0xc   : > { %3705 = vmatprep.subr.bf16.mxu0 %v4162_v0  ;;  %4137 = vmatprep.subr.bf16.mxu1 %v4162_v0  ;;  %v4165_v3 = vld [vmem:[%s5417_s1 + $0x60] sm:$0xff]   ;;  %v4166_v10 = vld [vmem:[%s5417_s1 + $0x58] sm:$0xff]   ;;  %v4167_v11 = vld [vmem:[%s5417_s1 + $0x50] sm:$0xff]  }
   0xd   : > { %s5503_s13 = smov (!%p161_p3, %s3085_s13), 1  ;;  %3706 = vmatpush3.bf16.msra.mxu0 %v4162_v0  ;;  %4145 = vmatpush3.bf16.msra.mxu1 %v4162_v0  ;;  %v4168_v12 = vld [vmem:[%s5417_s1 + $0x48] sm:$0xff]   ;;  %v4169_v13 = vld [vmem:[%s5417_s1 + $0x40] sm:$0xff]   ;;  %v4170_v18 = vld [vmem:[%s5417_s1 + $0x38] sm:$0xff]  }
   0xe   : > { %3707 = vmatprep.subr.bf16.mxu0 %v4163_v1  ;;  %4138 = vmatprep.subr.bf16.mxu1 %v4163_v1  ;;  %s4153_s20 = smul.u32 432, %s5503_s13  ;;  %v4171_v19 = vld [vmem:[%s5417_s1 + $0xb8] sm:$0xff]   ;;  %v4172_v26 = vld [vmem:[%s5417_s1 + $0x30] sm:$0xff]   ;;  %v4174_v34 = vld [vmem:[%s5417_s1 + $0x28] sm:$0xff]   ;;  %s3488_s18 = sshll.u32 %s5503_s13, 8 }
   0xf   : > { %v4173_v27 = vld [vmem:[%s5417_s1 + $0xb0] sm:$0xff]   ;;  %v4175_v35 = vld [vmem:[%s5417_s1 + $0xa8] sm:$0xff]   ;;  %v4176_v42 = vld [vmem:[%s5417_s1 + $0x20] sm:$0xff]   ;;  %s5272_s21 = scalar_lea.vmem %s5419_s3, %s3488_s18 }
  0x10   : > { %s4285_s23 = scalar_lea.vmem %s5416_s0, %s4153_s20  ;;  %v4177_v43 = vld [vmem:[%s5417_s1 + $0xa0] sm:$0xff]   ;;  %v4178_v50 = vld [vmem:[%s5417_s1 + $0x18] sm:$0xff]   ;;  %v4180_v58 = vld [vmem:[%s5417_s1 + $0x10] sm:$0xff]  }
  0x11   : > { %3708 = vmatpush3.bf16.msra.mxu0 %v4163_v1  ;;  %4146 = vmatpush3.bf16.msra.mxu1 %v4163_v1  ;;  %v236_v4 = vld [vmem:[%s4285_s23 + $0x1] sm:$0xff]  ;;  %v237_v5 = vld [vmem:[%s4285_s23 + $0x9] sm:$0xff]  ;;  %v238_v14 = vld [vmem:[%s4285_s23 + $0x19] sm:$0xff] }
  0x12   : > { %3709 = vmatprep.subr.bf16.mxu0 %v4164_v2  ;;  %4139 = vmatprep.subr.bf16.mxu1 %v4164_v2  ;;  %v252_v6 = vld [vmem:[%s4285_s23 + $0xc1] sm:$0xff]  ;;  %v268_v7 = vpack.c.bf16 %v237_v5, %v236_v4  ;;  %v253_v8 = vld [vmem:[%s4285_s23 + $0xc9] sm:$0xff]  ;;  %v254_v16 = vld [vmem:[%s4285_s23 + $0xd9] sm:$0xff] }
  0x13   : > { %v4294_v9 = vpack.c.bf16 %v253_v8, %v252_v6  ;;  %v239_v15 = vld [vmem:[%s4285_s23 + $0x21] sm:$0xff]  ;;  %v240_v20 = vld [vmem:[%s4285_s23 + $0x31] sm:$0xff]  ;;  %v241_v21 = vld [vmem:[%s4285_s23 + $0x39] sm:$0xff] }
  0x14   : > { %3721 = vmatprep.mubr.bf16.mxu0 %v268_v7  ;;  %v255_v17 = vld [vmem:[%s4285_s23 + $0xe1] sm:$0xff]  ;;  %v4321_v22 = vpack.c.bf16 %v239_v15, %v238_v14  ;;  %v256_v24 = vld [vmem:[%s4285_s23 + $0xf1] sm:$0xff]  ;;  %v257_v25 = vld [vmem:[%s4285_s23 + $0xf9] sm:$0xff]  ;;  %v4333_v28 = vpack.c.bf16 %v241_v21, %v240_v20 }
  0x15   : > { %3710 = vmatpush3.bf16.msra.mxu0 %v4164_v2  ;;  %4147 = vmatpush3.bf16.msra.mxu1 %v4164_v2  ;;  %v4323_v23 = vpack.c.bf16 %v255_v17, %v254_v16  ;;  %v4335_v29 = vpack.c.bf16 %v257_v25, %v256_v24  ;;  %v242_v30 = vld [vmem:[%s4285_s23 + $0x49] sm:$0xff]  ;;  %v243_v31 = vld [vmem:[%s4285_s23 + $0x51] sm:$0xff]  ;;  %v244_v36 = vld [vmem:[%s4285_s23 + $0x61] sm:$0xff] }
  0x16   : > { %3711 = vmatprep.subr.bf16.mxu0 %v4165_v3  ;;  %4140 = vmatprep.subr.bf16.mxu1 %v4165_v3  ;;  %v258_v32 = vld [vmem:[%s4285_s23 + $0x109] sm:$0xff]  ;;  %v259_v33 = vld [vmem:[%s4285_s23 + $0x111] sm:$0xff]  ;;  %v260_v38 = vld [vmem:[%s4285_s23 + $0x121] sm:$0xff]  ;;  %v4354_v39 = vpack.c.bf16 %v243_v31, %v242_v30 }
  0x17   : > { %3737 = vmatprep.mubr.bf16.mxu1 %v4294_v9  ;;  %v245_v37 = vld [vmem:[%s4285_s23 + $0x69] sm:$0xff]  ;;  %v4356_v40 = vpack.c.bf16 %v259_v33, %v258_v32  ;;  %v246_v46 = vld [vmem:[%s4285_s23 + $0x79] sm:$0xff]  ;;  %v247_v47 = vld [vmem:[%s4285_s23 + $0x81] sm:$0xff] }
  0x18   : > { %v261_v41 = vld [vmem:[%s4285_s23 + $0x129] sm:$0xff]  ;;  %v4365_v44 = vpack.c.bf16 %v245_v37, %v244_v36  ;;  %v262_v48 = vld [vmem:[%s4285_s23 + $0x139] sm:$0xff]  ;;  %v263_v49 = vld [vmem:[%s4285_s23 + $0x141] sm:$0xff]  ;;  %v4385_v54 = vpack.c.bf16 %v247_v47, %v246_v46 }
  0x19   : > { %3712 = vmatpush3.bf16.msra.mxu0 %v4165_v3  ;;  %4148 = vmatpush3.bf16.msra.mxu1 %v4165_v3  ;;  %v4367_v45 = vpack.c.bf16 %v261_v41, %v260_v38  ;;  %v4179_v51 = vld [vmem:[%s5417_s1 + $0x98] sm:$0xff]   ;;  %v4387_v55 = vpack.c.bf16 %v263_v49, %v262_v48  ;;  %v4181_v59 = vld [vmem:[%s5417_s1 + $0x90] sm:$0xff]   ;;  %v4182_v2 = vld [vmem:[%s5417_s1 + $0x8] sm:$0xff]  }
  0x1a   : > { %3713 = vmatprep.subr.bf16.mxu0 %v4166_v10  ;;  %4141 = vmatprep.subr.bf16.mxu1 %v4166_v10  ;;  %v248_v52 = vld [vmem:[%s4285_s23 + $0x91] sm:$0xff]  ;;  %v249_v53 = vld [vmem:[%s4285_s23 + $0x99] sm:$0xff]  ;;  %v250_v62 = vld [vmem:[%s4285_s23 + $0xa9] sm:$0xff] }
  0x1b   : > { %v264_v56 = vld [vmem:[%s4285_s23 + $0x151] sm:$0xff]  ;;  %v265_v57 = vld [vmem:[%s4285_s23 + $0x159] sm:$0xff]  ;;  %v4397_v60 = vpack.c.bf16 %v249_v53, %v248_v52  ;;  %v266_v0 = vld [vmem:[%s4285_s23 + $0x169] sm:$0xff] }
  0x1c   : > { %v4399_v61 = vpack.c.bf16 %v265_v57, %v264_v56  ;;  %v251_v63 = vld [vmem:[%s4285_s23 + $0xb1] sm:$0xff]  ;;  %v4183_v3 = vld [vmem:[%s5417_s1 + $0x88] sm:$0xff]   ;;  %v172_v4 = vld [vmem:[%s4285_s23] sm:$0xff] }
  0x1d   : > { %3714 = vmatpush3.bf16.msra.mxu0 %v4166_v10  ;;  %4149 = vmatpush3.bf16.msra.mxu1 %v4166_v10  ;;  %v267_v1 = vld [vmem:[%s4285_s23 + $0x171] sm:$0xff]  ;;  %v4416_v5 = vpack.c.bf16 %v251_v63, %v250_v62  ;;  %v173_v7 = vld [vmem:[%s4285_s23 + $0x8] sm:$0xff]  ;;  %v175_v16 = vld [vmem:[%s4285_s23 + $0x20] sm:$0xff] }
  0x1e   : > { %3715 = vmatprep.subr.bf16.mxu0 %v4167_v11  ;;  %4142 = vmatprep.subr.bf16.mxu1 %v4167_v11  ;;  %v4418_v6 = vpack.c.bf16 %v267_v1, %v266_v0  ;;  %v719_v8 = vld [vmem:[%s4285_s23 + $0x2] sm:$0xff]  ;;  %v720_v10 = vld [vmem:[%s4285_s23 + $0xa] sm:$0xff]  ;;  %v174_v15 = vld [vmem:[%s4285_s23 + $0x18] sm:$0xff] }
  0x1f   : > { %v751_v14 = vpack.c.bf16 %v720_v10, %v719_v8  ;;  %v721_v17 = vld [vmem:[%s4285_s23 + $0x1a] sm:$0xff]  ;;  %v176_v21 = vld [vmem:[%s4285_s23 + $0x30] sm:$0xff]  ;;  %v4190_v47 = vld [vmem:[%s5417_s1 + $0xe8] sm:$0xff]  }
  0x20   : > { %v4187_v20 = vld [vmem:[%s5417_s1 + $0x138] sm:$0xff]   ;;  %v4188_v33 = vld [vmem:[%s5417_s1 + $0xf0] sm:$0xff]   ;;  %v180_v41 = vld [vmem:[%s4285_s23 + $0x60] sm:$0xff] }
  0x21   : > { %3716 = vmatpush3.bf16.msra.mxu0 %v4167_v11  ;;  %4150 = vmatpush3.bf16.msra.mxu1 %v4167_v11  ;;  %v4184_v11 = vld [vmem:[%s5417_s1] sm:$0xff]   ;;  %v177_v24 = vld [vmem:[%s4285_s23 + $0x38] sm:$0xff]  ;;  %v725_v36 = vld [vmem:[%s4285_s23 + $0x4a] sm:$0xff] }
  0x22   : > { %3717 = vmatprep.subr.bf16.mxu0 %v4168_v12  ;;  %4143 = vmatprep.subr.bf16.mxu1 %v4168_v12  ;;  %v723_v25 = vld [vmem:[%s4285_s23 + $0x32] sm:$0xff]  ;;  %v4449_v31 = vpack.c.bf16 %v177_v24, %v176_v21  ;;  %v728_v46 = vld [vmem:[%s4285_s23 + $0x6a] sm:$0xff]  ;;  %v4192_v53 = vld [vmem:[%s5417_s1 + $0xe0] sm:$0xff]  }
  0x23   : > { %v4189_v37 = vld [vmem:[%s5417_s1 + $0x130] sm:$0xff]   ;;  %v4191_v48 = vld [vmem:[%s5417_s1 + $0x128] sm:$0xff]   ;;  %v182_v56 = vld [vmem:[%s4285_s23 + $0x78] sm:$0xff] }
  0x24   : > { %v726_v38 = vld [vmem:[%s4285_s23 + $0x52] sm:$0xff]  ;;  %v183_v57 = vld [vmem:[%s4285_s23 + $0x80] sm:$0xff]  ;;  %v736_v21 = vld [vmem:[%s4285_s23 + $0xca] sm:$0xff] }
  0x25   : > { %3718 = vmatpush3.bf16.msra.mxu0 %v4168_v12  ;;  %4151 = vmatpush3.bf16.msra.mxu1 %v4168_v12  ;;  %v4185_v12 = vld [vmem:[%s5417_s1 + $0x80] sm:$0xff]   ;;  %v184_v63 = vld [vmem:[%s4285_s23 + $0x90] sm:$0xff]  ;;  %v185_v0 = vld [vmem:[%s4285_s23 + $0x98] sm:$0xff] }
  0x26   : > { %3719 = vmatprep.subr.bf16.mxu0 %v4169_v13  ;;  %4144 = vmatprep.subr.bf16.mxu1 %v4169_v13  ;;  %v4193_v62 = vld [vmem:[%s5417_s1 + $0x120] sm:$0xff]   ;;  %v731_v1 = vld [vmem:[%s4285_s23 + $0x92] sm:$0xff]  ;;  %v4513_v10 = vpack.c.bf16 %v185_v0, %v184_v63  ;;  %v4198_v24 = vld [vmem:[%s5417_s1 + $0xc8] sm:$0xff]  }
  0x27   : > { %v194_v0 = vld [vmem:[%s4285_s23 + $0x108] sm:$0xff] }
  0x29   : > { %3720 = vmatpush3.bf16.msra.mxu0 %v4169_v13  ;;  %4152 = vmatpush3.bf16.msra.mxu1 %v4169_v13  ;;  %v204_v13 = vpack.c.bf16 %v173_v7, %v172_v4  ;;  %v4195_v4 = vld [vmem:[%s5417_s1 + $0x118] sm:$0xff]   ;;  %v4509_v7 = vpack.c.bf16 %v183_v57, %v182_v56 }
  0x2a   : > { %3753 = vmatprep.subr.bf16.mxu1 %v4170_v18  ;;  %3801 = vmatprep.subr.bf16.mxu0 %v4171_v19  ;;  %v4202_v56 = vld [vmem:[%s5417_s1 + $0x178] sm:$0xff]  }
  0x2b   : > { %v4203_v57 = vld [vmem:[%s5417_s1 + $0x1b8] sm:$0xff]  }
  0x2c   : > { %3722 = vmatmul.mubr.bf16.vlgmr.msra.gmra.mxu0 %v4321_v22  ;;  %3738 = vmatmul.mubr.bf16.vlgmr.msra.gmra.mxu1 %v4323_v23 }
  0x2d   : > { %3754 = vmatpush3.bf16.msra.mxu1 %v4170_v18  ;;  %3802 = vmatpush3.bf16.msra.mxu0 %v4171_v19  ;;  %v722_v18 = vld [vmem:[%s4285_s23 + $0x22] sm:$0xff]  ;;  %v4186_v19 = vld [vmem:[%s5417_s1 + $0xf8] sm:$0xff]  }
  0x2e   : > { %3755 = vmatprep.subr.bf16.mxu1 %v4172_v26  ;;  %3803 = vmatprep.subr.bf16.mxu0 %v4173_v27  ;;  %v4447_v30 = vpack.c.bf16 %v722_v18, %v721_v17  ;;  %v4197_v17 = vld [vmem:[%s5417_s1 + $0x110] sm:$0xff]   ;;  %v188_v18 = vld [vmem:[%s4285_s23 + $0xc0] sm:$0xff] }
  0x2f   : > { %3725 = vmatprep.mubr.bf16.mxu0 %v4333_v28  ;;  %3741 = vmatprep.mubr.bf16.mxu1 %v4335_v29 }
  0x31   : > { %3756 = vmatpush3.bf16.msra.mxu1 %v4172_v26  ;;  %3804 = vmatpush3.bf16.msra.mxu0 %v4173_v27  ;;  %v724_v26 = vld [vmem:[%s4285_s23 + $0x3a] sm:$0xff]  ;;  %v4445_v27 = vpack.c.bf16 %v175_v16, %v174_v15  ;;  %v733_v15 = vld [vmem:[%s4285_s23 + $0xaa] sm:$0xff]  ;;  %v734_v16 = vld [vmem:[%s4285_s23 + $0xb2] sm:$0xff] }
  0x32   : > { %3757 = vmatprep.subr.bf16.mxu1 %v4174_v34  ;;  %3805 = vmatprep.subr.bf16.mxu0 %v4175_v35  ;;  %v4451_v32 = vpack.c.bf16 %v724_v26, %v723_v25  ;;  %v4199_v25 = vld [vmem:[%s5417_s1 + $0x108] sm:$0xff]  }
  0x34   : > { %3726 = vmatmul.mubr.bf16.gmra.mxu0 %v4354_v39  ;;  %3742 = vmatmul.mubr.bf16.gmra.mxu1 %v4356_v40 }
  0x35   : > { %3758 = vmatpush3.bf16.msra.mxu1 %v4174_v34  ;;  %3806 = vmatpush3.bf16.msra.mxu0 %v4175_v35  ;;  %v178_v34 = vld [vmem:[%s4285_s23 + $0x48] sm:$0xff]  ;;  %v179_v35 = vld [vmem:[%s4285_s23 + $0x50] sm:$0xff] }
  0x36   : > { %3759 = vmatprep.subr.bf16.mxu1 %v4176_v42  ;;  %3807 = vmatprep.subr.bf16.mxu0 %v4177_v43  ;;  %v4477_v49 = vpack.c.bf16 %v179_v35, %v178_v34 }
  0x37   : > { %3729 = vmatprep.mubr.bf16.mxu0 %v4365_v44  ;;  %3745 = vmatprep.mubr.bf16.mxu1 %v4367_v45 }
  0x39   : > { %3760 = vmatpush3.bf16.msra.mxu1 %v4176_v42  ;;  %3808 = vmatpush3.bf16.msra.mxu0 %v4177_v43  ;;  %v181_v42 = vld [vmem:[%s4285_s23 + $0x68] sm:$0xff] }
  0x3a   : > { %3761 = vmatprep.subr.bf16.mxu1 %v4178_v50  ;;  %3809 = vmatprep.subr.bf16.mxu0 %v4179_v51  ;;  %v727_v43 = vld [vmem:[%s4285_s23 + $0x62] sm:$0xff] }
  0x3b   : > { %v4483_v52 = vpack.c.bf16 %v728_v46, %v727_v43  ;;  %v4201_v43 = vld [vmem:[%s5417_s1 + $0x100] sm:$0xff]   ;;  %v192_v46 = vld [vmem:[%s4285_s23 + $0xf0] sm:$0xff] }
  0x3c   : > { %3730 = vmatmul.mubr.bf16.gmra.mxu0 %v4385_v54  ;;  %3746 = vmatmul.mubr.bf16.gmra.mxu1 %v4387_v55 }
  0x3d   : > { %3762 = vmatpush3.bf16.msra.mxu1 %v4178_v50  ;;  %3810 = vmatpush3.bf16.msra.mxu0 %v4179_v51  ;;  %v4479_v50 = vpack.c.bf16 %v726_v38, %v725_v36  ;;  %v4481_v51 = vpack.c.bf16 %v181_v42, %v180_v41  ;;  %v4200_v36 = vld [vmem:[%s5417_s1 + $0xc0] sm:$0xff]  }
  0x3e   : > { %3763 = vmatprep.subr.bf16.mxu1 %v4180_v58  ;;  %3811 = vmatprep.subr.bf16.mxu0 %v4181_v59  ;;  %v191_v38 = vld [vmem:[%s4285_s23 + $0xe0] sm:$0xff] }
  0x3f   : > { %3733 = vmatprep.mubr.bf16.mxu0 %v4397_v60  ;;  %3749 = vmatprep.mubr.bf16.mxu1 %v4399_v61  ;;  %v737_v41 = vld [vmem:[%s4285_s23 + $0xda] sm:$0xff]  ;;  %v738_v42 = vld [vmem:[%s4285_s23 + $0xe2] sm:$0xff] }
  0x41   : > { %3764 = vmatpush3.bf16.msra.mxu1 %v4180_v58  ;;  %3812 = vmatpush3.bf16.msra.mxu0 %v4181_v59  ;;  %v729_v58 = vld [vmem:[%s4285_s23 + $0x7a] sm:$0xff]  ;;  %v730_v59 = vld [vmem:[%s4285_s23 + $0x82] sm:$0xff] }
  0x42   : > { %3765 = vmatprep.subr.bf16.mxu1 %v4182_v2  ;;  %3813 = vmatprep.subr.bf16.mxu0 %v4183_v3  ;;  %v4511_v8 = vpack.c.bf16 %v730_v59, %v729_v58  ;;  %v4575_v59 = vpack.c.bf16 %v738_v42, %v737_v41 }
  0x44   : > { %3734 = vmatmul.mubr.bf16.gmra.mxu0 %v4416_v5  ;;  %3750 = vmatmul.mubr.bf16.gmra.mxu1 %v4418_v6 }
  0x45   : > { %3766 = vmatpush3.bf16.msra.mxu1 %v4182_v2  ;;  %3814 = vmatpush3.bf16.msra.mxu0 %v4183_v3  ;;  %v732_v2 = vld [vmem:[%s4285_s23 + $0x9a] sm:$0xff] }
  0x46   : > { %3767 = vmatprep.subr.bf16.mxu1 %v4184_v11  ;;  %3815 = vmatprep.subr.bf16.mxu0 %v4185_v12  ;;  %v4194_v3 = vld [vmem:[%s5417_s1 + $0xd8] sm:$0xff]  }
  0x47   : > { %3769 = vmatprep.mubr.bf16.mxu1 %v204_v13  ;;  %3817 = vmatprep.mubr.bf16.mxu0 %v751_v14  ;;  %v186_v13 = vld [vmem:[%s4285_s23 + $0xa8] sm:$0xff]  ;;  %v187_v14 = vld [vmem:[%s4285_s23 + $0xb0] sm:$0xff] }
  0x48   : > { %v4541_v26 = vpack.c.bf16 %v187_v14, %v186_v13  ;;  %v743_v13 = vld [vmem:[%s4285_s23 + $0x122] sm:$0xff]  ;;  %v744_v14 = vld [vmem:[%s4285_s23 + $0x12a] sm:$0xff] }
  0x49   : > { %3768 = vmatpush3.bf16.msra.mxu1 %v4184_v11  ;;  %3816 = vmatpush3.bf16.msra.mxu0 %v4185_v12  ;;  %v4515_v11 = vpack.c.bf16 %v732_v2, %v731_v1  ;;  %v4196_v12 = vld [vmem:[%s5417_s1 + $0xd0] sm:$0xff]  }
  0x4a   : > { %3849 = vmatprep.subr.bf16.mxu1 %v4186_v19  ;;  %3897 = vmatprep.subr.bf16.mxu0 %v4187_v20  ;;  %v195_v1 = vld [vmem:[%s4285_s23 + $0x110] sm:$0xff] }
  0x4b   : > { %v741_v2 = vld [vmem:[%s4285_s23 + $0x10a] sm:$0xff] }
  0x4c   : > { %3770 = vmatmul.mubr.bf16.vlgmr.msra.gmra.mxu1 %v4445_v27  ;;  %3818 = vmatmul.mubr.bf16.vlgmr.msra.gmra.mxu0 %v4447_v30 }
  0x4d   : > { %3850 = vmatpush3.bf16.msra.mxu1 %v4186_v19  ;;  %3898 = vmatpush3.bf16.msra.mxu0 %v4187_v20  ;;  %v189_v19 = vld [vmem:[%s4285_s23 + $0xc8] sm:$0xff] }
  0x4e   : > { %3773 = vmatprep.mubr.bf16.mxu1 %v4449_v31  ;;  %3821 = vmatprep.mubr.bf16.mxu0 %v4451_v32  ;;  %v735_v20 = vld [vmem:[%s4285_s23 + $0xc2] sm:$0xff]  ;;  %v4545_v34 = vpack.c.bf16 %v189_v19, %v188_v18  ;;  %v4599_v18 = vpack.c.bf16 %v744_v14, %v743_v13  ;;  %v198_v19 = vld [vmem:[%s4285_s23 + $0x138] sm:$0xff] }
  0x4f   : > { %3851 = vmatprep.subr.bf16.mxu1 %v4188_v33  ;;  %3899 = vmatprep.subr.bf16.mxu0 %v4189_v37  ;;  %v4547_v35 = vpack.c.bf16 %v736_v21, %v735_v20  ;;  %v199_v20 = vld [vmem:[%s4285_s23 + $0x140] sm:$0xff]  ;;  %v4215_v13 = vld [vmem:[%s5417_s1 + $0x188] sm:$0xff]   ;;  %v4218_v14 = vld [vmem:[%s5417_s1 + $0x1f8] sm:$0xff]  }
  0x50   : > { %v745_v21 = vld [vmem:[%s4285_s23 + $0x13a] sm:$0xff]  ;;  %v4613_v41 = vpack.c.bf16 %v199_v20, %v198_v19 }
  0x51   : > { %3852 = vmatpush3.bf16.msra.mxu1 %v4188_v33  ;;  %3900 = vmatpush3.bf16.msra.mxu0 %v4189_v37  ;;  %v4543_v33 = vpack.c.bf16 %v734_v16, %v733_v15  ;;  %v190_v37 = vld [vmem:[%s4285_s23 + $0xd8] sm:$0xff]  ;;  %v4593_v15 = vpack.c.bf16 %v195_v1, %v194_v0 }
  0x52   : > { %3853 = vmatprep.subr.bf16.mxu1 %v4190_v47  ;;  %3901 = vmatprep.subr.bf16.mxu0 %v4191_v48  ;;  %v4573_v58 = vpack.c.bf16 %v191_v38, %v190_v37  ;;  %v747_v37 = vld [vmem:[%s4285_s23 + $0x152] sm:$0xff]  ;;  %v748_v38 = vld [vmem:[%s4285_s23 + $0x15a] sm:$0xff] }
  0x53   : > { %v750_v0 = vld [vmem:[%s4285_s23 + $0x172] sm:$0xff] }
  0x54   : > { %3774 = vmatmul.mubr.bf16.gmra.mxu1 %v4477_v49  ;;  %3822 = vmatmul.mubr.bf16.gmra.mxu0 %v4479_v50  ;;  %v4219_v19 = vld [vmem:[%s5417_s1 + $0x238] sm:$0xff]  }
  0x55   : > { %3777 = vmatprep.mubr.bf16.mxu1 %v4481_v51  ;;  %3825 = vmatprep.mubr.bf16.mxu0 %v4483_v52 }
  0x56   : > { %3854 = vmatpush3.bf16.msra.mxu1 %v4190_v47  ;;  %3902 = vmatpush3.bf16.msra.mxu0 %v4191_v48  ;;  %v193_v47 = vld [vmem:[%s4285_s23 + $0xf8] sm:$0xff] }
  0x57   : > { %3855 = vmatprep.subr.bf16.mxu1 %v4192_v53  ;;  %3903 = vmatprep.subr.bf16.mxu0 %v4193_v62  ;;  %v739_v48 = vld [vmem:[%s4285_s23 + $0xf2] sm:$0xff] }
  0x5a   : > { %3856 = vmatpush3.bf16.msra.mxu1 %v4192_v53  ;;  %3904 = vmatpush3.bf16.msra.mxu0 %v4193_v62  ;;  %v740_v53 = vld [vmem:[%s4285_s23 + $0xfa] sm:$0xff]  ;;  %v4577_v62 = vpack.c.bf16 %v193_v47, %v192_v46  ;;  %v4619_v46 = vpack.c.bf16 %v748_v38, %v747_v37  ;;  %v202_v47 = vld [vmem:[%s4285_s23 + $0x168] sm:$0xff] }
  0x5b   : > { %3857 = vmatprep.subr.bf16.mxu1 %v4194_v3  ;;  %3905 = vmatprep.subr.bf16.mxu0 %v4195_v4  ;;  %v4579_v63 = vpack.c.bf16 %v740_v53, %v739_v48  ;;  %v203_v48 = vld [vmem:[%s4285_s23 + $0x170] sm:$0xff] }
  0x5c   : > { %3778 = vmatmul.mubr.bf16.gmra.mxu1 %v4509_v7  ;;  %3826 = vmatmul.mubr.bf16.gmra.mxu0 %v4511_v8  ;;  %v749_v53 = vld [vmem:[%s4285_s23 + $0x16a] sm:$0xff]  ;;  %v4629_v1 = vpack.c.bf16 %v203_v48, %v202_v47  ;;  %v3348_v47 = vld [vmem:[%s4285_s23 + $0x1a0] sm:$0xff] }
  0x5d   : > { %3781 = vmatprep.mubr.bf16.mxu1 %v4513_v10  ;;  %3829 = vmatprep.mubr.bf16.mxu0 %v4515_v11  ;;  %v3373_v48 = vld [vmem:[%s4285_s23 + $0x31] sm:$0xff] }
  0x5e   : > { %3858 = vmatpush3.bf16.msra.mxu1 %v4194_v3  ;;  %3906 = vmatpush3.bf16.msra.mxu0 %v4195_v4  ;;  %v742_v3 = vld [vmem:[%s4285_s23 + $0x112] sm:$0xff]  ;;  %v196_v4 = vld [vmem:[%s4285_s23 + $0x120] sm:$0xff] }
  0x5f   : > { %3859 = vmatprep.subr.bf16.mxu1 %v4196_v12  ;;  %3907 = vmatprep.subr.bf16.mxu0 %v4197_v17  ;;  %v4595_v16 = vpack.c.bf16 %v742_v3, %v741_v2  ;;  %v4631_v2 = vpack.c.bf16 %v750_v0, %v749_v53  ;;  %v4204_v3 = vld [vmem:[%s5417_s1 + $0x170] sm:$0xff]  }
  0x62   : > { %3860 = vmatpush3.bf16.msra.mxu1 %v4196_v12  ;;  %3908 = vmatpush3.bf16.msra.mxu0 %v4197_v17  ;;  %v197_v12 = vld [vmem:[%s4285_s23 + $0x128] sm:$0xff] }
  0x63   : > { %3861 = vmatprep.subr.bf16.mxu1 %v4198_v24  ;;  %3909 = vmatprep.subr.bf16.mxu0 %v4199_v25  ;;  %v4597_v17 = vpack.c.bf16 %v197_v12, %v196_v4  ;;  %v4205_v4 = vld [vmem:[%s5417_s1 + $0x1b0] sm:$0xff]   ;;  %v4214_v12 = vld [vmem:[%s5417_s1 + $0x148] sm:$0xff]  }
  0x64   : > { %3782 = vmatmul.mubr.bf16.gmra.mxu1 %v4541_v26  ;;  %3830 = vmatmul.mubr.bf16.gmra.mxu0 %v4543_v33 }
  0x65   : > { %3785 = vmatprep.mubr.bf16.mxu1 %v4545_v34  ;;  %3833 = vmatprep.mubr.bf16.mxu0 %v4547_v35 }
  0x66   : > { %3862 = vmatpush3.bf16.msra.mxu1 %v4198_v24  ;;  %3910 = vmatpush3.bf16.msra.mxu0 %v4199_v25  ;;  %v746_v24 = vld [vmem:[%s4285_s23 + $0x142] sm:$0xff]  ;;  %v200_v25 = vld [vmem:[%s4285_s23 + $0x150] sm:$0xff] }
  0x67   : > { %3863 = vmatprep.subr.bf16.mxu1 %v4200_v36  ;;  %3911 = vmatprep.subr.bf16.mxu0 %v4201_v43  ;;  %v4615_v42 = vpack.c.bf16 %v746_v24, %v745_v21 }
  0x6a   : > { %3864 = vmatpush3.bf16.msra.mxu1 %v4200_v36  ;;  %3912 = vmatpush3.bf16.msra.mxu0 %v4201_v43  ;;  %v201_v36 = vld [vmem:[%s4285_s23 + $0x158] sm:$0xff] }
  0x6b   : > { %3945 = vmatprep.subr.bf16.mxu1 %v4202_v56  ;;  %3993 = vmatprep.subr.bf16.mxu0 %v4203_v57  ;;  %v4617_v43 = vpack.c.bf16 %v201_v36, %v200_v25 }
  0x6c   : > { %3786 = vmatmul.mubr.bf16.gmra.mxu1 %v4573_v58  ;;  %3834 = vmatmul.mubr.bf16.gmra.mxu0 %v4575_v59 }
  0x6d   : > { %3789 = vmatprep.mubr.bf16.mxu1 %v4577_v62  ;;  %3837 = vmatprep.mubr.bf16.mxu0 %v4579_v63 }
  0x74   : > { %3790 = vmatmul.mubr.bf16.gmra.mxu1 %v4593_v15  ;;  %3838 = vmatmul.mubr.bf16.gmra.mxu0 %v4595_v16 }
  0x75   : > { %3793 = vmatprep.mubr.bf16.mxu1 %v4597_v17  ;;  %3841 = vmatprep.mubr.bf16.mxu0 %v4599_v18 }
  0x7c   : > { %3794 = vmatmul.mubr.bf16.gmra.mxu1 %v4613_v41  ;;  %3842 = vmatmul.mubr.bf16.gmra.mxu0 %v4615_v42 }
  0x7d   : > { %3797 = vmatprep.mubr.bf16.mxu1 %v4617_v43  ;;  %3845 = vmatprep.mubr.bf16.mxu0 %v4619_v46 }
  0x84   : > { %3798 = vmatmul.mubr.bf16.gmra.mxu1 %v4629_v1  ;;  %3846 = vmatmul.mubr.bf16.gmra.mxu0 %v4631_v2 }
  0x85   : > { %3865 = vmatprep.mubr.bf16.mxu1 %v4445_v27  ;;  %3913 = vmatprep.mubr.bf16.mxu0 %v4321_v22  ;;  %v4206_v22 = vld [vmem:[%s5417_s1 + $0x168] sm:$0xff]  }
  0x86   : > { %v4207_v27 = vld [vmem:[%s5417_s1 + $0x1a8] sm:$0xff]  }
  0x8c   : > { %3866 = vmatmul.mubr.bf16.vlgmr.msra.gmra.mxu1 %v4449_v31  ;;  %3914 = vmatmul.mubr.bf16.vlgmr.msra.gmra.mxu0 %v4333_v28  ;;  %v4208_v28 = vld [vmem:[%s5417_s1 + $0x160] sm:$0xff]  }
  0x8d   : > { %3946 = vmatpush3.bf16.msra.mxu1 %v4202_v56  ;;  %3994 = vmatpush3.bf16.msra.mxu0 %v4203_v57  ;;  %v4210_v56 = vld [vmem:[%s5417_s1 + $0x158] sm:$0xff]  }
  0x8e   : > { %3869 = vmatprep.mubr.bf16.mxu1 %v4477_v49  ;;  %3917 = vmatprep.mubr.bf16.mxu0 %v4354_v39  ;;  %v4209_v39 = vld [vmem:[%s5417_s1 + $0x1a0] sm:$0xff]   ;;  %v4211_v57 = vld [vmem:[%s5417_s1 + $0x198] sm:$0xff]  }
  0x8f   : > { %3947 = vmatprep.subr.bf16.mxu1 %v4204_v3  ;;  %3995 = vmatprep.subr.bf16.mxu0 %v4205_v4 }
  0x91   : > { %3948 = vmatpush3.bf16.msra.mxu1 %v4204_v3  ;;  %3996 = vmatpush3.bf16.msra.mxu0 %v4205_v4  ;;  %v3374_v3 = vld [vmem:[%s4285_s23 + $0x39] sm:$0xff] }
  0x92   : > { %3949 = vmatprep.subr.bf16.mxu1 %v4206_v22  ;;  %3997 = vmatprep.subr.bf16.mxu0 %v4207_v27  ;;  %v3429_v4 = vld [vmem:[%s4285_s23 + $0x32] sm:$0xff] }
  0x94   : > { %3870 = vmatmul.mubr.bf16.gmra.mxu1 %v4481_v51  ;;  %3918 = vmatmul.mubr.bf16.gmra.mxu0 %v4365_v44  ;;  %v4212_v44 = vld [vmem:[%s5417_s1 + $0x150] sm:$0xff]  }
  0x95   : > { %3873 = vmatprep.mubr.bf16.mxu1 %v4509_v7  ;;  %3921 = vmatprep.mubr.bf16.mxu0 %v4385_v54  ;;  %v4213_v54 = vld [vmem:[%s5417_s1 + $0x190] sm:$0xff]  }
  0x96   : > { %3950 = vmatpush3.bf16.msra.mxu1 %v4206_v22  ;;  %3998 = vmatpush3.bf16.msra.mxu0 %v4207_v27 }
  0x97   : > { %3951 = vmatprep.subr.bf16.mxu1 %v4208_v28  ;;  %3999 = vmatprep.subr.bf16.mxu0 %v4209_v39 }
  0x9a   : > { %3952 = vmatpush3.bf16.msra.mxu1 %v4208_v28  ;;  %4000 = vmatpush3.bf16.msra.mxu0 %v4209_v39  ;;  %v2283_v28 = vpack.c.bf16 %v3374_v3, %v3373_v48  ;;  %v3437_v48 = vld [vmem:[%s4285_s23 + $0x92] sm:$0xff]  ;;  %v3438_v3 = vld [vmem:[%s4285_s23 + $0x9a] sm:$0xff] }
  0x9b   : > { %3953 = vmatprep.subr.bf16.mxu1 %v4210_v56  ;;  %4001 = vmatprep.subr.bf16.mxu0 %v4211_v57 }
  0x9c   : > { %3874 = vmatmul.mubr.bf16.gmra.mxu1 %v4513_v10  ;;  %3922 = vmatmul.mubr.bf16.gmra.mxu0 %v4397_v60  ;;  %v4216_v60 = vld [vmem:[%s5417_s1 + $0x140] sm:$0xff]  }
  0x9d   : > { %3877 = vmatprep.mubr.bf16.mxu1 %v4541_v26  ;;  %3925 = vmatprep.mubr.bf16.mxu0 %v4416_v5  ;;  %v4217_v5 = vld [vmem:[%s5417_s1 + $0x180] sm:$0xff]  }
  0x9e   : > { %3954 = vmatpush3.bf16.msra.mxu1 %v4210_v56  ;;  %4002 = vmatpush3.bf16.msra.mxu0 %v4211_v57 }
  0x9f   : > { %3955 = vmatprep.subr.bf16.mxu1 %v4212_v44  ;;  %4003 = vmatprep.subr.bf16.mxu0 %v4213_v54 }
  0xa2   : > { %3956 = vmatpush3.bf16.msra.mxu1 %v4212_v44  ;;  %4004 = vmatpush3.bf16.msra.mxu0 %v4213_v54 }
  0xa3   : > { %3957 = vmatprep.subr.bf16.mxu1 %v4214_v12  ;;  %4005 = vmatprep.subr.bf16.mxu0 %v4215_v13 }
  0xa4   : > { %3878 = vmatmul.mubr.bf16.gmra.mxu1 %v4545_v34  ;;  %3926 = vmatmul.mubr.bf16.gmra.mxu0 %v4294_v9  ;;  %v3179_v9 = vld [vmem:[%s4285_s23 + $0x180] sm:$0xff] }
  0xa5   : > { %3881 = vmatprep.mubr.bf16.mxu1 %v4573_v58  ;;  %3929 = vmatprep.mubr.bf16.mxu0 %v4323_v23  ;;  %v3180_v23 = vld [vmem:[%s4285_s23 + $0x188] sm:$0xff] }
  0xa6   : > { %3958 = vmatpush3.bf16.msra.mxu1 %v4214_v12  ;;  %4006 = vmatpush3.bf16.msra.mxu0 %v4215_v13  ;;  %v4717_v20 = vpack.c.bf16 %v3180_v23, %v3179_v9  ;;  %v3375_v12 = vld [vmem:[%s4285_s23 + $0x49] sm:$0xff]  ;;  %v3376_v13 = vld [vmem:[%s4285_s23 + $0x51] sm:$0xff] }
  0xa7   : > { %3959 = vmatprep.subr.bf16.mxu1 %v4216_v60  ;;  %4007 = vmatprep.subr.bf16.mxu0 %v4217_v5  ;;  %v3378_v23 = vld [vmem:[%s4285_s23 + $0x69] sm:$0xff] }
  0xaa   : > { %3960 = vmatpush3.bf16.msra.mxu1 %v4216_v60  ;;  %4008 = vmatpush3.bf16.msra.mxu0 %v4217_v5  ;;  %v3431_v60 = vld [vmem:[%s4285_s23 + $0x4a] sm:$0xff]  ;;  %v3432_v5 = vld [vmem:[%s4285_s23 + $0x52] sm:$0xff] }
  0xab   : > { %4041 = vmatprep.subr.bf16.mxu1 %v4218_v14  ;;  %4089 = vmatprep.subr.bf16.mxu0 %v4219_v19 }
  0xac   : > { %3882 = vmatmul.mubr.bf16.gmra.mxu1 %v4577_v62  ;;  %3930 = vmatmul.mubr.bf16.gmra.mxu0 %v4335_v29  ;;  %v3235_v29 = vld [vmem:[%s4285_s23 + $0x181] sm:$0xff] }
  0xad   : > { %3885 = vmatprep.mubr.bf16.mxu1 %v4593_v15  ;;  %3933 = vmatprep.mubr.bf16.mxu0 %v4356_v40  ;;  %v3236_v40 = vld [vmem:[%s4285_s23 + $0x189] sm:$0xff] }
  0xae   : > { %v4719_v21 = vpack.c.bf16 %v3236_v40, %v3235_v29  ;;  %v3433_v29 = vld [vmem:[%s4285_s23 + $0x62] sm:$0xff]  ;;  %v3434_v40 = vld [vmem:[%s4285_s23 + $0x6a] sm:$0xff] }
  0xb4   : > { %3886 = vmatmul.mubr.bf16.gmra.mxu1 %v4597_v17  ;;  %3934 = vmatmul.mubr.bf16.gmra.mxu0 %v4367_v45  ;;  %v4220_v45 = vld [vmem:[%s5417_s1 + $0x1f0] sm:$0xff]  }
  0xb5   : > { %3889 = vmatprep.mubr.bf16.mxu1 %v4613_v41  ;;  %3937 = vmatprep.mubr.bf16.mxu0 %v4387_v55  ;;  %v4221_v55 = vld [vmem:[%s5417_s1 + $0x230] sm:$0xff]  }
  0xbc   : > { %3890 = vmatmul.mubr.bf16.gmra.mxu1 %v4617_v43  ;;  %3938 = vmatmul.mubr.bf16.gmra.mxu0 %v4399_v61  ;;  %v4222_v61 = vld [vmem:[%s5417_s1 + $0x1e8] sm:$0xff]  }
  0xbd   : > { %3893 = vmatprep.mubr.bf16.mxu1 %v4629_v1  ;;  %3941 = vmatprep.mubr.bf16.mxu0 %v4418_v6  ;;  %v4223_v6 = vld [vmem:[%s5417_s1 + $0x228] sm:$0xff]  }
  0xc4   : > { %3894 = vmatmul.mubr.bf16.gmra.mxu1 %v4717_v20  ;;  %3942 = vmatmul.mubr.bf16.gmra.mxu0 %v4719_v21 }
  0xc5   : > { %3961 = vmatprep.mubr.bf16.mxu1 %v4447_v30  ;;  %4009 = vmatprep.mubr.bf16.mxu0 %v4449_v31  ;;  %v4224_v30 = vld [vmem:[%s5417_s1 + $0x1e0] sm:$0xff]  }
  0xc6   : > { %v4225_v31 = vld [vmem:[%s5417_s1 + $0x220] sm:$0xff]  }
  0xcc   : > { %3962 = vmatmul.mubr.bf16.vlgmr.msra.gmra.mxu1 %v4451_v32  ;;  %4010 = vmatmul.mubr.bf16.vlgmr.msra.gmra.mxu0 %v4477_v49  ;;  %v4226_v32 = vld [vmem:[%s5417_s1 + $0x1d8] sm:$0xff]  }
  0xcd   : > { %4042 = vmatpush3.bf16.msra.mxu1 %v4218_v14  ;;  %4090 = vmatpush3.bf16.msra.mxu0 %v4219_v19  ;;  %v4227_v49 = vld [vmem:[%s5417_s1 + $0x218] sm:$0xff]   ;;  %v3377_v14 = vld [vmem:[%s4285_s23 + $0x61] sm:$0xff] }
  0xce   : > { %3965 = vmatprep.mubr.bf16.mxu1 %v4479_v50  ;;  %4013 = vmatprep.mubr.bf16.mxu0 %v4481_v51  ;;  %v4228_v50 = vld [vmem:[%s5417_s1 + $0x1d0] sm:$0xff]  }
  0xcf   : > { %4043 = vmatprep.subr.bf16.mxu1 %v4220_v45  ;;  %4091 = vmatprep.subr.bf16.mxu0 %v4221_v55  ;;  %v4229_v51 = vld [vmem:[%s5417_s1 + $0x210] sm:$0xff]  }
  0xd1   : > { %4044 = vmatpush3.bf16.msra.mxu1 %v4220_v45  ;;  %4092 = vmatpush3.bf16.msra.mxu0 %v4221_v55  ;;  %v2284_v55 = vpack.c.bf16 %v3376_v13, %v3375_v12 }
  0xd2   : > { %4045 = vmatprep.subr.bf16.mxu1 %v4222_v61  ;;  %4093 = vmatprep.subr.bf16.mxu0 %v4223_v6 }
  0xd4   : > { %3966 = vmatmul.mubr.bf16.gmra.mxu1 %v4483_v52  ;;  %4014 = vmatmul.mubr.bf16.gmra.mxu0 %v4509_v7  ;;  %v4230_v52 = vld [vmem:[%s5417_s1 + $0x1c8] sm:$0xff]  }
  0xd5   : > { %3969 = vmatprep.mubr.bf16.mxu1 %v4511_v8  ;;  %4017 = vmatprep.mubr.bf16.mxu0 %v4513_v10  ;;  %v4231_v7 = vld [vmem:[%s5417_s1 + $0x208] sm:$0xff]   ;;  %v4232_v8 = vld [vmem:[%s5417_s1 + $0x1c0] sm:$0xff]  }
  0xd6   : > { %4046 = vmatpush3.bf16.msra.mxu1 %v4222_v61  ;;  %4094 = vmatpush3.bf16.msra.mxu0 %v4223_v6  ;;  %v4233_v10 = vld [vmem:[%s5417_s1 + $0x200] sm:$0xff]   ;;  %v2590_v61 = vpack.c.bf16 %v3432_v5, %v3431_v60  ;;  %v2285_v6 = vpack.c.bf16 %v3378_v23, %v3377_v14  ;;  %v2593_v5 = vpack.c.bf16 %v3438_v3, %v3437_v48 }
  0xd7   : > { %4047 = vmatprep.subr.bf16.mxu1 %v4224_v30  ;;  %4095 = vmatprep.subr.bf16.mxu0 %v4225_v31 }
  0xda   : > { %4048 = vmatpush3.bf16.msra.mxu1 %v4224_v30  ;;  %4096 = vmatpush3.bf16.msra.mxu0 %v4225_v31  ;;  %v2591_v30 = vpack.c.bf16 %v3434_v40, %v3433_v29 }
  0xdb   : > { %4049 = vmatprep.subr.bf16.mxu1 %v4226_v32  ;;  %4097 = vmatprep.subr.bf16.mxu0 %v4227_v49 }
  0xdc   : > { %3970 = vmatmul.mubr.bf16.gmra.mxu1 %v4515_v11  ;;  %4018 = vmatmul.mubr.bf16.gmra.mxu0 %v4541_v26 }
  0xdd   : > { %3973 = vmatprep.mubr.bf16.mxu1 %v4543_v33  ;;  %4021 = vmatprep.mubr.bf16.mxu0 %v4545_v34 }
  0xde   : > { %4050 = vmatpush3.bf16.msra.mxu1 %v4226_v32  ;;  %4098 = vmatpush3.bf16.msra.mxu0 %v4227_v49 }
  0xdf   : > { %4051 = vmatprep.subr.bf16.mxu1 %v4228_v50  ;;  %4099 = vmatprep.subr.bf16.mxu0 %v4229_v51 }
  0xe2   : > { %4052 = vmatpush3.bf16.msra.mxu1 %v4228_v50  ;;  %4100 = vmatpush3.bf16.msra.mxu0 %v4229_v51  ;;  %v3379_v51 = vld [vmem:[%s4285_s23 + $0x79] sm:$0xff] }
  0xe3   : > { %4053 = vmatprep.subr.bf16.mxu1 %v4230_v52  ;;  %4101 = vmatprep.subr.bf16.mxu0 %v4231_v7 }
  0xe4   : > { %3974 = vmatmul.mubr.bf16.gmra.mxu1 %v4547_v35  ;;  %4022 = vmatmul.mubr.bf16.gmra.mxu0 %v4573_v58 }
  0xe5   : > { %3977 = vmatprep.mubr.bf16.mxu1 %v4575_v59  ;;  %4025 = vmatprep.mubr.bf16.mxu0 %v4577_v62 }
  0xe6   : > { %4054 = vmatpush3.bf16.msra.mxu1 %v4230_v52  ;;  %4102 = vmatpush3.bf16.msra.mxu0 %v4231_v7  ;;  %v3380_v52 = vld [vmem:[%s4285_s23 + $0x81] sm:$0xff] }
  0xe7   : > { %4055 = vmatprep.subr.bf16.mxu1 %v4232_v8  ;;  %4103 = vmatprep.subr.bf16.mxu0 %v4233_v10 }
  0xea   : > { %4056 = vmatpush3.bf16.msra.mxu1 %v4232_v8  ;;  %4104 = vmatpush3.bf16.msra.mxu0 %v4233_v10  ;;  %v3435_v8 = vld [vmem:[%s4285_s23 + $0x7a] sm:$0xff]  ;;  %v3436_v10 = vld [vmem:[%s4285_s23 + $0x82] sm:$0xff] }
  0xec   : > { %v4783_v11 = vpop.f32.mrf.mxu0  ;;  %v4785_v26 = vpop.f32.mrf.mxu1  ;;  %3978 = vmatmul.mubr.bf16.gmra.mxu1 %v4579_v63  ;;  %4026 = vmatmul.mubr.bf16.gmra.mxu0 %v4593_v15 }
  0xed   : > { %3981 = vmatprep.mubr.bf16.mxu1 %v4595_v16  ;;  %4029 = vmatprep.mubr.bf16.mxu0 %v4597_v17 }
  0xee   : > { %v4791_v33 = vpop.f32.mrf.mxu0  ;;  %v4793_v34 = vpop.f32.mrf.mxu1 }
  0xf0   : > { %v4795_v35 = vpop.f32.mrf.mxu0  ;;  %v4797_v58 = vpop.f32.mrf.mxu1 }
  0xf2   : > { %v4799_v59 = vpop.f32.mrf.mxu0  ;;  %v4801_v62 = vpop.f32.mrf.mxu1 }
  0xf4   : > { %v4803_v24 = vpop.f32.mrf.mxu0  ;;  %v4805_v63 = vpop.f32.mrf.mxu1  ;;  %3982 = vmatmul.mubr.bf16.gmra.mxu1 %v4599_v18  ;;  %4030 = vmatmul.mubr.bf16.gmra.mxu0 %v4613_v41  ;;  %v3291_v41 = vld [vmem:[%s4285_s23 + $0x182] sm:$0xff] }
  0xf5   : > { %3985 = vmatprep.mubr.bf16.mxu1 %v4615_v42  ;;  %4033 = vmatprep.mubr.bf16.mxu0 %v4617_v43  ;;  %v3292_v42 = vld [vmem:[%s4285_s23 + $0x18a] sm:$0xff]  ;;  %v3347_v43 = vld [vmem:[%s4285_s23 + $0x198] sm:$0xff] }
  0xf6   : > { %v4811_v15 = vpop.f32.mrf.mxu0  ;;  %v4813_v16 = vpop.f32.mrf.mxu1  ;;  %v1992_v27 = vpack.c.bf16 %v3348_v47, %v3347_v43  ;;  %v3382_v47 = vld [vmem:[%s4285_s23 + $0x99] sm:$0xff] }
  0xf8   : > { %v4815_v17 = vpop.f32.mrf.mxu0  ;;  %v4817_v25 = vpop.f32.mrf.mxu1 }
  0xfa   : > { %v4819_v36 = vpop.f32.mrf.mxu0  ;;  %v4821_v18 = vpop.f32.mrf.mxu1 }
  0xfc   : > { %v4823_v37 = vpop.f32.mrf.mxu0  ;;  %v4825_v38 = vpop.f32.mrf.mxu1  ;;  %3986 = vmatmul.mubr.bf16.gmra.mxu1 %v4619_v46  ;;  %4034 = vmatmul.mubr.bf16.gmra.mxu0 %v4629_v1  ;;  %v3430_v46 = vld [vmem:[%s4285_s23 + $0x3a] sm:$0xff] }
  0xfd   : > { %3989 = vmatprep.mubr.bf16.mxu1 %v4631_v2  ;;  %4037 = vmatprep.mubr.bf16.mxu0 %v4717_v20  ;;  %v4847_v2 = vpack.c.bf16 %v3292_v42, %v3291_v41  ;;  %v2589_v39 = vpack.c.bf16 %v3430_v46, %v3429_v4  ;;  %v3381_v41 = vld [vmem:[%s4285_s23 + $0x91] sm:$0xff] }
  0xfe   : > { %v4836_v53 = vpop.f32.mrf.mxu0  ;;  %v4838_v0 = vpop.f32.mrf.mxu1  ;;  %v2287_v60 = vpack.c.bf16 %v3382_v47, %v3381_v41 }
 0x100   : > { %v4843_v22 = vpop.f32.mrf.mxu0  ;;  %v4845_v1 = vpop.f32.mrf.mxu1 }
 0x102   : > { %v4849_v56 = vpop.f32.mrf.mxu0  ;;  %v4851_v57 = vpop.f32.mrf.mxu1 }
 0x104   : > { %v4853_v44 = vpop.f32.mrf.mxu0  ;;  %v4855_v54 = vpop.f32.mrf.mxu1  ;;  %3990 = vmatmul.mubr.bf16.gmra.mxu1 %v4847_v2  ;;  %4038 = vmatmul.mubr.bf16.gmra.mxu0 %v1992_v27 }
 0x105   : > { %4057 = vmatprep.mubr.bf16.mxu1 %v2283_v28  ;;  %4105 = vmatprep.mubr.bf16.mxu0 %v2589_v39  ;;  %v2286_v39 = vpack.c.bf16 %v3380_v52, %v3379_v51  ;;  %v3385_v51 = vld [vmem:[%s4285_s23 + $0xc1] sm:$0xff] }
 0x106   : > { %v4863_v19 = vpop.f32.mrf.mxu0  ;;  %v4865_v9 = vpop.f32.mrf.mxu1 }
 0x108   : > { %v4870_v20 = vpop.f32.mrf.mxu0  ;;  %v4872_v45 = vpop.f32.mrf.mxu1 }
 0x10a   : > { %v4874_v31 = vpop.f32.mrf.mxu0  ;;  %v4876_v32 = vpop.f32.mrf.mxu1 }
 0x10c   : > { %v3771_v49 = vpop.f32.mrf.mxu1  ;;  %v3819_v50 = vpop.f32.mrf.mxu0  ;;  %4058 = vmatmul.mubr.bf16.vlgmr.msra.gmra.mxu1 %v2284_v55  ;;  %4106 = vmatmul.mubr.bf16.vlgmr.msra.gmra.mxu0 %v2590_v61  ;;  %v3383_v61 = vld [vmem:[%s4285_s23 + $0xa9] sm:$0xff] }
 0x10d   : > { %v601_v7 = vadd.f32 %v3771_v49, %v4783_v11  ;;  %4061 = vmatprep.mubr.bf16.mxu1 %v2285_v6  ;;  %4109 = vmatprep.mubr.bf16.mxu0 %v2591_v30  ;;  %v2592_v11 = vpack.c.bf16 %v3436_v10, %v3435_v8  ;;  %v3439_v49 = vld [vmem:[%s4285_s23 + $0xaa] sm:$0xff]  ;;  %v3441_v8 = vld [vmem:[%s4285_s23 + $0xc2] sm:$0xff] }
 0x10e   : > { %v592_v42 = vpop.f32.mrf.mxu1  ;;  %v866_v43 = vpop.f32.mrf.mxu0  ;;  %v3442_v10 = vld [vmem:[%s4285_s23 + $0xca] sm:$0xff] }
 0x10f   : > { %v4887_v4 = vadd.f32 %v3819_v50, %v601_v7  ;;  %v593_v46 = vadd.f32 %v592_v42, %v4791_v33  ;;  %v3440_v50 = vld [vmem:[%s4285_s23 + $0xb2] sm:$0xff]  ;;  %v3386_v7 = vld [vmem:[%s4285_s23 + $0xc9] sm:$0xff] }
 0x110   : > { %v3772_v27 = vpop.f32.mrf.mxu1  ;;  %v3820_v28 = vpop.f32.mrf.mxu0 }
 0x111   : > { %v4890_v12 = vadd.f32 %v866_v43, %v593_v46  ;;  %v604_v13 = vadd.f32 %v3772_v27, %v4795_v35  ;;  %v3384_v35 = vld [vmem:[%s4285_s23 + $0xb1] sm:$0xff]  ;;  %v2289_v27 = vpack.c.bf16 %v3386_v7, %v3385_v51 }
 0x112   : > { %v595_v14 = vpop.f32.mrf.mxu1  ;;  %v869_v23 = vpop.f32.mrf.mxu0  ;;  %v2288_v48 = vpack.c.bf16 %v3384_v35, %v3383_v61  ;;  %v3389_v61 = vld [vmem:[%s4285_s23 + $0xf1] sm:$0xff] }
 0x113   : > { %v4893_v29 = vadd.f32 %v3820_v28, %v604_v13  ;;  %v596_v33 = vadd.f32 %v595_v14, %v4799_v59  ;;  %v2595_v28 = vpack.c.bf16 %v3442_v10, %v3441_v8  ;;  %v3387_v14 = vld [vmem:[%s4285_s23 + $0xd9] sm:$0xff] }
 0x114   : > { %v3775_v40 = vpop.f32.mrf.mxu1  ;;  %v3823_v55 = vpop.f32.mrf.mxu0  ;;  %4062 = vmatmul.mubr.bf16.gmra.mxu1 %v2286_v39  ;;  %4110 = vmatmul.mubr.bf16.gmra.mxu0 %v2592_v11 }
 0x115   : > { %v4898_v6 = vadd.f32 %v869_v23, %v596_v33  ;;  %v617_v30 = vadd.f32 %v3775_v40, %v4803_v24  ;;  %4065 = vmatprep.mubr.bf16.mxu1 %v2287_v60  ;;  %4113 = vmatprep.mubr.bf16.mxu0 %v2593_v5  ;;  %v2594_v24 = vpack.c.bf16 %v3440_v50, %v3439_v49  ;;  %v3443_v40 = vld [vmem:[%s4285_s23 + $0xda] sm:$0xff]  ;;  %v3445_v49 = vld [vmem:[%s4285_s23 + $0xf2] sm:$0xff] }
 0x116   : > { %v608_v52 = vpop.f32.mrf.mxu1  ;;  %v882_v59 = vpop.f32.mrf.mxu0  ;;  %v3446_v50 = vld [vmem:[%s4285_s23 + $0xfa] sm:$0xff] }
 0x117   : > { %v4907_v41 = vadd.f32 %v3823_v55, %v617_v30  ;;  %v609_v42 = vadd.f32 %v608_v52, %v4811_v15  ;;  %v3444_v55 = vld [vmem:[%s4285_s23 + $0xe2] sm:$0xff]  ;;  %v3390_v30 = vld [vmem:[%s4285_s23 + $0xf9] sm:$0xff] }
 0x118   : > { %v3776_v43 = vpop.f32.mrf.mxu1  ;;  %v3824_v47 = vpop.f32.mrf.mxu0 }
 0x119   : > { %v4910_v3 = vadd.f32 %v882_v59, %v609_v42  ;;  %v620_v46 = vadd.f32 %v3776_v43, %v4815_v17  ;;  %v3388_v17 = vld [vmem:[%s4285_s23 + $0xe1] sm:$0xff]  ;;  %v2291_v43 = vpack.c.bf16 %v3390_v30, %v3389_v61 }
 0x11a   : > { %v611_v39 = vpop.f32.mrf.mxu1  ;;  %v885_v11 = vpop.f32.mrf.mxu0  ;;  %v2290_v8 = vpack.c.bf16 %v3388_v17, %v3387_v14  ;;  %v3393_v14 = vld [vmem:[%s4285_s23 + $0x121] sm:$0xff] }
 0x11b   : > { %v4913_v13 = vadd.f32 %v3824_v47, %v620_v46  ;;  %v612_v15 = vadd.f32 %v611_v39, %v4819_v36  ;;  %v2597_v47 = vpack.c.bf16 %v3446_v50, %v3445_v49  ;;  %v3391_v39 = vld [vmem:[%s4285_s23 + $0x109] sm:$0xff] }
 0x11c   : > { %v3779_v60 = vpop.f32.mrf.mxu1  ;;  %v3827_v5 = vpop.f32.mrf.mxu0  ;;  %4066 = vmatmul.mubr.bf16.gmra.mxu1 %v2288_v48  ;;  %4114 = vmatmul.mubr.bf16.gmra.mxu0 %v2594_v24 }
 0x11d   : > { %v4918_v23 = vadd.f32 %v885_v11, %v612_v15  ;;  %v633_v33 = vadd.f32 %v3779_v60, %v4823_v37  ;;  %4069 = vmatprep.mubr.bf16.mxu1 %v2289_v27  ;;  %4117 = vmatprep.mubr.bf16.mxu0 %v2595_v28  ;;  %v2596_v37 = vpack.c.bf16 %v3444_v55, %v3443_v40  ;;  %v3447_v60 = vld [vmem:[%s4285_s23 + $0x10a] sm:$0xff]  ;;  %v3449_v40 = vld [vmem:[%s4285_s23 + $0x122] sm:$0xff] }
 0x11e   : > { %v624_v35 = vpop.f32.mrf.mxu1  ;;  %v898_v36 = vpop.f32.mrf.mxu0  ;;  %v3450_v55 = vld [vmem:[%s4285_s23 + $0x12a] sm:$0xff] }
 0x11f   : > { %v4927_v51 = vadd.f32 %v3827_v5, %v633_v33  ;;  %v625_v52 = vadd.f32 %v624_v35, %v4836_v53  ;;  %v3448_v5 = vld [vmem:[%s4285_s23 + $0x112] sm:$0xff]  ;;  %v3394_v33 = vld [vmem:[%s4285_s23 + $0x129] sm:$0xff] }
 0x120   : > { %v3780_v59 = vpop.f32.mrf.mxu1  ;;  %v3828_v7 = vpop.f32.mrf.mxu0 }
 0x121   : > { %v4930_v10 = vadd.f32 %v898_v36, %v625_v52  ;;  %v636_v42 = vadd.f32 %v3780_v59, %v4843_v22  ;;  %v3392_v22 = vld [vmem:[%s4285_s23 + $0x111] sm:$0xff]  ;;  %v2293_v59 = vpack.c.bf16 %v3394_v33, %v3393_v14 }
 0x122   : > { %v627_v48 = vpop.f32.mrf.mxu1  ;;  %v901_v24 = vpop.f32.mrf.mxu0  ;;  %v2292_v49 = vpack.c.bf16 %v3392_v22, %v3391_v39  ;;  %v3397_v39 = vld [vmem:[%s4285_s23 + $0x151] sm:$0xff] }
 0x123   : > { %v4933_v46 = vadd.f32 %v3828_v7, %v636_v42  ;;  %v628_v53 = vadd.f32 %v627_v48, %v4849_v56  ;;  %v2599_v7 = vpack.c.bf16 %v3450_v55, %v3449_v40  ;;  %v3395_v48 = vld [vmem:[%s4285_s23 + $0x139] sm:$0xff] }
 0x124   : > { %v3783_v27 = vpop.f32.mrf.mxu1  ;;  %v3831_v28 = vpop.f32.mrf.mxu0  ;;  %4070 = vmatmul.mubr.bf16.gmra.mxu1 %v2290_v8  ;;  %4118 = vmatmul.mubr.bf16.gmra.mxu0 %v2596_v37 }
 0x125   : > { %v4938_v11 = vadd.f32 %v901_v24, %v628_v53  ;;  %v649_v15 = vadd.f32 %v3783_v27, %v4853_v44  ;;  %4073 = vmatprep.mubr.bf16.mxu1 %v2291_v43  ;;  %4121 = vmatprep.mubr.bf16.mxu0 %v2597_v47  ;;  %v2598_v44 = vpack.c.bf16 %v3448_v5, %v3447_v60  ;;  %v3451_v27 = vld [vmem:[%s4285_s23 + $0x13a] sm:$0xff]  ;;  %v3453_v60 = vld [vmem:[%s4285_s23 + $0x152] sm:$0xff] }
 0x126   : > { %v640_v17 = vpop.f32.mrf.mxu1  ;;  %v914_v56 = vpop.f32.mrf.mxu0  ;;  %v3454_v5 = vld [vmem:[%s4285_s23 + $0x15a] sm:$0xff] }
 0x127   : > { %v4947_v61 = vadd.f32 %v3831_v28, %v649_v15  ;;  %v641_v35 = vadd.f32 %v640_v17, %v4863_v19  ;;  %v3452_v28 = vld [vmem:[%s4285_s23 + $0x142] sm:$0xff]  ;;  %v3398_v15 = vld [vmem:[%s4285_s23 + $0x159] sm:$0xff] }
 0x128   : > { %v3784_v36 = vpop.f32.mrf.mxu1  ;;  %v3832_v30 = vpop.f32.mrf.mxu0  ;;  %v2600_v55 = vpack.c.bf16 %v3452_v28, %v3451_v27 }
 0x129   : > { %v4950_v50 = vadd.f32 %v914_v56, %v641_v35  ;;  %v652_v52 = vadd.f32 %v3784_v36, %v4870_v20  ;;  %v3396_v20 = vld [vmem:[%s4285_s23 + $0x141] sm:$0xff]  ;;  %v2295_v36 = vpack.c.bf16 %v3398_v15, %v3397_v39 }
 0x12a   : > { %v643_v8 = vpop.f32.mrf.mxu1  ;;  %v917_v37 = vpop.f32.mrf.mxu0  ;;  %v2294_v40 = vpack.c.bf16 %v3396_v20, %v3395_v48 }
 0x12b   : > { %v4953_v42 = vadd.f32 %v3832_v30, %v652_v52  ;;  %v644_v19 = vadd.f32 %v643_v8, %v4874_v31  ;;  %v2601_v30 = vpack.c.bf16 %v3454_v5, %v3453_v60  ;;  %v3399_v8 = vld [vmem:[%s4285_s23 + $0x169] sm:$0xff] }
 0x12c   : > { %v3787_v43 = vpop.f32.mrf.mxu1  ;;  %v3835_v47 = vpop.f32.mrf.mxu0  ;;  %4074 = vmatmul.mubr.bf16.gmra.mxu1 %v2292_v49  ;;  %4122 = vmatmul.mubr.bf16.gmra.mxu0 %v2598_v44 }
 0x12d   : > { %v4958_v24 = vadd.f32 %v917_v37, %v644_v19  ;;  %v665_v53 = vadd.f32 %v3787_v43, %v4785_v26  ;;  %4077 = vmatprep.mubr.bf16.mxu1 %v2293_v59  ;;  %4125 = vmatprep.mubr.bf16.mxu0 %v2599_v7  ;;  %v3400_v19 = vld [vmem:[%s4285_s23 + $0x171] sm:$0xff] }
 0x12e   : > { %v656_v22 = vpop.f32.mrf.mxu1  ;;  %v930_v31 = vpop.f32.mrf.mxu0  ;;  %v3455_v43 = vld [vmem:[%s4285_s23 + $0x16a] sm:$0xff]  ;;  %v2296_v39 = vpack.c.bf16 %v3400_v19, %v3399_v8 }
 0x12f   : > { %v4967_v14 = vadd.f32 %v3835_v47, %v665_v53  ;;  %v657_v17 = vadd.f32 %v656_v22, %v4793_v34  ;;  %v3456_v47 = vld [vmem:[%s4285_s23 + $0x172] sm:$0xff] }
 0x130   : > { %v3788_v56 = vpop.f32.mrf.mxu1  ;;  %v3836_v33 = vpop.f32.mrf.mxu0  ;;  %v2602_v22 = vpack.c.bf16 %v3456_v47, %v3455_v43 }
 0x131   : > { %v4970_v26 = vadd.f32 %v930_v31, %v657_v17  ;;  %v668_v35 = vadd.f32 %v3788_v56, %v4797_v58 }
 0x132   : > { %v659_v49 = vpop.f32.mrf.mxu1  ;;  %v933_v44 = vpop.f32.mrf.mxu0 }
 0x133   : > { %v4973_v52 = vadd.f32 %v3836_v33, %v668_v35  ;;  %v660_v34 = vadd.f32 %v659_v49, %v4801_v62  ;;  %v3459_v35 = vld [vmem:[%s4285_s23 + $0x19a] sm:$0xff] }
 0x134   : > { %v3791_v59 = vpop.f32.mrf.mxu1  ;;  %v3839_v7 = vpop.f32.mrf.mxu0  ;;  %4078 = vmatmul.mubr.bf16.gmra.mxu1 %v2294_v40  ;;  %4126 = vmatmul.mubr.bf16.gmra.mxu0 %v2600_v55 }
 0x135   : > { %v4977_v37 = vadd.f32 %v933_v44, %v660_v34  ;;  %v681_v58 = vadd.f32 %v3791_v59, %v4805_v63  ;;  %4081 = vmatprep.mubr.bf16.mxu1 %v2295_v36  ;;  %4129 = vmatprep.mubr.bf16.mxu0 %v2601_v30  ;;  %v3460_v36 = vld [vmem:[%s4285_s23 + $0x1a2] sm:$0xff] }
 0x136   : > { %v672_v48 = vpop.f32.mrf.mxu1  ;;  %v946_v20 = vpop.f32.mrf.mxu0  ;;  %v2604_v8 = vpack.c.bf16 %v3460_v36, %v3459_v35 }
 0x137   : > { %v4983_v53 = vadd.f32 %v3839_v7, %v681_v58  ;;  %v673_v62 = vadd.f32 %v672_v48, %v4813_v16  ;;  %v3403_v16 = vld [vmem:[%s4285_s23 + $0x199] sm:$0xff] }
 0x138   : > { %v3792_v27 = vpop.f32.mrf.mxu1  ;;  %v3840_v28 = vpop.f32.mrf.mxu0 }
 0x139   : > { %v4986_v31 = vadd.f32 %v946_v20, %v673_v62  ;;  %v684_v63 = vadd.f32 %v3792_v27, %v4817_v25  ;;  %v3404_v25 = vld [vmem:[%s4285_s23 + $0x1a1] sm:$0xff] }
 0x13a   : > { %v675_v15 = vpop.f32.mrf.mxu1  ;;  %v949_v60 = vpop.f32.mrf.mxu0  ;;  %v2298_v7 = vpack.c.bf16 %v3404_v25, %v3403_v16 }
 0x13b   : > { %v4989_v5 = vadd.f32 %v3840_v28, %v684_v63  ;;  %v676_v17 = vadd.f32 %v675_v15, %v4821_v18 }
 0x13c   : > { %v3795_v56 = vpop.f32.mrf.mxu1  ;;  %v3843_v33 = vpop.f32.mrf.mxu0  ;;  %4082 = vmatmul.mubr.bf16.gmra.mxu1 %v2296_v39  ;;  %4130 = vmatmul.mubr.bf16.gmra.mxu0 %v2602_v22 }
 0x13d   : > { %v4993_v40 = vadd.f32 %v949_v60, %v676_v17  ;;  %v697_v55 = vadd.f32 %v3795_v56, %v4825_v38  ;;  %4085 = vmatprep.mubr.bf16.mxu1 %v4719_v21  ;;  %4133 = vmatprep.mubr.bf16.mxu0 %v4847_v2 }
 0x13e   : > { %v688_v30 = vpop.f32.mrf.mxu1  ;;  %v962_v49 = vpop.f32.mrf.mxu0 }
 0x13f   : > { %v5001_v44 = vadd.f32 %v3843_v33, %v697_v55  ;;  %v689_v18 = vadd.f32 %v688_v30, %v4838_v0 }
 0x140   : > { %v3796_v34 = vpop.f32.mrf.mxu1  ;;  %v3844_v59 = vpop.f32.mrf.mxu0 }
 0x141   : > { %v5004_v58 = vadd.f32 %v962_v49, %v689_v18  ;;  %v700_v38 = vadd.f32 %v3796_v34, %v4845_v1 }
 0x142   : > { %v691_v21 = vpop.f32.mrf.mxu1  ;;  %v965_v19 = vpop.f32.mrf.mxu0 }
 0x143   : > { %v5007_v2 = vadd.f32 %v3844_v59, %v700_v38  ;;  %v692_v43 = vadd.f32 %v691_v21, %v4851_v57 }
 0x144   : > { %v3799_v47 = vpop.f32.mrf.mxu1  ;;  %v3847_v48 = vpop.f32.mrf.mxu0  ;;  %4086 = vmatmul.mubr.bf16.gmra.mxu1 %v2298_v7  ;;  %4134 = vmatmul.mubr.bf16.gmra.mxu0 %v2604_v8 }
 0x145   : > { %v5010_v20 = vadd.f32 %v965_v19, %v692_v43  ;;  %v713_v0 = vadd.f32 %v3799_v47, %v4855_v54 }
 0x146   : > { %v704_v62 = vpop.f32.mrf.mxu1  ;;  %v978_v27 = vpop.f32.mrf.mxu0 }
 0x147   : > { %v5013_v28 = vadd.f32 %v3847_v48, %v713_v0  ;;  %v705_v1 = vadd.f32 %v704_v62, %v4865_v9 }
 0x148   : > { %v3800_v39 = vpop.f32.mrf.mxu1  ;;  %v3848_v22 = vpop.f32.mrf.mxu0 }
 0x149   : > { %v5016_v63 = vadd.f32 %v978_v27, %v705_v1  ;;  %v716_v57 = vadd.f32 %v3800_v39, %v4872_v45 }
 0x14a   : > { %v707_v15 = vpop.f32.mrf.mxu1  ;;  %v981_v60 = vpop.f32.mrf.mxu0 }
 0x14b   : > { %v5019_v17 = vadd.f32 %v3848_v22, %v716_v57  ;;  %v708_v56 = vadd.f32 %v707_v15, %v4876_v32 }
 0x14c   : > { %v3867_v33 = vpop.f32.mrf.mxu1  ;;  %v3915_v54 = vpop.f32.mrf.mxu0 }
 0x14d   : > { %v5022_v16 = vadd.f32 %v981_v60, %v708_v56  ;;  %v1302_v55 = vadd.f32 %v3867_v33, %v4887_v4 }
 0x14e   : > { %v1173_v25 = vpop.f32.mrf.mxu1  ;;  %v1479_v9 = vpop.f32.mrf.mxu0 }
 0x14f   : > { %v5025_v35 = vadd.f32 %v3915_v54, %v1302_v55  ;;  %v1300_v36 = vadd.f32 %v1173_v25, %v4890_v12 }
 0x150   : > { %v3868_v30 = vpop.f32.mrf.mxu1  ;;  %v3916_v45 = vpop.f32.mrf.mxu0 }
 0x151   : > { %v5028_v49 = vadd.f32 %v1479_v9, %v1300_v36  ;;  %v1303_v18 = vadd.f32 %v3868_v30, %v4893_v29 }
 0x152   : > { %v1176_v34 = vpop.f32.mrf.mxu1  ;;  %v1482_v32 = vpop.f32.mrf.mxu0 }
 0x153   : > { %v5031_v59 = vadd.f32 %v3916_v45, %v1303_v18  ;;  %v1301_v7 = vadd.f32 %v1176_v34, %v4898_v6 }
 0x154   : > { %v3871_v8 = vpop.f32.mrf.mxu1  ;;  %v3919_v4 = vpop.f32.mrf.mxu0 }
 0x155   : > { %v5034_v38 = vadd.f32 %v1482_v32, %v1301_v7  ;;  %v1306_v21 = vadd.f32 %v3871_v8, %v4907_v41 }
 0x156   : > { %v1189_v19 = vpop.f32.mrf.mxu1  ;;  %v1495_v12 = vpop.f32.mrf.mxu0 }
 0x157   : > { %v5037_v43 = vadd.f32 %v3919_v4, %v1306_v21  ;;  %v1304_v47 = vadd.f32 %v1189_v19, %v4910_v3 }
 0x158   : > { %v3872_v48 = vpop.f32.mrf.mxu1  ;;  %v3920_v29 = vpop.f32.mrf.mxu0 }
 0x159   : > { %v5040_v0 = vadd.f32 %v1495_v12, %v1304_v47  ;;  %v1307_v62 = vadd.f32 %v3872_v48, %v4913_v13 }
 0x15a   : > { %v1192_v27 = vpop.f32.mrf.mxu1  ;;  %v1498_v6 = vpop.f32.mrf.mxu0 }
 0x15b   : > { %v5043_v1 = vadd.f32 %v3920_v29, %v1307_v62  ;;  %v1305_v39 = vadd.f32 %v1192_v27, %v4918_v23 }
 0x15c   : > { %v3875_v22 = vpop.f32.mrf.mxu1  ;;  %v3923_v41 = vpop.f32.mrf.mxu0 }
 0x15d   : > { %v5046_v57 = vadd.f32 %v1498_v6, %v1305_v39  ;;  %v1310_v15 = vadd.f32 %v3875_v22, %v4927_v51 }
 0x15e   : > { %v1205_v60 = vpop.f32.mrf.mxu1  ;;  %v1511_v3 = vpop.f32.mrf.mxu0 }
 0x15f   : > { %v5049_v56 = vadd.f32 %v3923_v41, %v1310_v15  ;;  %v1308_v33 = vadd.f32 %v1205_v60, %v4930_v10 }
 0x160   : > { %v3876_v54 = vpop.f32.mrf.mxu1  ;;  %v3924_v13 = vpop.f32.mrf.mxu0 }
 0x161   : > { %v5052_v55 = vadd.f32 %v1511_v3, %v1308_v33  ;;  %v1311_v25 = vadd.f32 %v3876_v54, %v4933_v46 }
 0x162   : > { %v1208_v9 = vpop.f32.mrf.mxu1  ;;  %v1514_v23 = vpop.f32.mrf.mxu0 }
 0x163   : > { %v5055_v36 = vadd.f32 %v3924_v13, %v1311_v25  ;;  %v1309_v30 = vadd.f32 %v1208_v9, %v4938_v11 }
 0x164   : > { %v3879_v45 = vpop.f32.mrf.mxu1  ;;  %v3927_v51 = vpop.f32.mrf.mxu0 }
 0x165   : > { %v5058_v18 = vadd.f32 %v1514_v23, %v1309_v30  ;;  %v1314_v34 = vadd.f32 %v3879_v45, %v4947_v61 }
 0x166   : > { %v1221_v32 = vpop.f32.mrf.mxu1  ;;  %v1527_v10 = vpop.f32.mrf.mxu0 }
 0x167   : > { %v5061_v7 = vadd.f32 %v3927_v51, %v1314_v34  ;;  %v1312_v8 = vadd.f32 %v1221_v32, %v4950_v50 }
 0x168   : > { %v3880_v4 = vpop.f32.mrf.mxu1  ;;  %v3928_v46 = vpop.f32.mrf.mxu0 }
 0x169   : > { %v5064_v21 = vadd.f32 %v1527_v10, %v1312_v8  ;;  %v1315_v19 = vadd.f32 %v3880_v4, %v4953_v42 }
 0x16a   : > { %v1224_v12 = vpop.f32.mrf.mxu1  ;;  %v1530_v11 = vpop.f32.mrf.mxu0 }
 0x16b   : > { %v5067_v47 = vadd.f32 %v3928_v46, %v1315_v19  ;;  %v1313_v48 = vadd.f32 %v1224_v12, %v4958_v24 }
 0x16c   : > { %v3883_v29 = vpop.f32.mrf.mxu1  ;;  %v3931_v61 = vpop.f32.mrf.mxu0 }
 0x16d   : > { %v5070_v62 = vadd.f32 %v1530_v11, %v1313_v48  ;;  %v1318_v27 = vadd.f32 %v3883_v29, %v4967_v14 }
 0x16e   : > { %v1237_v6 = vpop.f32.mrf.mxu1  ;;  %v1543_v50 = vpop.f32.mrf.mxu0 }
 0x16f   : > { %v5073_v39 = vadd.f32 %v3931_v61, %v1318_v27  ;;  %v1316_v22 = vadd.f32 %v1237_v6, %v4970_v26 }
 0x170   : > { %v3884_v41 = vpop.f32.mrf.mxu1  ;;  %v3932_v42 = vpop.f32.mrf.mxu0 }
 0x171   : > { %v5076_v15 = vadd.f32 %v1543_v50, %v1316_v22  ;;  %v1319_v60 = vadd.f32 %v3884_v41, %v4973_v52 }
 0x172   : > { %v1240_v3 = vpop.f32.mrf.mxu1  ;;  %v1546_v24 = vpop.f32.mrf.mxu0 }
 0x173   : > { %v5079_v33 = vadd.f32 %v3932_v42, %v1319_v60  ;;  %v1317_v54 = vadd.f32 %v1240_v3, %v4977_v37 }
 0x174   : > { %v3887_v13 = vpop.f32.mrf.mxu1  ;;  %v3935_v14 = vpop.f32.mrf.mxu0 }
 0x175   : > { %5420 = vst [vmem:[#allocation2_spill] sm:$0xff] %v5079_v33  ;;  %v5082_v25 = vadd.f32 %v1546_v24, %v1317_v54  ;;  %v1322_v9 = vadd.f32 %v3887_v13, %v4983_v53 }
 0x176   : > { %v1253_v23 = vpop.f32.mrf.mxu1  ;;  %v1559_v26 = vpop.f32.mrf.mxu0 }
 0x177   : > { %5421 = vst [vmem:[#allocation3_spill] sm:$0xff] %v5082_v25  ;;  %v5085_v30 = vadd.f32 %v3935_v14, %v1322_v9  ;;  %v1320_v45 = vadd.f32 %v1253_v23, %v4986_v31 }
 0x178   : > { %v3888_v51 = vpop.f32.mrf.mxu1  ;;  %v3936_v52 = vpop.f32.mrf.mxu0 }
 0x179   : > { %5422 = vst [vmem:[#allocation4_spill] sm:$0xff] %v5085_v30  ;;  %v5088_v34 = vadd.f32 %v1559_v26, %v1320_v45  ;;  %v1323_v32 = vadd.f32 %v3888_v51, %v4989_v5 }
 0x17a   : > { %v1256_v10 = vpop.f32.mrf.mxu1  ;;  %v1562_v37 = vpop.f32.mrf.mxu0 }
 0x17b   : > { %5423 = vst [vmem:[#allocation5_spill] sm:$0xff] %v5088_v34  ;;  %v5091_v8 = vadd.f32 %v3936_v52, %v1323_v32  ;;  %v1321_v4 = vadd.f32 %v1256_v10, %v4993_v40 }
 0x17c   : > { %v3891_v46 = vpop.f32.mrf.mxu1  ;;  %v3939_v53 = vpop.f32.mrf.mxu0 }
 0x17d   : > { %5424 = vst [vmem:[#allocation6_spill] sm:$0xff] %v5091_v8  ;;  %v5094_v19 = vadd.f32 %v1562_v37, %v1321_v4  ;;  %v1326_v12 = vadd.f32 %v3891_v46, %v5001_v44 }
 0x17e   : > { %v1269_v11 = vpop.f32.mrf.mxu1  ;;  %v1575_v31 = vpop.f32.mrf.mxu0 }
 0x17f   : > { %5425 = vst [vmem:[#allocation7_spill] sm:$0xff] %v5094_v19  ;;  %v5097_v48 = vadd.f32 %v3939_v53, %v1326_v12  ;;  %v1324_v29 = vadd.f32 %v1269_v11, %v5004_v58 }
 0x180   : > { %v3892_v61 = vpop.f32.mrf.mxu1  ;;  %v3940_v5 = vpop.f32.mrf.mxu0 }
 0x181   : > { %5426 = vst [vmem:[#allocation8_spill] sm:$0xff] %v5097_v48  ;;  %v5100_v27 = vadd.f32 %v1575_v31, %v1324_v29  ;;  %v1327_v6 = vadd.f32 %v3892_v61, %v5007_v2 }
 0x182   : > { %v1272_v50 = vpop.f32.mrf.mxu1  ;;  %v1578_v40 = vpop.f32.mrf.mxu0 }
 0x183   : > { %5427 = vst [vmem:[#allocation9_spill] sm:$0xff] %v5100_v27  ;;  %v5103_v22 = vadd.f32 %v3940_v5, %v1327_v6  ;;  %v1325_v41 = vadd.f32 %v1272_v50, %v5010_v20 }
 0x184   : > { %v3895_v42 = vpop.f32.mrf.mxu1  ;;  %v3943_v44 = vpop.f32.mrf.mxu0 }
 0x185   : > { %5428 = vst [vmem:[#allocation10_spill] sm:$0xff] %v5103_v22  ;;  %v5106_v60 = vadd.f32 %v1578_v40, %v1325_v41  ;;  %v1330_v3 = vadd.f32 %v3895_v42, %v5013_v28 }
 0x186   : > { %v1285_v24 = vpop.f32.mrf.mxu1  ;;  %v1591_v58 = vpop.f32.mrf.mxu0 }
 0x187   : > { %5429 = vst [vmem:[#allocation11_spill] sm:$0xff] %v5106_v60  ;;  %v5109_v54 = vadd.f32 %v3943_v44, %v1330_v3  ;;  %v1328_v13 = vadd.f32 %v1285_v24, %v5016_v63 }
 0x188   : > { %v3896_v14 = vpop.f32.mrf.mxu1  ;;  %v3944_v2 = vpop.f32.mrf.mxu0 }
 0x189   : > { %5430 = vst [vmem:[#allocation12_spill] sm:$0xff] %v5109_v54  ;;  %v5112_v9 = vadd.f32 %v1591_v58, %v1328_v13  ;;  %v1331_v23 = vadd.f32 %v3896_v14, %v5019_v17 }
 0x18a   : > { %v1288_v26 = vpop.f32.mrf.mxu1  ;;  %v1594_v20 = vpop.f32.mrf.mxu0 }
 0x18b   : > { %5431 = vst [vmem:[#allocation13_spill] sm:$0xff] %v5112_v9  ;;  %v5115_v45 = vadd.f32 %v3944_v2, %v1331_v23  ;;  %v1329_v51 = vadd.f32 %v1288_v26, %v5022_v16 }
 0x18c   : > { %v3963_v52 = vpop.f32.mrf.mxu1  ;;  %v5118_v28 = vpop.f32.mrf.mxu0 }
 0x18d   : > { %5432 = vst [vmem:[#allocation14_spill] sm:$0xff] %v5115_v45  ;;  %v5120_v32 = vadd.f32 %v1594_v20, %v1329_v51 }
 0x18e   : > { %v1785_v10 = vpop.f32.mrf.mxu1  ;;  %v5122_v37 = vpop.f32.mrf.mxu0 }
 0x18f   : > { %5433 = vst [vmem:[#allocation15_spill] sm:$0xff] %v5120_v32 }
 0x190   : > { %v5124_v63 = vpop.f32.mrf.mxu1  ;;  %v5126_v4 = vpop.f32.mrf.mxu0 }
 0x192   : > { %v5128_v46 = vpop.f32.mrf.mxu1  ;;  %v5130_v17 = vpop.f32.mrf.mxu0 }
 0x194   : > { %v5132_v53 = vpop.f32.mrf.mxu1  ;;  %v5134_v12 = vpop.f32.mrf.mxu0 }
 0x196   : > { %v5136_v16 = vpop.f32.mrf.mxu1  ;;  %v5138_v11 = vpop.f32.mrf.mxu0 }
 0x198   : > { %v5140_v31 = vpop.f32.mrf.mxu1  ;;  %v5142_v29 = vpop.f32.mrf.mxu0 }
 0x19a   : > { %v5144_v61 = vpop.f32.mrf.mxu1  ;;  %v5146_v5 = vpop.f32.mrf.mxu0 }
 0x19c   : > { %v5148_v6 = vpop.f32.mrf.mxu1  ;;  %v5150_v50 = vpop.f32.mrf.mxu0 }
 0x19e   : > { %v5152_v40 = vpop.f32.mrf.mxu1  ;;  %v5154_v41 = vpop.f32.mrf.mxu0 }
 0x1a0   : > { %v5156_v42 = vpop.f32.mrf.mxu1  ;;  %v5158_v44 = vpop.f32.mrf.mxu0 }
 0x1a2   : > { %v5160_v3 = vpop.f32.mrf.mxu1  ;;  %v5162_v24 = vpop.f32.mrf.mxu0 }
 0x1a4   : > { %v5164_v58 = vpop.f32.mrf.mxu1  ;;  %v5166_v13 = vpop.f32.mrf.mxu0 }
 0x1a6   : > { %v5168_v14 = vpop.f32.mrf.mxu1  ;;  %v5170_v2 = vpop.f32.mrf.mxu0 }
 0x1a8   : > { %v5172_v23 = vpop.f32.mrf.mxu1  ;;  %v5174_v26 = vpop.f32.mrf.mxu0 }
 0x1aa   : > { %v5176_v20 = vpop.f32.mrf.mxu1  ;;  %v5178_v51 = vpop.f32.mrf.mxu0 }
 0x1ac   : > { %v5180_v32 = vpop.f32.mrf.mxu1  ;;  %v5182_v45 = vpop.f32.mrf.mxu0 }
 0x1ae   : > { %v5184_v9 = vpop.f32.mrf.mxu1  ;;  %v5186_v54 = vpop.f32.mrf.mxu0 }
 0x1af   : > { %5434 = vst [vmem:[#allocation16_spill] sm:$0xff] %v5186_v54 }
 0x1b0   : > { %v5188_v60 = vpop.f32.mrf.mxu1  ;;  %v5190_v22 = vpop.f32.mrf.mxu0 }
 0x1b1   : > { %5435 = vst [vmem:[#allocation17_spill] sm:$0xff] %v5188_v60  ;;  %5436 = vst [vmem:[#allocation18_spill] sm:$0xff] %v5190_v22 }
 0x1b2   : > { %v5192_v27 = vpop.f32.mrf.mxu1  ;;  %v5194_v48 = vpop.f32.mrf.mxu0 }
 0x1b3   : > { %5437 = vst [vmem:[#allocation19_spill] sm:$0xff] %v5192_v27  ;;  %5438 = vst [vmem:[#allocation20_spill] sm:$0xff] %v5194_v48 }
 0x1b4   : > { %v5196_v19 = vpop.f32.mrf.mxu1  ;;  %v5198_v8 = vpop.f32.mrf.mxu0 }
 0x1b5   : > { %5439 = vst [vmem:[#allocation21_spill] sm:$0xff] %v5196_v19  ;;  %5440 = vst [vmem:[#allocation22_spill] sm:$0xff] %v5198_v8 }
 0x1b6   : > { %v5200_v34 = vpop.f32.mrf.mxu1  ;;  %v5202_v30 = vpop.f32.mrf.mxu0 }
 0x1b7   : > { %5441 = vst [vmem:[#allocation23_spill] sm:$0xff] %v5200_v34  ;;  %5442 = vst [vmem:[#allocation24_spill] sm:$0xff] %v5202_v30 }
 0x1b8   : > { %v5204_v25 = vpop.f32.mrf.mxu1  ;;  %v5206_v33 = vpop.f32.mrf.mxu0 }
 0x1b9   : > { %5443 = vst [vmem:[#allocation25_spill] sm:$0xff] %v5204_v25  ;;  %5444 = vst [vmem:[#allocation26_spill] sm:$0xff] %v5206_v33 }
 0x1ba   : > { %v5208_v54 = vpop.f32.mrf.mxu1  ;;  %v5210_v60 = vpop.f32.mrf.mxu0 }
 0x1bb   : > { %5445 = vst [vmem:[#allocation27_spill] sm:$0xff] %v5208_v54  ;;  %5446 = vst [vmem:[#allocation28_spill] sm:$0xff] %v5210_v60 }
 0x1bc   : > { %v5212_v22 = vpop.f32.mrf.mxu1  ;;  %v5214_v27 = vpop.f32.mrf.mxu0 }
 0x1bd   : > { %5447 = vst [vmem:[#allocation29_spill] sm:$0xff] %v5212_v22  ;;  %5448 = vst [vmem:[#allocation30_spill] sm:$0xff] %v5214_v27  ;;  %v1914_v27 = vadd.f32 %v3963_v52, %v5025_v35 }
 0x1be   : > { %v5216_v48 = vpop.f32.mrf.mxu1  ;;  %v5218_v19 = vpop.f32.mrf.mxu0 }
 0x1bf   : > { %5449 = vst [vmem:[#allocation31_spill] sm:$0xff] %v5216_v48  ;;  %5450 = vst [vmem:[#allocation32_spill] sm:$0xff] %v5218_v19 }
 0x1c0   : > { %v5220_v8 = vpop.f32.mrf.mxu1  ;;  %v5222_v34 = vpop.f32.mrf.mxu0 }
 0x1c1   : > { %5451 = vst [vmem:[#allocation33_spill] sm:$0xff] %v5220_v8  ;;  %5452 = vst [vmem:[#allocation34_spill] sm:$0xff] %v5222_v34  ;;  %v1912_v34 = vadd.f32 %v1785_v10, %v5028_v49  ;;  %v1918_v49 = vadd.f32 %v5132_v53, %v5037_v43  ;;  %v1916_v10 = vadd.f32 %v5136_v16, %v5040_v0 }
 0x1c2   : > { %v5224_v30 = vpop.f32.mrf.mxu1  ;;  %v5226_v25 = vpop.f32.mrf.mxu0 }
 0x1c3   : > { %5453 = vst [vmem:[#allocation35_spill] sm:$0xff] %v5224_v30  ;;  %5454 = vst [vmem:[#allocation36_spill] sm:$0xff] %v5226_v25  ;;  %v2221_v25 = vadd.f32 %v5118_v28, %v1914_v27  ;;  %v2219_v35 = vadd.f32 %v5122_v37, %v1912_v34  ;;  %v5259_v27 = vld [vmem:[%s5418_s2] ss:$0 sm:$0xff]  ;;  %v2225_v16 = vadd.f32 %v5134_v12, %v1918_v49 }
 0x1c4   : > { %v5228_v33 = vpop.f32.mrf.mxu1  ;;  %v5230_v54 = vpop.f32.mrf.mxu0 }
 0x1c5   : > { %5455 = vst [vmem:[#allocation37_spill] sm:$0xff] %v5230_v54  ;;  %v1915_v54 = vadd.f32 %v5124_v63, %v5031_v59 }
 0x1c6   : > { %v5232_v60 = vpop.f32.mrf.mxu1  ;;  %v5234_v22 = vpop.f32.mrf.mxu0 }
 0x1c7   : > { %5456 = vst [vmem:[#allocation38_spill] sm:$0xff] %v5232_v60  ;;  %5457 = vst [vmem:[#allocation39_spill] sm:$0xff] %v5234_v22  ;;  %v2222_v63 = vadd.f32 %v5126_v4, %v1915_v54 }
 0x1c8   : > { %v5237_v48 = vpop.f32.mrf.mxu1  ;;  %v5239_v19 = vpop.f32.mrf.mxu0 }
 0x1c9   : > { %5458 = vst [vmem:[#allocation40_spill] sm:$0xff] %v5239_v19  ;;  %v1913_v19 = vadd.f32 %v5128_v46, %v5034_v38  ;;  %v1919_v38 = vadd.f32 %v5140_v31, %v5043_v1 }
 0x1ca   : > { %v5242_v8 = vpop.f32.mrf.mxu1  ;;  %v5244_v30 = vpop.f32.mrf.mxu0 }
 0x1cb   : > { %5459 = vst [vmem:[#allocation41_spill] sm:$0xff] %v5242_v8  ;;  %5460 = vst [vmem:[#allocation42_spill] sm:$0xff] %v5244_v30  ;;  %v2220_v53 = vadd.f32 %v5130_v17, %v1913_v19  ;;  %v2223_v30 = vadd.f32 %v5138_v11, %v1916_v10  ;;  %v2226_v31 = vadd.f32 %v5142_v29, %v1919_v38 }
 0x1cc   : > { %v4059_v60 = vpop.f32.mrf.mxu1  ;;  %v4107_v22 = vpop.f32.mrf.mxu0  ;;  %v1917_v19 = vadd.f32 %v5144_v61, %v5046_v57  ;;  %v1922_v17 = vadd.f32 %v5148_v6, %v5049_v56  ;;  %v1923_v29 = vadd.f32 %v5156_v42, %v5055_v36 }
 0x1cd   : > { %v2527_v52 = vadd.f32 %v4059_v60, %v2221_v25 }
 0x1ce   : > { %v2398_v59 = vpop.f32.mrf.mxu1  ;;  %v2704_v28 = vpop.f32.mrf.mxu0  ;;  %v2229_v38 = vadd.f32 %v5150_v50, %v1922_v17 }
 0x1cf   : > { %v2833_v34 = vadd.f32 %v4107_v22, %v2527_v52  ;;  %v2525_v25 = vadd.f32 %v2398_v59, %v2219_v35  ;;  %v1920_v59 = vadd.f32 %v5152_v40, %v5052_v55 }
 0x1d0   : > { %v4060_v60 = vpop.f32.mrf.mxu1  ;;  %v4108_v43 = vpop.f32.mrf.mxu0 }
 0x1d1   : > { %v2872_v37 = vadd.f32 %v5259_v27, %v2833_v34  ;;  %v2831_v0 = vadd.f32 %v2704_v28, %v2525_v25  ;;  %v2528_v46 = vadd.f32 %v4060_v60, %v2222_v63  ;;  %v2224_v34 = vadd.f32 %v5146_v5, %v1917_v19 }
 0x1d2   : > { %v2401_v8 = vpop.f32.mrf.mxu1  ;;  %v2707_v54 = vpop.f32.mrf.mxu0  ;;  %v1921_v25 = vadd.f32 %v5160_v3, %v5058_v18 }
 0x1d3   : > { %vm2904_vm0 = vcmp.ge.f32.partialorder %v2872_v37, 0.0  ;;  %v2936_v1 = vmul.f32 0.2, %v2872_v37  ;;  %v2870_v22 = vadd.f32 %v5259_v27, %v2831_v0  ;;  %v2834_v4 = vadd.f32 %v4108_v43, %v2528_v46 }
 0x1d4   : > { %v2526_v12 = vadd.f32 %v2401_v8, %v2220_v53  ;;  %v4063_v11 = vpop.f32.mrf.mxu1  ;;  %v4111_v35 = vpop.f32.mrf.mxu0  ;;  %v2227_v0 = vadd.f32 %v5154_v41, %v1920_v59  ;;  %v2230_v46 = vadd.f32 %v5158_v44, %v1923_v29  ;;  %v2228_v50 = vadd.f32 %v5162_v24, %v1921_v25 }
 0x1d5   : > { %v2968_v52 = vsel %vm2904_vm0, %v2872_v37, %v2936_v1  ;;  %vm2902_vm1 = vcmp.ge.f32.partialorder %v2870_v22, 0.0  ;;  %v2934_v49 = vmul.f32 0.2, %v2870_v22  ;;  %v2873_v10 = vadd.f32 %v5259_v27, %v2834_v4 }
 0x1d6   : > { %3000 = vst [vmem:[%s5272_s21 + $0x10] sm:$0xff] %v2968_v52  ;;  %v2832_v57 = vadd.f32 %v2707_v54, %v2526_v12  ;;  %v2531_v61 = vadd.f32 %v4063_v11, %v2225_v16  ;;  %v2414_v28 = vpop.f32.mrf.mxu1  ;;  %v2720_v56 = vpop.f32.mrf.mxu0  ;;  %v1926_v44 = vadd.f32 %v5164_v58, %v5061_v7  ;;  %v1924_v12 = vadd.f32 %v5168_v14, %v5064_v21 }
 0x1d7   : > { %v2966_v8 = vsel %vm2902_vm1, %v2870_v22, %v2934_v49  ;;  %vm2905_vm2 = vcmp.ge.f32.partialorder %v2873_v10, 0.0  ;;  %v2937_v6 = vmul.f32 0.2, %v2873_v10  ;;  %v2529_v63 = vadd.f32 %v2414_v28, %v2223_v30 }
 0x1d8   : > { %2998 = vst [vmem:[%s5272_s21] sm:$0xff] %v2966_v8  ;;  %v2871_v55 = vadd.f32 %v5259_v27, %v2832_v57  ;;  %v2837_v40 = vadd.f32 %v4111_v35, %v2531_v61  ;;  %v4064_v36 = vpop.f32.mrf.mxu1  ;;  %v4112_v42 = vpop.f32.mrf.mxu0  ;;  %v1927_v29 = vadd.f32 %v5172_v23, %v5067_v47  ;;  %v1925_v7 = vadd.f32 %v5176_v20, %v5070_v62 }
 0x1d9   : > { %v2969_v60 = vsel %vm2905_vm2, %v2873_v10, %v2937_v6  ;;  %v2835_v43 = vadd.f32 %v2720_v56, %v2529_v63  ;;  %v2532_v37 = vadd.f32 %v4064_v36, %v2226_v31  ;;  %v2233_v8 = vadd.f32 %v5166_v13, %v1926_v44  ;;  %v5465_v44 = vld [vmem:[#allocation4_spill] sm:$0xff] }
 0x1da   : > { %3001 = vst [vmem:[%s5272_s21 + $0x18] sm:$0xff] %v2969_v60  ;;  %vm2903_vm3 = vcmp.ge.f32.partialorder %v2871_v55, 0.0  ;;  %v2935_v30 = vmul.f32 0.2, %v2871_v55  ;;  %v2876_v5 = vadd.f32 %v5259_v27, %v2837_v40  ;;  %v2417_v18 = vpop.f32.mrf.mxu1  ;;  %v2723_v3 = vpop.f32.mrf.mxu0  ;;  %v1930_v6 = vadd.f32 %v5180_v32, %v5073_v39 }
 0x1db   : > { %v2874_v53 = vadd.f32 %v5259_v27, %v2835_v43  ;;  %v2838_v16 = vadd.f32 %v4112_v42, %v2532_v37  ;;  %v2530_v54 = vadd.f32 %v2417_v18, %v2224_v34  ;;  %v2231_v63 = vadd.f32 %v5170_v2, %v1924_v12  ;;  %v5466_v12 = vld [vmem:[#allocation21_spill] sm:$0xff] }
 0x1dc   : > { %v2967_v1 = vsel %vm2903_vm3, %v2871_v55, %v2935_v30  ;;  %vm2908_vm4 = vcmp.ge.f32.partialorder %v2876_v5, 0.0  ;;  %v2940_v41 = vmul.f32 0.2, %v2876_v5  ;;  %v4067_v22 = vpop.f32.mrf.mxu1  ;;  %v4115_v4 = vpop.f32.mrf.mxu0  ;;  %v2234_v40 = vadd.f32 %v5174_v26, %v1927_v29 }
 0x1dd   : > { %2999 = vst [vmem:[%s5272_s21 + $0x8] sm:$0xff] %v2967_v1  ;;  %vm2906_vm5 = vcmp.ge.f32.partialorder %v2874_v53, 0.0  ;;  %v2938_v31 = vmul.f32 0.2, %v2874_v53  ;;  %v2877_v19 = vadd.f32 %v5259_v27, %v2838_v16  ;;  %v2836_v17 = vadd.f32 %v2723_v3, %v2530_v54 }
 0x1de   : > { %v2972_v24 = vsel %vm2908_vm4, %v2876_v5, %v2940_v41  ;;  %v2535_v11 = vadd.f32 %v4067_v22, %v2229_v38  ;;  %v2430_v35 = vpop.f32.mrf.mxu1  ;;  %v2736_v52 = vpop.f32.mrf.mxu0  ;;  %v2232_v42 = vadd.f32 %v5178_v51, %v1925_v7  ;;  %v2237_v2 = vadd.f32 %v5182_v45, %v1930_v6  ;;  %v5469_v6 = vld [vmem:[#allocation20_spill] sm:$0xff] }
 0x1df   : > { %3004 = vst [vmem:[%s5272_s21 + $0x30] sm:$0xff] %v2972_v24  ;;  %v2970_v49 = vsel %vm2906_vm5, %v2874_v53, %v2938_v31  ;;  %vm2909_vm6 = vcmp.ge.f32.partialorder %v2877_v19, 0.0  ;;  %v2941_v10 = vmul.f32 0.2, %v2877_v19  ;;  %v2875_v59 = vadd.f32 %v5259_v27, %v2836_v17  ;;  %v5462_v53 = vld [vmem:[#allocation17_spill] sm:$0xff]  ;;  %v5463_v31 = vld [vmem:[#allocation3_spill] sm:$0xff] }
 0x1e0   : > { %3002 = vst [vmem:[%s5272_s21 + $0x20] sm:$0xff] %v2970_v49  ;;  %v2841_v58 = vadd.f32 %v4115_v4, %v2535_v11  ;;  %v2533_v21 = vadd.f32 %v2430_v35, %v2227_v0  ;;  %v4068_v14 = vpop.f32.mrf.mxu1  ;;  %v4116_v57 = vpop.f32.mrf.mxu0  ;;  %v1928_v51 = vadd.f32 %v5184_v9, %v5076_v15  ;;  %v1934_v15 = vadd.f32 %v5466_v12, %v5465_v44 }
 0x1e1   : > { %v2973_v61 = vsel %vm2909_vm6, %v2877_v19, %v2941_v10  ;;  %vm2907_vm7 = vcmp.ge.f32.partialorder %v2875_v59, 0.0  ;;  %v2939_v28 = vmul.f32 0.2, %v2875_v59  ;;  %v2536_v56 = vadd.f32 %v4068_v14, %v2230_v46  ;;  %v5461_v46 = vld [vmem:[#allocation2_spill] sm:$0xff]  ;;  %v5464_v19 = vld [vmem:[#allocation19_spill] sm:$0xff] }
 0x1e2   : > { %3005 = vst [vmem:[%s5272_s21 + $0x38] sm:$0xff] %v2973_v61  ;;  %v2880_v47 = vadd.f32 %v5259_v27, %v2841_v58  ;;  %v2839_v23 = vadd.f32 %v2736_v52, %v2533_v21  ;;  %v2433_v62 = vpop.f32.mrf.mxu1  ;;  %v2739_v20 = vpop.f32.mrf.mxu0  ;;  %v1931_v16 = vadd.f32 %v5462_v53, %v5461_v46  ;;  %v1929_v17 = vadd.f32 %v5464_v19, %v5463_v31  ;;  %v5479_v31 = vld [vmem:[#allocation29_spill] sm:$0xff] }
 0x1e3   : > { %v2971_v34 = vsel %vm2907_vm7, %v2875_v59, %v2939_v28  ;;  %v2842_v25 = vadd.f32 %v4116_v57, %v2536_v56  ;;  %v2534_v55 = vadd.f32 %v2433_v62, %v2228_v50  ;;  %v5467_v59 = vld [vmem:[#allocation16_spill] sm:$0xff]  ;;  %v5468_v57 = vld [vmem:[#allocation18_spill] sm:$0xff] }
 0x1e4   : > { %3003 = vst [vmem:[%s5272_s21 + $0x28] sm:$0xff] %v2971_v34  ;;  %vm2912_vm8 = vcmp.ge.f32.partialorder %v2880_v47, 0.0  ;;  %v2944_v13 = vmul.f32 0.2, %v2880_v47  ;;  %v2878_v36 = vadd.f32 %v5259_v27, %v2839_v23  ;;  %v4071_v39 = vpop.f32.mrf.mxu1  ;;  %v4119_v32 = vpop.f32.mrf.mxu0  ;;  %v2235_v29 = vadd.f32 %v5467_v59, %v1928_v51  ;;  %v5470_v34 = vld [vmem:[#allocation22_spill] sm:$0xff] }
 0x1e5   : > { %v2881_v38 = vadd.f32 %v5259_v27, %v2842_v25  ;;  %v2840_v60 = vadd.f32 %v2739_v20, %v2534_v55  ;;  %v2539_v43 = vadd.f32 %v4071_v39, %v2233_v8  ;;  %v2238_v61 = vadd.f32 %v5468_v57, %v1931_v16  ;;  %v5472_v39 = vld [vmem:[#allocation23_spill] sm:$0xff] }
 0x1e6   : > { %v2976_v37 = vsel %vm2912_vm8, %v2880_v47, %v2944_v13  ;;  %vm2910_vm9 = vcmp.ge.f32.partialorder %v2878_v36, 0.0  ;;  %v2942_v26 = vmul.f32 0.2, %v2878_v36  ;;  %v2446_v0 = vpop.f32.mrf.mxu1  ;;  %v2752_v30 = vpop.f32.mrf.mxu0  ;;  %v2236_v47 = vadd.f32 %v5469_v6, %v1929_v17 }
 0x1e7   : > { %3008 = vst [vmem:[%s5272_s21 + $0x50] sm:$0xff] %v2976_v37  ;;  %vm2913_vm10 = vcmp.ge.f32.partialorder %v2881_v38, 0.0  ;;  %v2945_v5 = vmul.f32 0.2, %v2881_v38  ;;  %v2879_v18 = vadd.f32 %v5259_v27, %v2840_v60  ;;  %v2845_v3 = vadd.f32 %v4119_v32, %v2539_v43 }
 0x1e8   : > { %v2974_v45 = vsel %vm2910_vm9, %v2878_v36, %v2942_v26  ;;  %v2537_v54 = vadd.f32 %v2446_v0, %v2231_v63  ;;  %v4072_v50 = vpop.f32.mrf.mxu1  ;;  %v4120_v1 = vpop.f32.mrf.mxu0  ;;  %v2241_v25 = vadd.f32 %v5470_v34, %v1934_v15  ;;  %v5471_v36 = vld [vmem:[#allocation5_spill] sm:$0xff]  ;;  %v5473_v0 = vld [vmem:[#allocation6_spill] sm:$0xff] }
 0x1e9   : > { %3006 = vst [vmem:[%s5272_s21 + $0x40] sm:$0xff] %v2974_v45  ;;  %v2977_v41 = vsel %vm2913_vm10, %v2881_v38, %v2945_v5  ;;  %vm2911_vm11 = vcmp.ge.f32.partialorder %v2879_v18, 0.0  ;;  %v2943_v22 = vmul.f32 0.2, %v2879_v18  ;;  %v2884_v4 = vadd.f32 %v5259_v27, %v2845_v3  ;;  %v5476_v3 = vld [vmem:[#allocation27_spill] sm:$0xff] }
 0x1ea   : > { %3009 = vst [vmem:[%s5272_s21 + $0x58] sm:$0xff] %v2977_v41  ;;  %v2843_v9 = vadd.f32 %v2752_v30, %v2537_v54  ;;  %v2540_v24 = vadd.f32 %v4072_v50, %v2234_v40  ;;  %v2449_v11 = vpop.f32.mrf.mxu1  ;;  %v2755_v35 = vpop.f32.mrf.mxu0  ;;  %v1932_v32 = vadd.f32 %v5472_v39, %v5471_v36  ;;  %v5474_v30 = vld [vmem:[#allocation25_spill] sm:$0xff]  ;;  %v5477_v41 = vld [vmem:[#allocation24_spill] sm:$0xff] }
 0x1eb   : > { %v2975_v52 = vsel %vm2911_vm11, %v2879_v18, %v2943_v22  ;;  %vm2916_vm12 = vcmp.ge.f32.partialorder %v2884_v4, 0.0  ;;  %v2948_v49 = vmul.f32 0.2, %v2884_v4  ;;  %v2538_v10 = vadd.f32 %v2449_v11, %v2232_v42  ;;  %v5475_v18 = vld [vmem:[#allocation7_spill] sm:$0xff] }
 0x1ec   : > { %3007 = vst [vmem:[%s5272_s21 + $0x48] sm:$0xff] %v2975_v52  ;;  %v2882_v7 = vadd.f32 %v5259_v27, %v2843_v9  ;;  %v2846_v58 = vadd.f32 %v4120_v1, %v2540_v24  ;;  %v4075_v21 = vpop.f32.mrf.mxu1  ;;  %v4123_v14 = vpop.f32.mrf.mxu0  ;;  %v1935_v5 = vadd.f32 %v5474_v30, %v5473_v0  ;;  %v1933_v51 = vadd.f32 %v5476_v3, %v5475_v18  ;;  %v5489_v0 = vld [vmem:[#allocation35_spill] sm:$0xff] }
 0x1ed   : > { %v2980_v28 = vsel %vm2916_vm12, %v2884_v4, %v2948_v49  ;;  %v2844_v56 = vadd.f32 %v2755_v35, %v2538_v10  ;;  %v2543_v8 = vadd.f32 %v4075_v21, %v2237_v2  ;;  %v2239_v22 = vadd.f32 %v5477_v41, %v1932_v32  ;;  %v5478_v4 = vld [vmem:[#allocation8_spill] sm:$0xff]  ;;  %v5480_v35 = vld [vmem:[#allocation26_spill] sm:$0xff] }
 0x1ee   : > { %3012 = vst [vmem:[%s5272_s21 + $0x70] sm:$0xff] %v2980_v28  ;;  %vm2914_vm13 = vcmp.ge.f32.partialorder %v2882_v7, 0.0  ;;  %v2946_v23 = vmul.f32 0.2, %v2882_v7  ;;  %v2885_v62 = vadd.f32 %v5259_v27, %v2846_v58  ;;  %v2462_v20 = vpop.f32.mrf.mxu1  ;;  %v2768_v63 = vpop.f32.mrf.mxu0  ;;  %v1938_v19 = vadd.f32 %v5479_v31, %v5478_v4  ;;  %v5483_v28 = vld [vmem:[#allocation31_spill] sm:$0xff] }
 0x1ef   : > { %v2883_v55 = vadd.f32 %v5259_v27, %v2844_v56  ;;  %v2849_v40 = vadd.f32 %v4123_v14, %v2543_v8  ;;  %v2541_v13 = vadd.f32 %v2462_v20, %v2235_v29  ;;  %v2242_v52 = vadd.f32 %v5480_v35, %v1935_v5 }
 0x1f0   : > { %v2978_v42 = vsel %vm2914_vm13, %v2882_v7, %v2946_v23  ;;  %vm2917_vm14 = vcmp.ge.f32.partialorder %v2885_v62, 0.0  ;;  %v2949_v38 = vmul.f32 0.2, %v2885_v62  ;;  %v4076_v60 = vpop.f32.mrf.mxu1  ;;  %v4124_v43 = vpop.f32.mrf.mxu0  ;;  %v5481_v7 = vld [vmem:[#allocation28_spill] sm:$0xff] }
 0x1f1   : > { %3010 = vst [vmem:[%s5272_s21 + $0x60] sm:$0xff] %v2978_v42  ;;  %vm2915_vm15 = vcmp.ge.f32.partialorder %v2883_v55, 0.0  ;;  %v2947_v2 = vmul.f32 0.2, %v2883_v55  ;;  %v2888_v37 = vadd.f32 %v5259_v27, %v2849_v40  ;;  %v2847_v26 = vadd.f32 %v2768_v63, %v2541_v13  ;;  %v5486_v40 = vld [vmem:[#allocation33_spill] sm:$0xff] }
 0x1f2   : > { %v2981_v46 = vsel %vm2917_vm14, %v2885_v62, %v2949_v38  ;;  %v2544_v53 = vadd.f32 %v4076_v60, %v2238_v61  ;;  %v2465_v16 = vpop.f32.mrf.mxu1  ;;  %v2771_v45 = vpop.f32.mrf.mxu0  ;;  %v2240_v58 = vadd.f32 %v5481_v7, %v1933_v51  ;;  %v5482_v61 = vld [vmem:[#allocation9_spill] sm:$0xff]  ;;  %v5484_v62 = vld [vmem:[#allocation30_spill] sm:$0xff] }
 0x1f3   : > { %3013 = vst [vmem:[%s5272_s21 + $0x78] sm:$0xff] %v2981_v46  ;;  %v2979_v54 = vsel %vm2915_vm15, %v2883_v55, %v2947_v2  ;;  %vm2920_vm0 = vcmp.ge.f32.partialorder %v2888_v37, 0.0  ;;  %v2952_v50 = vmul.f32 0.2, %v2888_v37  ;;  %v2886_v1 = vadd.f32 %v5259_v27, %v2847_v26  ;;  %v5485_v55 = vld [vmem:[#allocation10_spill] sm:$0xff]  ;;  %v5487_v2 = vld [vmem:[#allocation32_spill] sm:$0xff] }
 0x1f4   : > { %3011 = vst [vmem:[%s5272_s21 + $0x68] sm:$0xff] %v2979_v54  ;;  %v2850_v17 = vadd.f32 %v4124_v43, %v2544_v53  ;;  %v2542_v44 = vadd.f32 %v2465_v16, %v2236_v47  ;;  %v4079_v12 = vpop.f32.mrf.mxu1  ;;  %v4127_v15 = vpop.f32.mrf.mxu0  ;;  %v1936_v56 = vadd.f32 %v5483_v28, %v5482_v61  ;;  %v2245_v20 = vadd.f32 %v5484_v62, %v1938_v19  ;;  %v5488_v26 = vld [vmem:[#allocation11_spill] sm:$0xff]  ;;  %v5495_v7 = vld [vmem:[#allocation14_spill] sm:$0xff]  ;;  %v5496_v28 = vld [vmem:[#allocation37_spill] sm:$0xff] }
 0x1f5   : > { %v2984_v9 = vsel %vm2920_vm0, %v2888_v37, %v2952_v50  ;;  %vm2918_vm1 = vcmp.ge.f32.partialorder %v2886_v1, 0.0  ;;  %v2950_v24 = vmul.f32 0.2, %v2886_v1  ;;  %v2547_v11 = vadd.f32 %v4079_v12, %v2241_v25  ;;  %v5491_v50 = vld [vmem:[#allocation12_spill] sm:$0xff]  ;;  %v5498_v62 = vld [vmem:[#allocation41_spill] sm:$0xff] }
 0x1f6   : > { %3016 = vst [vmem:[%s5272_s21 + $0x90] sm:$0xff] %v2984_v9  ;;  %v2889_v49 = vadd.f32 %v5259_v27, %v2850_v17  ;;  %v2848_v10 = vadd.f32 %v2771_v45, %v2542_v44  ;;  %v2478_v59 = vpop.f32.mrf.mxu1  ;;  %v2784_v29 = vpop.f32.mrf.mxu0  ;;  %v1939_v13 = vadd.f32 %v5486_v40, %v5485_v55  ;;  %v2243_v37 = vadd.f32 %v5487_v2, %v1936_v56  ;;  %v5490_v45 = vld [vmem:[#allocation34_spill] sm:$0xff]  ;;  %v5492_v12 = vld [vmem:[#allocation36_spill] sm:$0xff] }
 0x1f7   : > { %v2982_v21 = vsel %vm2918_vm1, %v2886_v1, %v2950_v24  ;;  %v2853_v14 = vadd.f32 %v4127_v15, %v2547_v11  ;;  %v2545_v57 = vadd.f32 %v2478_v59, %v2239_v22  ;;  %v1937_v30 = vadd.f32 %v5489_v0, %v5488_v26 }
 0x1f8   : > { %3014 = vst [vmem:[%s5272_s21 + $0x80] sm:$0xff] %v2982_v21  ;;  %vm2921_vm2 = vcmp.ge.f32.partialorder %v2889_v49, 0.0  ;;  %v2953_v8 = vmul.f32 0.2, %v2889_v49  ;;  %v2887_v6 = vadd.f32 %v5259_v27, %v2848_v10  ;;  %v4080_v47 = vpop.f32.mrf.mxu1  ;;  %v4128_v23 = vpop.f32.mrf.mxu0  ;;  %v2246_v54 = vadd.f32 %v5490_v45, %v1939_v13 }
 0x1f9   : > { %v2892_v63 = vadd.f32 %v5259_v27, %v2853_v14  ;;  %v2851_v34 = vadd.f32 %v2784_v29, %v2545_v57  ;;  %v2548_v25 = vadd.f32 %v4080_v47, %v2242_v52  ;;  %v1942_v1 = vadd.f32 %v5228_v33, %v5491_v50  ;;  %v5493_v52 = vld [vmem:[#allocation13_spill] sm:$0xff]  ;;  %v5494_v33 = vld [vmem:[#allocation38_spill] sm:$0xff] }
 0x1fa   : > { %v2985_v36 = vsel %vm2921_vm2, %v2889_v49, %v2953_v8  ;;  %vm2919_vm3 = vcmp.ge.f32.partialorder %v2887_v6, 0.0  ;;  %v2951_v39 = vmul.f32 0.2, %v2887_v6  ;;  %v2481_v32 = vpop.f32.mrf.mxu1  ;;  %v2787_v42 = vpop.f32.mrf.mxu0  ;;  %v2244_v15 = vadd.f32 %v5492_v12, %v1937_v30  ;;  %v5501_v30 = vld [vmem:[#allocation42_spill] sm:$0xff] }
 0x1fb   : > { %3017 = vst [vmem:[%s5272_s21 + $0x98] sm:$0xff] %v2985_v36  ;;  %vm2924_vm4 = vcmp.ge.f32.partialorder %v2892_v63, 0.0  ;;  %v2956_v38 = vmul.f32 0.2, %v2892_v63  ;;  %v2890_v60 = vadd.f32 %v5259_v27, %v2851_v34  ;;  %v2854_v43 = vadd.f32 %v4128_v23, %v2548_v25  ;;  %v5497_v23 = vld [vmem:[#allocation15_spill] sm:$0xff] }
 0x1fc   : > { %v2983_v5 = vsel %vm2919_vm3, %v2887_v6, %v2951_v39  ;;  %v2546_v18 = vadd.f32 %v2481_v32, %v2240_v58  ;;  %v4083_v3 = vpop.f32.mrf.mxu1  ;;  %v4131_v51 = vpop.f32.mrf.mxu0  ;;  %v1940_v49 = vadd.f32 %v5494_v33, %v5493_v52  ;;  %v1943_v58 = vadd.f32 %v5237_v48, %v5495_v7  ;;  %v5499_v36 = vld [vmem:[#allocation39_spill] sm:$0xff]  ;;  %v5500_v32 = vld [vmem:[#allocation40_spill] sm:$0xff] }
 0x1fd   : > { %3015 = vst [vmem:[%s5272_s21 + $0x88] sm:$0xff] %v2983_v5  ;;  %v2988_v46 = vsel %vm2924_vm4, %v2892_v63, %v2956_v38  ;;  %vm2922_vm5 = vcmp.ge.f32.partialorder %v2890_v60, 0.0  ;;  %v2954_v53 = vmul.f32 0.2, %v2890_v60  ;;  %v2893_v16 = vadd.f32 %v5259_v27, %v2854_v43 }
 0x1fe   : > { %3020 = vst [vmem:[%s5272_s21 + $0xb0] sm:$0xff] %v2988_v46  ;;  %v2852_v41 = vadd.f32 %v2787_v42, %v2546_v18  ;;  %v2551_v22 = vadd.f32 %v4083_v3, %v2245_v20  ;;  %v2494_v4 = vpop.f32.mrf.mxu1  ;;  %v2800_v31 = vpop.f32.mrf.mxu0  ;;  %v2249_v56 = vadd.f32 %v5496_v28, %v1942_v1  ;;  %v1941_v20 = vadd.f32 %v5498_v62, %v5497_v23 }
 0x1ff   : > { %v2986_v19 = vsel %vm2922_vm5, %v2890_v60, %v2954_v53  ;;  %vm2925_vm6 = vcmp.ge.f32.partialorder %v2893_v16, 0.0  ;;  %v2957_v17 = vmul.f32 0.2, %v2893_v16  ;;  %v2549_v44 = vadd.f32 %v2494_v4, %v2243_v37 }
 0x200   : > { %3018 = vst [vmem:[%s5272_s21 + $0xa0] sm:$0xff] %v2986_v19  ;;  %v2891_v9 = vadd.f32 %v5259_v27, %v2852_v41  ;;  %v2857_v24 = vadd.f32 %v4131_v51, %v2551_v22  ;;  %v4084_v11 = vpop.f32.mrf.mxu1  ;;  %v4132_v35 = vpop.f32.mrf.mxu0  ;;  %v2247_v39 = vadd.f32 %v5499_v36, %v1940_v49  ;;  %v2250_v42 = vadd.f32 %v5500_v32, %v1943_v58 }
 0x201   : > { %v2989_v10 = vsel %vm2925_vm6, %v2893_v16, %v2957_v17  ;;  %v2855_v59 = vadd.f32 %v2800_v31, %v2549_v44  ;;  %v2552_v29 = vadd.f32 %v4084_v11, %v2246_v54  ;;  %v2248_v5 = vadd.f32 %v5501_v30, %v1941_v20 }
 0x202   : > { %3021 = vst [vmem:[%s5272_s21 + $0xb8] sm:$0xff] %v2989_v10  ;;  %vm2923_vm7 = vcmp.ge.f32.partialorder %v2891_v9, 0.0  ;;  %v2955_v21 = vmul.f32 0.2, %v2891_v9  ;;  %v2896_v14 = vadd.f32 %v5259_v27, %v2857_v24  ;;  %v2497_v57 = vpop.f32.mrf.mxu1  ;;  %v2803_v61 = vpop.f32.mrf.mxu0 }
 0x203   : > { %v2894_v8 = vadd.f32 %v5259_v27, %v2855_v59  ;;  %v2858_v6 = vadd.f32 %v4132_v35, %v2552_v29  ;;  %v2550_v47 = vadd.f32 %v2497_v57, %v2244_v15 }
 0x204   : > { %v2987_v63 = vsel %vm2923_vm7, %v2891_v9, %v2955_v21  ;;  %vm2928_vm8 = vcmp.ge.f32.partialorder %v2896_v14, 0.0  ;;  %v2960_v48 = vmul.f32 0.2, %v2896_v14  ;;  %v4087_v34 = vpop.f32.mrf.mxu1  ;;  %v4135_v25 = vpop.f32.mrf.mxu0 }
 0x205   : > { %3019 = vst [vmem:[%s5272_s21 + $0xa8] sm:$0xff] %v2987_v63  ;;  %vm2926_vm9 = vcmp.ge.f32.partialorder %v2894_v8, 0.0  ;;  %v2958_v55 = vmul.f32 0.2, %v2894_v8  ;;  %v2897_v40 = vadd.f32 %v5259_v27, %v2858_v6  ;;  %v2856_v13 = vadd.f32 %v2803_v61, %v2550_v47 }
 0x206   : > { %v2992_v38 = vsel %vm2928_vm8, %v2896_v14, %v2960_v48  ;;  %v2555_v60 = vadd.f32 %v4087_v34, %v2249_v56  ;;  %v2510_v43 = vpop.f32.mrf.mxu1  ;;  %v2816_v2 = vpop.f32.mrf.mxu0 }
 0x207   : > { %3024 = vst [vmem:[%s5272_s21 + $0xd0] sm:$0xff] %v2992_v38  ;;  %v2990_v37 = vsel %vm2926_vm9, %v2894_v8, %v2958_v55  ;;  %vm2929_vm10 = vcmp.ge.f32.partialorder %v2897_v40, 0.0  ;;  %v2961_v26 = vmul.f32 0.2, %v2897_v40  ;;  %v2895_v0 = vadd.f32 %v5259_v27, %v2856_v13 }
 0x208   : > { %3022 = vst [vmem:[%s5272_s21 + $0xc0] sm:$0xff] %v2990_v37  ;;  %v2861_v18 = vadd.f32 %v4135_v25, %v2555_v60  ;;  %v2553_v3 = vadd.f32 %v2510_v43, %v2247_v39  ;;  %v4088_v51 = vpop.f32.mrf.mxu1  ;;  %v4136_v46 = vpop.f32.mrf.mxu0 }
 0x209   : > { %v2993_v53 = vsel %vm2929_vm10, %v2897_v40, %v2961_v26  ;;  %vm2927_vm11 = vcmp.ge.f32.partialorder %v2895_v0, 0.0  ;;  %v2959_v16 = vmul.f32 0.2, %v2895_v0  ;;  %v2556_v45 = vadd.f32 %v4088_v51, %v2250_v42 }
 0x20a   : > { %3025 = vst [vmem:[%s5272_s21 + $0xd8] sm:$0xff] %v2993_v53  ;;  %v2900_v54 = vadd.f32 %v5259_v27, %v2861_v18  ;;  %v2859_v50 = vadd.f32 %v2816_v2, %v2553_v3  ;;  %v2513_v1 = vpop.f32.mrf.mxu1  ;;  %v2819_v17 = vpop.f32.mrf.mxu0 }
 0x20b   : > { %v2991_v41 = vsel %vm2927_vm11, %v2895_v0, %v2959_v16  ;;  %v2862_v22 = vadd.f32 %v4136_v46, %v2556_v45  ;;  %v2554_v4 = vadd.f32 %v2513_v1, %v2248_v5 }
 0x20c   : > { %3023 = vst [vmem:[%s5272_s21 + $0xc8] sm:$0xff] %v2991_v41  ;;  %vm2932_vm12 = vcmp.ge.f32.partialorder %v2900_v54, 0.0  ;;  %v2964_v31 = vmul.f32 0.2, %v2900_v54  ;;  %v2898_v19 = vadd.f32 %v5259_v27, %v2859_v50 }
 0x20d   : > { %v2901_v44 = vadd.f32 %v5259_v27, %v2862_v22  ;;  %v2860_v12 = vadd.f32 %v2819_v17, %v2554_v4 }
 0x20e   : > { %v2996_v15 = vsel %vm2932_vm12, %v2900_v54, %v2964_v31  ;;  %vm2930_vm13 = vcmp.ge.f32.partialorder %v2898_v19, 0.0  ;;  %v2962_v9 = vmul.f32 0.2, %v2898_v19 }
 0x20f   : > { %3028 = vst [vmem:[%s5272_s21 + $0xf0] sm:$0xff] %v2996_v15  ;;  %vm2933_vm14 = vcmp.ge.f32.partialorder %v2901_v44, 0.0  ;;  %v2965_v24 = vmul.f32 0.2, %v2901_v44  ;;  %v2899_v11 = vadd.f32 %v5259_v27, %v2860_v12 }
 0x210   : > { %v2994_v35 = vsel %vm2930_vm13, %v2898_v19, %v2962_v9 }
 0x211   : > { %3026 = vst [vmem:[%s5272_s21 + $0xe0] sm:$0xff] %v2994_v35  ;;  %v2997_v52 = vsel %vm2933_vm14, %v2901_v44, %v2965_v24  ;;  %vm2931_vm15 = vcmp.ge.f32.partialorder %v2899_v11, 0.0  ;;  %v2963_v33 = vmul.f32 0.2, %v2899_v11 }
 0x212   : > { %3029 = vst [vmem:[%s5272_s21 + $0xf8] sm:$0xff] %v2997_v52 }
 0x213   : > { %v2995_v49 = vsel %vm2931_vm15, %v2899_v11, %v2963_v33 }
 0x214   : > { %3027 = vst [vmem:[%s5272_s21 + $0xe8] sm:$0xff] %v2995_v49 }
 0x215 PF: > { %s13_s12 = sadd.s32 1, %s4240_s12  }
 0x216   : > { %p10_p4 = scmp.ge.s32.totalorder %s13_s12, 4  }
 0x218   :  { %12 = sbr.rel (!%p10_p4) target bundleno = 1 (0x1), region = 72 }

// kernel: unet_disc_forward.7
= control target key start
LH: loop header
LB: loop body
LE: loop exit
PB: predicated region body
PF: predicated region fallthrough
CT: control target
= control target key end

     0   :  { %s4393_s15 = smov 0   ;;  %s5618_s0 = inlined_call_operand.vmem [shape: f32[2,18,18,128], index: 0, kind: input, shape index: {}]   ;;  %s5619_s1 = inlined_call_operand.vmem [shape: bf16[9,128,128], index: 1, kind: input, shape index: {}]   ;;  %s5620_s2 = inlined_call_operand.vmem [shape: f32[1,128], index: 2, kind: input, shape index: {}]   ;;  %s5621_s3 = inlined_call_operand.vmem [shape: f32[2,16,16,128], index: 3, kind: input, shape index: {}]   ;;  %s5622_s4 = inlined_call_operand.vmem [shape: f32[2,16,16,128], index: 4, kind: output, shape index: {}]  }
   0x1 LB: > { %s3208_s16 = sadd.s32 4294967295, %s4366_s15   ;;  %p3212_p0 = scmp.ge.s32.totalorder %s4366_s15, 1  ;;  %s4366_s15 = sphi %s4393_s15, %s14_s15  }
   0x2   : > { %p172_p1 = scmp.lt.s32.totalorder %s4366_s15, 3 }
   0x4   : > { %p173_p2 = pnand %p3212_p0, %p172_p1 }
   0x6   : > { %176 = sbr.rel (%p173_p2) target bundleno = 536 (0x218), region = 36 }
   0xb   : > { %v4288_v0 = vld [vmem:[%s5619_s1 + $0x78] sm:$0xff]   ;;  %p203_p3 = scmp.lt.s32.totalorder %s3208_s16, 1  ;;  %v4289_v1 = vld [vmem:[%s5619_s1 + $0x70] sm:$0xff]   ;;  %v4290_v2 = vld [vmem:[%s5619_s1 + $0x68] sm:$0xff]  }
   0xc   : > { %3831 = vmatprep.subr.bf16.mxu0 %v4288_v0  ;;  %4263 = vmatprep.subr.bf16.mxu1 %v4288_v0  ;;  %v4291_v3 = vld [vmem:[%s5619_s1 + $0x60] sm:$0xff]   ;;  %v4292_v10 = vld [vmem:[%s5619_s1 + $0x58] sm:$0xff]   ;;  %v4293_v11 = vld [vmem:[%s5619_s1 + $0x50] sm:$0xff]  }
   0xd   : > { %s5700_s16 = smov (!%p203_p3, %s3208_s16), 1  ;;  %3832 = vmatpush3.bf16.msra.mxu0 %v4288_v0  ;;  %4271 = vmatpush3.bf16.msra.mxu1 %v4288_v0  ;;  %v4294_v12 = vld [vmem:[%s5619_s1 + $0x48] sm:$0xff]   ;;  %v4295_v13 = vld [vmem:[%s5619_s1 + $0x40] sm:$0xff]   ;;  %v4296_v18 = vld [vmem:[%s5619_s1 + $0x38] sm:$0xff]  }
   0xe   : > { %3833 = vmatprep.subr.bf16.mxu0 %v4289_v1  ;;  %4264 = vmatprep.subr.bf16.mxu1 %v4289_v1  ;;  %s4279_s23 = smul.u32 432, %s5700_s16  ;;  %v4297_v19 = vld [vmem:[%s5619_s1 + $0xb8] sm:$0xff]   ;;  %v4298_v26 = vld [vmem:[%s5619_s1 + $0x30] sm:$0xff]   ;;  %v4300_v34 = vld [vmem:[%s5619_s1 + $0x28] sm:$0xff]  }
   0xf   : > { %v4299_v27 = vld [vmem:[%s5619_s1 + $0xb0] sm:$0xff]   ;;  %v4301_v35 = vld [vmem:[%s5619_s1 + $0xa8] sm:$0xff]   ;;  %v4302_v42 = vld [vmem:[%s5619_s1 + $0x20] sm:$0xff]  }
  0x10   : > { %s4416_s26 = scalar_lea.vmem %s5618_s0, %s4279_s23  ;;  %v4303_v43 = vld [vmem:[%s5619_s1 + $0xa0] sm:$0xff]   ;;  %v4304_v50 = vld [vmem:[%s5619_s1 + $0x18] sm:$0xff]   ;;  %v4306_v58 = vld [vmem:[%s5619_s1 + $0x10] sm:$0xff]  }
  0x11   : > { %3834 = vmatpush3.bf16.msra.mxu0 %v4289_v1  ;;  %4272 = vmatpush3.bf16.msra.mxu1 %v4289_v1  ;;  %v283_v4 = vld [vmem:[%s4416_s26 + $0x1] sm:$0xff]  ;;  %v284_v5 = vld [vmem:[%s4416_s26 + $0x9] sm:$0xff]  ;;  %v285_v14 = vld [vmem:[%s4416_s26 + $0x19] sm:$0xff] }
  0x12   : > { %3835 = vmatprep.subr.bf16.mxu0 %v4290_v2  ;;  %4265 = vmatprep.subr.bf16.mxu1 %v4290_v2  ;;  %v299_v6 = vld [vmem:[%s4416_s26 + $0xc1] sm:$0xff]  ;;  %v315_v7 = vpack.c.bf16 %v284_v5, %v283_v4  ;;  %v300_v8 = vld [vmem:[%s4416_s26 + $0xc9] sm:$0xff]  ;;  %v301_v16 = vld [vmem:[%s4416_s26 + $0xd9] sm:$0xff] }
  0x13   : > { %v4425_v9 = vpack.c.bf16 %v300_v8, %v299_v6  ;;  %v286_v15 = vld [vmem:[%s4416_s26 + $0x21] sm:$0xff]  ;;  %v287_v20 = vld [vmem:[%s4416_s26 + $0x31] sm:$0xff]  ;;  %v288_v21 = vld [vmem:[%s4416_s26 + $0x39] sm:$0xff] }
  0x14   : > { %3847 = vmatprep.mubr.bf16.mxu0 %v315_v7  ;;  %v302_v17 = vld [vmem:[%s4416_s26 + $0xe1] sm:$0xff]  ;;  %v4452_v22 = vpack.c.bf16 %v286_v15, %v285_v14  ;;  %v303_v24 = vld [vmem:[%s4416_s26 + $0xf1] sm:$0xff]  ;;  %v304_v25 = vld [vmem:[%s4416_s26 + $0xf9] sm:$0xff]  ;;  %v4464_v28 = vpack.c.bf16 %v288_v21, %v287_v20 }
  0x15   : > { %3836 = vmatpush3.bf16.msra.mxu0 %v4290_v2  ;;  %4273 = vmatpush3.bf16.msra.mxu1 %v4290_v2  ;;  %v4454_v23 = vpack.c.bf16 %v302_v17, %v301_v16  ;;  %v4466_v29 = vpack.c.bf16 %v304_v25, %v303_v24  ;;  %v289_v30 = vld [vmem:[%s4416_s26 + $0x49] sm:$0xff]  ;;  %v290_v31 = vld [vmem:[%s4416_s26 + $0x51] sm:$0xff]  ;;  %v291_v36 = vld [vmem:[%s4416_s26 + $0x61] sm:$0xff] }
  0x16   : > { %3837 = vmatprep.subr.bf16.mxu0 %v4291_v3  ;;  %4266 = vmatprep.subr.bf16.mxu1 %v4291_v3  ;;  %v305_v32 = vld [vmem:[%s4416_s26 + $0x109] sm:$0xff]  ;;  %v306_v33 = vld [vmem:[%s4416_s26 + $0x111] sm:$0xff]  ;;  %v307_v38 = vld [vmem:[%s4416_s26 + $0x121] sm:$0xff]  ;;  %v4485_v39 = vpack.c.bf16 %v290_v31, %v289_v30 }
  0x17   : > { %3863 = vmatprep.mubr.bf16.mxu1 %v4425_v9  ;;  %v292_v37 = vld [vmem:[%s4416_s26 + $0x69] sm:$0xff]  ;;  %v4487_v40 = vpack.c.bf16 %v306_v33, %v305_v32  ;;  %v293_v46 = vld [vmem:[%s4416_s26 + $0x79] sm:$0xff]  ;;  %v294_v47 = vld [vmem:[%s4416_s26 + $0x81] sm:$0xff] }
  0x18   : > { %v308_v41 = vld [vmem:[%s4416_s26 + $0x129] sm:$0xff]  ;;  %v4496_v44 = vpack.c.bf16 %v292_v37, %v291_v36  ;;  %v309_v48 = vld [vmem:[%s4416_s26 + $0x139] sm:$0xff]  ;;  %v310_v49 = vld [vmem:[%s4416_s26 + $0x141] sm:$0xff]  ;;  %v4516_v54 = vpack.c.bf16 %v294_v47, %v293_v46 }
  0x19   : > { %3838 = vmatpush3.bf16.msra.mxu0 %v4291_v3  ;;  %4274 = vmatpush3.bf16.msra.mxu1 %v4291_v3  ;;  %v4498_v45 = vpack.c.bf16 %v308_v41, %v307_v38  ;;  %v4305_v51 = vld [vmem:[%s5619_s1 + $0x98] sm:$0xff]   ;;  %v4518_v55 = vpack.c.bf16 %v310_v49, %v309_v48  ;;  %v4307_v59 = vld [vmem:[%s5619_s1 + $0x90] sm:$0xff]   ;;  %v4308_v2 = vld [vmem:[%s5619_s1 + $0x8] sm:$0xff]  }
  0x1a   : > { %3839 = vmatprep.subr.bf16.mxu0 %v4292_v10  ;;  %4267 = vmatprep.subr.bf16.mxu1 %v4292_v10  ;;  %v295_v52 = vld [vmem:[%s4416_s26 + $0x91] sm:$0xff]  ;;  %v296_v53 = vld [vmem:[%s4416_s26 + $0x99] sm:$0xff]  ;;  %v297_v62 = vld [vmem:[%s4416_s26 + $0xa9] sm:$0xff] }
  0x1b   : > { %v311_v56 = vld [vmem:[%s4416_s26 + $0x151] sm:$0xff]  ;;  %v312_v57 = vld [vmem:[%s4416_s26 + $0x159] sm:$0xff]  ;;  %v4528_v60 = vpack.c.bf16 %v296_v53, %v295_v52  ;;  %v313_v0 = vld [vmem:[%s4416_s26 + $0x169] sm:$0xff] }
  0x1c   : > { %v4530_v61 = vpack.c.bf16 %v312_v57, %v311_v56  ;;  %v298_v63 = vld [vmem:[%s4416_s26 + $0xb1] sm:$0xff]  ;;  %v4309_v3 = vld [vmem:[%s5619_s1 + $0x88] sm:$0xff]   ;;  %v219_v4 = vld [vmem:[%s4416_s26] sm:$0xff] }
  0x1d   : > { %3840 = vmatpush3.bf16.msra.mxu0 %v4292_v10  ;;  %4275 = vmatpush3.bf16.msra.mxu1 %v4292_v10  ;;  %v314_v1 = vld [vmem:[%s4416_s26 + $0x171] sm:$0xff]  ;;  %v4547_v5 = vpack.c.bf16 %v298_v63, %v297_v62  ;;  %v220_v7 = vld [vmem:[%s4416_s26 + $0x8] sm:$0xff]  ;;  %v222_v16 = vld [vmem:[%s4416_s26 + $0x20] sm:$0xff] }
  0x1e   : > { %3841 = vmatprep.subr.bf16.mxu0 %v4293_v11  ;;  %4268 = vmatprep.subr.bf16.mxu1 %v4293_v11  ;;  %v4549_v6 = vpack.c.bf16 %v314_v1, %v313_v0  ;;  %v766_v8 = vld [vmem:[%s4416_s26 + $0x2] sm:$0xff]  ;;  %v767_v10 = vld [vmem:[%s4416_s26 + $0xa] sm:$0xff]  ;;  %v221_v15 = vld [vmem:[%s4416_s26 + $0x18] sm:$0xff] }
  0x1f   : > { %v798_v14 = vpack.c.bf16 %v767_v10, %v766_v8  ;;  %v768_v17 = vld [vmem:[%s4416_s26 + $0x1a] sm:$0xff]  ;;  %v223_v21 = vld [vmem:[%s4416_s26 + $0x30] sm:$0xff]  ;;  %v4316_v47 = vld [vmem:[%s5619_s1 + $0xe8] sm:$0xff]  }
  0x20   : > { %v4313_v20 = vld [vmem:[%s5619_s1 + $0x138] sm:$0xff]   ;;  %v4314_v33 = vld [vmem:[%s5619_s1 + $0xf0] sm:$0xff]   ;;  %v227_v41 = vld [vmem:[%s4416_s26 + $0x60] sm:$0xff] }
  0x21   : > { %3842 = vmatpush3.bf16.msra.mxu0 %v4293_v11  ;;  %4276 = vmatpush3.bf16.msra.mxu1 %v4293_v11  ;;  %v4310_v11 = vld [vmem:[%s5619_s1] sm:$0xff]   ;;  %v224_v24 = vld [vmem:[%s4416_s26 + $0x38] sm:$0xff]  ;;  %v772_v36 = vld [vmem:[%s4416_s26 + $0x4a] sm:$0xff] }
  0x22   : > { %3843 = vmatprep.subr.bf16.mxu0 %v4294_v12  ;;  %4269 = vmatprep.subr.bf16.mxu1 %v4294_v12  ;;  %v770_v25 = vld [vmem:[%s4416_s26 + $0x32] sm:$0xff]  ;;  %v4580_v31 = vpack.c.bf16 %v224_v24, %v223_v21  ;;  %v775_v46 = vld [vmem:[%s4416_s26 + $0x6a] sm:$0xff]  ;;  %v4318_v53 = vld [vmem:[%s5619_s1 + $0xe0] sm:$0xff]  }
  0x23   : > { %v4315_v37 = vld [vmem:[%s5619_s1 + $0x130] sm:$0xff]   ;;  %v4317_v48 = vld [vmem:[%s5619_s1 + $0x128] sm:$0xff]   ;;  %v229_v56 = vld [vmem:[%s4416_s26 + $0x78] sm:$0xff] }
  0x24   : > { %v773_v38 = vld [vmem:[%s4416_s26 + $0x52] sm:$0xff]  ;;  %v230_v57 = vld [vmem:[%s4416_s26 + $0x80] sm:$0xff]  ;;  %v783_v21 = vld [vmem:[%s4416_s26 + $0xca] sm:$0xff] }
  0x25   : > { %3844 = vmatpush3.bf16.msra.mxu0 %v4294_v12  ;;  %4277 = vmatpush3.bf16.msra.mxu1 %v4294_v12  ;;  %v4311_v12 = vld [vmem:[%s5619_s1 + $0x80] sm:$0xff]   ;;  %v231_v63 = vld [vmem:[%s4416_s26 + $0x90] sm:$0xff]  ;;  %v232_v0 = vld [vmem:[%s4416_s26 + $0x98] sm:$0xff] }
  0x26   : > { %3845 = vmatprep.subr.bf16.mxu0 %v4295_v13  ;;  %4270 = vmatprep.subr.bf16.mxu1 %v4295_v13  ;;  %v4319_v62 = vld [vmem:[%s5619_s1 + $0x120] sm:$0xff]   ;;  %v778_v1 = vld [vmem:[%s4416_s26 + $0x92] sm:$0xff]  ;;  %v4644_v10 = vpack.c.bf16 %v232_v0, %v231_v63  ;;  %v4324_v24 = vld [vmem:[%s5619_s1 + $0xc8] sm:$0xff]  }
  0x27   : > { %v241_v0 = vld [vmem:[%s4416_s26 + $0x108] sm:$0xff] }
  0x29   : > { %3846 = vmatpush3.bf16.msra.mxu0 %v4295_v13  ;;  %4278 = vmatpush3.bf16.msra.mxu1 %v4295_v13  ;;  %v251_v13 = vpack.c.bf16 %v220_v7, %v219_v4  ;;  %v4321_v4 = vld [vmem:[%s5619_s1 + $0x118] sm:$0xff]   ;;  %v4640_v7 = vpack.c.bf16 %v230_v57, %v229_v56 }
  0x2a   : > { %3879 = vmatprep.subr.bf16.mxu1 %v4296_v18  ;;  %3927 = vmatprep.subr.bf16.mxu0 %v4297_v19  ;;  %v4328_v56 = vld [vmem:[%s5619_s1 + $0x178] sm:$0xff]  }
  0x2b   : > { %v4329_v57 = vld [vmem:[%s5619_s1 + $0x1b8] sm:$0xff]  }
  0x2c   : > { %3848 = vmatmul.mubr.bf16.vlgmr.msra.gmra.mxu0 %v4452_v22  ;;  %3864 = vmatmul.mubr.bf16.vlgmr.msra.gmra.mxu1 %v4454_v23 }
  0x2d   : > { %3880 = vmatpush3.bf16.msra.mxu1 %v4296_v18  ;;  %3928 = vmatpush3.bf16.msra.mxu0 %v4297_v19  ;;  %v769_v18 = vld [vmem:[%s4416_s26 + $0x22] sm:$0xff]  ;;  %v4312_v19 = vld [vmem:[%s5619_s1 + $0xf8] sm:$0xff]  }
  0x2e   : > { %3881 = vmatprep.subr.bf16.mxu1 %v4298_v26  ;;  %3929 = vmatprep.subr.bf16.mxu0 %v4299_v27  ;;  %v4578_v30 = vpack.c.bf16 %v769_v18, %v768_v17  ;;  %v4323_v17 = vld [vmem:[%s5619_s1 + $0x110] sm:$0xff]   ;;  %v235_v18 = vld [vmem:[%s4416_s26 + $0xc0] sm:$0xff] }
  0x2f   : > { %3851 = vmatprep.mubr.bf16.mxu0 %v4464_v28  ;;  %3867 = vmatprep.mubr.bf16.mxu1 %v4466_v29 }
  0x31   : > { %3882 = vmatpush3.bf16.msra.mxu1 %v4298_v26  ;;  %3930 = vmatpush3.bf16.msra.mxu0 %v4299_v27  ;;  %v771_v26 = vld [vmem:[%s4416_s26 + $0x3a] sm:$0xff]  ;;  %v4576_v27 = vpack.c.bf16 %v222_v16, %v221_v15  ;;  %v780_v15 = vld [vmem:[%s4416_s26 + $0xaa] sm:$0xff]  ;;  %v781_v16 = vld [vmem:[%s4416_s26 + $0xb2] sm:$0xff] }
  0x32   : > { %3883 = vmatprep.subr.bf16.mxu1 %v4300_v34  ;;  %3931 = vmatprep.subr.bf16.mxu0 %v4301_v35  ;;  %v4582_v32 = vpack.c.bf16 %v771_v26, %v770_v25  ;;  %v4325_v25 = vld [vmem:[%s5619_s1 + $0x108] sm:$0xff]  }
  0x34   : > { %3852 = vmatmul.mubr.bf16.gmra.mxu0 %v4485_v39  ;;  %3868 = vmatmul.mubr.bf16.gmra.mxu1 %v4487_v40 }
  0x35   : > { %3884 = vmatpush3.bf16.msra.mxu1 %v4300_v34  ;;  %3932 = vmatpush3.bf16.msra.mxu0 %v4301_v35  ;;  %v225_v34 = vld [vmem:[%s4416_s26 + $0x48] sm:$0xff]  ;;  %v226_v35 = vld [vmem:[%s4416_s26 + $0x50] sm:$0xff] }
  0x36   : > { %3885 = vmatprep.subr.bf16.mxu1 %v4302_v42  ;;  %3933 = vmatprep.subr.bf16.mxu0 %v4303_v43  ;;  %v4608_v49 = vpack.c.bf16 %v226_v35, %v225_v34 }
  0x37   : > { %3855 = vmatprep.mubr.bf16.mxu0 %v4496_v44  ;;  %3871 = vmatprep.mubr.bf16.mxu1 %v4498_v45 }
  0x39   : > { %3886 = vmatpush3.bf16.msra.mxu1 %v4302_v42  ;;  %3934 = vmatpush3.bf16.msra.mxu0 %v4303_v43  ;;  %v228_v42 = vld [vmem:[%s4416_s26 + $0x68] sm:$0xff] }
  0x3a   : > { %3887 = vmatprep.subr.bf16.mxu1 %v4304_v50  ;;  %3935 = vmatprep.subr.bf16.mxu0 %v4305_v51  ;;  %v774_v43 = vld [vmem:[%s4416_s26 + $0x62] sm:$0xff] }
  0x3b   : > { %v4614_v52 = vpack.c.bf16 %v775_v46, %v774_v43  ;;  %v4327_v43 = vld [vmem:[%s5619_s1 + $0x100] sm:$0xff]   ;;  %v239_v46 = vld [vmem:[%s4416_s26 + $0xf0] sm:$0xff] }
  0x3c   : > { %3856 = vmatmul.mubr.bf16.gmra.mxu0 %v4516_v54  ;;  %3872 = vmatmul.mubr.bf16.gmra.mxu1 %v4518_v55 }
  0x3d   : > { %3888 = vmatpush3.bf16.msra.mxu1 %v4304_v50  ;;  %3936 = vmatpush3.bf16.msra.mxu0 %v4305_v51  ;;  %v4610_v50 = vpack.c.bf16 %v773_v38, %v772_v36  ;;  %v4612_v51 = vpack.c.bf16 %v228_v42, %v227_v41  ;;  %v4326_v36 = vld [vmem:[%s5619_s1 + $0xc0] sm:$0xff]  }
  0x3e   : > { %3889 = vmatprep.subr.bf16.mxu1 %v4306_v58  ;;  %3937 = vmatprep.subr.bf16.mxu0 %v4307_v59  ;;  %v238_v38 = vld [vmem:[%s4416_s26 + $0xe0] sm:$0xff] }
  0x3f   : > { %3859 = vmatprep.mubr.bf16.mxu0 %v4528_v60  ;;  %3875 = vmatprep.mubr.bf16.mxu1 %v4530_v61  ;;  %v784_v41 = vld [vmem:[%s4416_s26 + $0xda] sm:$0xff]  ;;  %v785_v42 = vld [vmem:[%s4416_s26 + $0xe2] sm:$0xff] }
  0x41   : > { %3890 = vmatpush3.bf16.msra.mxu1 %v4306_v58  ;;  %3938 = vmatpush3.bf16.msra.mxu0 %v4307_v59  ;;  %v776_v58 = vld [vmem:[%s4416_s26 + $0x7a] sm:$0xff]  ;;  %v777_v59 = vld [vmem:[%s4416_s26 + $0x82] sm:$0xff] }
  0x42   : > { %3891 = vmatprep.subr.bf16.mxu1 %v4308_v2  ;;  %3939 = vmatprep.subr.bf16.mxu0 %v4309_v3  ;;  %v4642_v8 = vpack.c.bf16 %v777_v59, %v776_v58  ;;  %v4706_v59 = vpack.c.bf16 %v785_v42, %v784_v41 }
  0x44   : > { %3860 = vmatmul.mubr.bf16.gmra.mxu0 %v4547_v5  ;;  %3876 = vmatmul.mubr.bf16.gmra.mxu1 %v4549_v6 }
  0x45   : > { %3892 = vmatpush3.bf16.msra.mxu1 %v4308_v2  ;;  %3940 = vmatpush3.bf16.msra.mxu0 %v4309_v3  ;;  %v779_v2 = vld [vmem:[%s4416_s26 + $0x9a] sm:$0xff] }
  0x46   : > { %3893 = vmatprep.subr.bf16.mxu1 %v4310_v11  ;;  %3941 = vmatprep.subr.bf16.mxu0 %v4311_v12  ;;  %v4320_v3 = vld [vmem:[%s5619_s1 + $0xd8] sm:$0xff]  }
  0x47   : > { %3895 = vmatprep.mubr.bf16.mxu1 %v251_v13  ;;  %3943 = vmatprep.mubr.bf16.mxu0 %v798_v14  ;;  %v233_v13 = vld [vmem:[%s4416_s26 + $0xa8] sm:$0xff]  ;;  %v234_v14 = vld [vmem:[%s4416_s26 + $0xb0] sm:$0xff] }
  0x48   : > { %v4672_v26 = vpack.c.bf16 %v234_v14, %v233_v13  ;;  %v790_v13 = vld [vmem:[%s4416_s26 + $0x122] sm:$0xff]  ;;  %v791_v14 = vld [vmem:[%s4416_s26 + $0x12a] sm:$0xff] }
  0x49   : > { %3894 = vmatpush3.bf16.msra.mxu1 %v4310_v11  ;;  %3942 = vmatpush3.bf16.msra.mxu0 %v4311_v12  ;;  %v4646_v11 = vpack.c.bf16 %v779_v2, %v778_v1  ;;  %v4322_v12 = vld [vmem:[%s5619_s1 + $0xd0] sm:$0xff]  }
  0x4a   : > { %3975 = vmatprep.subr.bf16.mxu1 %v4312_v19  ;;  %4023 = vmatprep.subr.bf16.mxu0 %v4313_v20  ;;  %v242_v1 = vld [vmem:[%s4416_s26 + $0x110] sm:$0xff] }
  0x4b   : > { %v788_v2 = vld [vmem:[%s4416_s26 + $0x10a] sm:$0xff] }
  0x4c   : > { %3896 = vmatmul.mubr.bf16.vlgmr.msra.gmra.mxu1 %v4576_v27  ;;  %3944 = vmatmul.mubr.bf16.vlgmr.msra.gmra.mxu0 %v4578_v30 }
  0x4d   : > { %3976 = vmatpush3.bf16.msra.mxu1 %v4312_v19  ;;  %4024 = vmatpush3.bf16.msra.mxu0 %v4313_v20  ;;  %v236_v19 = vld [vmem:[%s4416_s26 + $0xc8] sm:$0xff] }
  0x4e   : > { %3899 = vmatprep.mubr.bf16.mxu1 %v4580_v31  ;;  %3947 = vmatprep.mubr.bf16.mxu0 %v4582_v32  ;;  %v782_v20 = vld [vmem:[%s4416_s26 + $0xc2] sm:$0xff]  ;;  %v4676_v34 = vpack.c.bf16 %v236_v19, %v235_v18  ;;  %v4730_v18 = vpack.c.bf16 %v791_v14, %v790_v13  ;;  %v245_v19 = vld [vmem:[%s4416_s26 + $0x138] sm:$0xff] }
  0x4f   : > { %3977 = vmatprep.subr.bf16.mxu1 %v4314_v33  ;;  %4025 = vmatprep.subr.bf16.mxu0 %v4315_v37  ;;  %v4678_v35 = vpack.c.bf16 %v783_v21, %v782_v20  ;;  %v246_v20 = vld [vmem:[%s4416_s26 + $0x140] sm:$0xff]  ;;  %v4341_v13 = vld [vmem:[%s5619_s1 + $0x188] sm:$0xff]   ;;  %v4344_v14 = vld [vmem:[%s5619_s1 + $0x1f8] sm:$0xff]  }
  0x50   : > { %v792_v21 = vld [vmem:[%s4416_s26 + $0x13a] sm:$0xff]  ;;  %v4744_v41 = vpack.c.bf16 %v246_v20, %v245_v19 }
  0x51   : > { %3978 = vmatpush3.bf16.msra.mxu1 %v4314_v33  ;;  %4026 = vmatpush3.bf16.msra.mxu0 %v4315_v37  ;;  %v4674_v33 = vpack.c.bf16 %v781_v16, %v780_v15  ;;  %v237_v37 = vld [vmem:[%s4416_s26 + $0xd8] sm:$0xff]  ;;  %v4724_v15 = vpack.c.bf16 %v242_v1, %v241_v0 }
  0x52   : > { %3979 = vmatprep.subr.bf16.mxu1 %v4316_v47  ;;  %4027 = vmatprep.subr.bf16.mxu0 %v4317_v48  ;;  %v4704_v58 = vpack.c.bf16 %v238_v38, %v237_v37  ;;  %v794_v37 = vld [vmem:[%s4416_s26 + $0x152] sm:$0xff]  ;;  %v795_v38 = vld [vmem:[%s4416_s26 + $0x15a] sm:$0xff] }
  0x53   : > { %v797_v0 = vld [vmem:[%s4416_s26 + $0x172] sm:$0xff] }
  0x54   : > { %3900 = vmatmul.mubr.bf16.gmra.mxu1 %v4608_v49  ;;  %3948 = vmatmul.mubr.bf16.gmra.mxu0 %v4610_v50  ;;  %v4345_v19 = vld [vmem:[%s5619_s1 + $0x238] sm:$0xff]  }
  0x55   : > { %3903 = vmatprep.mubr.bf16.mxu1 %v4612_v51  ;;  %3951 = vmatprep.mubr.bf16.mxu0 %v4614_v52 }
  0x56   : > { %3980 = vmatpush3.bf16.msra.mxu1 %v4316_v47  ;;  %4028 = vmatpush3.bf16.msra.mxu0 %v4317_v48  ;;  %v240_v47 = vld [vmem:[%s4416_s26 + $0xf8] sm:$0xff] }
  0x57   : > { %3981 = vmatprep.subr.bf16.mxu1 %v4318_v53  ;;  %4029 = vmatprep.subr.bf16.mxu0 %v4319_v62  ;;  %v786_v48 = vld [vmem:[%s4416_s26 + $0xf2] sm:$0xff] }
  0x5a   : > { %3982 = vmatpush3.bf16.msra.mxu1 %v4318_v53  ;;  %4030 = vmatpush3.bf16.msra.mxu0 %v4319_v62  ;;  %v787_v53 = vld [vmem:[%s4416_s26 + $0xfa] sm:$0xff]  ;;  %v4708_v62 = vpack.c.bf16 %v240_v47, %v239_v46  ;;  %v4750_v46 = vpack.c.bf16 %v795_v38, %v794_v37  ;;  %v249_v47 = vld [vmem:[%s4416_s26 + $0x168] sm:$0xff] }
  0x5b   : > { %3983 = vmatprep.subr.bf16.mxu1 %v4320_v3  ;;  %4031 = vmatprep.subr.bf16.mxu0 %v4321_v4  ;;  %v4710_v63 = vpack.c.bf16 %v787_v53, %v786_v48  ;;  %v250_v48 = vld [vmem:[%s4416_s26 + $0x170] sm:$0xff] }
  0x5c   : > { %3904 = vmatmul.mubr.bf16.gmra.mxu1 %v4640_v7  ;;  %3952 = vmatmul.mubr.bf16.gmra.mxu0 %v4642_v8  ;;  %v796_v53 = vld [vmem:[%s4416_s26 + $0x16a] sm:$0xff]  ;;  %v4760_v1 = vpack.c.bf16 %v250_v48, %v249_v47  ;;  %v3473_v47 = vld [vmem:[%s4416_s26 + $0x1a0] sm:$0xff] }
  0x5d   : > { %3907 = vmatprep.mubr.bf16.mxu1 %v4644_v10  ;;  %3955 = vmatprep.mubr.bf16.mxu0 %v4646_v11  ;;  %v3498_v48 = vld [vmem:[%s4416_s26 + $0x31] sm:$0xff] }
  0x5e   : > { %3984 = vmatpush3.bf16.msra.mxu1 %v4320_v3  ;;  %4032 = vmatpush3.bf16.msra.mxu0 %v4321_v4  ;;  %v789_v3 = vld [vmem:[%s4416_s26 + $0x112] sm:$0xff]  ;;  %v243_v4 = vld [vmem:[%s4416_s26 + $0x120] sm:$0xff] }
  0x5f   : > { %3985 = vmatprep.subr.bf16.mxu1 %v4322_v12  ;;  %4033 = vmatprep.subr.bf16.mxu0 %v4323_v17  ;;  %v4726_v16 = vpack.c.bf16 %v789_v3, %v788_v2  ;;  %v4762_v2 = vpack.c.bf16 %v797_v0, %v796_v53  ;;  %v4330_v3 = vld [vmem:[%s5619_s1 + $0x170] sm:$0xff]  }
  0x62   : > { %3986 = vmatpush3.bf16.msra.mxu1 %v4322_v12  ;;  %4034 = vmatpush3.bf16.msra.mxu0 %v4323_v17  ;;  %v244_v12 = vld [vmem:[%s4416_s26 + $0x128] sm:$0xff] }
  0x63   : > { %3987 = vmatprep.subr.bf16.mxu1 %v4324_v24  ;;  %4035 = vmatprep.subr.bf16.mxu0 %v4325_v25  ;;  %v4728_v17 = vpack.c.bf16 %v244_v12, %v243_v4  ;;  %v4331_v4 = vld [vmem:[%s5619_s1 + $0x1b0] sm:$0xff]   ;;  %v4340_v12 = vld [vmem:[%s5619_s1 + $0x148] sm:$0xff]  }
  0x64   : > { %3908 = vmatmul.mubr.bf16.gmra.mxu1 %v4672_v26  ;;  %3956 = vmatmul.mubr.bf16.gmra.mxu0 %v4674_v33 }
  0x65   : > { %3911 = vmatprep.mubr.bf16.mxu1 %v4676_v34  ;;  %3959 = vmatprep.mubr.bf16.mxu0 %v4678_v35 }
  0x66   : > { %3988 = vmatpush3.bf16.msra.mxu1 %v4324_v24  ;;  %4036 = vmatpush3.bf16.msra.mxu0 %v4325_v25  ;;  %v793_v24 = vld [vmem:[%s4416_s26 + $0x142] sm:$0xff]  ;;  %v247_v25 = vld [vmem:[%s4416_s26 + $0x150] sm:$0xff] }
  0x67   : > { %3989 = vmatprep.subr.bf16.mxu1 %v4326_v36  ;;  %4037 = vmatprep.subr.bf16.mxu0 %v4327_v43  ;;  %v4746_v42 = vpack.c.bf16 %v793_v24, %v792_v21 }
  0x6a   : > { %3990 = vmatpush3.bf16.msra.mxu1 %v4326_v36  ;;  %4038 = vmatpush3.bf16.msra.mxu0 %v4327_v43  ;;  %v248_v36 = vld [vmem:[%s4416_s26 + $0x158] sm:$0xff] }
  0x6b   : > { %4071 = vmatprep.subr.bf16.mxu1 %v4328_v56  ;;  %4119 = vmatprep.subr.bf16.mxu0 %v4329_v57  ;;  %v4748_v43 = vpack.c.bf16 %v248_v36, %v247_v25 }
  0x6c   : > { %3912 = vmatmul.mubr.bf16.gmra.mxu1 %v4704_v58  ;;  %3960 = vmatmul.mubr.bf16.gmra.mxu0 %v4706_v59 }
  0x6d   : > { %3915 = vmatprep.mubr.bf16.mxu1 %v4708_v62  ;;  %3963 = vmatprep.mubr.bf16.mxu0 %v4710_v63 }
  0x74   : > { %3916 = vmatmul.mubr.bf16.gmra.mxu1 %v4724_v15  ;;  %3964 = vmatmul.mubr.bf16.gmra.mxu0 %v4726_v16 }
  0x75   : > { %3919 = vmatprep.mubr.bf16.mxu1 %v4728_v17  ;;  %3967 = vmatprep.mubr.bf16.mxu0 %v4730_v18 }
  0x7c   : > { %3920 = vmatmul.mubr.bf16.gmra.mxu1 %v4744_v41  ;;  %3968 = vmatmul.mubr.bf16.gmra.mxu0 %v4746_v42 }
  0x7d   : > { %3923 = vmatprep.mubr.bf16.mxu1 %v4748_v43  ;;  %3971 = vmatprep.mubr.bf16.mxu0 %v4750_v46 }
  0x84   : > { %3924 = vmatmul.mubr.bf16.gmra.mxu1 %v4760_v1  ;;  %3972 = vmatmul.mubr.bf16.gmra.mxu0 %v4762_v2 }
  0x85   : > { %3991 = vmatprep.mubr.bf16.mxu1 %v4576_v27  ;;  %4039 = vmatprep.mubr.bf16.mxu0 %v4452_v22  ;;  %v4332_v22 = vld [vmem:[%s5619_s1 + $0x168] sm:$0xff]  }
  0x86   : > { %v4333_v27 = vld [vmem:[%s5619_s1 + $0x1a8] sm:$0xff]  }
  0x8c   : > { %3992 = vmatmul.mubr.bf16.vlgmr.msra.gmra.mxu1 %v4580_v31  ;;  %4040 = vmatmul.mubr.bf16.vlgmr.msra.gmra.mxu0 %v4464_v28  ;;  %v4334_v28 = vld [vmem:[%s5619_s1 + $0x160] sm:$0xff]  }
  0x8d   : > { %4072 = vmatpush3.bf16.msra.mxu1 %v4328_v56  ;;  %4120 = vmatpush3.bf16.msra.mxu0 %v4329_v57  ;;  %v4336_v56 = vld [vmem:[%s5619_s1 + $0x158] sm:$0xff]  }
  0x8e   : > { %3995 = vmatprep.mubr.bf16.mxu1 %v4608_v49  ;;  %4043 = vmatprep.mubr.bf16.mxu0 %v4485_v39  ;;  %v4335_v39 = vld [vmem:[%s5619_s1 + $0x1a0] sm:$0xff]   ;;  %v4337_v57 = vld [vmem:[%s5619_s1 + $0x198] sm:$0xff]  }
  0x8f   : > { %4073 = vmatprep.subr.bf16.mxu1 %v4330_v3  ;;  %4121 = vmatprep.subr.bf16.mxu0 %v4331_v4 }
  0x91   : > { %4074 = vmatpush3.bf16.msra.mxu1 %v4330_v3  ;;  %4122 = vmatpush3.bf16.msra.mxu0 %v4331_v4  ;;  %v3499_v3 = vld [vmem:[%s4416_s26 + $0x39] sm:$0xff] }
  0x92   : > { %4075 = vmatprep.subr.bf16.mxu1 %v4332_v22  ;;  %4123 = vmatprep.subr.bf16.mxu0 %v4333_v27  ;;  %v3554_v4 = vld [vmem:[%s4416_s26 + $0x32] sm:$0xff] }
  0x94   : > { %3996 = vmatmul.mubr.bf16.gmra.mxu1 %v4612_v51  ;;  %4044 = vmatmul.mubr.bf16.gmra.mxu0 %v4496_v44  ;;  %v4338_v44 = vld [vmem:[%s5619_s1 + $0x150] sm:$0xff]  }
  0x95   : > { %3999 = vmatprep.mubr.bf16.mxu1 %v4640_v7  ;;  %4047 = vmatprep.mubr.bf16.mxu0 %v4516_v54  ;;  %v4339_v54 = vld [vmem:[%s5619_s1 + $0x190] sm:$0xff]  }
  0x96   : > { %4076 = vmatpush3.bf16.msra.mxu1 %v4332_v22  ;;  %4124 = vmatpush3.bf16.msra.mxu0 %v4333_v27 }
  0x97   : > { %4077 = vmatprep.subr.bf16.mxu1 %v4334_v28  ;;  %4125 = vmatprep.subr.bf16.mxu0 %v4335_v39 }
  0x9a   : > { %4078 = vmatpush3.bf16.msra.mxu1 %v4334_v28  ;;  %4126 = vmatpush3.bf16.msra.mxu0 %v4335_v39  ;;  %v2330_v28 = vpack.c.bf16 %v3499_v3, %v3498_v48  ;;  %v3562_v48 = vld [vmem:[%s4416_s26 + $0x92] sm:$0xff]  ;;  %v3563_v3 = vld [vmem:[%s4416_s26 + $0x9a] sm:$0xff] }
  0x9b   : > { %4079 = vmatprep.subr.bf16.mxu1 %v4336_v56  ;;  %4127 = vmatprep.subr.bf16.mxu0 %v4337_v57 }
  0x9c   : > { %4000 = vmatmul.mubr.bf16.gmra.mxu1 %v4644_v10  ;;  %4048 = vmatmul.mubr.bf16.gmra.mxu0 %v4528_v60  ;;  %v4342_v60 = vld [vmem:[%s5619_s1 + $0x140] sm:$0xff]  }
  0x9d   : > { %4003 = vmatprep.mubr.bf16.mxu1 %v4672_v26  ;;  %4051 = vmatprep.mubr.bf16.mxu0 %v4547_v5  ;;  %v4343_v5 = vld [vmem:[%s5619_s1 + $0x180] sm:$0xff]  }
  0x9e   : > { %4080 = vmatpush3.bf16.msra.mxu1 %v4336_v56  ;;  %4128 = vmatpush3.bf16.msra.mxu0 %v4337_v57 }
  0x9f   : > { %4081 = vmatprep.subr.bf16.mxu1 %v4338_v44  ;;  %4129 = vmatprep.subr.bf16.mxu0 %v4339_v54 }
  0xa2   : > { %4082 = vmatpush3.bf16.msra.mxu1 %v4338_v44  ;;  %4130 = vmatpush3.bf16.msra.mxu0 %v4339_v54 }
  0xa3   : > { %4083 = vmatprep.subr.bf16.mxu1 %v4340_v12  ;;  %4131 = vmatprep.subr.bf16.mxu0 %v4341_v13 }
  0xa4   : > { %4004 = vmatmul.mubr.bf16.gmra.mxu1 %v4676_v34  ;;  %4052 = vmatmul.mubr.bf16.gmra.mxu0 %v4425_v9  ;;  %v3304_v9 = vld [vmem:[%s4416_s26 + $0x180] sm:$0xff] }
  0xa5   : > { %4007 = vmatprep.mubr.bf16.mxu1 %v4704_v58  ;;  %4055 = vmatprep.mubr.bf16.mxu0 %v4454_v23  ;;  %v3305_v23 = vld [vmem:[%s4416_s26 + $0x188] sm:$0xff] }
  0xa6   : > { %4084 = vmatpush3.bf16.msra.mxu1 %v4340_v12  ;;  %4132 = vmatpush3.bf16.msra.mxu0 %v4341_v13  ;;  %v4848_v20 = vpack.c.bf16 %v3305_v23, %v3304_v9  ;;  %v3500_v12 = vld [vmem:[%s4416_s26 + $0x49] sm:$0xff]  ;;  %v3501_v13 = vld [vmem:[%s4416_s26 + $0x51] sm:$0xff] }
  0xa7   : > { %4085 = vmatprep.subr.bf16.mxu1 %v4342_v60  ;;  %4133 = vmatprep.subr.bf16.mxu0 %v4343_v5  ;;  %v3503_v23 = vld [vmem:[%s4416_s26 + $0x69] sm:$0xff] }
  0xaa   : > { %4086 = vmatpush3.bf16.msra.mxu1 %v4342_v60  ;;  %4134 = vmatpush3.bf16.msra.mxu0 %v4343_v5  ;;  %v3556_v60 = vld [vmem:[%s4416_s26 + $0x4a] sm:$0xff]  ;;  %v3557_v5 = vld [vmem:[%s4416_s26 + $0x52] sm:$0xff] }
  0xab   : > { %4167 = vmatprep.subr.bf16.mxu1 %v4344_v14  ;;  %4215 = vmatprep.subr.bf16.mxu0 %v4345_v19 }
  0xac   : > { %4008 = vmatmul.mubr.bf16.gmra.mxu1 %v4708_v62  ;;  %4056 = vmatmul.mubr.bf16.gmra.mxu0 %v4466_v29  ;;  %v3360_v29 = vld [vmem:[%s4416_s26 + $0x181] sm:$0xff] }
  0xad   : > { %4011 = vmatprep.mubr.bf16.mxu1 %v4724_v15  ;;  %4059 = vmatprep.mubr.bf16.mxu0 %v4487_v40  ;;  %v3361_v40 = vld [vmem:[%s4416_s26 + $0x189] sm:$0xff] }
  0xae   : > { %v4850_v21 = vpack.c.bf16 %v3361_v40, %v3360_v29  ;;  %v3558_v29 = vld [vmem:[%s4416_s26 + $0x62] sm:$0xff]  ;;  %v3559_v40 = vld [vmem:[%s4416_s26 + $0x6a] sm:$0xff] }
  0xb4   : > { %4012 = vmatmul.mubr.bf16.gmra.mxu1 %v4728_v17  ;;  %4060 = vmatmul.mubr.bf16.gmra.mxu0 %v4498_v45  ;;  %v4346_v45 = vld [vmem:[%s5619_s1 + $0x1f0] sm:$0xff]  }
  0xb5   : > { %4015 = vmatprep.mubr.bf16.mxu1 %v4744_v41  ;;  %4063 = vmatprep.mubr.bf16.mxu0 %v4518_v55  ;;  %v4347_v55 = vld [vmem:[%s5619_s1 + $0x230] sm:$0xff]  }
  0xbc   : > { %4016 = vmatmul.mubr.bf16.gmra.mxu1 %v4748_v43  ;;  %4064 = vmatmul.mubr.bf16.gmra.mxu0 %v4530_v61  ;;  %v4348_v61 = vld [vmem:[%s5619_s1 + $0x1e8] sm:$0xff]  }
  0xbd   : > { %4019 = vmatprep.mubr.bf16.mxu1 %v4760_v1  ;;  %4067 = vmatprep.mubr.bf16.mxu0 %v4549_v6  ;;  %v4349_v6 = vld [vmem:[%s5619_s1 + $0x228] sm:$0xff]  }
  0xc4   : > { %4020 = vmatmul.mubr.bf16.gmra.mxu1 %v4848_v20  ;;  %4068 = vmatmul.mubr.bf16.gmra.mxu0 %v4850_v21 }
  0xc5   : > { %4087 = vmatprep.mubr.bf16.mxu1 %v4578_v30  ;;  %4135 = vmatprep.mubr.bf16.mxu0 %v4580_v31  ;;  %v4350_v30 = vld [vmem:[%s5619_s1 + $0x1e0] sm:$0xff]  }
  0xc6   : > { %v4351_v31 = vld [vmem:[%s5619_s1 + $0x220] sm:$0xff]  }
  0xcc   : > { %4088 = vmatmul.mubr.bf16.vlgmr.msra.gmra.mxu1 %v4582_v32  ;;  %4136 = vmatmul.mubr.bf16.vlgmr.msra.gmra.mxu0 %v4608_v49  ;;  %v4352_v32 = vld [vmem:[%s5619_s1 + $0x1d8] sm:$0xff]  }
  0xcd   : > { %4168 = vmatpush3.bf16.msra.mxu1 %v4344_v14  ;;  %4216 = vmatpush3.bf16.msra.mxu0 %v4345_v19  ;;  %v4353_v49 = vld [vmem:[%s5619_s1 + $0x218] sm:$0xff]   ;;  %v3502_v14 = vld [vmem:[%s4416_s26 + $0x61] sm:$0xff] }
  0xce   : > { %4091 = vmatprep.mubr.bf16.mxu1 %v4610_v50  ;;  %4139 = vmatprep.mubr.bf16.mxu0 %v4612_v51  ;;  %v4354_v50 = vld [vmem:[%s5619_s1 + $0x1d0] sm:$0xff]  }
  0xcf   : > { %4169 = vmatprep.subr.bf16.mxu1 %v4346_v45  ;;  %4217 = vmatprep.subr.bf16.mxu0 %v4347_v55  ;;  %v4355_v51 = vld [vmem:[%s5619_s1 + $0x210] sm:$0xff]  }
  0xd1   : > { %4170 = vmatpush3.bf16.msra.mxu1 %v4346_v45  ;;  %4218 = vmatpush3.bf16.msra.mxu0 %v4347_v55  ;;  %v2331_v55 = vpack.c.bf16 %v3501_v13, %v3500_v12 }
  0xd2   : > { %4171 = vmatprep.subr.bf16.mxu1 %v4348_v61  ;;  %4219 = vmatprep.subr.bf16.mxu0 %v4349_v6 }
  0xd4   : > { %4092 = vmatmul.mubr.bf16.gmra.mxu1 %v4614_v52  ;;  %4140 = vmatmul.mubr.bf16.gmra.mxu0 %v4640_v7  ;;  %v4356_v52 = vld [vmem:[%s5619_s1 + $0x1c8] sm:$0xff]  }
  0xd5   : > { %4095 = vmatprep.mubr.bf16.mxu1 %v4642_v8  ;;  %4143 = vmatprep.mubr.bf16.mxu0 %v4644_v10  ;;  %v4357_v7 = vld [vmem:[%s5619_s1 + $0x208] sm:$0xff]   ;;  %v4358_v8 = vld [vmem:[%s5619_s1 + $0x1c0] sm:$0xff]  }
  0xd6   : > { %4172 = vmatpush3.bf16.msra.mxu1 %v4348_v61  ;;  %4220 = vmatpush3.bf16.msra.mxu0 %v4349_v6  ;;  %v4359_v10 = vld [vmem:[%s5619_s1 + $0x200] sm:$0xff]   ;;  %v2637_v61 = vpack.c.bf16 %v3557_v5, %v3556_v60  ;;  %v2332_v6 = vpack.c.bf16 %v3503_v23, %v3502_v14  ;;  %v2640_v5 = vpack.c.bf16 %v3563_v3, %v3562_v48 }
  0xd7   : > { %4173 = vmatprep.subr.bf16.mxu1 %v4350_v30  ;;  %4221 = vmatprep.subr.bf16.mxu0 %v4351_v31 }
  0xda   : > { %4174 = vmatpush3.bf16.msra.mxu1 %v4350_v30  ;;  %4222 = vmatpush3.bf16.msra.mxu0 %v4351_v31  ;;  %v2638_v30 = vpack.c.bf16 %v3559_v40, %v3558_v29 }
  0xdb   : > { %4175 = vmatprep.subr.bf16.mxu1 %v4352_v32  ;;  %4223 = vmatprep.subr.bf16.mxu0 %v4353_v49 }
  0xdc   : > { %4096 = vmatmul.mubr.bf16.gmra.mxu1 %v4646_v11  ;;  %4144 = vmatmul.mubr.bf16.gmra.mxu0 %v4672_v26 }
  0xdd   : > { %4099 = vmatprep.mubr.bf16.mxu1 %v4674_v33  ;;  %4147 = vmatprep.mubr.bf16.mxu0 %v4676_v34 }
  0xde   : > { %4176 = vmatpush3.bf16.msra.mxu1 %v4352_v32  ;;  %4224 = vmatpush3.bf16.msra.mxu0 %v4353_v49 }
  0xdf   : > { %4177 = vmatprep.subr.bf16.mxu1 %v4354_v50  ;;  %4225 = vmatprep.subr.bf16.mxu0 %v4355_v51 }
  0xe2   : > { %4178 = vmatpush3.bf16.msra.mxu1 %v4354_v50  ;;  %4226 = vmatpush3.bf16.msra.mxu0 %v4355_v51  ;;  %v3504_v51 = vld [vmem:[%s4416_s26 + $0x79] sm:$0xff] }
  0xe3   : > { %4179 = vmatprep.subr.bf16.mxu1 %v4356_v52  ;;  %4227 = vmatprep.subr.bf16.mxu0 %v4357_v7 }
  0xe4   : > { %4100 = vmatmul.mubr.bf16.gmra.mxu1 %v4678_v35  ;;  %4148 = vmatmul.mubr.bf16.gmra.mxu0 %v4704_v58 }
  0xe5   : > { %4103 = vmatprep.mubr.bf16.mxu1 %v4706_v59  ;;  %4151 = vmatprep.mubr.bf16.mxu0 %v4708_v62 }
  0xe6   : > { %4180 = vmatpush3.bf16.msra.mxu1 %v4356_v52  ;;  %4228 = vmatpush3.bf16.msra.mxu0 %v4357_v7  ;;  %v3505_v52 = vld [vmem:[%s4416_s26 + $0x81] sm:$0xff] }
  0xe7   : > { %4181 = vmatprep.subr.bf16.mxu1 %v4358_v8  ;;  %4229 = vmatprep.subr.bf16.mxu0 %v4359_v10 }
  0xea   : > { %4182 = vmatpush3.bf16.msra.mxu1 %v4358_v8  ;;  %4230 = vmatpush3.bf16.msra.mxu0 %v4359_v10  ;;  %v3560_v8 = vld [vmem:[%s4416_s26 + $0x7a] sm:$0xff]  ;;  %v3561_v10 = vld [vmem:[%s4416_s26 + $0x82] sm:$0xff] }
  0xec   : > { %v4914_v11 = vpop.f32.mrf.mxu0  ;;  %v4916_v26 = vpop.f32.mrf.mxu1  ;;  %4104 = vmatmul.mubr.bf16.gmra.mxu1 %v4710_v63  ;;  %4152 = vmatmul.mubr.bf16.gmra.mxu0 %v4724_v15 }
  0xed   : > { %4107 = vmatprep.mubr.bf16.mxu1 %v4726_v16  ;;  %4155 = vmatprep.mubr.bf16.mxu0 %v4728_v17 }
  0xee   : > { %v4922_v33 = vpop.f32.mrf.mxu0  ;;  %v4924_v34 = vpop.f32.mrf.mxu1 }
  0xf0   : > { %v4926_v35 = vpop.f32.mrf.mxu0  ;;  %v4928_v58 = vpop.f32.mrf.mxu1 }
  0xf2   : > { %v4930_v59 = vpop.f32.mrf.mxu0  ;;  %v4932_v62 = vpop.f32.mrf.mxu1 }
  0xf4   : > { %v4934_v24 = vpop.f32.mrf.mxu0  ;;  %v4936_v63 = vpop.f32.mrf.mxu1  ;;  %4108 = vmatmul.mubr.bf16.gmra.mxu1 %v4730_v18  ;;  %4156 = vmatmul.mubr.bf16.gmra.mxu0 %v4744_v41  ;;  %v3416_v41 = vld [vmem:[%s4416_s26 + $0x182] sm:$0xff] }
  0xf5   : > { %4111 = vmatprep.mubr.bf16.mxu1 %v4746_v42  ;;  %4159 = vmatprep.mubr.bf16.mxu0 %v4748_v43  ;;  %v3417_v42 = vld [vmem:[%s4416_s26 + $0x18a] sm:$0xff]  ;;  %v3472_v43 = vld [vmem:[%s4416_s26 + $0x198] sm:$0xff] }
  0xf6   : > { %v4942_v15 = vpop.f32.mrf.mxu0  ;;  %v4944_v16 = vpop.f32.mrf.mxu1  ;;  %v2039_v27 = vpack.c.bf16 %v3473_v47, %v3472_v43  ;;  %v3507_v47 = vld [vmem:[%s4416_s26 + $0x99] sm:$0xff] }
  0xf8   : > { %v4946_v17 = vpop.f32.mrf.mxu0  ;;  %v4948_v25 = vpop.f32.mrf.mxu1 }
  0xfa   : > { %v4950_v36 = vpop.f32.mrf.mxu0  ;;  %v4952_v18 = vpop.f32.mrf.mxu1 }
  0xfc   : > { %v4954_v37 = vpop.f32.mrf.mxu0  ;;  %v4956_v38 = vpop.f32.mrf.mxu1  ;;  %4112 = vmatmul.mubr.bf16.gmra.mxu1 %v4750_v46  ;;  %4160 = vmatmul.mubr.bf16.gmra.mxu0 %v4760_v1  ;;  %v3555_v46 = vld [vmem:[%s4416_s26 + $0x3a] sm:$0xff] }
  0xfd   : > { %4115 = vmatprep.mubr.bf16.mxu1 %v4762_v2  ;;  %4163 = vmatprep.mubr.bf16.mxu0 %v4848_v20  ;;  %v4978_v2 = vpack.c.bf16 %v3417_v42, %v3416_v41  ;;  %v2636_v39 = vpack.c.bf16 %v3555_v46, %v3554_v4  ;;  %v3506_v41 = vld [vmem:[%s4416_s26 + $0x91] sm:$0xff] }
  0xfe   : > { %v4967_v53 = vpop.f32.mrf.mxu0  ;;  %v4969_v0 = vpop.f32.mrf.mxu1  ;;  %v2334_v60 = vpack.c.bf16 %v3507_v47, %v3506_v41 }
 0x100   : > { %v4974_v22 = vpop.f32.mrf.mxu0  ;;  %v4976_v1 = vpop.f32.mrf.mxu1 }
 0x102   : > { %v4980_v56 = vpop.f32.mrf.mxu0  ;;  %v4982_v57 = vpop.f32.mrf.mxu1 }
 0x104   : > { %v4984_v44 = vpop.f32.mrf.mxu0  ;;  %v4986_v54 = vpop.f32.mrf.mxu1  ;;  %4116 = vmatmul.mubr.bf16.gmra.mxu1 %v4978_v2  ;;  %4164 = vmatmul.mubr.bf16.gmra.mxu0 %v2039_v27 }
 0x105   : > { %4183 = vmatprep.mubr.bf16.mxu1 %v2330_v28  ;;  %4231 = vmatprep.mubr.bf16.mxu0 %v2636_v39  ;;  %v2333_v39 = vpack.c.bf16 %v3505_v52, %v3504_v51  ;;  %v3510_v51 = vld [vmem:[%s4416_s26 + $0xc1] sm:$0xff] }
 0x106   : > { %v4994_v19 = vpop.f32.mrf.mxu0  ;;  %v4996_v9 = vpop.f32.mrf.mxu1 }
 0x108   : > { %v5001_v20 = vpop.f32.mrf.mxu0  ;;  %v5003_v45 = vpop.f32.mrf.mxu1 }
 0x10a   : > { %v5005_v31 = vpop.f32.mrf.mxu0  ;;  %v5007_v32 = vpop.f32.mrf.mxu1 }
 0x10c   : > { %v3897_v49 = vpop.f32.mrf.mxu1  ;;  %v3945_v50 = vpop.f32.mrf.mxu0  ;;  %4184 = vmatmul.mubr.bf16.vlgmr.msra.gmra.mxu1 %v2331_v55  ;;  %4232 = vmatmul.mubr.bf16.vlgmr.msra.gmra.mxu0 %v2637_v61  ;;  %v3508_v61 = vld [vmem:[%s4416_s26 + $0xa9] sm:$0xff] }
 0x10d   : > { %v648_v7 = vadd.f32 %v3897_v49, %v4914_v11  ;;  %4187 = vmatprep.mubr.bf16.mxu1 %v2332_v6  ;;  %4235 = vmatprep.mubr.bf16.mxu0 %v2638_v30  ;;  %v2639_v11 = vpack.c.bf16 %v3561_v10, %v3560_v8  ;;  %v3564_v49 = vld [vmem:[%s4416_s26 + $0xaa] sm:$0xff]  ;;  %v3566_v8 = vld [vmem:[%s4416_s26 + $0xc2] sm:$0xff] }
 0x10e   : > { %v639_v42 = vpop.f32.mrf.mxu1  ;;  %v913_v43 = vpop.f32.mrf.mxu0  ;;  %v3567_v10 = vld [vmem:[%s4416_s26 + $0xca] sm:$0xff] }
 0x10f   : > { %v5018_v4 = vadd.f32 %v3945_v50, %v648_v7  ;;  %v640_v46 = vadd.f32 %v639_v42, %v4922_v33  ;;  %v3565_v50 = vld [vmem:[%s4416_s26 + $0xb2] sm:$0xff]  ;;  %v3511_v7 = vld [vmem:[%s4416_s26 + $0xc9] sm:$0xff] }
 0x110   : > { %v3898_v27 = vpop.f32.mrf.mxu1  ;;  %v3946_v28 = vpop.f32.mrf.mxu0 }
 0x111   : > { %v5021_v12 = vadd.f32 %v913_v43, %v640_v46  ;;  %v651_v13 = vadd.f32 %v3898_v27, %v4926_v35  ;;  %v3509_v35 = vld [vmem:[%s4416_s26 + $0xb1] sm:$0xff]  ;;  %v2336_v27 = vpack.c.bf16 %v3511_v7, %v3510_v51 }
 0x112   : > { %v642_v14 = vpop.f32.mrf.mxu1  ;;  %v916_v23 = vpop.f32.mrf.mxu0  ;;  %v2335_v48 = vpack.c.bf16 %v3509_v35, %v3508_v61  ;;  %v3514_v61 = vld [vmem:[%s4416_s26 + $0xf1] sm:$0xff] }
 0x113   : > { %v5024_v29 = vadd.f32 %v3946_v28, %v651_v13  ;;  %v643_v33 = vadd.f32 %v642_v14, %v4930_v59  ;;  %v2642_v28 = vpack.c.bf16 %v3567_v10, %v3566_v8  ;;  %v3512_v14 = vld [vmem:[%s4416_s26 + $0xd9] sm:$0xff] }
 0x114   : > { %v3901_v40 = vpop.f32.mrf.mxu1  ;;  %v3949_v55 = vpop.f32.mrf.mxu0  ;;  %4188 = vmatmul.mubr.bf16.gmra.mxu1 %v2333_v39  ;;  %4236 = vmatmul.mubr.bf16.gmra.mxu0 %v2639_v11 }
 0x115   : > { %v5029_v6 = vadd.f32 %v916_v23, %v643_v33  ;;  %v664_v30 = vadd.f32 %v3901_v40, %v4934_v24  ;;  %4191 = vmatprep.mubr.bf16.mxu1 %v2334_v60  ;;  %4239 = vmatprep.mubr.bf16.mxu0 %v2640_v5  ;;  %v2641_v24 = vpack.c.bf16 %v3565_v50, %v3564_v49  ;;  %v3568_v40 = vld [vmem:[%s4416_s26 + $0xda] sm:$0xff]  ;;  %v3570_v49 = vld [vmem:[%s4416_s26 + $0xf2] sm:$0xff] }
 0x116   : > { %v655_v52 = vpop.f32.mrf.mxu1  ;;  %v929_v59 = vpop.f32.mrf.mxu0  ;;  %v3571_v50 = vld [vmem:[%s4416_s26 + $0xfa] sm:$0xff] }
 0x117   : > { %v5038_v41 = vadd.f32 %v3949_v55, %v664_v30  ;;  %v656_v42 = vadd.f32 %v655_v52, %v4942_v15  ;;  %v3569_v55 = vld [vmem:[%s4416_s26 + $0xe2] sm:$0xff]  ;;  %v3515_v30 = vld [vmem:[%s4416_s26 + $0xf9] sm:$0xff] }
 0x118   : > { %v3902_v43 = vpop.f32.mrf.mxu1  ;;  %v3950_v47 = vpop.f32.mrf.mxu0 }
 0x119   : > { %v5041_v3 = vadd.f32 %v929_v59, %v656_v42  ;;  %v667_v46 = vadd.f32 %v3902_v43, %v4946_v17  ;;  %v3513_v17 = vld [vmem:[%s4416_s26 + $0xe1] sm:$0xff]  ;;  %v2338_v43 = vpack.c.bf16 %v3515_v30, %v3514_v61 }
 0x11a   : > { %v658_v39 = vpop.f32.mrf.mxu1  ;;  %v932_v11 = vpop.f32.mrf.mxu0  ;;  %v2337_v8 = vpack.c.bf16 %v3513_v17, %v3512_v14  ;;  %v3518_v14 = vld [vmem:[%s4416_s26 + $0x121] sm:$0xff] }
 0x11b   : > { %v5044_v13 = vadd.f32 %v3950_v47, %v667_v46  ;;  %v659_v15 = vadd.f32 %v658_v39, %v4950_v36  ;;  %v2644_v47 = vpack.c.bf16 %v3571_v50, %v3570_v49  ;;  %v3516_v39 = vld [vmem:[%s4416_s26 + $0x109] sm:$0xff] }
 0x11c   : > { %v3905_v60 = vpop.f32.mrf.mxu1  ;;  %v3953_v5 = vpop.f32.mrf.mxu0  ;;  %4192 = vmatmul.mubr.bf16.gmra.mxu1 %v2335_v48  ;;  %4240 = vmatmul.mubr.bf16.gmra.mxu0 %v2641_v24 }
 0x11d   : > { %v5049_v23 = vadd.f32 %v932_v11, %v659_v15  ;;  %v680_v33 = vadd.f32 %v3905_v60, %v4954_v37  ;;  %4195 = vmatprep.mubr.bf16.mxu1 %v2336_v27  ;;  %4243 = vmatprep.mubr.bf16.mxu0 %v2642_v28  ;;  %v2643_v37 = vpack.c.bf16 %v3569_v55, %v3568_v40  ;;  %v3572_v60 = vld [vmem:[%s4416_s26 + $0x10a] sm:$0xff]  ;;  %v3574_v40 = vld [vmem:[%s4416_s26 + $0x122] sm:$0xff] }
 0x11e   : > { %v671_v35 = vpop.f32.mrf.mxu1  ;;  %v945_v36 = vpop.f32.mrf.mxu0  ;;  %v3575_v55 = vld [vmem:[%s4416_s26 + $0x12a] sm:$0xff] }
 0x11f   : > { %v5058_v51 = vadd.f32 %v3953_v5, %v680_v33  ;;  %v672_v52 = vadd.f32 %v671_v35, %v4967_v53  ;;  %v3573_v5 = vld [vmem:[%s4416_s26 + $0x112] sm:$0xff]  ;;  %v3519_v33 = vld [vmem:[%s4416_s26 + $0x129] sm:$0xff] }
 0x120   : > { %v3906_v59 = vpop.f32.mrf.mxu1  ;;  %v3954_v7 = vpop.f32.mrf.mxu0 }
 0x121   : > { %v5061_v10 = vadd.f32 %v945_v36, %v672_v52  ;;  %v683_v42 = vadd.f32 %v3906_v59, %v4974_v22  ;;  %v3517_v22 = vld [vmem:[%s4416_s26 + $0x111] sm:$0xff]  ;;  %v2340_v59 = vpack.c.bf16 %v3519_v33, %v3518_v14 }
 0x122   : > { %v674_v48 = vpop.f32.mrf.mxu1  ;;  %v948_v24 = vpop.f32.mrf.mxu0  ;;  %v2339_v49 = vpack.c.bf16 %v3517_v22, %v3516_v39  ;;  %v3522_v39 = vld [vmem:[%s4416_s26 + $0x151] sm:$0xff] }
 0x123   : > { %v5064_v46 = vadd.f32 %v3954_v7, %v683_v42  ;;  %v675_v53 = vadd.f32 %v674_v48, %v4980_v56  ;;  %v2646_v7 = vpack.c.bf16 %v3575_v55, %v3574_v40  ;;  %v3520_v48 = vld [vmem:[%s4416_s26 + $0x139] sm:$0xff] }
 0x124   : > { %v3909_v27 = vpop.f32.mrf.mxu1  ;;  %v3957_v28 = vpop.f32.mrf.mxu0  ;;  %4196 = vmatmul.mubr.bf16.gmra.mxu1 %v2337_v8  ;;  %4244 = vmatmul.mubr.bf16.gmra.mxu0 %v2643_v37 }
 0x125   : > { %v5069_v11 = vadd.f32 %v948_v24, %v675_v53  ;;  %v696_v15 = vadd.f32 %v3909_v27, %v4984_v44  ;;  %4199 = vmatprep.mubr.bf16.mxu1 %v2338_v43  ;;  %4247 = vmatprep.mubr.bf16.mxu0 %v2644_v47  ;;  %v2645_v44 = vpack.c.bf16 %v3573_v5, %v3572_v60  ;;  %v3576_v27 = vld [vmem:[%s4416_s26 + $0x13a] sm:$0xff]  ;;  %v3578_v60 = vld [vmem:[%s4416_s26 + $0x152] sm:$0xff] }
 0x126   : > { %v687_v17 = vpop.f32.mrf.mxu1  ;;  %v961_v56 = vpop.f32.mrf.mxu0  ;;  %v3579_v5 = vld [vmem:[%s4416_s26 + $0x15a] sm:$0xff] }
 0x127   : > { %v5078_v61 = vadd.f32 %v3957_v28, %v696_v15  ;;  %v688_v35 = vadd.f32 %v687_v17, %v4994_v19  ;;  %v3577_v28 = vld [vmem:[%s4416_s26 + $0x142] sm:$0xff]  ;;  %v3523_v15 = vld [vmem:[%s4416_s26 + $0x159] sm:$0xff] }
 0x128   : > { %v3910_v36 = vpop.f32.mrf.mxu1  ;;  %v3958_v30 = vpop.f32.mrf.mxu0  ;;  %v2647_v55 = vpack.c.bf16 %v3577_v28, %v3576_v27 }
 0x129   : > { %v5081_v50 = vadd.f32 %v961_v56, %v688_v35  ;;  %v699_v52 = vadd.f32 %v3910_v36, %v5001_v20  ;;  %v3521_v20 = vld [vmem:[%s4416_s26 + $0x141] sm:$0xff]  ;;  %v2342_v36 = vpack.c.bf16 %v3523_v15, %v3522_v39 }
 0x12a   : > { %v690_v8 = vpop.f32.mrf.mxu1  ;;  %v964_v37 = vpop.f32.mrf.mxu0  ;;  %v2341_v40 = vpack.c.bf16 %v3521_v20, %v3520_v48 }
 0x12b   : > { %v5084_v42 = vadd.f32 %v3958_v30, %v699_v52  ;;  %v691_v19 = vadd.f32 %v690_v8, %v5005_v31  ;;  %v2648_v30 = vpack.c.bf16 %v3579_v5, %v3578_v60  ;;  %v3524_v8 = vld [vmem:[%s4416_s26 + $0x169] sm:$0xff] }
 0x12c   : > { %v3913_v43 = vpop.f32.mrf.mxu1  ;;  %v3961_v47 = vpop.f32.mrf.mxu0  ;;  %4200 = vmatmul.mubr.bf16.gmra.mxu1 %v2339_v49  ;;  %4248 = vmatmul.mubr.bf16.gmra.mxu0 %v2645_v44 }
 0x12d   : > { %v5089_v24 = vadd.f32 %v964_v37, %v691_v19  ;;  %v712_v53 = vadd.f32 %v3913_v43, %v4916_v26  ;;  %4203 = vmatprep.mubr.bf16.mxu1 %v2340_v59  ;;  %4251 = vmatprep.mubr.bf16.mxu0 %v2646_v7  ;;  %v3525_v19 = vld [vmem:[%s4416_s26 + $0x171] sm:$0xff] }
 0x12e   : > { %v703_v22 = vpop.f32.mrf.mxu1  ;;  %v977_v31 = vpop.f32.mrf.mxu0  ;;  %v3580_v43 = vld [vmem:[%s4416_s26 + $0x16a] sm:$0xff]  ;;  %v2343_v39 = vpack.c.bf16 %v3525_v19, %v3524_v8 }
 0x12f   : > { %v5098_v14 = vadd.f32 %v3961_v47, %v712_v53  ;;  %v704_v17 = vadd.f32 %v703_v22, %v4924_v34  ;;  %v3581_v47 = vld [vmem:[%s4416_s26 + $0x172] sm:$0xff] }
 0x130   : > { %v3914_v56 = vpop.f32.mrf.mxu1  ;;  %v3962_v33 = vpop.f32.mrf.mxu0  ;;  %v2649_v22 = vpack.c.bf16 %v3581_v47, %v3580_v43 }
 0x131   : > { %v5101_v26 = vadd.f32 %v977_v31, %v704_v17  ;;  %v715_v35 = vadd.f32 %v3914_v56, %v4928_v58 }
 0x132   : > { %v706_v49 = vpop.f32.mrf.mxu1  ;;  %v980_v44 = vpop.f32.mrf.mxu0 }
 0x133   : > { %v5104_v52 = vadd.f32 %v3962_v33, %v715_v35  ;;  %v707_v34 = vadd.f32 %v706_v49, %v4932_v62  ;;  %v3584_v35 = vld [vmem:[%s4416_s26 + $0x19a] sm:$0xff] }
 0x134   : > { %v3917_v59 = vpop.f32.mrf.mxu1  ;;  %v3965_v7 = vpop.f32.mrf.mxu0  ;;  %4204 = vmatmul.mubr.bf16.gmra.mxu1 %v2341_v40  ;;  %4252 = vmatmul.mubr.bf16.gmra.mxu0 %v2647_v55 }
 0x135   : > { %v5108_v37 = vadd.f32 %v980_v44, %v707_v34  ;;  %v728_v58 = vadd.f32 %v3917_v59, %v4936_v63  ;;  %4207 = vmatprep.mubr.bf16.mxu1 %v2342_v36  ;;  %4255 = vmatprep.mubr.bf16.mxu0 %v2648_v30  ;;  %v3585_v36 = vld [vmem:[%s4416_s26 + $0x1a2] sm:$0xff] }
 0x136   : > { %v719_v48 = vpop.f32.mrf.mxu1  ;;  %v993_v20 = vpop.f32.mrf.mxu0  ;;  %v2651_v8 = vpack.c.bf16 %v3585_v36, %v3584_v35 }
 0x137   : > { %v5114_v53 = vadd.f32 %v3965_v7, %v728_v58  ;;  %v720_v62 = vadd.f32 %v719_v48, %v4944_v16  ;;  %v3528_v16 = vld [vmem:[%s4416_s26 + $0x199] sm:$0xff] }
 0x138   : > { %v3918_v27 = vpop.f32.mrf.mxu1  ;;  %v3966_v28 = vpop.f32.mrf.mxu0 }
 0x139   : > { %v5117_v31 = vadd.f32 %v993_v20, %v720_v62  ;;  %v731_v63 = vadd.f32 %v3918_v27, %v4948_v25  ;;  %v3529_v25 = vld [vmem:[%s4416_s26 + $0x1a1] sm:$0xff]  ;;  %s3613_s26 = sshll.u32 %s5700_s16, 8 }
 0x13a   : > { %v722_v15 = vpop.f32.mrf.mxu1  ;;  %v996_v60 = vpop.f32.mrf.mxu0  ;;  %v2345_v7 = vpack.c.bf16 %v3529_v25, %v3528_v16  ;;  %s5398_s5 = scalar_lea.vmem %s5621_s3, %s3613_s26  ;;  %s5431_s8 = scalar_lea.vmem %s5622_s4, %s3613_s26 }
 0x13b   : > { %v5120_v5 = vadd.f32 %v3966_v28, %v731_v63  ;;  %v723_v17 = vadd.f32 %v722_v15, %v4952_v18 }
 0x13c   : > { %v3921_v56 = vpop.f32.mrf.mxu1  ;;  %v3969_v33 = vpop.f32.mrf.mxu0  ;;  %4208 = vmatmul.mubr.bf16.gmra.mxu1 %v2343_v39  ;;  %4256 = vmatmul.mubr.bf16.gmra.mxu0 %v2649_v22 }
 0x13d   : > { %v5124_v40 = vadd.f32 %v996_v60, %v723_v17  ;;  %v744_v55 = vadd.f32 %v3921_v56, %v4956_v38  ;;  %4211 = vmatprep.mubr.bf16.mxu1 %v4850_v21  ;;  %4259 = vmatprep.mubr.bf16.mxu0 %v4978_v2 }
 0x13e   : > { %v735_v30 = vpop.f32.mrf.mxu1  ;;  %v1009_v49 = vpop.f32.mrf.mxu0 }
 0x13f   : > { %v5132_v44 = vadd.f32 %v3969_v33, %v744_v55  ;;  %v736_v18 = vadd.f32 %v735_v30, %v4969_v0 }
 0x140   : > { %v3922_v34 = vpop.f32.mrf.mxu1  ;;  %v3970_v59 = vpop.f32.mrf.mxu0 }
 0x141   : > { %v5135_v58 = vadd.f32 %v1009_v49, %v736_v18  ;;  %v747_v38 = vadd.f32 %v3922_v34, %v4976_v1 }
 0x142   : > { %v738_v21 = vpop.f32.mrf.mxu1  ;;  %v1012_v19 = vpop.f32.mrf.mxu0 }
 0x143   : > { %v5138_v2 = vadd.f32 %v3970_v59, %v747_v38  ;;  %v739_v43 = vadd.f32 %v738_v21, %v4982_v57 }
 0x144   : > { %v3925_v47 = vpop.f32.mrf.mxu1  ;;  %v3973_v48 = vpop.f32.mrf.mxu0  ;;  %4212 = vmatmul.mubr.bf16.gmra.mxu1 %v2345_v7  ;;  %4260 = vmatmul.mubr.bf16.gmra.mxu0 %v2651_v8 }
 0x145   : > { %v5141_v20 = vadd.f32 %v1012_v19, %v739_v43  ;;  %v760_v0 = vadd.f32 %v3925_v47, %v4986_v54 }
 0x146   : > { %v751_v62 = vpop.f32.mrf.mxu1  ;;  %v1025_v27 = vpop.f32.mrf.mxu0 }
 0x147   : > { %v5144_v28 = vadd.f32 %v3973_v48, %v760_v0  ;;  %v752_v1 = vadd.f32 %v751_v62, %v4996_v9 }
 0x148   : > { %v3926_v39 = vpop.f32.mrf.mxu1  ;;  %v3974_v22 = vpop.f32.mrf.mxu0 }
 0x149   : > { %v5147_v63 = vadd.f32 %v1025_v27, %v752_v1  ;;  %v763_v57 = vadd.f32 %v3926_v39, %v5003_v45 }
 0x14a   : > { %v754_v15 = vpop.f32.mrf.mxu1  ;;  %v1028_v60 = vpop.f32.mrf.mxu0 }
 0x14b   : > { %v5150_v17 = vadd.f32 %v3974_v22, %v763_v57  ;;  %v755_v56 = vadd.f32 %v754_v15, %v5007_v32 }
 0x14c   : > { %v3993_v33 = vpop.f32.mrf.mxu1  ;;  %v4041_v54 = vpop.f32.mrf.mxu0 }
 0x14d   : > { %v5153_v16 = vadd.f32 %v1028_v60, %v755_v56  ;;  %v1349_v55 = vadd.f32 %v3993_v33, %v5018_v4 }
 0x14e   : > { %v1220_v25 = vpop.f32.mrf.mxu1  ;;  %v1526_v9 = vpop.f32.mrf.mxu0 }
 0x14f   : > { %v5156_v35 = vadd.f32 %v4041_v54, %v1349_v55  ;;  %v1347_v36 = vadd.f32 %v1220_v25, %v5021_v12 }
 0x150   : > { %v3994_v30 = vpop.f32.mrf.mxu1  ;;  %v4042_v45 = vpop.f32.mrf.mxu0 }
 0x151   : > { %v5159_v49 = vadd.f32 %v1526_v9, %v1347_v36  ;;  %v1350_v18 = vadd.f32 %v3994_v30, %v5024_v29 }
 0x152   : > { %v1223_v34 = vpop.f32.mrf.mxu1  ;;  %v1529_v32 = vpop.f32.mrf.mxu0 }
 0x153   : > { %v5162_v59 = vadd.f32 %v4042_v45, %v1350_v18  ;;  %v1348_v7 = vadd.f32 %v1223_v34, %v5029_v6 }
 0x154   : > { %v3997_v8 = vpop.f32.mrf.mxu1  ;;  %v4045_v4 = vpop.f32.mrf.mxu0 }
 0x155   : > { %v5165_v38 = vadd.f32 %v1529_v32, %v1348_v7  ;;  %v1353_v21 = vadd.f32 %v3997_v8, %v5038_v41 }
 0x156   : > { %v1236_v19 = vpop.f32.mrf.mxu1  ;;  %v1542_v12 = vpop.f32.mrf.mxu0 }
 0x157   : > { %v5168_v43 = vadd.f32 %v4045_v4, %v1353_v21  ;;  %v1351_v47 = vadd.f32 %v1236_v19, %v5041_v3 }
 0x158   : > { %v3998_v48 = vpop.f32.mrf.mxu1  ;;  %v4046_v29 = vpop.f32.mrf.mxu0 }
 0x159   : > { %v5171_v0 = vadd.f32 %v1542_v12, %v1351_v47  ;;  %v1354_v62 = vadd.f32 %v3998_v48, %v5044_v13 }
 0x15a   : > { %v1239_v27 = vpop.f32.mrf.mxu1  ;;  %v1545_v6 = vpop.f32.mrf.mxu0 }
 0x15b   : > { %v5174_v1 = vadd.f32 %v4046_v29, %v1354_v62  ;;  %v1352_v39 = vadd.f32 %v1239_v27, %v5049_v23 }
 0x15c   : > { %v4001_v22 = vpop.f32.mrf.mxu1  ;;  %v4049_v41 = vpop.f32.mrf.mxu0 }
 0x15d   : > { %v5177_v57 = vadd.f32 %v1545_v6, %v1352_v39  ;;  %v1357_v15 = vadd.f32 %v4001_v22, %v5058_v51 }
 0x15e   : > { %v1252_v60 = vpop.f32.mrf.mxu1  ;;  %v1558_v3 = vpop.f32.mrf.mxu0 }
 0x15f   : > { %v5180_v56 = vadd.f32 %v4049_v41, %v1357_v15  ;;  %v1355_v33 = vadd.f32 %v1252_v60, %v5061_v10 }
 0x160   : > { %v4002_v54 = vpop.f32.mrf.mxu1  ;;  %v4050_v13 = vpop.f32.mrf.mxu0 }
 0x161   : > { %v5183_v55 = vadd.f32 %v1558_v3, %v1355_v33  ;;  %v1358_v25 = vadd.f32 %v4002_v54, %v5064_v46 }
 0x162   : > { %v1255_v9 = vpop.f32.mrf.mxu1  ;;  %v1561_v23 = vpop.f32.mrf.mxu0 }
 0x163   : > { %v5186_v36 = vadd.f32 %v4050_v13, %v1358_v25  ;;  %v1356_v30 = vadd.f32 %v1255_v9, %v5069_v11 }
 0x164   : > { %v4005_v45 = vpop.f32.mrf.mxu1  ;;  %v4053_v51 = vpop.f32.mrf.mxu0 }
 0x165   : > { %v5189_v18 = vadd.f32 %v1561_v23, %v1356_v30  ;;  %v1361_v34 = vadd.f32 %v4005_v45, %v5078_v61 }
 0x166   : > { %v1268_v32 = vpop.f32.mrf.mxu1  ;;  %v1574_v10 = vpop.f32.mrf.mxu0 }
 0x167   : > { %v5192_v7 = vadd.f32 %v4053_v51, %v1361_v34  ;;  %v1359_v8 = vadd.f32 %v1268_v32, %v5081_v50 }
 0x168   : > { %v4006_v4 = vpop.f32.mrf.mxu1  ;;  %v4054_v46 = vpop.f32.mrf.mxu0 }
 0x169   : > { %v5195_v21 = vadd.f32 %v1574_v10, %v1359_v8  ;;  %v1362_v19 = vadd.f32 %v4006_v4, %v5084_v42 }
 0x16a   : > { %v1271_v12 = vpop.f32.mrf.mxu1  ;;  %v1577_v11 = vpop.f32.mrf.mxu0 }
 0x16b   : > { %v5198_v47 = vadd.f32 %v4054_v46, %v1362_v19  ;;  %v1360_v48 = vadd.f32 %v1271_v12, %v5089_v24 }
 0x16c   : > { %v4009_v29 = vpop.f32.mrf.mxu1  ;;  %v4057_v61 = vpop.f32.mrf.mxu0 }
 0x16d   : > { %v5201_v62 = vadd.f32 %v1577_v11, %v1360_v48  ;;  %v1365_v27 = vadd.f32 %v4009_v29, %v5098_v14 }
 0x16e   : > { %v1284_v6 = vpop.f32.mrf.mxu1  ;;  %v1590_v50 = vpop.f32.mrf.mxu0 }
 0x16f   : > { %v5204_v39 = vadd.f32 %v4057_v61, %v1365_v27  ;;  %v1363_v22 = vadd.f32 %v1284_v6, %v5101_v26 }
 0x170   : > { %v4010_v41 = vpop.f32.mrf.mxu1  ;;  %v4058_v42 = vpop.f32.mrf.mxu0 }
 0x171   : > { %v5207_v15 = vadd.f32 %v1590_v50, %v1363_v22  ;;  %v1366_v60 = vadd.f32 %v4010_v41, %v5104_v52 }
 0x172   : > { %v1287_v3 = vpop.f32.mrf.mxu1  ;;  %v1593_v24 = vpop.f32.mrf.mxu0 }
 0x173   : > { %v5210_v33 = vadd.f32 %v4058_v42, %v1366_v60  ;;  %v1364_v54 = vadd.f32 %v1287_v3, %v5108_v37 }
 0x174   : > { %v4013_v13 = vpop.f32.mrf.mxu1  ;;  %v4061_v14 = vpop.f32.mrf.mxu0 }
 0x175   : > { %5623 = vst [vmem:[#allocation2_spill] sm:$0xff] %v5210_v33  ;;  %v5213_v25 = vadd.f32 %v1593_v24, %v1364_v54  ;;  %v1369_v9 = vadd.f32 %v4013_v13, %v5114_v53 }
 0x176   : > { %v1300_v23 = vpop.f32.mrf.mxu1  ;;  %v1606_v26 = vpop.f32.mrf.mxu0 }
 0x177   : > { %5624 = vst [vmem:[#allocation3_spill] sm:$0xff] %v5213_v25  ;;  %v5216_v30 = vadd.f32 %v4061_v14, %v1369_v9  ;;  %v1367_v45 = vadd.f32 %v1300_v23, %v5117_v31 }
 0x178   : > { %v4014_v51 = vpop.f32.mrf.mxu1  ;;  %v4062_v52 = vpop.f32.mrf.mxu0 }
 0x179   : > { %5625 = vst [vmem:[#allocation4_spill] sm:$0xff] %v5216_v30  ;;  %v5219_v34 = vadd.f32 %v1606_v26, %v1367_v45  ;;  %v1370_v32 = vadd.f32 %v4014_v51, %v5120_v5 }
 0x17a   : > { %v1303_v10 = vpop.f32.mrf.mxu1  ;;  %v1609_v37 = vpop.f32.mrf.mxu0 }
 0x17b   : > { %5626 = vst [vmem:[#allocation5_spill] sm:$0xff] %v5219_v34  ;;  %v5222_v8 = vadd.f32 %v4062_v52, %v1370_v32  ;;  %v1368_v4 = vadd.f32 %v1303_v10, %v5124_v40 }
 0x17c   : > { %v4017_v46 = vpop.f32.mrf.mxu1  ;;  %v4065_v53 = vpop.f32.mrf.mxu0 }
 0x17d   : > { %5627 = vst [vmem:[#allocation6_spill] sm:$0xff] %v5222_v8  ;;  %v5225_v19 = vadd.f32 %v1609_v37, %v1368_v4  ;;  %v1373_v12 = vadd.f32 %v4017_v46, %v5132_v44 }
 0x17e   : > { %v1316_v11 = vpop.f32.mrf.mxu1  ;;  %v1622_v31 = vpop.f32.mrf.mxu0 }
 0x17f   : > { %5628 = vst [vmem:[#allocation7_spill] sm:$0xff] %v5225_v19  ;;  %v5228_v48 = vadd.f32 %v4065_v53, %v1373_v12  ;;  %v1371_v29 = vadd.f32 %v1316_v11, %v5135_v58 }
 0x180   : > { %v4018_v61 = vpop.f32.mrf.mxu1  ;;  %v4066_v5 = vpop.f32.mrf.mxu0 }
 0x181   : > { %5629 = vst [vmem:[#allocation8_spill] sm:$0xff] %v5228_v48  ;;  %v5231_v27 = vadd.f32 %v1622_v31, %v1371_v29  ;;  %v1374_v6 = vadd.f32 %v4018_v61, %v5138_v2 }
 0x182   : > { %v1319_v50 = vpop.f32.mrf.mxu1  ;;  %v1625_v40 = vpop.f32.mrf.mxu0 }
 0x183   : > { %5630 = vst [vmem:[#allocation9_spill] sm:$0xff] %v5231_v27  ;;  %v5234_v22 = vadd.f32 %v4066_v5, %v1374_v6  ;;  %v1372_v41 = vadd.f32 %v1319_v50, %v5141_v20 }
 0x184   : > { %v4021_v42 = vpop.f32.mrf.mxu1  ;;  %v4069_v44 = vpop.f32.mrf.mxu0 }
 0x185   : > { %5631 = vst [vmem:[#allocation10_spill] sm:$0xff] %v5234_v22  ;;  %v5237_v60 = vadd.f32 %v1625_v40, %v1372_v41  ;;  %v1377_v3 = vadd.f32 %v4021_v42, %v5144_v28 }
 0x186   : > { %v1332_v24 = vpop.f32.mrf.mxu1  ;;  %v1638_v58 = vpop.f32.mrf.mxu0 }
 0x187   : > { %5632 = vst [vmem:[#allocation11_spill] sm:$0xff] %v5237_v60  ;;  %v5240_v54 = vadd.f32 %v4069_v44, %v1377_v3  ;;  %v1375_v13 = vadd.f32 %v1332_v24, %v5147_v63 }
 0x188   : > { %v4022_v14 = vpop.f32.mrf.mxu1  ;;  %v4070_v2 = vpop.f32.mrf.mxu0 }
 0x189   : > { %5633 = vst [vmem:[#allocation12_spill] sm:$0xff] %v5240_v54  ;;  %v5243_v9 = vadd.f32 %v1638_v58, %v1375_v13  ;;  %v1378_v23 = vadd.f32 %v4022_v14, %v5150_v17 }
 0x18a   : > { %v1335_v26 = vpop.f32.mrf.mxu1  ;;  %v1641_v20 = vpop.f32.mrf.mxu0 }
 0x18b   : > { %5634 = vst [vmem:[#allocation13_spill] sm:$0xff] %v5243_v9  ;;  %v5246_v45 = vadd.f32 %v4070_v2, %v1378_v23  ;;  %v1376_v51 = vadd.f32 %v1335_v26, %v5153_v16 }
 0x18c   : > { %v4089_v52 = vpop.f32.mrf.mxu1  ;;  %v5249_v28 = vpop.f32.mrf.mxu0 }
 0x18d   : > { %5635 = vst [vmem:[#allocation14_spill] sm:$0xff] %v5246_v45  ;;  %v5251_v32 = vadd.f32 %v1641_v20, %v1376_v51 }
 0x18e   : > { %v1832_v10 = vpop.f32.mrf.mxu1  ;;  %v5253_v37 = vpop.f32.mrf.mxu0 }
 0x18f   : > { %5636 = vst [vmem:[#allocation15_spill] sm:$0xff] %v5251_v32 }
 0x190   : > { %v4090_v63 = vpop.f32.mrf.mxu1  ;;  %v5255_v4 = vpop.f32.mrf.mxu0 }
 0x192   : > { %v1835_v46 = vpop.f32.mrf.mxu1  ;;  %v5257_v53 = vpop.f32.mrf.mxu0 }
 0x194   : > { %v4093_v17 = vpop.f32.mrf.mxu1  ;;  %v5259_v12 = vpop.f32.mrf.mxu0 }
 0x196   : > { %v1848_v11 = vpop.f32.mrf.mxu1  ;;  %v5261_v31 = vpop.f32.mrf.mxu0 }
 0x198   : > { %v4094_v16 = vpop.f32.mrf.mxu1  ;;  %v5263_v29 = vpop.f32.mrf.mxu0 }
 0x19a   : > { %v1851_v61 = vpop.f32.mrf.mxu1  ;;  %v5265_v5 = vpop.f32.mrf.mxu0 }
 0x19c   : > { %v4097_v6 = vpop.f32.mrf.mxu1  ;;  %v5267_v50 = vpop.f32.mrf.mxu0 }
 0x19e   : > { %v1864_v40 = vpop.f32.mrf.mxu1  ;;  %v5269_v41 = vpop.f32.mrf.mxu0 }
 0x1a0   : > { %v4098_v42 = vpop.f32.mrf.mxu1  ;;  %v5271_v44 = vpop.f32.mrf.mxu0 }
 0x1a2   : > { %v5273_v3 = vpop.f32.mrf.mxu1  ;;  %v5275_v24 = vpop.f32.mrf.mxu0 }
 0x1a4   : > { %v4101_v58 = vpop.f32.mrf.mxu1  ;;  %v5277_v13 = vpop.f32.mrf.mxu0 }
 0x1a6   : > { %v1880_v14 = vpop.f32.mrf.mxu1  ;;  %v5279_v2 = vpop.f32.mrf.mxu0 }
 0x1a8   : > { %v4102_v23 = vpop.f32.mrf.mxu1  ;;  %v5281_v26 = vpop.f32.mrf.mxu0 }
 0x1aa   : > { %v5283_v20 = vpop.f32.mrf.mxu1  ;;  %v5285_v51 = vpop.f32.mrf.mxu0 }
 0x1ac   : > { %v5287_v32 = vpop.f32.mrf.mxu1  ;;  %v5289_v45 = vpop.f32.mrf.mxu0 }
 0x1ae   : > { %v5291_v9 = vpop.f32.mrf.mxu1  ;;  %v5293_v54 = vpop.f32.mrf.mxu0 }
 0x1af   : > { %5637 = vst [vmem:[#allocation16_spill] sm:$0xff] %v5293_v54 }
 0x1b0   : > { %v5295_v60 = vpop.f32.mrf.mxu1  ;;  %v5297_v22 = vpop.f32.mrf.mxu0 }
 0x1b1   : > { %5638 = vst [vmem:[#allocation17_spill] sm:$0xff] %v5295_v60  ;;  %5639 = vst [vmem:[#allocation18_spill] sm:$0xff] %v5297_v22 }
 0x1b2   : > { %v5299_v27 = vpop.f32.mrf.mxu1  ;;  %v5301_v48 = vpop.f32.mrf.mxu0 }
 0x1b3   : > { %5640 = vst [vmem:[#allocation19_spill] sm:$0xff] %v5299_v27  ;;  %5641 = vst [vmem:[#allocation20_spill] sm:$0xff] %v5301_v48 }
 0x1b4   : > { %v5303_v19 = vpop.f32.mrf.mxu1  ;;  %v5305_v8 = vpop.f32.mrf.mxu0 }
 0x1b5   : > { %5642 = vst [vmem:[#allocation21_spill] sm:$0xff] %v5303_v19  ;;  %5643 = vst [vmem:[#allocation22_spill] sm:$0xff] %v5305_v8 }
 0x1b6   : > { %v5307_v34 = vpop.f32.mrf.mxu1  ;;  %v5309_v30 = vpop.f32.mrf.mxu0 }
 0x1b7   : > { %5644 = vst [vmem:[#allocation23_spill] sm:$0xff] %v5307_v34  ;;  %5645 = vst [vmem:[#allocation24_spill] sm:$0xff] %v5309_v30 }
 0x1b8   : > { %v5311_v25 = vpop.f32.mrf.mxu1  ;;  %v5313_v33 = vpop.f32.mrf.mxu0 }
 0x1b9   : > { %5646 = vst [vmem:[#allocation25_spill] sm:$0xff] %v5311_v25  ;;  %5647 = vst [vmem:[#allocation26_spill] sm:$0xff] %v5313_v33 }
 0x1ba   : > { %v5315_v54 = vpop.f32.mrf.mxu1  ;;  %v5317_v60 = vpop.f32.mrf.mxu0 }
 0x1bb   : > { %5648 = vst [vmem:[#allocation27_spill] sm:$0xff] %v5315_v54  ;;  %5649 = vst [vmem:[#allocation28_spill] sm:$0xff] %v5317_v60 }
 0x1bc   : > { %v5319_v22 = vpop.f32.mrf.mxu1  ;;  %v5321_v27 = vpop.f32.mrf.mxu0 }
 0x1bd   : > { %5650 = vst [vmem:[#allocation29_spill] sm:$0xff] %v5319_v22  ;;  %5651 = vst [vmem:[#allocation30_spill] sm:$0xff] %v5321_v27 }
 0x1be   : > { %v5323_v48 = vpop.f32.mrf.mxu1  ;;  %v5325_v19 = vpop.f32.mrf.mxu0 }
 0x1bf   : > { %5652 = vst [vmem:[#allocation31_spill] sm:$0xff] %v5323_v48  ;;  %5653 = vst [vmem:[#allocation32_spill] sm:$0xff] %v5325_v19  ;;  %v1961_v48 = vadd.f32 %v4089_v52, %v5156_v35  ;;  %v1959_v19 = vadd.f32 %v1832_v10, %v5159_v49 }
 0x1c0   : > { %v5327_v8 = vpop.f32.mrf.mxu1  ;;  %v5329_v34 = vpop.f32.mrf.mxu0 }
 0x1c1   : > { %5654 = vst [vmem:[#allocation33_spill] sm:$0xff] %v5327_v8  ;;  %5655 = vst [vmem:[#allocation34_spill] sm:$0xff] %v5329_v34  ;;  %v1962_v8 = vadd.f32 %v4090_v63, %v5162_v59  ;;  %v1960_v34 = vadd.f32 %v1835_v46, %v5165_v38  ;;  %v2268_v35 = vadd.f32 %v5249_v28, %v1961_v48 }
 0x1c2   : > { %v5331_v30 = vpop.f32.mrf.mxu1  ;;  %v5333_v25 = vpop.f32.mrf.mxu0  ;;  %v2266_v49 = vadd.f32 %v5253_v37, %v1959_v19  ;;  %v1966_v59 = vadd.f32 %v4094_v16, %v5174_v1  ;;  %v1964_v38 = vadd.f32 %v1851_v61, %v5177_v57  ;;  %v1970_v19 = vadd.f32 %v4098_v42, %v5186_v36 }
 0x1c3   : > { %5656 = vst [vmem:[#allocation35_spill] sm:$0xff] %v5331_v30  ;;  %5657 = vst [vmem:[#allocation36_spill] sm:$0xff] %v5333_v25  ;;  %v1965_v25 = vadd.f32 %v4093_v17, %v5168_v43  ;;  %v2269_v52 = vadd.f32 %v5255_v4, %v1962_v8  ;;  %v2267_v10 = vadd.f32 %v5257_v53, %v1960_v34 }
 0x1c4   : > { %v5335_v33 = vpop.f32.mrf.mxu1  ;;  %v5337_v54 = vpop.f32.mrf.mxu0  ;;  %v1969_v43 = vadd.f32 %v4097_v6, %v5180_v56  ;;  %v1968_v1 = vadd.f32 %v5273_v3, %v5189_v18  ;;  %v1973_v57 = vadd.f32 %v4101_v58, %v5192_v7  ;;  %v1971_v56 = vadd.f32 %v1880_v14, %v5195_v21 }
 0x1c5   : > { %5658 = vst [vmem:[#allocation37_spill] sm:$0xff] %v5335_v33  ;;  %5659 = vst [vmem:[#allocation38_spill] sm:$0xff] %v5337_v54  ;;  %v1963_v54 = vadd.f32 %v1848_v11, %v5171_v0  ;;  %v1967_v0 = vadd.f32 %v1864_v40, %v5183_v55  ;;  %v2272_v17 = vadd.f32 %v5259_v12, %v1965_v25  ;;  %v5377_v25 = vld [vmem:[%s5620_s2] ss:$0 sm:$0xff]  ;;  %v3047_v40 = vld [vmem:[%s5398_s5 + $0x10] sm:$0xff] }
 0x1c6   : > { %v5339_v60 = vpop.f32.mrf.mxu1  ;;  %v5341_v22 = vpop.f32.mrf.mxu0  ;;  %v1974_v55 = vadd.f32 %v4102_v23, %v5198_v47  ;;  %v2273_v36 = vadd.f32 %v5263_v29, %v1966_v59  ;;  %v5384_v7 = vadd.f32 %v5267_v50, %v1969_v43  ;;  %v1972_v47 = vadd.f32 %v5283_v20, %v5201_v62  ;;  %v5661_v20 = vld [vmem:[#allocation2_spill] sm:$0xff]  ;;  %v3048_v43 = vld [vmem:[%s5398_s5 + $0x18] sm:$0xff] }
 0x1c7   : > { %5660 = vst [vmem:[#allocation39_spill] sm:$0xff] %v5341_v22  ;;  %v2270_v48 = vadd.f32 %v5261_v31, %v1963_v54  ;;  %v5381_v54 = vadd.f32 %v5265_v5, %v1964_v38  ;;  %v5387_v21 = vadd.f32 %v5269_v41, %v1967_v0  ;;  %v1977_v4 = vadd.f32 %v5287_v32, %v5204_v39 }
 0x1c8   : > { %v5347_v27 = vpop.f32.mrf.mxu1  ;;  %v5349_v30 = vpop.f32.mrf.mxu0  ;;  %v5401_v11 = vadd.f32 %v5271_v44, %v1970_v19  ;;  %v5405_v62 = vadd.f32 %v5275_v24, %v1968_v1  ;;  %v5408_v39 = vadd.f32 %v5277_v13, %v1973_v57  ;;  %v5411_v32 = vadd.f32 %v5279_v2, %v1971_v56 }
 0x1c9   : > { %v5414_v61 = vadd.f32 %v5281_v26, %v1974_v55  ;;  %v5419_v44 = vadd.f32 %v5285_v51, %v1972_v47  ;;  %v5422_v3 = vadd.f32 %v5289_v45, %v1977_v4  ;;  %v1975_v24 = vadd.f32 %v5291_v9, %v5207_v15  ;;  %v3045_v26 = vld [vmem:[%s5398_s5] sm:$0xff]  ;;  %v5662_v51 = vld [vmem:[#allocation17_spill] sm:$0xff]  ;;  %v5665_v55 = vld [vmem:[#allocation19_spill] sm:$0xff] }
 0x1ca   : > { %v5353_v33 = vpop.f32.mrf.mxu1  ;;  %v5355_v22 = vpop.f32.mrf.mxu0  ;;  %v1978_v15 = vadd.f32 %v5662_v51, %v5661_v20  ;;  %v3046_v4 = vld [vmem:[%s5398_s5 + $0x8] sm:$0xff]  ;;  %v5669_v20 = vld [vmem:[#allocation20_spill] sm:$0xff] }
 0x1cc   : > { %v4185_v63 = vpop.f32.mrf.mxu1  ;;  %v4233_v46 = vpop.f32.mrf.mxu0 }
 0x1cd   : > { %v2574_v28 = vadd.f32 %v4185_v63, %v2268_v35  ;;  %v5663_v63 = vld [vmem:[#allocation16_spill] sm:$0xff] }
 0x1ce   : > { %v2445_v34 = vpop.f32.mrf.mxu1  ;;  %v2751_v8 = vpop.f32.mrf.mxu0 }
 0x1cf   : > { %v2880_v37 = vadd.f32 %v4233_v46, %v2574_v28  ;;  %v2572_v18 = vadd.f32 %v2445_v34, %v2266_v49  ;;  %v5439_v46 = vadd.f32 %v5663_v63, %v1975_v24 }
 0x1d0   : > { %v4186_v53 = vpop.f32.mrf.mxu1  ;;  %v4234_v12 = vpop.f32.mrf.mxu0 }
 0x1d1   : > { %v2919_v31 = vadd.f32 %v5377_v25, %v2880_v37  ;;  %v2878_v16 = vadd.f32 %v2751_v8, %v2572_v18  ;;  %v2575_v29 = vadd.f32 %v4186_v53, %v2269_v52 }
 0x1d2   : > { %v2448_v5 = vpop.f32.mrf.mxu1  ;;  %v2754_v6 = vpop.f32.mrf.mxu0 }
 0x1d3   : > { %vm2951_vm0 = vcmp.ge.f32.partialorder %v2919_v31, 0.0  ;;  %v2983_v50 = vmul.f32 0.2, %v2919_v31  ;;  %v2917_v41 = vadd.f32 %v5377_v25, %v2878_v16  ;;  %v2881_v42 = vadd.f32 %v4234_v12, %v2575_v29  ;;  %v5666_v16 = vld [vmem:[#allocation18_spill] sm:$0xff] }
 0x1d4   : > { %v2573_v58 = vadd.f32 %v2448_v5, %v2267_v10  ;;  %v4189_v13 = vpop.f32.mrf.mxu1  ;;  %v4237_v14 = vpop.f32.mrf.mxu0  ;;  %v5449_v29 = vadd.f32 %v5666_v16, %v1978_v15 }
 0x1d5   : > { %v3015_v2 = vsel %vm2951_vm0, %v2919_v31, %v2983_v50  ;;  %vm2949_vm1 = vcmp.ge.f32.partialorder %v2917_v41, 0.0  ;;  %v2981_v23 = vmul.f32 0.2, %v2917_v41  ;;  %v2920_v45 = vadd.f32 %v5377_v25, %v2881_v42 }
 0x1d6   : > { %v3079_v9 = vadd.f32 %v3047_v40, %v3015_v2  ;;  %v2879_v35 = vadd.f32 %v2754_v6, %v2573_v58  ;;  %v2578_v49 = vadd.f32 %v4189_v13, %v2272_v17  ;;  %v2461_v59 = vpop.f32.mrf.mxu1  ;;  %v2767_v38 = vpop.f32.mrf.mxu0  ;;  %v5664_v17 = vld [vmem:[#allocation3_spill] sm:$0xff]  ;;  %v5668_v40 = vld [vmem:[#allocation21_spill] sm:$0xff]  ;;  %v3051_v58 = vld [vmem:[%s5398_s5 + $0x30] sm:$0xff] }
 0x1d7   : > { %v3013_v52 = vsel %vm2949_vm1, %v2917_v41, %v2981_v23  ;;  %vm2952_vm2 = vcmp.ge.f32.partialorder %v2920_v45, 0.0  ;;  %v2984_v10 = vmul.f32 0.2, %v2920_v45  ;;  %v2576_v0 = vadd.f32 %v2461_v59, %v2270_v48 }
 0x1d8   : > { %3111 = vst [vmem:[%s5431_s8 + $0x10] sm:$0xff] %v3079_v9  ;;  %v3077_v19 = vadd.f32 %v3045_v26, %v3013_v52  ;;  %v2918_v28 = vadd.f32 %v5377_v25, %v2879_v35  ;;  %v2884_v1 = vadd.f32 %v4237_v14, %v2578_v49  ;;  %v4190_v57 = vpop.f32.mrf.mxu1  ;;  %v4238_v56 = vpop.f32.mrf.mxu0  ;;  %v1976_v34 = vadd.f32 %v5665_v55, %v5664_v17  ;;  %v3049_v26 = vld [vmem:[%s5398_s5 + $0x20] sm:$0xff]  ;;  %v5672_v17 = vld [vmem:[#allocation23_spill] sm:$0xff] }
 0x1d9   : > { %v3016_v8 = vsel %vm2952_vm2, %v2920_v45, %v2984_v10  ;;  %v2882_v37 = vadd.f32 %v2767_v38, %v2576_v0  ;;  %v2579_v18 = vadd.f32 %v4190_v57, %v2273_v36  ;;  %v5667_v36 = vld [vmem:[#allocation4_spill] sm:$0xff]  ;;  %v3052_v10 = vld [vmem:[%s5398_s5 + $0x38] sm:$0xff] }
 0x1da   : > { %3109 = vst [vmem:[%s5431_s8] sm:$0xff] %v3077_v19  ;;  %v3080_v48 = vadd.f32 %v3048_v43, %v3016_v8  ;;  %vm2950_vm3 = vcmp.ge.f32.partialorder %v2918_v28, 0.0  ;;  %v2982_v47 = vmul.f32 0.2, %v2918_v28  ;;  %v2923_v53 = vadd.f32 %v5377_v25, %v2884_v1  ;;  %v2464_v12 = vpop.f32.mrf.mxu1  ;;  %v2770_v31 = vpop.f32.mrf.mxu0 }
 0x1db   : > { %v2921_v5 = vadd.f32 %v5377_v25, %v2882_v37  ;;  %v2885_v6 = vadd.f32 %v4238_v56, %v2579_v18  ;;  %v2577_v50 = vadd.f32 %v2464_v12, %v5381_v54  ;;  %v1981_v41 = vadd.f32 %v5668_v40, %v5667_v36  ;;  %v5671_v56 = vld [vmem:[#allocation5_spill] sm:$0xff]  ;;  %v5676_v36 = vld [vmem:[#allocation27_spill] sm:$0xff] }
 0x1dc   : > { %3112 = vst [vmem:[%s5431_s8 + $0x18] sm:$0xff] %v3080_v48  ;;  %v3014_v42 = vsel %vm2950_vm3, %v2918_v28, %v2982_v47  ;;  %vm2955_vm4 = vcmp.ge.f32.partialorder %v2923_v53, 0.0  ;;  %v2987_v24 = vmul.f32 0.2, %v2923_v53  ;;  %v4193_v13 = vpop.f32.mrf.mxu1  ;;  %v4241_v14 = vpop.f32.mrf.mxu0  ;;  %v5460_v54 = vadd.f32 %v5669_v20, %v1976_v34  ;;  %v3050_v48 = vld [vmem:[%s5398_s5 + $0x28] sm:$0xff]  ;;  %v5674_v12 = vld [vmem:[#allocation25_spill] sm:$0xff] }
 0x1dd   : > { %v3078_v2 = vadd.f32 %v3046_v4, %v3014_v42  ;;  %vm2953_vm5 = vcmp.ge.f32.partialorder %v2921_v5, 0.0  ;;  %v2985_v23 = vmul.f32 0.2, %v2921_v5  ;;  %v2924_v45 = vadd.f32 %v5377_v25, %v2885_v6  ;;  %v3055_v42 = vld [vmem:[%s5398_s5 + $0x50] sm:$0xff]  ;;  %v5679_v20 = vld [vmem:[#allocation29_spill] sm:$0xff] }
 0x1de   : > { %v3019_v51 = vsel %vm2955_vm4, %v2923_v53, %v2987_v24  ;;  %v2883_v15 = vadd.f32 %v2770_v31, %v2577_v50  ;;  %v2582_v9 = vadd.f32 %v4193_v13, %v5384_v7  ;;  %v2477_v35 = vpop.f32.mrf.mxu1  ;;  %v2783_v49 = vpop.f32.mrf.mxu0  ;;  %v5670_v7 = vld [vmem:[#allocation22_spill] sm:$0xff]  ;;  %v1979_v55 = vadd.f32 %v5672_v17, %v5671_v56  ;;  %v5675_v50 = vld [vmem:[#allocation7_spill] sm:$0xff]  ;;  %v5681_v56 = vld [vmem:[#allocation28_spill] sm:$0xff] }
 0x1df   : > { %3110 = vst [vmem:[%s5431_s8 + $0x8] sm:$0xff] %v3078_v2  ;;  %v3083_v59 = vadd.f32 %v3051_v58, %v3019_v51  ;;  %v3017_v38 = vsel %vm2953_vm5, %v2921_v5, %v2985_v23  ;;  %vm2956_vm6 = vcmp.ge.f32.partialorder %v2924_v45, 0.0  ;;  %v2988_v52 = vmul.f32 0.2, %v2924_v45  ;;  %v5673_v53 = vld [vmem:[#allocation6_spill] sm:$0xff] }
 0x1e0   : > { %v3081_v43 = vadd.f32 %v3049_v26, %v3017_v38  ;;  %v2922_v0 = vadd.f32 %v5377_v25, %v2883_v15  ;;  %v2888_v63 = vadd.f32 %v4241_v14, %v2582_v9  ;;  %v2580_v19 = vadd.f32 %v2477_v35, %v5387_v21  ;;  %v4194_v28 = vpop.f32.mrf.mxu1  ;;  %v4242_v1 = vpop.f32.mrf.mxu0 }
 0x1e1   : > { %v5468_v57 = vadd.f32 %v5670_v7, %v1981_v41  ;;  %3115 = vst [vmem:[%s5431_s8 + $0x30] sm:$0xff] %v3083_v59  ;;  %v3020_v34 = vsel %vm2956_vm6, %v2924_v45, %v2988_v52  ;;  %v2583_v8 = vadd.f32 %v4194_v28, %v5401_v11  ;;  %v1982_v31 = vadd.f32 %v5674_v12, %v5673_v53  ;;  %v5678_v45 = vld [vmem:[#allocation8_spill] sm:$0xff]  ;;  %v3053_v52 = vld [vmem:[%s5398_s5 + $0x40] sm:$0xff] }
 0x1e2   : > { %3113 = vst [vmem:[%s5431_s8 + $0x20] sm:$0xff] %v3081_v43  ;;  %v3084_v37 = vadd.f32 %v3052_v10, %v3020_v34  ;;  %vm2954_vm7 = vcmp.ge.f32.partialorder %v2922_v0, 0.0  ;;  %v2986_v18 = vmul.f32 0.2, %v2922_v0  ;;  %v2927_v21 = vadd.f32 %v5377_v25, %v2888_v63  ;;  %v2480_v47 = vpop.f32.mrf.mxu1  ;;  %v2786_v4 = vpop.f32.mrf.mxu0  ;;  %v3056_v43 = vld [vmem:[%s5398_s5 + $0x58] sm:$0xff] }
 0x1e3   : > { %v2886_v16 = vadd.f32 %v2783_v49, %v2580_v19  ;;  %v2889_v5 = vadd.f32 %v4242_v1, %v2583_v8  ;;  %v2581_v6 = vadd.f32 %v2480_v47, %v5405_v62  ;;  %v1980_v11 = vadd.f32 %v5676_v36, %v5675_v50  ;;  %v5677_v62 = vld [vmem:[#allocation24_spill] sm:$0xff] }
 0x1e4   : > { %3116 = vst [vmem:[%s5431_s8 + $0x38] sm:$0xff] %v3084_v37  ;;  %v3018_v40 = vsel %vm2954_vm7, %v2922_v0, %v2986_v18  ;;  %vm2959_vm8 = vcmp.ge.f32.partialorder %v2927_v21, 0.0  ;;  %v2991_v41 = vmul.f32 0.2, %v2927_v21  ;;  %v4197_v24 = vpop.f32.mrf.mxu1  ;;  %v4245_v58 = vpop.f32.mrf.mxu0  ;;  %v5487_v26 = vadd.f32 %v5677_v62, %v1979_v55 }
 0x1e5   : > { %v3082_v13 = vadd.f32 %v3050_v48, %v3018_v40  ;;  %v2925_v14 = vadd.f32 %v5377_v25, %v2886_v16  ;;  %v2928_v2 = vadd.f32 %v5377_v25, %v2889_v5  ;;  %v2887_v23 = vadd.f32 %v2786_v4, %v2581_v6  ;;  %v3054_v48 = vld [vmem:[%s5398_s5 + $0x48] sm:$0xff]  ;;  %v5683_v5 = vld [vmem:[#allocation9_spill] sm:$0xff] }
 0x1e6   : > { %v1985_v51 = vadd.f32 %v5679_v20, %v5678_v45  ;;  %v3023_v15 = vsel %vm2959_vm8, %v2927_v21, %v2991_v41  ;;  %v2586_v9 = vadd.f32 %v4197_v24, %v5408_v39  ;;  %v2493_v35 = vpop.f32.mrf.mxu1  ;;  %v2799_v49 = vpop.f32.mrf.mxu0  ;;  %v5680_v39 = vld [vmem:[#allocation26_spill] sm:$0xff]  ;;  %v5501_v17 = vadd.f32 %v5681_v56, %v1980_v11  ;;  %v5684_v6 = vld [vmem:[#allocation31_spill] sm:$0xff]  ;;  %v3059_v24 = vld [vmem:[%s5398_s5 + $0x70] sm:$0xff] }
 0x1e7   : > { %3114 = vst [vmem:[%s5431_s8 + $0x28] sm:$0xff] %v3082_v13  ;;  %v3087_v59 = vadd.f32 %v3055_v42, %v3023_v15  ;;  %vm2957_vm9 = vcmp.ge.f32.partialorder %v2925_v14, 0.0  ;;  %v2989_v38 = vmul.f32 0.2, %v2925_v14  ;;  %vm2960_vm10 = vcmp.ge.f32.partialorder %v2928_v2, 0.0  ;;  %v5685_v13 = vld [vmem:[#allocation10_spill] sm:$0xff] }
 0x1e8   : > { %v2992_v10 = vmul.f32 0.2, %v2928_v2  ;;  %v2926_v0 = vadd.f32 %v5377_v25, %v2887_v23  ;;  %v2892_v63 = vadd.f32 %v4245_v58, %v2586_v9  ;;  %v2584_v19 = vadd.f32 %v2493_v35, %v5411_v32  ;;  %v4198_v28 = vpop.f32.mrf.mxu1  ;;  %v4246_v1 = vpop.f32.mrf.mxu0  ;;  %v3057_v9 = vld [vmem:[%s5398_s5 + $0x60] sm:$0xff] }
 0x1e9   : > { %v5498_v7 = vadd.f32 %v5680_v39, %v1982_v31  ;;  %3119 = vst [vmem:[%s5431_s8 + $0x50] sm:$0xff] %v3087_v59  ;;  %v3021_v55 = vsel %vm2957_vm9, %v2925_v14, %v2989_v38  ;;  %v2587_v34 = vadd.f32 %v4198_v28, %v5414_v61  ;;  %v5682_v31 = vld [vmem:[#allocation30_spill] sm:$0xff]  ;;  %v5512_v61 = vadd.f32 %v5684_v6, %v5683_v5  ;;  %v5686_v14 = vld [vmem:[#allocation33_spill] sm:$0xff]  ;;  %v3058_v39 = vld [vmem:[%s5398_s5 + $0x68] sm:$0xff] }
 0x1ea   : > { %v3085_v8 = vadd.f32 %v3053_v52, %v3021_v55  ;;  %v3024_v37 = vsel %vm2960_vm10, %v2928_v2, %v2992_v10  ;;  %vm2958_vm11 = vcmp.ge.f32.partialorder %v2926_v0, 0.0  ;;  %v2990_v18 = vmul.f32 0.2, %v2926_v0  ;;  %v2496_v32 = vpop.f32.mrf.mxu1  ;;  %v2802_v21 = vpop.f32.mrf.mxu0  ;;  %v3060_v38 = vld [vmem:[%s5398_s5 + $0x78] sm:$0xff] }
 0x1eb   : > { %v3088_v47 = vadd.f32 %v3056_v43, %v3024_v37  ;;  %v2931_v4 = vadd.f32 %v5377_v25, %v2892_v63  ;;  %v2890_v53 = vadd.f32 %v2799_v49, %v2584_v19  ;;  %v2893_v12 = vadd.f32 %v4246_v1, %v2587_v34 }
 0x1ec   : > { %v5508_v16 = vadd.f32 %v5682_v31, %v1985_v51  ;;  %3117 = vst [vmem:[%s5431_s8 + $0x40] sm:$0xff] %v3085_v8  ;;  %v3022_v50 = vsel %vm2958_vm11, %v2926_v0, %v2990_v18  ;;  %v2585_v36 = vadd.f32 %v2496_v32, %v5419_v44  ;;  %v4201_v11 = vpop.f32.mrf.mxu1  ;;  %v4249_v40 = vpop.f32.mrf.mxu0  ;;  %v1986_v2 = vadd.f32 %v5686_v14, %v5685_v13  ;;  %v5688_v32 = vld [vmem:[#allocation35_spill] sm:$0xff] }
 0x1ed   : > { %3120 = vst [vmem:[%s5431_s8 + $0x58] sm:$0xff] %v3088_v47  ;;  %v3086_v41 = vadd.f32 %v3054_v48, %v3022_v50  ;;  %vm2963_vm12 = vcmp.ge.f32.partialorder %v2931_v4, 0.0  ;;  %v2995_v42 = vmul.f32 0.2, %v2931_v4  ;;  %v2929_v58 = vadd.f32 %v5377_v25, %v2890_v53  ;;  %v5687_v48 = vld [vmem:[#allocation11_spill] sm:$0xff]  ;;  %v5690_v47 = vld [vmem:[#allocation37_spill] sm:$0xff] }
 0x1ee   : > { %v2932_v23 = vadd.f32 %v5377_v25, %v2893_v12  ;;  %v2891_v62 = vadd.f32 %v2802_v21, %v2585_v36  ;;  %v2590_v45 = vadd.f32 %v4201_v11, %v5422_v3  ;;  %v2509_v44 = vpop.f32.mrf.mxu1  ;;  %v2815_v20 = vpop.f32.mrf.mxu0  ;;  %v5689_v21 = vld [vmem:[#allocation12_spill] sm:$0xff] }
 0x1ef   : > { %3118 = vst [vmem:[%s5431_s8 + $0x48] sm:$0xff] %v3086_v41  ;;  %v3027_v51 = vsel %vm2963_vm12, %v2931_v4, %v2995_v42  ;;  %vm2961_vm13 = vcmp.ge.f32.partialorder %v2929_v58, 0.0  ;;  %v2993_v15 = vmul.f32 0.2, %v2929_v58  ;;  %v2588_v35 = vadd.f32 %v2509_v44, %v5439_v46  ;;  %v3063_v36 = vld [vmem:[%s5398_s5 + $0x90] sm:$0xff] }
 0x1f0   : > { %v3091_v49 = vadd.f32 %v3059_v24, %v3027_v51  ;;  %vm2964_vm14 = vcmp.ge.f32.partialorder %v2932_v23, 0.0  ;;  %v2996_v59 = vmul.f32 0.2, %v2932_v23  ;;  %v2930_v52 = vadd.f32 %v5377_v25, %v2891_v62  ;;  %v4202_v10 = vpop.f32.mrf.mxu1  ;;  %v4250_v43 = vpop.f32.mrf.mxu0 }
 0x1f1   : > { %v3025_v3 = vsel %vm2961_vm13, %v2929_v58, %v2993_v15  ;;  %v2896_v0 = vadd.f32 %v4249_v40, %v2590_v45  ;;  %v2894_v63 = vadd.f32 %v2815_v20, %v2588_v35  ;;  %v2591_v19 = vadd.f32 %v4202_v10, %v5449_v29  ;;  %v3061_v40 = vld [vmem:[%s5398_s5 + $0x80] sm:$0xff] }
 0x1f2   : > { %3123 = vst [vmem:[%s5431_s8 + $0x70] sm:$0xff] %v3091_v49  ;;  %v3089_v28 = vadd.f32 %v3057_v9, %v3025_v3  ;;  %v3028_v1 = vsel %vm2964_vm14, %v2932_v23, %v2996_v59  ;;  %vm2962_vm15 = vcmp.ge.f32.partialorder %v2930_v52, 0.0  ;;  %v2994_v46 = vmul.f32 0.2, %v2930_v52  ;;  %v2512_v56 = vpop.f32.mrf.mxu1  ;;  %v2818_v55 = vpop.f32.mrf.mxu0  ;;  %v5692_v23 = vld [vmem:[#allocation34_spill] sm:$0xff]  ;;  %v3064_v9 = vld [vmem:[%s5398_s5 + $0x98] sm:$0xff] }
 0x1f3   : > { %v3092_v34 = vadd.f32 %v3060_v38, %v3028_v1  ;;  %v2935_v8 = vadd.f32 %v5377_v25, %v2896_v0  ;;  %v2933_v37 = vadd.f32 %v5377_v25, %v2894_v63  ;;  %v2897_v18 = vadd.f32 %v4250_v43, %v2591_v19  ;;  %v5693_v38 = vld [vmem:[#allocation36_spill] sm:$0xff]  ;;  %v5694_v10 = vld [vmem:[#allocation38_spill] sm:$0xff]  ;;  %v3062_v1 = vld [vmem:[%s5398_s5 + $0x88] sm:$0xff] }
 0x1f4   : > { %v1984_v29 = vadd.f32 %v5688_v32, %v5687_v48  ;;  %v1989_v4 = vadd.f32 %v5690_v47, %v5689_v21  ;;  %3121 = vst [vmem:[%s5431_s8 + $0x60] sm:$0xff] %v3089_v28  ;;  %v3026_v53 = vsel %vm2962_vm15, %v2930_v52, %v2994_v46  ;;  %v2589_v12 = vadd.f32 %v2512_v56, %v5460_v54  ;;  %v4205_v31 = vpop.f32.mrf.mxu1  ;;  %v4253_v5 = vpop.f32.mrf.mxu0  ;;  %v5691_v54 = vld [vmem:[#allocation32_spill] sm:$0xff] }
 0x1f5   : > { %3124 = vst [vmem:[%s5431_s8 + $0x78] sm:$0xff] %v3092_v34  ;;  %v3090_v6 = vadd.f32 %v3058_v39, %v3026_v53  ;;  %vm2967_vm0 = vcmp.ge.f32.partialorder %v2935_v8, 0.0  ;;  %v2999_v50 = vmul.f32 0.2, %v2935_v8  ;;  %vm2965_vm1 = vcmp.ge.f32.partialorder %v2933_v37, 0.0  ;;  %v5695_v39 = vld [vmem:[#allocation13_spill] sm:$0xff] }
 0x1f6   : > { %v2997_v11 = vmul.f32 0.2, %v2933_v37  ;;  %v2936_v41 = vadd.f32 %v5377_v25, %v2897_v18  ;;  %v2895_v42 = vadd.f32 %v2818_v55, %v2589_v12  ;;  %v2594_v24 = vadd.f32 %v4205_v31, %v5468_v57  ;;  %v2525_v58 = vpop.f32.mrf.mxu1  ;;  %v2831_v13 = vpop.f32.mrf.mxu0  ;;  %v3067_v32 = vld [vmem:[%s5398_s5 + $0xb0] sm:$0xff] }
 0x1f7   : > { %v2290_v14 = vadd.f32 %v5691_v54, %v5512_v61  ;;  %v5547_v62 = vadd.f32 %v5692_v23, %v1986_v2  ;;  %3122 = vst [vmem:[%s5431_s8 + $0x68] sm:$0xff] %v3090_v6  ;;  %v3031_v45 = vsel %vm2967_vm0, %v2935_v8, %v2999_v50  ;;  %v2592_v44 = vadd.f32 %v2525_v58, %v5487_v26  ;;  %v5696_v54 = vld [vmem:[#allocation14_spill] sm:$0xff]  ;;  %v5697_v23 = vld [vmem:[#allocation15_spill] sm:$0xff] }
 0x1f8   : > { %v3095_v20 = vadd.f32 %v3063_v36, %v3031_v45  ;;  %v3029_v51 = vsel %vm2965_vm1, %v2933_v37, %v2997_v11  ;;  %vm2968_vm2 = vcmp.ge.f32.partialorder %v2936_v41, 0.0  ;;  %v3000_v15 = vmul.f32 0.2, %v2936_v41  ;;  %v4206_v57 = vpop.f32.mrf.mxu1  ;;  %v4254_v35 = vpop.f32.mrf.mxu0  ;;  %v3068_v11 = vld [vmem:[%s5398_s5 + $0xb8] sm:$0xff] }
 0x1f9   : > { %v3093_v49 = vadd.f32 %v3061_v40, %v3029_v51  ;;  %v2934_v61 = vadd.f32 %v5377_v25, %v2895_v42  ;;  %v2900_v59 = vadd.f32 %v4253_v5, %v2594_v24  ;;  %v2898_v2 = vadd.f32 %v2831_v13, %v2592_v44 }
 0x1fa   : > { %v5554_v52 = vadd.f32 %v5693_v38, %v1984_v29  ;;  %v5557_v43 = vadd.f32 %v5694_v10, %v1989_v4  ;;  %3127 = vst [vmem:[%s5431_s8 + $0x90] sm:$0xff] %v3095_v20  ;;  %v3032_v26 = vsel %vm2968_vm2, %v2936_v41, %v3000_v15  ;;  %v2595_v3 = vadd.f32 %v4206_v57, %v5498_v7  ;;  %v2528_v0 = vpop.f32.mrf.mxu1  ;;  %v2834_v63 = vpop.f32.mrf.mxu0 }
 0x1fb   : > { %3125 = vst [vmem:[%s5431_s8 + $0x80] sm:$0xff] %v3093_v49  ;;  %v3096_v19 = vadd.f32 %v3064_v9, %v3032_v26  ;;  %vm2966_vm3 = vcmp.ge.f32.partialorder %v2934_v61, 0.0  ;;  %v2998_v28 = vmul.f32 0.2, %v2934_v61  ;;  %v2939_v46 = vadd.f32 %v5377_v25, %v2900_v59 }
 0x1fc   : > { %v1987_v56 = vadd.f32 %v5339_v60, %v5695_v39  ;;  %v2937_v55 = vadd.f32 %v5377_v25, %v2898_v2  ;;  %v2901_v34 = vadd.f32 %v4254_v35, %v2595_v3  ;;  %v2593_v8 = vadd.f32 %v2528_v0, %v5501_v17  ;;  %v4209_v7 = vpop.f32.mrf.mxu1  ;;  %v4257_v37 = vpop.f32.mrf.mxu0  ;;  %v3065_v60 = vld [vmem:[%s5398_s5 + $0xa0] sm:$0xff]  ;;  %v3066_v35 = vld [vmem:[%s5398_s5 + $0xa8] sm:$0xff] }
 0x1fd   : > { %3128 = vst [vmem:[%s5431_s8 + $0x98] sm:$0xff] %v3096_v19  ;;  %v3030_v18 = vsel %vm2966_vm3, %v2934_v61, %v2998_v28  ;;  %vm2971_vm4 = vcmp.ge.f32.partialorder %v2939_v46, 0.0  ;;  %v3003_v48 = vmul.f32 0.2, %v2939_v46  ;;  %v2598_v29 = vadd.f32 %v4209_v7, %v5508_v16  ;;  %v3071_v61 = vld [vmem:[%s5398_s5 + $0xd0] sm:$0xff]  ;;  %v3069_v28 = vld [vmem:[%s5398_s5 + $0xc0] sm:$0xff] }
 0x1fe   : > { %v3094_v21 = vadd.f32 %v3062_v1, %v3030_v18  ;;  %vm2969_vm5 = vcmp.ge.f32.partialorder %v2937_v55, 0.0  ;;  %v3001_v47 = vmul.f32 0.2, %v2937_v55  ;;  %v2940_v4 = vadd.f32 %v5377_v25, %v2901_v34  ;;  %v2541_v53 = vpop.f32.mrf.mxu1  ;;  %v2847_v12 = vpop.f32.mrf.mxu0 }
 0x1ff   : > { %v3035_v17 = vsel %vm2971_vm4, %v2939_v46, %v3003_v48  ;;  %v2899_v31 = vadd.f32 %v2834_v63, %v2593_v8  ;;  %v2904_v5 = vadd.f32 %v4257_v37, %v2598_v29  ;;  %v2596_v6 = vadd.f32 %v2541_v53, %v2290_v14  ;;  %v3072_v29 = vld [vmem:[%s5398_s5 + $0xd8] sm:$0xff] }
 0x200   : > { %3126 = vst [vmem:[%s5431_s8 + $0x88] sm:$0xff] %v3094_v21  ;;  %v3099_v50 = vadd.f32 %v3067_v32, %v3035_v17  ;;  %v3033_v36 = vsel %vm2969_vm5, %v2937_v55, %v3001_v47  ;;  %vm2972_vm6 = vcmp.ge.f32.partialorder %v2940_v4, 0.0  ;;  %v3004_v16 = vmul.f32 0.2, %v2940_v4  ;;  %v4210_v40 = vpop.f32.mrf.mxu1  ;;  %v4258_v41 = vpop.f32.mrf.mxu0 }
 0x201   : > { %v3097_v42 = vadd.f32 %v3065_v60, %v3033_v36  ;;  %v2938_v24 = vadd.f32 %v5377_v25, %v2899_v31  ;;  %v2943_v58 = vadd.f32 %v5377_v25, %v2904_v5  ;;  %v2902_v13 = vadd.f32 %v2847_v12, %v2596_v6  ;;  %v3070_v12 = vld [vmem:[%s5398_s5 + $0xc8] sm:$0xff]  ;;  %v3075_v6 = vld [vmem:[%s5398_s5 + $0xf0] sm:$0xff] }
 0x202   : > { %v1990_v14 = vadd.f32 %v5347_v27, %v5696_v54  ;;  %v1988_v45 = vadd.f32 %v5353_v33, %v5697_v23  ;;  %3131 = vst [vmem:[%s5431_s8 + $0xb0] sm:$0xff] %v3099_v50  ;;  %v3036_v44 = vsel %vm2972_vm6, %v2940_v4, %v3004_v16  ;;  %v2599_v20 = vadd.f32 %v4210_v40, %v5547_v62  ;;  %v2544_v51 = vpop.f32.mrf.mxu1  ;;  %v2850_v15 = vpop.f32.mrf.mxu0  ;;  %v5698_v62 = vld [vmem:[#allocation39_spill] sm:$0xff] }
 0x203   : > { %3129 = vst [vmem:[%s5431_s8 + $0xa0] sm:$0xff] %v3097_v42  ;;  %v3100_v9 = vadd.f32 %v3068_v11, %v3036_v44  ;;  %vm2970_vm7 = vcmp.ge.f32.partialorder %v2938_v24, 0.0  ;;  %v3002_v57 = vmul.f32 0.2, %v2938_v24  ;;  %vm2975_vm8 = vcmp.ge.f32.partialorder %v2943_v58, 0.0 }
 0x204   : > { %v3007_v49 = vmul.f32 0.2, %v2943_v58  ;;  %v2941_v27 = vadd.f32 %v5377_v25, %v2902_v13  ;;  %v2905_v59 = vadd.f32 %v4258_v41, %v2599_v20  ;;  %v2597_v33 = vadd.f32 %v2544_v51, %v5554_v52  ;;  %v4213_v2 = vpop.f32.mrf.mxu1  ;;  %v4261_v38 = vpop.f32.mrf.mxu0  ;;  %v3076_v20 = vld [vmem:[%s5398_s5 + $0xf8] sm:$0xff] }
 0x205   : > { %v2294_v10 = vadd.f32 %v5698_v62, %v1987_v56  ;;  %3132 = vst [vmem:[%s5431_s8 + $0xb8] sm:$0xff] %v3100_v9  ;;  %v3034_v26 = vsel %vm2970_vm7, %v2938_v24, %v3002_v57  ;;  %v2602_v3 = vadd.f32 %v4213_v2, %v5557_v43  ;;  %v2297_v56 = vadd.f32 %v5349_v30, %v1990_v14 }
 0x206   : > { %v3098_v0 = vadd.f32 %v3066_v35, %v3034_v26  ;;  %v3039_v63 = vsel %vm2975_vm8, %v2943_v58, %v3007_v49  ;;  %vm2973_vm9 = vcmp.ge.f32.partialorder %v2941_v27, 0.0  ;;  %v3005_v19 = vmul.f32 0.2, %v2941_v27  ;;  %v2557_v1 = vpop.f32.mrf.mxu1  ;;  %v2863_v46 = vpop.f32.mrf.mxu0  ;;  %v3073_v58 = vld [vmem:[%s5398_s5 + $0xe0] sm:$0xff] }
 0x207   : > { %v3103_v39 = vadd.f32 %v3071_v61, %v3039_v63  ;;  %v2944_v52 = vadd.f32 %v5377_v25, %v2905_v59  ;;  %v2903_v55 = vadd.f32 %v2850_v15, %v2597_v33  ;;  %v2908_v34 = vadd.f32 %v4261_v38, %v2602_v3  ;;  %v3074_v15 = vld [vmem:[%s5398_s5 + $0xe8] sm:$0xff] }
 0x208   : > { %v2295_v8 = vadd.f32 %v5355_v22, %v1988_v45  ;;  %3130 = vst [vmem:[%s5431_s8 + $0xa8] sm:$0xff] %v3098_v0  ;;  %v3037_v43 = vsel %vm2973_vm9, %v2941_v27, %v3005_v19  ;;  %v2600_v7 = vadd.f32 %v2557_v1, %v2294_v10  ;;  %v4214_v37 = vpop.f32.mrf.mxu1  ;;  %v4262_v18 = vpop.f32.mrf.mxu0 }
 0x209   : > { %3135 = vst [vmem:[%s5431_s8 + $0xd0] sm:$0xff] %v3103_v39  ;;  %v3101_v48 = vadd.f32 %v3069_v28, %v3037_v43  ;;  %vm2976_vm10 = vcmp.ge.f32.partialorder %v2944_v52, 0.0  ;;  %v3008_v32 = vmul.f32 0.2, %v2944_v52  ;;  %v2942_v21 = vadd.f32 %v5377_v25, %v2903_v55 }
 0x20a   : > { %v2947_v47 = vadd.f32 %v5377_v25, %v2908_v34  ;;  %v2906_v30 = vadd.f32 %v2863_v46, %v2600_v7  ;;  %v2603_v60 = vadd.f32 %v4214_v37, %v2297_v56  ;;  %v2560_v22 = vpop.f32.mrf.mxu1  ;;  %v2866_v36 = vpop.f32.mrf.mxu0 }
 0x20b   : > { %3133 = vst [vmem:[%s5431_s8 + $0xc0] sm:$0xff] %v3101_v48  ;;  %v3040_v4 = vsel %vm2976_vm10, %v2944_v52, %v3008_v32  ;;  %vm2974_vm11 = vcmp.ge.f32.partialorder %v2942_v21, 0.0  ;;  %v3006_v53 = vmul.f32 0.2, %v2942_v21  ;;  %v2601_v17 = vadd.f32 %v2560_v22, %v2295_v8 }
 0x20c   : > { %v3104_v31 = vadd.f32 %v3072_v29, %v3040_v4  ;;  %vm2979_vm12 = vcmp.ge.f32.partialorder %v2947_v47, 0.0  ;;  %v3011_v5 = vmul.f32 0.2, %v2947_v47  ;;  %v2945_v50 = vadd.f32 %v5377_v25, %v2906_v30 }
 0x20d   : > { %v3038_v16 = vsel %vm2974_vm11, %v2942_v21, %v3006_v53  ;;  %v2909_v11 = vadd.f32 %v4262_v18, %v2603_v60  ;;  %v2907_v40 = vadd.f32 %v2866_v36, %v2601_v17 }
 0x20e   : > { %3136 = vst [vmem:[%s5431_s8 + $0xd8] sm:$0xff] %v3104_v31  ;;  %v3102_v41 = vadd.f32 %v3070_v12, %v3038_v16  ;;  %v3043_v42 = vsel %vm2979_vm12, %v2947_v47, %v3011_v5  ;;  %vm2977_vm13 = vcmp.ge.f32.partialorder %v2945_v50, 0.0  ;;  %v3009_v24 = vmul.f32 0.2, %v2945_v50 }
 0x20f   : > { %v3107_v13 = vadd.f32 %v3075_v6, %v3043_v42  ;;  %v2948_v54 = vadd.f32 %v5377_v25, %v2909_v11  ;;  %v2946_v14 = vadd.f32 %v5377_v25, %v2907_v40 }
 0x210   : > { %3134 = vst [vmem:[%s5431_s8 + $0xc8] sm:$0xff] %v3102_v41  ;;  %v3041_v23 = vsel %vm2977_vm13, %v2945_v50, %v3009_v24 }
 0x211   : > { %3139 = vst [vmem:[%s5431_s8 + $0xf0] sm:$0xff] %v3107_v13  ;;  %v3105_v45 = vadd.f32 %v3073_v58, %v3041_v23  ;;  %vm2980_vm14 = vcmp.ge.f32.partialorder %v2948_v54, 0.0  ;;  %v3012_v44 = vmul.f32 0.2, %v2948_v54  ;;  %vm2978_vm15 = vcmp.ge.f32.partialorder %v2946_v14, 0.0 }
 0x212   : > { %v3010_v51 = vmul.f32 0.2, %v2946_v14 }
 0x213   : > { %3137 = vst [vmem:[%s5431_s8 + $0xe0] sm:$0xff] %v3105_v45  ;;  %v3044_v9 = vsel %vm2980_vm14, %v2948_v54, %v3012_v44 }
 0x214   : > { %v3108_v57 = vadd.f32 %v3076_v20, %v3044_v9  ;;  %v3042_v35 = vsel %vm2978_vm15, %v2946_v14, %v3010_v51 }
 0x215   : > { %v3106_v49 = vadd.f32 %v3074_v15, %v3042_v35 }
 0x216   : > { %3140 = vst [vmem:[%s5431_s8 + $0xf8] sm:$0xff] %v3108_v57 }
 0x217   : > { %3138 = vst [vmem:[%s5431_s8 + $0xe8] sm:$0xff] %v3106_v49 }
 0x218 PF: > { %s14_s15 = sadd.s32 1, %s4366_s15  }
 0x219   : > { %p11_p4 = scmp.ge.s32.totalorder %s14_s15, 4  }
 0x21b   :  { %13 = sbr.rel (!%p11_p4) target bundleno = 1 (0x1), region = 79 }

// kernel: unet_disc_forward.6
= control target key start
LH: loop header
LB: loop body
LE: loop exit
PB: predicated region body
PF: predicated region fallthrough
CT: control target
= control target key end

     0   :  { %s3882_s15 = smov 0   ;;  %s4792_s0 = inlined_call_operand.vmem [shape: f32[2,9,9,512], index: 0, kind: input, shape index: {}]   ;;  %s4793_s1 = inlined_call_operand.vmem [shape: bf16[4,512,128], index: 1, kind: input, shape index: {}]   ;;  %s4794_s2 = inlined_call_operand.vmem [shape: f32[1,128], index: 2, kind: input, shape index: {}]   ;;  %s4795_s3 = inlined_call_operand.vmem [shape: bf16[256,64], index: 3, kind: input, shape index: {}]   ;;  %s4796_s4 = inlined_call_operand.vmem [shape: f32[2,16,16,128], index: 4, kind: output, shape index: {}]  }
   0x1 LB: > { %s2856_s16 = sadd.s32 4294967295, %s3855_s15   ;;  %p2860_p0 = scmp.ge.s32.totalorder %s3855_s15, 1  ;;  %s3855_s15 = sphi %s3882_s15, %s14_s15  }
   0x2   : > { %p162_p1 = scmp.lt.s32.totalorder %s3855_s15, 3 }
   0x4   : > { %p163_p2 = pnand %p2860_p0, %p162_p1 }
   0x5   : > { %p188_p3 = scmp.lt.s32.totalorder (!%p163_p2), %s2856_s16, 1 }
   0x6   : > { %166 = sbr.rel (%p163_p2) target bundleno = 680 (0x2a8), region = 36 }
   0xb   : > { %v3705_v0 = vld [vmem:[%s4793_s1 + $0x178] sm:$0xff]   ;;  %v3707_v2 = vld [vmem:[%s4793_s1 + $0x170] sm:$0xff]   ;;  %v3709_v4 = vld [vmem:[%s4793_s1 + $0x168] sm:$0xff]   ;;  %s4798_s16 = smov (!%p188_p3, %s2856_s16), 1  ;;  %vm439_vm0 = vcmask 1046528   ;;  %vm2559_vm1 = vcmask 523264  }
   0xc   : > { %v3706_v1 = vld [vmem:[%s4793_s1 + $0x138] sm:$0xff]   ;;  %3316 = vmatprep.subr.bf16.mxu1 %v3705_v0  ;;  %v3708_v3 = vld [vmem:[%s4793_s1 + $0x130] sm:$0xff]   ;;  %v3710_v5 = vld [vmem:[%s4793_s1 + $0x128] sm:$0xff]   ;;  %s3696_s5 = smul.u32 576, %s4798_s16  ;;  %s3315_s6 = sshll.u32 %s4798_s16, 8 }
   0xd   : > { %3317 = vmatpush3.bf16.msra.mxu1 %v3706_v1  ;;  %v3711_v6 = vld [vmem:[%s4793_s1 + $0x160] sm:$0xff]   ;;  %v3713_v8 = vld [vmem:[%s4793_s1 + $0x158] sm:$0xff]   ;;  %v3715_v10 = vld [vmem:[%s4793_s1 + $0x150] sm:$0xff]   ;;  %s4755_s9 = scalar_lea.vmem %s4796_s4, %s3315_s6 }
   0xe   : > { %3318 = vmatprep.subr.bf16.mxu1 %v3707_v2  ;;  %v3712_v7 = vld [vmem:[%s4793_s1 + $0x120] sm:$0xff]   ;;  %s3923_s12 = scalar_lea.vmem %s4792_s0, %s3696_s5  ;;  %v3714_v9 = vld [vmem:[%s4793_s1 + $0x118] sm:$0xff]   ;;  %v3716_v18 = vld [vmem:[%s4793_s1 + $0x110] sm:$0xff]  }
   0xf   : > { %v312_v11 = vld [vmem:[%s3923_s12 + $0x8] sm:$0xfe]  ;;  %v316_v12 = vld [vmem:[%s3923_s12 + $0x28] sm:$0x1]  ;;  %v311_v20 = vld [vmem:[%s3923_s12] sm:$0xfe] }
  0x10   : > { %v320_v13 = vld [vmem:[%s3923_s12 + $0x48] sm:$0xfe]  ;;  %v324_v14 = vld [vmem:[%s3923_s12 + $0x68] sm:$0x1]  ;;  %v443_v15 = vrot.slane %v312_v11, 1  ;;  %v444_v16 = vrot.slane %v316_v12, 1 }
  0x11   : > { %3319 = vmatpush3.bf16.msra.mxu1 %v3708_v3  ;;  %v455_v17 = vrot.slane %v320_v13, 1  ;;  %v456_v19 = vrot.slane %v324_v14, 1  ;;  %v315_v21 = vld [vmem:[%s3923_s12 + $0x20] sm:$0x1]  ;;  %v3717_v22 = vld [vmem:[%s4793_s1 + $0x148] sm:$0xff]   ;;  %v440_v27 = vrot.slane %v311_v20, 1 }
  0x12   : > { %3320 = vmatprep.subr.bf16.mxu1 %v3709_v4  ;;  %v445_v23 = vsel %vm439_vm0, %v443_v15, %v444_v16  ;;  %v319_v24 = vld [vmem:[%s3923_s12 + $0x40] sm:$0xfe]  ;;  %v323_v25 = vld [vmem:[%s3923_s12 + $0x60] sm:$0x1]  ;;  %v441_v28 = vrot.slane %v315_v21, 1  ;;  %v3718_v29 = vld [vmem:[%s4793_s1 + $0x108] sm:$0xff]  }
  0x13   : > { %v457_v26 = vsel %vm439_vm0, %v455_v17, %v456_v19  ;;  %v452_v31 = vrot.slane %v319_v24, 1  ;;  %v3723_v32 = vld [vmem:[%s4793_s1 + $0x78] sm:$0xff]   ;;  %v453_v33 = vrot.slane %v323_v25, 1  ;;  %v3719_v35 = vld [vmem:[%s4793_s1 + $0x140] sm:$0xff]   ;;  %v3727_v38 = vld [vmem:[%s4793_s1 + $0x70] sm:$0xff]  }
  0x14   : > { %v569_v30 = vpack.c.bf16 %v457_v26, %v445_v23  ;;  %v3724_v34 = vld [vmem:[%s4793_s1 + $0x38] sm:$0xff]   ;;  %3396 = vmatprep.subr.bf16.mxu0 %v3723_v32  ;;  %v3720_v36 = vld [vmem:[%s4793_s1 + $0x100] sm:$0xff]   ;;  %v328_v39 = vld [vmem:[%s3923_s12 + $0x88] sm:$0xfe]  ;;  %v442_v40 = vsel %vm439_vm0, %v440_v27, %v441_v28 }
  0x15   : > { %3321 = vmatpush3.bf16.msra.mxu1 %v3710_v5  ;;  %3397 = vmatpush3.bf16.msra.mxu0 %v3724_v34  ;;  %v3721_v37 = vld [vmem:[%s4793_s1 + $0x1f8] sm:$0xff]   ;;  %v454_v41 = vsel %vm439_vm0, %v452_v31, %v453_v33  ;;  %v332_v42 = vld [vmem:[%s3923_s12 + $0xa8] sm:$0x1]  ;;  %v336_v43 = vld [vmem:[%s3923_s12 + $0xc8] sm:$0xfe]  ;;  %v467_v45 = vrot.slane %v328_v39, 1 }
  0x16   : > { %3322 = vmatprep.subr.bf16.mxu1 %v3711_v6  ;;  %873 = vmatprep.mubr.bf16.mxu1 %v569_v30  ;;  %v340_v44 = vld [vmem:[%s3923_s12 + $0xe8] sm:$0x1]  ;;  %v468_v46 = vrot.slane %v332_v42, 1  ;;  %v479_v47 = vrot.slane %v336_v43, 1  ;;  %v3728_v49 = vld [vmem:[%s4793_s1 + $0x30] sm:$0xff]   ;;  %v568_v51 = vpack.c.bf16 %v454_v41, %v442_v40  ;;  %v3722_v57 = vld [vmem:[%s4793_s1 + $0x1b8] sm:$0xff]  }
  0x17   : > { %3398 = vmatprep.subr.bf16.mxu0 %v3727_v38  ;;  %v480_v48 = vrot.slane %v340_v44, 1  ;;  %v327_v50 = vld [vmem:[%s3923_s12 + $0x80] sm:$0xfe]  ;;  %v331_v54 = vld [vmem:[%s3923_s12 + $0xa0] sm:$0x1]  ;;  %v3725_v62 = vld [vmem:[%s4793_s1 + $0x1f0] sm:$0xff]  }
  0x18   : > { %v469_v52 = vsel %vm439_vm0, %v467_v45, %v468_v46  ;;  %v335_v55 = vld [vmem:[%s3923_s12 + $0xc0] sm:$0xfe]  ;;  %v339_v56 = vld [vmem:[%s3923_s12 + $0xe0] sm:$0x1]  ;;  %v464_v59 = vrot.slane %v327_v50, 1  ;;  %v465_v60 = vrot.slane %v331_v54, 1 }
  0x19   : > { %3323 = vmatpush3.bf16.msra.mxu1 %v3712_v7  ;;  %v481_v53 = vsel %vm439_vm0, %v479_v47, %v480_v48  ;;  %3399 = vmatpush3.bf16.msra.mxu0 %v3728_v49  ;;  %v476_v61 = vrot.slane %v335_v55, 1  ;;  %v477_v63 = vrot.slane %v339_v56, 1  ;;  %v3726_v0 = vld [vmem:[%s4793_s1 + $0x1b0] sm:$0xff]   ;;  %v3731_v1 = vld [vmem:[%s4793_s1 + $0x68] sm:$0xff]   ;;  %v3736_v20 = vld [vmem:[%s4793_s1 + $0x20] sm:$0xff]  }
  0x1a   : > { %3324 = vmatprep.subr.bf16.mxu1 %v3713_v8  ;;  %v573_v58 = vpack.c.bf16 %v481_v53, %v469_v52  ;;  %v466_v2 = vsel %vm439_vm0, %v464_v59, %v465_v60  ;;  %v3732_v4 = vld [vmem:[%s4793_s1 + $0x28] sm:$0xff]   ;;  %3400 = vmatprep.subr.bf16.mxu0 %v3731_v1  ;;  %v3733_v8 = vld [vmem:[%s4793_s1 + $0x1e0] sm:$0xff]   ;;  %v3737_v32 = vld [vmem:[%s4793_s1 + $0x1d8] sm:$0xff]  }
  0x1b   : > { %v478_v3 = vsel %vm439_vm0, %v476_v61, %v477_v63  ;;  %v3729_v5 = vld [vmem:[%s4793_s1 + $0x1e8] sm:$0xff]   ;;  %v343_v21 = vld [vmem:[%s3923_s12 + $0x100] sm:$0xfe]  ;;  %v355_v25 = vld [vmem:[%s3923_s12 + $0x160] sm:$0x1] }
  0x1c   : > { %v3730_v6 = vld [vmem:[%s4793_s1 + $0x1a8] sm:$0xff]   ;;  %v572_v7 = vpack.c.bf16 %v478_v3, %v466_v2  ;;  %v351_v24 = vld [vmem:[%s3923_s12 + $0x140] sm:$0xfe]  ;;  %v488_v26 = vrot.slane %v343_v21, 1  ;;  %v501_v30 = vrot.slane %v355_v25, 1  ;;  %v3738_v34 = vld [vmem:[%s4793_s1 + $0x198] sm:$0xff]  }
  0x1d   : > { %3325 = vmatpush3.bf16.msra.mxu1 %v3714_v9  ;;  %3401 = vmatpush3.bf16.msra.mxu0 %v3732_v4  ;;  %v3735_v9 = vld [vmem:[%s4793_s1 + $0x60] sm:$0xff]   ;;  %v348_v11 = vld [vmem:[%s3923_s12 + $0x128] sm:$0x1]  ;;  %v352_v12 = vld [vmem:[%s3923_s12 + $0x148] sm:$0xfe] }
  0x1e   : > { %3326 = vmatprep.subr.bf16.mxu1 %v3715_v10  ;;  %v344_v10 = vld [vmem:[%s3923_s12 + $0x108] sm:$0xfe]  ;;  %v356_v13 = vld [vmem:[%s3923_s12 + $0x168] sm:$0x1]  ;;  %v492_v15 = vrot.slane %v348_v11, 1  ;;  %3402 = vmatprep.subr.bf16.mxu0 %v3735_v9  ;;  %v503_v16 = vrot.slane %v352_v12, 1 }
  0x1f   : > { %v491_v14 = vrot.slane %v344_v10, 1  ;;  %v504_v17 = vrot.slane %v356_v13, 1  ;;  %v3741_v38 = vld [vmem:[%s4793_s1 + $0x1d0] sm:$0xff]   ;;  %v360_v41 = vld [vmem:[%s3923_s12 + $0x188] sm:$0xfe]  ;;  %v3749_v4 = vld [vmem:[%s4793_s1 + $0x1c0] sm:$0xff]  }
  0x20   : > { %v3742_v39 = vld [vmem:[%s4793_s1 + $0x190] sm:$0xff]   ;;  %v364_v42 = vld [vmem:[%s3923_s12 + $0x1a8] sm:$0x1]  ;;  %v368_v43 = vld [vmem:[%s3923_s12 + $0x1c8] sm:$0xfe]  ;;  %v515_v45 = vrot.slane %v360_v41, 1 }
  0x21   : > { %3327 = vmatpush3.bf16.msra.mxu1 %v3716_v18  ;;  %v3734_v18 = vld [vmem:[%s4793_s1 + $0x1a0] sm:$0xff]   ;;  %v493_v19 = vsel %vm439_vm0, %v491_v14, %v492_v15  ;;  %v505_v23 = vsel %vm439_vm0, %v503_v16, %v504_v17  ;;  %3403 = vmatpush3.bf16.msra.mxu0 %v3736_v20  ;;  %v3743_v40 = vld [vmem:[%s4793_s1 + $0x50] sm:$0xff]   ;;  %v372_v44 = vld [vmem:[%s3923_s12 + $0x1e8] sm:$0x1]  ;;  %v516_v46 = vrot.slane %v364_v42, 1  ;;  %v527_v47 = vrot.slane %v368_v43, 1 }
  0x22   : > { %3328 = vmatprep.subr.bf16.mxu1 %v3717_v22  ;;  %v347_v22 = vld [vmem:[%s3923_s12 + $0x120] sm:$0x1]  ;;  %v577_v28 = vpack.c.bf16 %v505_v23, %v493_v19  ;;  %v528_v48 = vrot.slane %v372_v44, 1  ;;  %v3744_v50 = vld [vmem:[%s4793_s1 + $0x10] sm:$0xff]   ;;  %v367_v54 = vld [vmem:[%s3923_s12 + $0x1c0] sm:$0xfe] }
  0x23   : > { %v489_v27 = vrot.slane %v347_v22, 1  ;;  %v517_v49 = vsel %vm439_vm0, %v515_v45, %v516_v46  ;;  %v363_v52 = vld [vmem:[%s3923_s12 + $0x1a0] sm:$0x1]  ;;  %v524_v59 = vrot.slane %v367_v54, 1  ;;  %v3747_v2 = vld [vmem:[%s4793_s1 + $0x48] sm:$0xff]  }
  0x24   : > { %v529_v53 = vsel %vm439_vm0, %v527_v47, %v528_v48  ;;  %v371_v55 = vld [vmem:[%s3923_s12 + $0x1e0] sm:$0x1]  ;;  %v3748_v3 = vld [vmem:[%s4793_s1 + $0x8] sm:$0xff]   ;;  %v322_v9 = vld [vmem:[%s3923_s12 + $0x58] sm:$0xfe] }
  0x25   : > { %3329 = vmatpush3.bf16.msra.mxu1 %v3718_v29  ;;  %v500_v29 = vrot.slane %v351_v24, 1  ;;  %v490_v31 = vsel %vm439_vm0, %v488_v26, %v489_v27  ;;  %v525_v60 = vrot.slane %v371_v55, 1  ;;  %v326_v10 = vld [vmem:[%s3923_s12 + $0x78] sm:$0x1]  ;;  %v461_v13 = vrot.slane %v322_v9, 1  ;;  %v3752_v16 = vld [vmem:[%s4793_s1] sm:$0xff]  }
  0x26   : > { %3330 = vmatprep.subr.bf16.mxu1 %v3719_v35  ;;  %v462_v14 = vrot.slane %v326_v10, 1  ;;  %v313_v17 = vld [vmem:[%s3923_s12 + $0x10] sm:$0xfe]  ;;  %v325_v21 = vld [vmem:[%s3923_s12 + $0x70] sm:$0x1] }
  0x27   : > { %v502_v33 = vsel %vm439_vm0, %v500_v29, %v501_v30  ;;  %v526_v63 = vsel %vm439_vm0, %v524_v59, %v525_v60  ;;  %v321_v20 = vld [vmem:[%s3923_s12 + $0x50] sm:$0xfe]  ;;  %v446_v22 = vrot.slane %v313_v17, 1  ;;  %v459_v26 = vrot.slane %v325_v21, 1  ;;  %v200_v29 = vld [vmem:[%s3923_s12 + $0x8] sm:$0xff] }
  0x28   : > { %v576_v35 = vpack.c.bf16 %v502_v33, %v490_v31  ;;  %v463_v19 = vsel %vm439_vm0, %v461_v13, %v462_v14  ;;  %v458_v25 = vrot.slane %v321_v20, 1  ;;  %v4106_v30 = vld [vmem:[%s3923_s12 + $0x48] sm:$0xff]  ;;  %v3754_v33 = vld [vmem:[%s4793_s1 + $0xb8] sm:$0xff]   ;;  %v329_v48 = vld [vmem:[%s3923_s12 + $0x90] sm:$0xfe] }
  0x29   : > { %3331 = vmatpush3.bf16.msra.mxu1 %v3720_v36  ;;  %v3739_v36 = vld [vmem:[%s4793_s1 + $0x58] sm:$0xff]   ;;  %v470_v54 = vrot.slane %v329_v48, 1  ;;  %v3757_v59 = vld [vmem:[%s4793_s1 + $0xe8] sm:$0xff]   ;;  %v349_v17 = vld [vmem:[%s3923_s12 + $0x130] sm:$0x1] }
  0x2a   : > { %3356 = vmatprep.subr.bf16.mxu1 %v3721_v37  ;;  %v3740_v37 = vld [vmem:[%s4793_s1 + $0x18] sm:$0xff]   ;;  %3404 = vmatprep.subr.bf16.mxu0 %v3739_v36  ;;  %v460_v31 = vsel %vm439_vm0, %v458_v25, %v459_v26  ;;  %v4115_v36 = vld [vmem:[%s3923_s12 + $0x40] sm:$0xff]  ;;  %v4138_v60 = vld [vmem:[%s3923_s12 + $0x88] sm:$0xff] }
  0x2b   : > { %3405 = vmatpush3.bf16.msra.mxu0 %v3740_v37  ;;  %v334_v41 = vld [vmem:[%s3923_s12 + $0xb8] sm:$0x1]  ;;  %v338_v42 = vld [vmem:[%s3923_s12 + $0xd8] sm:$0xfe] }
  0x2c   : > { %874 = vmatmul.mubr.bf16.vlgmr.msra.gmra.mxu1 %v568_v51  ;;  %3406 = vmatprep.subr.bf16.mxu0 %v3743_v40  ;;  %v359_v51 = vld [vmem:[%s3923_s12 + $0x180] sm:$0xfe]  ;;  %v330_v40 = vld [vmem:[%s3923_s12 + $0x98] sm:$0xfe]  ;;  %v342_v43 = vld [vmem:[%s3923_s12 + $0xf8] sm:$0x1] }
  0x2d   : > { %3357 = vmatpush3.bf16.msra.mxu1 %v3722_v57  ;;  %881 = vmatprep.mubr.bf16.mxu1 %v573_v58  ;;  %v512_v56 = vrot.slane %v359_v51, 1  ;;  %v513_v57 = vrot.slane %v363_v52, 1  ;;  %v581_v58 = vpack.c.bf16 %v529_v53, %v517_v49  ;;  %v473_v44 = vrot.slane %v330_v40, 1  ;;  %v333_v49 = vld [vmem:[%s3923_s12 + $0xb0] sm:$0x1] }
  0x2e   : > { %3358 = vmatprep.subr.bf16.mxu1 %v3725_v62  ;;  %v3745_v62 = vld [vmem:[%s4793_s1 + $0x1c8] sm:$0xff]   ;;  %v474_v45 = vrot.slane %v334_v41, 1  ;;  %v485_v46 = vrot.slane %v338_v42, 1  ;;  %v486_v47 = vrot.slane %v342_v43, 1  ;;  %v341_v51 = vld [vmem:[%s3923_s12 + $0xf0] sm:$0x1] }
  0x2f   : > { %3407 = vmatpush3.bf16.msra.mxu0 %v3744_v50  ;;  %v514_v61 = vsel %vm439_vm0, %v512_v56, %v513_v57  ;;  %v337_v50 = vld [vmem:[%s3923_s12 + $0xd0] sm:$0xfe]  ;;  %v471_v55 = vrot.slane %v333_v49, 1  ;;  %v350_v9 = vld [vmem:[%s3923_s12 + $0x138] sm:$0x1] }
  0x30   : > { %v580_v1 = vpack.c.bf16 %v526_v63, %v514_v61  ;;  %3408 = vmatprep.subr.bf16.mxu0 %v3747_v2  ;;  %v475_v52 = vsel %vm439_vm0, %v473_v44, %v474_v45  ;;  %v487_v53 = vsel %vm439_vm0, %v485_v46, %v486_v47  ;;  %v482_v57 = vrot.slane %v337_v50, 1  ;;  %v4141_v61 = vld [vmem:[%s3923_s12 + $0xc8] sm:$0xff]  ;;  %v4151_v2 = vld [vmem:[%s3923_s12 + $0x80] sm:$0xff]  ;;  %v354_v10 = vld [vmem:[%s3923_s12 + $0x158] sm:$0xfe] }
  0x31   : > { %3359 = vmatpush3.bf16.msra.mxu1 %v3726_v0  ;;  %v3746_v0 = vld [vmem:[%s4793_s1 + $0x188] sm:$0xff]   ;;  %v575_v56 = vpack.c.bf16 %v487_v53, %v475_v52  ;;  %v236_v63 = vpack.c.bf16 %v4141_v61, %v4138_v60  ;;  %v498_v13 = vrot.slane %v350_v9, 1  ;;  %v509_v14 = vrot.slane %v354_v10, 1  ;;  %v3763_v40 = vld [vmem:[%s4793_s1 + $0xd0] sm:$0xff]   ;;  %v362_v42 = vld [vmem:[%s3923_s12 + $0x198] sm:$0xfe] }
  0x32   : > { %3360 = vmatprep.subr.bf16.mxu1 %v3729_v5  ;;  %v3750_v5 = vld [vmem:[%s4793_s1 + $0x180] sm:$0xff]   ;;  %v3764_v41 = vld [vmem:[%s4793_s1 + $0x90] sm:$0xff]   ;;  %v366_v43 = vld [vmem:[%s3923_s12 + $0x1b8] sm:$0x1]  ;;  %v521_v46 = vrot.slane %v362_v42, 1  ;;  %v1327_v10 = vpack.c.bf16 %v4138_v60, %v4106_v30 }
  0x33   : > { %3409 = vmatpush3.bf16.msra.mxu0 %v3748_v3  ;;  %v4154_v3 = vld [vmem:[%s3923_s12 + $0xc0] sm:$0xff]  ;;  %v370_v44 = vld [vmem:[%s3923_s12 + $0x1d8] sm:$0xfe]  ;;  %v374_v45 = vld [vmem:[%s3923_s12 + $0x1f8] sm:$0x1]  ;;  %v522_v47 = vrot.slane %v366_v43, 1 }
  0x34   : > { %882 = vmatmul.mubr.bf16.gmra.mxu1 %v572_v7  ;;  %v314_v7 = vld [vmem:[%s3923_s12 + $0x18] sm:$0xfe]  ;;  %v533_v48 = vrot.slane %v370_v44, 1  ;;  %v534_v49 = vrot.slane %v374_v45, 1  ;;  %v361_v50 = vld [vmem:[%s3923_s12 + $0x190] sm:$0xfe] }
  0x35   : > { %3361 = vmatpush3.bf16.msra.mxu1 %v3730_v6  ;;  %889 = vmatprep.mubr.bf16.mxu1 %v577_v28  ;;  %v3751_v6 = vld [vmem:[%s4793_s1 + $0x40] sm:$0xff]   ;;  %v449_v11 = vrot.slane %v314_v7, 1  ;;  %v3753_v28 = vld [vmem:[%s4793_s1 + $0xf8] sm:$0xff]   ;;  %v369_v52 = vld [vmem:[%s3923_s12 + $0x1d0] sm:$0xfe] }
  0x36   : > { %3362 = vmatprep.subr.bf16.mxu1 %v3733_v8  ;;  %v318_v8 = vld [vmem:[%s3923_s12 + $0x38] sm:$0x1]  ;;  %3410 = vmatprep.subr.bf16.mxu0 %v3751_v6  ;;  %v3759_v6 = vld [vmem:[%s4793_s1 + $0xe0] sm:$0xff]   ;;  %v373_v53 = vld [vmem:[%s3923_s12 + $0x1f0] sm:$0x1] }
  0x37   : > { %v450_v12 = vrot.slane %v318_v8, 1  ;;  %3411 = vmatpush3.bf16.msra.mxu0 %v3752_v16  ;;  %v3760_v7 = vld [vmem:[%s4793_s1 + $0xa0] sm:$0xff]   ;;  %v346_v8 = vld [vmem:[%s3923_s12 + $0x118] sm:$0xfe]  ;;  %v345_v16 = vld [vmem:[%s3923_s12 + $0x110] sm:$0xfe] }
  0x38   : > { %v4234_v9 = vld [vmem:[%s3923_s12 + $0x1c0] sm:$0xff]  ;;  %v3781_v43 = vld [vmem:[%s4793_s1 + $0x2e8] sm:$0xff]   ;;  %v3783_v45 = vld [vmem:[%s4793_s1 + $0x258] sm:$0xff]  }
  0x39   : > { %3363 = vmatpush3.bf16.msra.mxu1 %v3734_v18  ;;  %v451_v15 = vsel %vm439_vm0, %v449_v11, %v450_v12  ;;  %v317_v18 = vld [vmem:[%s3923_s12 + $0x30] sm:$0x1]  ;;  %v358_v11 = vld [vmem:[%s3923_s12 + $0x178] sm:$0x1]  ;;  %v497_v12 = vrot.slane %v346_v8, 1  ;;  %v4231_v8 = vld [vmem:[%s3923_s12 + $0x180] sm:$0xff] }
  0x3a   : > { %3364 = vmatprep.subr.bf16.mxu1 %v3737_v32  ;;  %v447_v23 = vrot.slane %v317_v18, 1  ;;  %v571_v24 = vpack.c.bf16 %v463_v19, %v451_v15  ;;  %v232_v32 = vpack.c.bf16 %v4106_v30, %v200_v29  ;;  %v510_v15 = vrot.slane %v358_v11, 1  ;;  %v353_v18 = vld [vmem:[%s3923_s12 + $0x150] sm:$0xfe]  ;;  %v357_v19 = vld [vmem:[%s3923_s12 + $0x170] sm:$0x1] }
  0x3b   : > { %v499_v20 = vsel %vm439_vm0, %v497_v12, %v498_v13  ;;  %v506_v25 = vrot.slane %v353_v18, 1  ;;  %v507_v26 = vrot.slane %v357_v19, 1  ;;  %v4181_v29 = vld [vmem:[%s3923_s12 + $0x148] sm:$0xff]  ;;  %v243_v12 = vpack.c.bf16 %v4234_v9, %v4231_v8  ;;  %v3767_v13 = vld [vmem:[%s4793_s1 + $0x278] sm:$0xff]   ;;  %v3769_v30 = vld [vmem:[%s4793_s1 + $0xc0] sm:$0xff]  }
  0x3c   : > { %890 = vmatmul.mubr.bf16.gmra.mxu1 %v576_v35  ;;  %v448_v27 = vsel %vm439_vm0, %v446_v22, %v447_v23  ;;  %v199_v35 = vld [vmem:[%s3923_s12] sm:$0xff]  ;;  %1195 = vmatprep.mubr.bf16.mxu0 %v232_v32  ;;  %v511_v21 = vsel %vm439_vm0, %v509_v14, %v510_v15  ;;  %v494_v22 = vrot.slane %v345_v16, 1  ;;  %v495_v23 = vrot.slane %v349_v17, 1  ;;  %v3768_v14 = vld [vmem:[%s4793_s1 + $0x238] sm:$0xff]   ;;  %v3771_v15 = vld [vmem:[%s4793_s1 + $0x270] sm:$0xff]  }
  0x3d   : > { %3365 = vmatpush3.bf16.msra.mxu1 %v3738_v34  ;;  %897 = vmatprep.mubr.bf16.mxu1 %v581_v58  ;;  %v570_v34 = vpack.c.bf16 %v460_v31, %v448_v27  ;;  %v231_v37 = vpack.c.bf16 %v4115_v36, %v199_v35  ;;  %v483_v58 = vrot.slane %v341_v51, 1  ;;  %v3761_v27 = vld [vmem:[%s4793_s1 + $0xd8] sm:$0xff]   ;;  %v4191_v35 = vld [vmem:[%s3923_s12 + $0x100] sm:$0xff]  ;;  %v365_v51 = vld [vmem:[%s3923_s12 + $0x1b0] sm:$0x1] }
  0x3e   : > { %3366 = vmatprep.subr.bf16.mxu1 %v3741_v38  ;;  %v3755_v38 = vld [vmem:[%s4793_s1 + $0xf0] sm:$0xff]   ;;  %v496_v31 = vsel %vm439_vm0, %v494_v22, %v495_v23  ;;  %3476 = vmatprep.subr.bf16.mxu0 %v3767_v13  ;;  %v3770_v60 = vld [vmem:[%s4793_s1 + $0x80] sm:$0xff]   ;;  %v202_v16 = vld [vmem:[%s3923_s12 + $0x18] sm:$0xff] }
  0x3f   : > { %1196 = vmatmul.mubr.bf16.vlgmr.msra.gmra.mxu0 %v231_v37  ;;  %v4194_v37 = vld [vmem:[%s3923_s12 + $0x140] sm:$0xff]  ;;  %v4257_v17 = vld [vmem:[%s3923_s12 + $0x58] sm:$0xff]  ;;  %v3772_v19 = vld [vmem:[%s4793_s1 + $0x230] sm:$0xff]  }
  0x40   : > { %1203 = vmatprep.mubr.bf16.mxu0 %v236_v63  ;;  %v3765_v63 = vld [vmem:[%s4793_s1 + $0xc8] sm:$0xff]   ;;  %3477 = vmatpush3.bf16.msra.mxu0 %v3768_v14  ;;  %v234_v18 = vpack.c.bf16 %v4257_v17, %v202_v16  ;;  %v3773_v23 = vld [vmem:[%s4793_s1 + $0x2f8] sm:$0xff]   ;;  %v4384_v13 = vld [vmem:[%s3923_s12 + $0x1d0] sm:$0xff] }
  0x41   : > { %3367 = vmatpush3.bf16.msra.mxu1 %v3742_v39  ;;  %v3756_v39 = vld [vmem:[%s4793_s1 + $0xb0] sm:$0xff]   ;;  %3478 = vmatprep.subr.bf16.mxu0 %v3771_v15  ;;  %v3782_v44 = vld [vmem:[%s4793_s1 + $0x2a8] sm:$0xff]   ;;  %v1326_v15 = vpack.c.bf16 %v4151_v2, %v4115_v36  ;;  %v3800_v36 = vld [vmem:[%s4793_s1 + $0x338] sm:$0xff]  }
  0x42   : > { %3368 = vmatprep.subr.bf16.mxu1 %v3745_v62  ;;  %v472_v62 = vsel %vm439_vm0, %v470_v54, %v471_v55  ;;  %v523_v54 = vsel %vm439_vm0, %v521_v46, %v522_v47  ;;  %v535_v55 = vsel %vm439_vm0, %v533_v48, %v534_v49  ;;  %v3784_v46 = vld [vmem:[%s4793_s1 + $0x218] sm:$0xff]   ;;  %v3785_v47 = vld [vmem:[%s4793_s1 + $0x2e0] sm:$0xff]   ;;  %v3787_v49 = vld [vmem:[%s4793_s1 + $0x250] sm:$0xff]  }
  0x43   : > { %v3786_v48 = vld [vmem:[%s4793_s1 + $0x2a0] sm:$0xff]   ;;  %v3798_v16 = vld [vmem:[%s4793_s1 + $0x288] sm:$0xff]  }
  0x44   : > { %898 = vmatmul.mubr.bf16.gmra.mxu1 %v580_v1  ;;  %v484_v1 = vsel %vm439_vm0, %v482_v57, %v483_v58  ;;  %v519_v57 = vrot.slane %v365_v51, 1  ;;  %v583_v58 = vpack.c.bf16 %v535_v55, %v523_v54  ;;  %3479 = vmatpush3.bf16.msra.mxu0 %v3772_v19  ;;  %v4333_v51 = vld [vmem:[%s3923_s12 + $0x158] sm:$0xff]  ;;  %v4341_v54 = vld [vmem:[%s3923_s12 + $0x110] sm:$0xff] }
  0x45   : > { %3369 = vmatpush3.bf16.msra.mxu1 %v3746_v0  ;;  %938 = vmatprep.mubr.bf16.mxu1 %v571_v24  ;;  %v3758_v0 = vld [vmem:[%s4793_s1 + $0xa8] sm:$0xff]   ;;  %v579_v24 = vpack.c.bf16 %v511_v21, %v499_v20  ;;  %v201_v20 = vld [vmem:[%s3923_s12 + $0x10] sm:$0xff] }
  0x46   : > { %3370 = vmatprep.subr.bf16.mxu1 %v3749_v4  ;;  %v574_v4 = vpack.c.bf16 %v484_v1, %v472_v62  ;;  %v531_v62 = vrot.slane %v373_v53, 1  ;;  %v4221_v1 = vld [vmem:[%s3923_s12 + $0x1c8] sm:$0xff]  ;;  %v4265_v21 = vld [vmem:[%s3923_s12 + $0x50] sm:$0xff] }
  0x47   : > { %v233_v22 = vpack.c.bf16 %v4265_v21, %v201_v20  ;;  %v3788_v53 = vld [vmem:[%s4793_s1 + $0x210] sm:$0xff]  }
  0x48   : > { %v4344_v55 = vld [vmem:[%s3923_s12 + $0x150] sm:$0xff] }
  0x49   : > { %3371 = vmatpush3.bf16.msra.mxu1 %v3750_v5  ;;  %v235_v5 = vpack.c.bf16 %v4154_v3, %v4151_v2  ;;  %v3801_v2 = vld [vmem:[%s4793_s1 + $0x2c0] sm:$0xff]   ;;  %v3804_v20 = vld [vmem:[%s4793_s1 + $0x330] sm:$0xff]  }
  0x4a   : > { %3436 = vmatprep.subr.bf16.mxu1 %v3753_v28  ;;  %v4178_v28 = vld [vmem:[%s3923_s12 + $0x108] sm:$0xff] }
  0x4b   : > { %1204 = vmatmul.mubr.bf16.gmra.mxu0 %v235_v5  ;;  %v240_v32 = vpack.c.bf16 %v4181_v29, %v4178_v28 }
  0x4c   : > { %939 = vmatmul.mubr.bf16.vlgmr.msra.gmra.mxu1 %v570_v34  ;;  %v508_v34 = vsel %vm439_vm0, %v506_v25, %v507_v26  ;;  %v3775_v25 = vld [vmem:[%s4793_s1 + $0x268] sm:$0xff]  }
  0x4d   : > { %3437 = vmatpush3.bf16.msra.mxu1 %v3754_v33  ;;  %946 = vmatprep.mubr.bf16.mxu1 %v575_v56  ;;  %v3762_v33 = vld [vmem:[%s4793_s1 + $0x98] sm:$0xff]   ;;  %v518_v56 = vrot.slane %v361_v50, 1  ;;  %v3776_v26 = vld [vmem:[%s4793_s1 + $0x228] sm:$0xff]  }
  0x4e   : > { %3438 = vmatprep.subr.bf16.mxu1 %v3755_v38  ;;  %v578_v38 = vpack.c.bf16 %v508_v34, %v496_v31  ;;  %1211 = vmatprep.mubr.bf16.mxu0 %v240_v32  ;;  %v3778_v31 = vld [vmem:[%s4793_s1 + $0x2b0] sm:$0xff]   ;;  %v3779_v32 = vld [vmem:[%s4793_s1 + $0x260] sm:$0xff]   ;;  %v4293_v34 = vld [vmem:[%s3923_s12 + $0xd8] sm:$0xff] }
  0x4f   : > { %3480 = vmatprep.subr.bf16.mxu0 %v3775_v25  ;;  %v4330_v50 = vld [vmem:[%s3923_s12 + $0x118] sm:$0xff] }
  0x50   : > { %3481 = vmatpush3.bf16.msra.mxu0 %v3776_v26  ;;  %v3807_v26 = vld [vmem:[%s4793_s1 + $0x368] sm:$0xff]  }
  0x51   : > { %3439 = vmatpush3.bf16.msra.mxu1 %v3756_v39  ;;  %v239_v39 = vpack.c.bf16 %v4194_v37, %v4191_v35  ;;  %3482 = vmatprep.subr.bf16.mxu0 %v3779_v32 }
  0x52   : > { %3440 = vmatprep.subr.bf16.mxu1 %v3757_v59  ;;  %v530_v59 = vrot.slane %v369_v52, 1  ;;  %v242_v52 = vpack.c.bf16 %v4333_v51, %v4330_v50 }
  0x53   : > { %1212 = vmatmul.mubr.bf16.gmra.mxu0 %v239_v39  ;;  %v3780_v39 = vld [vmem:[%s4793_s1 + $0x220] sm:$0xff]  }
  0x54   : > { %947 = vmatmul.mubr.bf16.gmra.mxu1 %v574_v4  ;;  %v520_v4 = vsel %vm439_vm0, %v518_v56, %v519_v57  ;;  %3483 = vmatpush3.bf16.msra.mxu0 %v3780_v39  ;;  %v241_v56 = vpack.c.bf16 %v4344_v55, %v4341_v54  ;;  %v3789_v57 = vld [vmem:[%s4793_s1 + $0x2d8] sm:$0xff]  }
  0x55   : > { %3441 = vmatpush3.bf16.msra.mxu1 %v3758_v0  ;;  %954 = vmatprep.mubr.bf16.mxu1 %v579_v24  ;;  %v4218_v0 = vld [vmem:[%s3923_s12 + $0x188] sm:$0xff]  ;;  %v3774_v24 = vld [vmem:[%s4793_s1 + $0x2b8] sm:$0xff]  }
  0x56   : > { %3442 = vmatprep.subr.bf16.mxu1 %v3759_v6  ;;  %v244_v5 = vpack.c.bf16 %v4221_v1, %v4218_v0  ;;  %v3766_v6 = vld [vmem:[%s4793_s1 + $0x88] sm:$0xff]   ;;  %3484 = vmatprep.subr.bf16.mxu0 %v3783_v45  ;;  %v1335_v25 = vpack.c.bf16 %v4218_v0, %v4181_v29  ;;  %v3810_v29 = vld [vmem:[%s4793_s1 + $0x3b0] sm:$0xff]   ;;  %v3815_v39 = vld [vmem:[%s4793_s1 + $0x358] sm:$0xff]  }
  0x57   : > { %v3021_v45 = vld [vmem:[%s3923_s12 + $0x208] sm:$0xff] }
  0x58   : > { %1219 = vmatprep.mubr.bf16.mxu0 %v244_v5  ;;  %3485 = vmatpush3.bf16.msra.mxu0 %v3784_v46  ;;  %v3795_v5 = vld [vmem:[%s4793_s1 + $0x240] sm:$0xff]   ;;  %v1339_v46 = vpack.c.bf16 %v3021_v45, %v4221_v1  ;;  %v3825_v1 = vld [vmem:[%s4793_s1 + $0x3d0] sm:$0xff]   ;;  %v3149_v45 = vld [vmem:[%s3923_s12 + $0x128] sm:$0x1] }
  0x59   : > { %3443 = vmatpush3.bf16.msra.mxu1 %v3760_v7  ;;  %v532_v7 = vsel %vm439_vm0, %v530_v59, %v531_v62  ;;  %3486 = vmatprep.subr.bf16.mxu0 %v3787_v49  ;;  %v3791_v59 = vld [vmem:[%s4793_s1 + $0x248] sm:$0xff]  }
  0x5a   : > { %3444 = vmatprep.subr.bf16.mxu1 %v3761_v27  ;;  %v582_v11 = vpack.c.bf16 %v532_v7, %v520_v4  ;;  %v3777_v27 = vld [vmem:[%s4793_s1 + $0x2f0] sm:$0xff]   ;;  %v3792_v62 = vld [vmem:[%s4793_s1 + $0x208] sm:$0xff]   ;;  %v4373_v7 = vld [vmem:[%s3923_s12 + $0x1d8] sm:$0xff] }
  0x5b   : > { %1220 = vmatmul.mubr.bf16.gmra.mxu0 %v243_v12  ;;  %v3794_v4 = vld [vmem:[%s4793_s1 + $0x290] sm:$0xff]  }
  0x5c   : > { %955 = vmatmul.mubr.bf16.gmra.mxu1 %v578_v38  ;;  %1631 = vmatprep.mubr.bf16.mxu0 %v1327_v10  ;;  %v4381_v12 = vld [vmem:[%s3923_s12 + $0x190] sm:$0xff] }
  0x5d   : > { %3445 = vmatpush3.bf16.msra.mxu1 %v3762_v33  ;;  %962 = vmatprep.mubr.bf16.mxu1 %v583_v58  ;;  %v4290_v33 = vld [vmem:[%s3923_s12 + $0x98] sm:$0xff] }
  0x5e   : > { %3446 = vmatprep.subr.bf16.mxu1 %v3763_v40  ;;  %v238_v38 = vpack.c.bf16 %v4293_v34, %v4290_v33  ;;  %v4301_v40 = vld [vmem:[%s3923_s12 + $0x90] sm:$0xff]  ;;  %3487 = vmatpush3.bf16.msra.mxu0 %v3788_v53  ;;  %v3790_v58 = vld [vmem:[%s4793_s1 + $0x298] sm:$0xff]   ;;  %v1329_v14 = vpack.c.bf16 %v4290_v33, %v4257_v17  ;;  %v3813_v33 = vld [vmem:[%s4793_s1 + $0x3e8] sm:$0xff]  }
  0x5f   : > { %3488 = vmatprep.subr.bf16.mxu0 %v3791_v59  ;;  %v3799_v17 = vld [vmem:[%s4793_s1 + $0x378] sm:$0xff]   ;;  %v1328_v19 = vpack.c.bf16 %v4301_v40, %v4265_v21  ;;  %v3121_v59 = vld [vmem:[%s3923_s12 + $0x48] sm:$0xfe] }
  0x60   : > { %v3806_v21 = vld [vmem:[%s4793_s1 + $0x3b8] sm:$0xff]  }
  0x61   : > { %3447 = vmatpush3.bf16.msra.mxu1 %v3764_v41  ;;  %v4304_v41 = vld [vmem:[%s3923_s12 + $0xd0] sm:$0xff]  ;;  %v3023_v53 = vld [vmem:[%s3923_s12 + $0x218] sm:$0xff] }
  0x62   : > { %3448 = vmatprep.subr.bf16.mxu1 %v3765_v63  ;;  %v237_v42 = vpack.c.bf16 %v4304_v41, %v4301_v40  ;;  %v3793_v63 = vld [vmem:[%s4793_s1 + $0x2d0] sm:$0xff]   ;;  %3489 = vmatpush3.bf16.msra.mxu0 %v3792_v62  ;;  %v1332_v0 = vpack.c.bf16 %v4341_v54, %v4304_v41  ;;  %v3816_v40 = vld [vmem:[%s4793_s1 + $0x318] sm:$0xff]   ;;  %v1341_v54 = vpack.c.bf16 %v3023_v53, %v4373_v7  ;;  %v3125_v62 = vld [vmem:[%s3923_s12 + $0x68] sm:$0x1] }
  0x63   : > { %3490 = vmatprep.subr.bf16.mxu0 %v3795_v5  ;;  %v3819_v41 = vld [vmem:[%s4793_s1 + $0x350] sm:$0xff]   ;;  %v1868_v5 = vrot.slane %v3121_v59, 1  ;;  %v3144_v53 = vld [vmem:[%s3923_s12 + $0x100] sm:$0xfe] }
  0x64   : > { %963 = vmatmul.mubr.bf16.gmra.mxu1 %v582_v11  ;;  %v3796_v11 = vld [vmem:[%s4793_s1 + $0x200] sm:$0xff]  }
  0x65   : > { %3449 = vmatpush3.bf16.msra.mxu1 %v3766_v6  ;;  %1260 = vmatprep.mubr.bf16.mxu1 %v234_v18  ;;  %v4370_v6 = vld [vmem:[%s3923_s12 + $0x198] sm:$0xff]  ;;  %v1331_v18 = vpack.c.bf16 %v4178_v28, %v4141_v61  ;;  %v3802_v61 = vld [vmem:[%s4793_s1 + $0x280] sm:$0xff]   ;;  %v3803_v28 = vld [vmem:[%s4793_s1 + $0x370] sm:$0xff]  }
  0x66   : > { %3450 = vmatprep.subr.bf16.mxu1 %v3769_v30  ;;  %v246_v10 = vpack.c.bf16 %v4373_v7, %v4370_v6  ;;  %v245_v30 = vpack.c.bf16 %v4384_v13, %v4381_v12  ;;  %3491 = vmatpush3.bf16.msra.mxu0 %v3796_v11  ;;  %v1337_v32 = vpack.c.bf16 %v4370_v6, %v4333_v51  ;;  %v3824_v51 = vld [vmem:[%s4793_s1 + $0x308] sm:$0xff]   ;;  %v1869_v6 = vrot.slane %v3125_v62, 1  ;;  %v3139_v62 = vld [vmem:[%s3923_s12 + $0xd8] sm:$0xfe] }
  0x67   : > { %3556 = vmatprep.subr.bf16.mxu0 %v3799_v17 }
  0x68   : > { %v1870_v11 = vsel %vm439_vm0, %v1868_v5, %v1869_v6  ;;  %v3147_v6 = vld [vmem:[%s3923_s12 + $0x118] sm:$0xfe] }
  0x69   : > { %3451 = vmatpush3.bf16.msra.mxu1 %v3770_v60  ;;  %v3797_v60 = vld [vmem:[%s4793_s1 + $0x2c8] sm:$0xff]   ;;  %1632 = vmatmul.mubr.bf16.vlgmr.msra.gmra.mxu0 %v1326_v15  ;;  %v3132_v15 = vld [vmem:[%s3923_s12 + $0xa0] sm:$0x1] }
  0x6a   : > { %3516 = vmatprep.subr.bf16.mxu1 %v3773_v23  ;;  %3557 = vmatpush3.bf16.msra.mxu0 %v3800_v36  ;;  %v3805_v23 = vld [vmem:[%s4793_s1 + $0x3f8] sm:$0xff]  }
  0x6b   : > { %1639 = vmatprep.mubr.bf16.mxu0 %v1331_v18  ;;  %3558 = vmatprep.subr.bf16.mxu0 %v3803_v28  ;;  %v3831_v28 = vld [vmem:[%s4793_s1 + $0x3c0] sm:$0xff]  }
  0x6c   : > { %1261 = vmatmul.mubr.bf16.vlgmr.msra.gmra.mxu1 %v233_v22  ;;  %v1333_v22 = vpack.c.bf16 %v4330_v50, %v4293_v34  ;;  %v1334_v34 = vpack.c.bf16 %v4231_v8, %v4194_v37  ;;  %v3817_v37 = vld [vmem:[%s4793_s1 + $0x3e0] sm:$0xff]   ;;  %v3823_v50 = vld [vmem:[%s4793_s1 + $0x348] sm:$0xff]  }
  0x6d   : > { %3517 = vmatpush3.bf16.msra.mxu1 %v3774_v24  ;;  %1268 = vmatprep.mubr.bf16.mxu1 %v238_v38  ;;  %v1330_v24 = vpack.c.bf16 %v4191_v35, %v4154_v3  ;;  %v3809_v3 = vld [vmem:[%s4793_s1 + $0x3f0] sm:$0xff]   ;;  %v3811_v35 = vld [vmem:[%s4793_s1 + $0x360] sm:$0xff]   ;;  %v3814_v38 = vld [vmem:[%s4793_s1 + $0x3a8] sm:$0xff]  }
  0x6e   : > { %3518 = vmatprep.subr.bf16.mxu1 %v3777_v27  ;;  %3559 = vmatpush3.bf16.msra.mxu0 %v3804_v20  ;;  %v3808_v27 = vld [vmem:[%s4793_s1 + $0x328] sm:$0xff]   ;;  %v3818_v8 = vld [vmem:[%s4793_s1 + $0x3a0] sm:$0xff]  }
  0x6f   : > { %3560 = vmatprep.subr.bf16.mxu0 %v3807_v26  ;;  %v3832_v20 = vld [vmem:[%s4793_s1 + $0x380] sm:$0xff]  }
  0x71   : > { %3519 = vmatpush3.bf16.msra.mxu1 %v3778_v31  ;;  %1640 = vmatmul.mubr.bf16.gmra.mxu0 %v1330_v24  ;;  %v3812_v31 = vld [vmem:[%s4793_s1 + $0x320] sm:$0xff]  }
  0x72   : > { %3520 = vmatprep.subr.bf16.mxu1 %v3781_v43  ;;  %3561 = vmatpush3.bf16.msra.mxu0 %v3808_v27  ;;  %v3820_v43 = vld [vmem:[%s4793_s1 + $0x310] sm:$0xff]  }
  0x73   : > { %1647 = vmatprep.mubr.bf16.mxu0 %v1335_v25  ;;  %3562 = vmatprep.subr.bf16.mxu0 %v3811_v35  ;;  %v3135_v25 = vld [vmem:[%s3923_s12 + $0xb8] sm:$0x1]  ;;  %v3122_v35 = vld [vmem:[%s3923_s12 + $0x50] sm:$0xfe] }
  0x74   : > { %1269 = vmatmul.mubr.bf16.gmra.mxu1 %v237_v42  ;;  %v1336_v42 = vpack.c.bf16 %v4381_v12, %v4344_v55  ;;  %v3828_v55 = vld [vmem:[%s4793_s1 + $0x300] sm:$0xff]   ;;  %v3830_v12 = vld [vmem:[%s4793_s1 + $0x388] sm:$0xff]  }
  0x75   : > { %3521 = vmatpush3.bf16.msra.mxu1 %v3782_v44  ;;  %1276 = vmatprep.mubr.bf16.mxu1 %v242_v52  ;;  %v3821_v44 = vld [vmem:[%s4793_s1 + $0x3d8] sm:$0xff]   ;;  %v3827_v52 = vld [vmem:[%s4793_s1 + $0x340] sm:$0xff]  }
  0x76   : > { %3522 = vmatprep.subr.bf16.mxu1 %v3785_v47  ;;  %3563 = vmatpush3.bf16.msra.mxu0 %v3812_v31  ;;  %v3822_v47 = vld [vmem:[%s4793_s1 + $0x398] sm:$0xff]  }
  0x77   : > { %3564 = vmatprep.subr.bf16.mxu0 %v3815_v39 }
  0x79   : > { %3523 = vmatpush3.bf16.msra.mxu1 %v3786_v48  ;;  %1648 = vmatmul.mubr.bf16.gmra.mxu0 %v1334_v34  ;;  %v3020_v48 = vld [vmem:[%s3923_s12 + $0x200] sm:$0xff]  ;;  %v1871_v34 = vrot.slane %v3122_v35, 1 }
  0x7a   : > { %3524 = vmatprep.subr.bf16.mxu1 %v3789_v57  ;;  %3565 = vmatpush3.bf16.msra.mxu0 %v3816_v40  ;;  %v1338_v49 = vpack.c.bf16 %v3020_v48, %v4234_v9  ;;  %v3826_v9 = vld [vmem:[%s4793_s1 + $0x390] sm:$0xff]  }
  0x7b   : > { %3566 = vmatprep.subr.bf16.mxu0 %v3819_v41  ;;  %1655 = vmatprep.mubr.bf16.mxu0 %v1339_v46  ;;  %v3141_v41 = vld [vmem:[%s3923_s12 + $0xe8] sm:$0x1] }
  0x7c   : > { %1277 = vmatmul.mubr.bf16.gmra.mxu1 %v241_v56  ;;  %v3022_v56 = vld [vmem:[%s3923_s12 + $0x210] sm:$0xff] }
  0x7d   : > { %3525 = vmatpush3.bf16.msra.mxu1 %v3790_v58  ;;  %1284 = vmatprep.mubr.bf16.mxu1 %v246_v10  ;;  %v1340_v57 = vpack.c.bf16 %v3022_v56, %v4384_v13  ;;  %v3829_v58 = vld [vmem:[%s4793_s1 + $0x3c8] sm:$0xff]   ;;  %v3120_v13 = vld [vmem:[%s3923_s12 + $0x40] sm:$0xfe] }
  0x7e   : > { %3526 = vmatprep.subr.bf16.mxu1 %v3793_v63  ;;  %3567 = vmatpush3.bf16.msra.mxu0 %v3820_v43  ;;  %v3129_v63 = vld [vmem:[%s3923_s12 + $0x88] sm:$0xfe] }
  0x7f   : > { %3568 = vmatprep.subr.bf16.mxu0 %v3823_v50  ;;  %v1880_v7 = vrot.slane %v3129_v63, 1  ;;  %v1905_v50 = vrot.slane %v3149_v45, 1  ;;  %v3143_v63 = vld [vmem:[%s3923_s12 + $0xf8] sm:$0x1] }
  0x81   : > { %3527 = vmatpush3.bf16.msra.mxu1 %v3794_v4  ;;  %1656 = vmatmul.mubr.bf16.gmra.mxu0 %v1338_v49  ;;  %v3133_v4 = vld [vmem:[%s3923_s12 + $0xa8] sm:$0x1] }
  0x82   : > { %3528 = vmatprep.subr.bf16.mxu1 %v3797_v60  ;;  %3569 = vmatpush3.bf16.msra.mxu0 %v3824_v51  ;;  %v1881_v10 = vrot.slane %v3133_v4, 1  ;;  %v3128_v60 = vld [vmem:[%s3923_s12 + $0x80] sm:$0xfe] }
  0x83   : > { %3570 = vmatprep.subr.bf16.mxu0 %v3827_v52  ;;  %v1877_v36 = vrot.slane %v3128_v60, 1  ;;  %v3136_v51 = vld [vmem:[%s3923_s12 + $0xc0] sm:$0xfe]  ;;  %v3142_v60 = vld [vmem:[%s3923_s12 + $0xf0] sm:$0x1] }
  0x84   : > { %1285 = vmatmul.mubr.bf16.gmra.mxu1 %v245_v30  ;;  %v1882_v30 = vsel %vm439_vm0, %v1880_v7, %v1881_v10  ;;  %v3151_v7 = vld [vmem:[%s3923_s12 + $0x138] sm:$0x1]  ;;  %v1898_v10 = vrot.slane %v3139_v62, 1 }
  0x85   : > { %3529 = vmatpush3.bf16.msra.mxu1 %v3798_v16  ;;  %1696 = vmatprep.mubr.bf16.mxu1 %v1329_v14  ;;  %v3124_v14 = vld [vmem:[%s3923_s12 + $0x60] sm:$0x1]  ;;  %v1865_v16 = vrot.slane %v3120_v13, 1  ;;  %v1994_v17 = vpack.c.bf16 %v1882_v30, %v1870_v11  ;;  %v1899_v11 = vrot.slane %v3143_v63, 1  ;;  %v1910_v13 = vrot.slane %v3147_v6, 1 }
  0x86   : > { %3530 = vmatprep.subr.bf16.mxu1 %v3801_v2  ;;  %3571 = vmatpush3.bf16.msra.mxu0 %v3828_v55  ;;  %v1866_v18 = vrot.slane %v3124_v14, 1  ;;  %v1878_v2 = vrot.slane %v3132_v15, 1  ;;  %v1889_v55 = vrot.slane %v3136_v51, 1  ;;  %v1911_v14 = vrot.slane %v3151_v7, 1  ;;  %v3138_v30 = vld [vmem:[%s3923_s12 + $0xd0] sm:$0xfe] }
  0x87   : > { %2298 = vmatprep.mubr.bf16.mxu0 %v1994_v17  ;;  %v3150_v17 = vld [vmem:[%s3923_s12 + $0x130] sm:$0x1] }
  0x89   : > { %3531 = vmatpush3.bf16.msra.mxu1 %v3802_v61  ;;  %v1867_v61 = vsel %vm439_vm0, %v1865_v16, %v1866_v18  ;;  %v1900_v16 = vsel %vm439_vm0, %v1898_v10, %v1899_v11  ;;  %v3146_v18 = vld [vmem:[%s3923_s12 + $0x110] sm:$0xfe]  ;;  %v3177_v10 = vld [vmem:[%s3923_s12 + $0x208] sm:$0xfe]  ;;  %v3181_v11 = vld [vmem:[%s3923_s12 + $0x228] sm:$0x1] }
  0x8a   : > { %3596 = vmatprep.subr.bf16.mxu1 %v3805_v23  ;;  %v3127_v23 = vld [vmem:[%s3923_s12 + $0x78] sm:$0x1] }
  0x8b   : > { %v1875_v27 = vrot.slane %v3127_v23, 1 }
  0x8c   : > { %1697 = vmatmul.mubr.bf16.vlgmr.msra.gmra.mxu1 %v1328_v19  ;;  %v1879_v19 = vsel %vm439_vm0, %v1877_v36, %v1878_v2  ;;  %v1895_v36 = vrot.slane %v3138_v30, 1  ;;  %v1896_v2 = vrot.slane %v3142_v60, 1  ;;  %v1952_v30 = vrot.slane %v3177_v10, 1 }
  0x8d   : > { %3597 = vmatpush3.bf16.msra.mxu1 %v3806_v21  ;;  %1704 = vmatprep.mubr.bf16.mxu1 %v1333_v22  ;;  %v3123_v22 = vld [vmem:[%s3923_s12 + $0x58] sm:$0xfe]  ;;  %v1993_v24 = vpack.c.bf16 %v1879_v19, %v1867_v61  ;;  %v1912_v61 = vsel %vm439_vm0, %v1910_v13, %v1911_v14  ;;  %v1908_v19 = vrot.slane %v3150_v17, 1  ;;  %v1953_v60 = vrot.slane %v3181_v11, 1 }
  0x8e   : > { %3598 = vmatprep.subr.bf16.mxu1 %v3809_v3  ;;  %v3131_v21 = vld [vmem:[%s3923_s12 + $0x98] sm:$0xfe]  ;;  %v1874_v26 = vrot.slane %v3123_v22, 1  ;;  %v3157_v22 = vld [vmem:[%s3923_s12 + $0x168] sm:$0x1]  ;;  %v2000_v23 = vpack.c.bf16 %v1912_v61, %v1900_v16 }
  0x8f   : > { %v1886_v3 = vrot.slane %v3131_v21, 1  ;;  %2299 = vmatmul.mubr.bf16.vlgmr.msra.gmra.mxu0 %v1993_v24  ;;  %v1897_v24 = vsel %vm439_vm0, %v1895_v36, %v1896_v2  ;;  %v3161_v21 = vld [vmem:[%s3923_s12 + $0x188] sm:$0xfe]  ;;  %v3172_v16 = vld [vmem:[%s3923_s12 + $0x1e0] sm:$0x1] }
  0x90   : > { %v1876_v31 = vsel %vm439_vm0, %v1874_v26, %v1875_v27  ;;  %v1917_v27 = vrot.slane %v3157_v22, 1  ;;  %v3176_v36 = vld [vmem:[%s3923_s12 + $0x200] sm:$0xfe]  ;;  %v3180_v2 = vld [vmem:[%s3923_s12 + $0x220] sm:$0x1] }
  0x91   : > { %3599 = vmatpush3.bf16.msra.mxu1 %v3810_v29  ;;  %v1887_v29 = vrot.slane %v3135_v25, 1  ;;  %v3165_v25 = vld [vmem:[%s3923_s12 + $0x1a8] sm:$0x1]  ;;  %v1950_v22 = vrot.slane %v3180_v2, 1 }
  0x92   : > { %3600 = vmatprep.subr.bf16.mxu1 %v3813_v33  ;;  %v3134_v33 = vld [vmem:[%s3923_s12 + $0xb0] sm:$0x1]  ;;  %v1929_v35 = vrot.slane %v3165_v25, 1 }
  0x93   : > { %v1888_v39 = vsel %vm439_vm0, %v1886_v3, %v1887_v29  ;;  %v1928_v29 = vrot.slane %v3161_v21, 1 }
  0x94   : > { %1705 = vmatmul.mubr.bf16.gmra.mxu1 %v1332_v0  ;;  %v3126_v0 = vld [vmem:[%s3923_s12 + $0x70] sm:$0x1] }
  0x95   : > { %3601 = vmatpush3.bf16.msra.mxu1 %v3814_v38  ;;  %1712 = vmatprep.mubr.bf16.mxu1 %v1337_v32  ;;  %v3130_v32 = vld [vmem:[%s3923_s12 + $0x90] sm:$0xfe]  ;;  %v1872_v38 = vrot.slane %v3126_v0, 1  ;;  %v3152_v0 = vld [vmem:[%s3923_s12 + $0x140] sm:$0xfe] }
  0x96   : > { %3602 = vmatprep.subr.bf16.mxu1 %v3817_v37  ;;  %v1883_v40 = vrot.slane %v3130_v32, 1  ;;  %v1884_v37 = vrot.slane %v3134_v33, 1 }
  0x97   : > { %v1873_v43 = vsel %vm439_vm0, %v1871_v34, %v1872_v38  ;;  %v3160_v34 = vld [vmem:[%s3923_s12 + $0x180] sm:$0xfe]  ;;  %v3164_v38 = vld [vmem:[%s3923_s12 + $0x1a0] sm:$0x1] }
  0x98   : > { %v1885_v48 = vsel %vm439_vm0, %v1883_v40, %v1884_v37  ;;  %v1930_v37 = vsel %vm439_vm0, %v1928_v29, %v1929_v35 }
  0x99   : > { %3603 = vmatpush3.bf16.msra.mxu1 %v3818_v8  ;;  %v3137_v8 = vld [vmem:[%s3923_s12 + $0xc8] sm:$0xfe] }
  0x9a   : > { %3604 = vmatprep.subr.bf16.mxu1 %v3821_v44  ;;  %v3145_v44 = vld [vmem:[%s3923_s12 + $0x108] sm:$0xfe]  ;;  %v1892_v46 = vrot.slane %v3137_v8, 1  ;;  %v1925_v8 = vrot.slane %v3160_v34, 1 }
  0x9b   : > { %v1904_v49 = vrot.slane %v3145_v44, 1 }
  0x9c   : > { %1713 = vmatmul.mubr.bf16.gmra.mxu1 %v1336_v42  ;;  %v1996_v42 = vpack.c.bf16 %v1888_v39, %v1876_v31  ;;  %v3156_v31 = vld [vmem:[%s3923_s12 + $0x160] sm:$0x1]  ;;  %v1913_v39 = vrot.slane %v3152_v0, 1 }
  0x9d   : > { %3605 = vmatpush3.bf16.msra.mxu1 %v3822_v47  ;;  %1720 = vmatprep.mubr.bf16.mxu1 %v1341_v54  ;;  %v1893_v47 = vrot.slane %v3141_v41, 1  ;;  %v3148_v54 = vld [vmem:[%s3923_s12 + $0x120] sm:$0x1]  ;;  %v1914_v40 = vrot.slane %v3156_v31, 1  ;;  %v1926_v41 = vrot.slane %v3164_v38, 1 }
  0x9e   : > { %3606 = vmatprep.subr.bf16.mxu1 %v3825_v1  ;;  %v3140_v1 = vld [vmem:[%s3923_s12 + $0xe0] sm:$0x1]  ;;  %v1902_v59 = vrot.slane %v3148_v54, 1 }
  0x9f   : > { %v1894_v52 = vsel %vm439_vm0, %v1892_v46, %v1893_v47  ;;  %v1890_v56 = vrot.slane %v3140_v1, 1  ;;  %v1915_v45 = vsel %vm439_vm0, %v1913_v39, %v1914_v40  ;;  %v3163_v46 = vld [vmem:[%s3923_s12 + $0x198] sm:$0xfe]  ;;  %v3167_v47 = vld [vmem:[%s3923_s12 + $0x1b8] sm:$0x1] }
  0xa0   : > { %v1934_v51 = vrot.slane %v3163_v46, 1  ;;  %v1935_v1 = vrot.slane %v3167_v47, 1  ;;  %v3178_v39 = vld [vmem:[%s3923_s12 + $0x210] sm:$0xfe]  ;;  %v3182_v40 = vld [vmem:[%s3923_s12 + $0x230] sm:$0x1] }
  0xa1   : > { %3607 = vmatpush3.bf16.msra.mxu1 %v3826_v9  ;;  %v1995_v9 = vpack.c.bf16 %v1885_v48, %v1873_v43  ;;  %v1891_v5 = vsel %vm439_vm0, %v1889_v55, %v1890_v56  ;;  %v3159_v43 = vld [vmem:[%s3923_s12 + $0x178] sm:$0x1]  ;;  %v3162_v55 = vld [vmem:[%s3923_s12 + $0x190] sm:$0xfe]  ;;  %v3166_v56 = vld [vmem:[%s3923_s12 + $0x1b0] sm:$0x1] }
  0xa2   : > { %3608 = vmatprep.subr.bf16.mxu1 %v3829_v58  ;;  %v1901_v58 = vrot.slane %v3144_v53, 1  ;;  %v1931_v62 = vrot.slane %v3162_v55, 1  ;;  %v1932_v63 = vrot.slane %v3166_v56, 1 }
  0xa4   : > { %1721 = vmatmul.mubr.bf16.gmra.mxu1 %v1340_v57  ;;  %v1906_v57 = vsel %vm439_vm0, %v1904_v49, %v1905_v50  ;;  %v1923_v49 = vrot.slane %v3159_v43, 1  ;;  %v1927_v50 = vsel %vm439_vm0, %v1925_v8, %v1926_v41  ;;  %v1933_v14 = vsel %vm439_vm0, %v1931_v62, %v1932_v63 }
  0xa5   : > { %3609 = vmatpush3.bf16.msra.mxu1 %v3830_v12  ;;  %2363 = vmatprep.mubr.bf16.mxu1 %v1996_v42  ;;  %v1998_v4 = vpack.c.bf16 %v1906_v57, %v1894_v52  ;;  %v1903_v12 = vsel %vm439_vm0, %v1901_v58, %v1902_v59  ;;  %v3155_v42 = vld [vmem:[%s3923_s12 + $0x158] sm:$0xfe]  ;;  %v3158_v52 = vld [vmem:[%s3923_s12 + $0x170] sm:$0x1]  ;;  %v2001_v53 = vpack.c.bf16 %v1927_v50, %v1915_v45  ;;  %v1956_v43 = vrot.slane %v3182_v40, 1 }
  0xa6   : > { %3610 = vmatprep.subr.bf16.mxu1 %v3831_v28  ;;  %v1997_v15 = vpack.c.bf16 %v1903_v12, %v1891_v5  ;;  %v1907_v28 = vrot.slane %v3146_v18, 1  ;;  %v1922_v48 = vrot.slane %v3155_v42, 1  ;;  %v1920_v58 = vrot.slane %v3158_v52, 1  ;;  %v3173_v5 = vld [vmem:[%s3923_s12 + $0x1e8] sm:$0x1] }
  0xa7   : > { %2306 = vmatprep.mubr.bf16.mxu0 %v1998_v4  ;;  %v1936_v59 = vsel %vm439_vm0, %v1934_v51, %v1935_v1  ;;  %v3169_v4 = vld [vmem:[%s3923_s12 + $0x1c8] sm:$0xfe]  ;;  %v1941_v13 = vrot.slane %v3173_v5, 1  ;;  %v1955_v42 = vrot.slane %v3178_v39, 1 }
  0xa8   : > { %2307 = vmatmul.mubr.bf16.gmra.mxu0 %v1997_v15  ;;  %v1909_v3 = vsel %vm439_vm0, %v1907_v28, %v1908_v19  ;;  %v1924_v54 = vsel %vm439_vm0, %v1922_v48, %v1923_v49  ;;  %v1940_v12 = vrot.slane %v3169_v4, 1  ;;  %v3168_v15 = vld [vmem:[%s3923_s12 + $0x1c0] sm:$0xfe]  ;;  %v1938_v28 = vrot.slane %v3172_v16, 1 }
  0xa9   : > { %3611 = vmatpush3.bf16.msra.mxu1 %v3832_v20  ;;  %v3153_v20 = vld [vmem:[%s3923_s12 + $0x148] sm:$0xfe]  ;;  %v1999_v32 = vpack.c.bf16 %v1909_v3, %v1897_v24  ;;  %v2004_v6 = vpack.c.bf16 %v1936_v59, %v1924_v54  ;;  %v1937_v61 = vrot.slane %v3168_v15, 1  ;;  %v1954_v19 = vsel %vm439_vm0, %v1952_v30, %v1953_v60  ;;  %v3175_v24 = vld [vmem:[%s3923_s12 + $0x1f8] sm:$0x1] }
  0xaa   : > { %v1916_v26 = vrot.slane %v3153_v20, 1  ;;  %v1942_v17 = vsel %vm439_vm0, %v1940_v12, %v1941_v13  ;;  %v1949_v20 = vrot.slane %v3176_v36, 1  ;;  %v1947_v29 = vrot.slane %v3175_v24, 1 }
  0xab   : > { %v2006_v21 = vpack.c.bf16 %v1954_v19, %v1942_v17  ;;  %v1939_v25 = vsel %vm439_vm0, %v1937_v61, %v1938_v28  ;;  %v1957_v46 = vsel %vm439_vm0, %v1955_v42, %v1956_v43 }
  0xac   : > { %2364 = vmatmul.mubr.bf16.vlgmr.msra.gmra.mxu1 %v1995_v9  ;;  %v1918_v33 = vsel %vm439_vm0, %v1916_v26, %v1917_v27  ;;  %v3154_v9 = vld [vmem:[%s3923_s12 + $0x150] sm:$0xfe]  ;;  %v3179_v26 = vld [vmem:[%s3923_s12 + $0x218] sm:$0xfe]  ;;  %v3183_v27 = vld [vmem:[%s3923_s12 + $0x238] sm:$0x1]  ;;  %v1951_v35 = vsel %vm439_vm0, %v1949_v20, %v1950_v22 }
  0xad   : > { %2371 = vmatprep.mubr.bf16.mxu1 %v2000_v23  ;;  %v2002_v44 = vpack.c.bf16 %v1930_v37, %v1918_v33  ;;  %v1919_v57 = vrot.slane %v3154_v9, 1  ;;  %v3171_v23 = vld [vmem:[%s3923_s12 + $0x1d8] sm:$0xfe]  ;;  %v1958_v0 = vrot.slane %v3179_v26, 1  ;;  %v1959_v31 = vrot.slane %v3183_v27, 1 }
  0xae   : > { %v1946_v3 = vrot.slane %v3171_v23, 1  ;;  %v3174_v33 = vld [vmem:[%s3923_s12 + $0x1f0] sm:$0x1]  ;;  %v2005_v34 = vpack.c.bf16 %v1951_v35, %v1939_v25 }
  0xaf   : > { %2314 = vmatprep.mubr.bf16.mxu0 %v2002_v44  ;;  %v1921_v7 = vsel %vm439_vm0, %v1919_v57, %v1920_v58  ;;  %v1944_v8 = vrot.slane %v3174_v33, 1  ;;  %v1960_v41 = vsel %vm439_vm0, %v1958_v0, %v1959_v31 }
  0xb0   : > { %2315 = vmatmul.mubr.bf16.gmra.mxu0 %v2001_v53  ;;  %v2003_v18 = vpack.c.bf16 %v1933_v14, %v1921_v7  ;;  %v1948_v38 = vsel %vm439_vm0, %v1946_v3, %v1947_v29 }
  0xb1   : > { %2322 = vmatprep.mubr.bf16.mxu0 %v2006_v21  ;;  %v2008_v44 = vpack.c.bf16 %v1960_v41, %v1948_v38 }
  0xb4   : > { %2372 = vmatmul.mubr.bf16.gmra.mxu1 %v1999_v32  ;;  %v3170_v32 = vld [vmem:[%s3923_s12 + $0x1d0] sm:$0xfe] }
  0xb5   : > { %2379 = vmatprep.mubr.bf16.mxu1 %v2004_v6  ;;  %v1943_v37 = vrot.slane %v3170_v32, 1 }
  0xb7   : > { %v1945_v45 = vsel %vm439_vm0, %v1943_v37, %v1944_v8 }
  0xb8   : > { %2323 = vmatmul.mubr.bf16.gmra.mxu0 %v2005_v34  ;;  %v2007_v47 = vpack.c.bf16 %v1957_v46, %v1945_v45 }
  0xbc   : > { %2380 = vmatmul.mubr.bf16.gmra.mxu1 %v2003_v18 }
  0xbd   : > { %2387 = vmatprep.mubr.bf16.mxu1 %v2008_v44 }
  0xc4   : > { %2388 = vmatmul.mubr.bf16.gmra.mxu1 %v2007_v47 }
  0xec   : > { %v3332_v48 = vpop.f32.mrf.mxu1 }
  0xee   : > { %v3333_v49 = vpop.f32.mrf.mxu1 }
  0xef   : > { %v3334_v50 = vadd.f32 %v3333_v49, %v3332_v48 }
  0xf0   : > { %v3335_v51 = vpop.f32.mrf.mxu1 }
  0xf2   : > { %v3336_v1 = vpop.f32.mrf.mxu1 }
  0xf3   : > { %v3337_v9 = vadd.f32 %v3336_v1, %v3335_v51 }
  0xf4   : > { %v3338_v52 = vpop.f32.mrf.mxu1 }
  0xf6   : > { %v3339_v53 = vpop.f32.mrf.mxu1 }
  0xf7   : > { %v3340_v54 = vadd.f32 %v3339_v53, %v3338_v52 }
  0xf8   : > { %v3341_v55 = vpop.f32.mrf.mxu1 }
  0xfa   : > { %v3342_v56 = vpop.f32.mrf.mxu1 }
  0xfb   : > { %v3343_v57 = vadd.f32 %v3342_v56, %v3341_v55 }
  0xfc   : > { %v3344_v58 = vpop.f32.mrf.mxu1 }
  0xfe   : > { %v3345_v59 = vpop.f32.mrf.mxu1 }
  0xff   : > { %v3346_v62 = vadd.f32 %v3345_v59, %v3344_v58  ;;  %v3412_v30 = vpop.f32.mrf.mxu0 }
 0x100   : > { %v3347_v63 = vpop.f32.mrf.mxu1 }
 0x101   : > { %v3413_v16 = vpop.f32.mrf.mxu0 }
 0x102   : > { %v3348_v4 = vpop.f32.mrf.mxu1  ;;  %v3414_v17 = vadd.f32 %v3413_v16, %v3412_v30 }
 0x103   : > { %v3349_v5 = vadd.f32 %v3348_v4, %v3347_v63  ;;  %v3415_v2 = vpop.f32.mrf.mxu0 }
 0x104   : > { %v3350_v6 = vpop.f32.mrf.mxu1 }
 0x105   : > { %v3416_v20 = vpop.f32.mrf.mxu0 }
 0x106   : > { %v3351_v7 = vpop.f32.mrf.mxu1  ;;  %v3417_v22 = vadd.f32 %v3416_v20, %v3415_v2 }
 0x107   : > { %v3352_v10 = vadd.f32 %v3351_v7, %v3350_v6 }
 0x108   : > { %v3353_v11 = vpop.f32.mrf.mxu1 }
 0x10a   : > { %v3354_v12 = vpop.f32.mrf.mxu1 }
 0x10b   : > { %v3355_v13 = vadd.f32 %v3354_v12, %v3353_v11  ;;  %v3418_v21 = vpop.f32.mrf.mxu0 }
 0x10c   : > { %v3372_v14 = vpop.f32.mrf.mxu1 }
 0x10d   : > { %v3419_v27 = vpop.f32.mrf.mxu0 }
 0x10e   : > { %v3373_v60 = vpop.f32.mrf.mxu1  ;;  %v3420_v29 = vadd.f32 %v3419_v27, %v3418_v21 }
 0x10f   : > { %v3374_v15 = vadd.f32 %v3373_v60, %v3372_v14  ;;  %v3421_v0 = vpop.f32.mrf.mxu0 }
 0x110   : > { %v3375_v18 = vpop.f32.mrf.mxu1 }
 0x111   : > { %v941_v36 = vadd.f32 %v3374_v15, %v3334_v50  ;;  %v3422_v33 = vpop.f32.mrf.mxu0 }
 0x112   : > { %v3376_v61 = vpop.f32.mrf.mxu1  ;;  %v3423_v39 = vadd.f32 %v3422_v33, %v3421_v0 }
 0x113   : > { %v1198_v28 = vadd.f32 %v3414_v17, %v941_v36  ;;  %v3377_v19 = vadd.f32 %v3376_v61, %v3375_v18  ;;  %v3424_v8 = vpop.f32.mrf.mxu0 }
 0x114   : > { %v3378_v24 = vpop.f32.mrf.mxu1 }
 0x115   : > { %v944_v23 = vadd.f32 %v3377_v19, %v3337_v9  ;;  %v3425_v43 = vpop.f32.mrf.mxu0 }
 0x116   : > { %v3379_v26 = vpop.f32.mrf.mxu1  ;;  %v3426_v45 = vadd.f32 %v3425_v43, %v3424_v8 }
 0x117   : > { %v1201_v25 = vadd.f32 %v3417_v22, %v944_v23  ;;  %v3380_v3 = vadd.f32 %v3379_v26, %v3378_v24  ;;  %v3427_v47 = vpop.f32.mrf.mxu0 }
 0x118   : > { %v3381_v35 = vpop.f32.mrf.mxu1 }
 0x119   : > { %v949_v31 = vadd.f32 %v3380_v3, %v3340_v54  ;;  %v3428_v50 = vpop.f32.mrf.mxu0 }
 0x11a   : > { %v3382_v32 = vpop.f32.mrf.mxu1  ;;  %v3429_v9 = vadd.f32 %v3428_v50, %v3427_v47 }
 0x11b   : > { %v1206_v34 = vadd.f32 %v3420_v29, %v949_v31  ;;  %v3383_v38 = vadd.f32 %v3382_v32, %v3381_v35  ;;  %v3430_v54 = vpop.f32.mrf.mxu0 }
 0x11c   : > { %v3384_v37 = vpop.f32.mrf.mxu1 }
 0x11d   : > { %v952_v40 = vadd.f32 %v3383_v38, %v3343_v57  ;;  %v3431_v57 = vpop.f32.mrf.mxu0 }
 0x11e   : > { %v3385_v42 = vpop.f32.mrf.mxu1  ;;  %v3432_v59 = vadd.f32 %v3431_v57, %v3430_v54 }
 0x11f   : > { %v1209_v41 = vadd.f32 %v3423_v39, %v952_v40  ;;  %v3386_v44 = vadd.f32 %v3385_v42, %v3384_v37 }
 0x120   : > { %v3387_v46 = vpop.f32.mrf.mxu1 }
 0x121   : > { %v957_v48 = vadd.f32 %v3386_v44, %v3346_v62 }
 0x122   : > { %v3388_v49 = vpop.f32.mrf.mxu1 }
 0x123   : > { %v1214_v51 = vadd.f32 %v3426_v45, %v957_v48  ;;  %v3389_v1 = vadd.f32 %v3388_v49, %v3387_v46 }
 0x124   : > { %v3390_v53 = vpop.f32.mrf.mxu1 }
 0x125   : > { %v960_v52 = vadd.f32 %v3389_v1, %v3349_v5  ;;  %v3833_v5 = vld [vmem:[%s4795_s3] sm:$0xff]  }
 0x126   : > { %v3391_v56 = vpop.f32.mrf.mxu1  ;;  %3664 = vmatprep.mubr.msk.bf16.mxu0 %vm2559_vm1, %v3833_v5 }
 0x127   : > { %v1217_v55 = vadd.f32 %v3429_v9, %v960_v52  ;;  %v3392_v58 = vadd.f32 %v3391_v56, %v3390_v53 }
 0x128   : > { %v3393_v63 = vpop.f32.mrf.mxu1 }
 0x129   : > { %v965_v4 = vadd.f32 %v3392_v58, %v3352_v10 }
 0x12a   : > { %v3394_v6 = vpop.f32.mrf.mxu1 }
 0x12b   : > { %v1222_v7 = vadd.f32 %v3432_v59, %v965_v4  ;;  %v3395_v11 = vadd.f32 %v3394_v6, %v3393_v63 }
 0x12c   : > { %v3452_v12 = vpop.f32.mrf.mxu1 }
 0x12d   : > { %v968_v62 = vadd.f32 %v3395_v11, %v3355_v13 }
 0x12e   : > { %v3453_v14 = vpop.f32.mrf.mxu1 }
 0x12f   : > { %v3454_v30 = vadd.f32 %v3453_v14, %v3452_v12 }
 0x130   : > { %v3455_v60 = vpop.f32.mrf.mxu1 }
 0x131   : > { %v1263_v15 = vadd.f32 %v3454_v30, %v1198_v28  ;;  %v3433_v28 = vpop.f32.mrf.mxu0 }
 0x132   : > { %v3456_v16 = vpop.f32.mrf.mxu1 }
 0x133   : > { %v3457_v18 = vadd.f32 %v3456_v16, %v3455_v60 }
 0x134   : > { %v3458_v10 = vpop.f32.mrf.mxu1 }
 0x135   : > { %v1266_v17 = vadd.f32 %v3457_v18, %v1201_v25  ;;  %v3434_v25 = vpop.f32.mrf.mxu0 }
 0x136   : > { %v3459_v36 = vpop.f32.mrf.mxu1  ;;  %v3435_v33 = vadd.f32 %v3434_v25, %v3433_v28 }
 0x137   : > { %v3460_v2 = vadd.f32 %v3459_v36, %v3458_v10  ;;  %v3492_v32 = vpop.f32.mrf.mxu0 }
 0x138   : > { %v3461_v61 = vpop.f32.mrf.mxu1  ;;  %v1225_v42 = vadd.f32 %v3435_v33, %v968_v62 }
 0x139   : > { %v4626_v19 = vadd.f32 %v3460_v2, %v1206_v34  ;;  %v3493_v39 = vpop.f32.mrf.mxu0 }
 0x13a   : > { %v3462_v13 = vpop.f32.mrf.mxu1  ;;  %v3494_v37 = vadd.f32 %v3493_v39, %v3492_v32 }
 0x13b   : > { %v3463_v20 = vadd.f32 %v3462_v13, %v3461_v61 }
 0x13c   : > { %v3464_v23 = vpop.f32.mrf.mxu1 }
 0x13d   : > { %v4628_v22 = vadd.f32 %v3463_v20, %v1209_v41  ;;  %v3495_v41 = vpop.f32.mrf.mxu0 }
 0x13e   : > { %v3465_v24 = vpop.f32.mrf.mxu1 }
 0x13f   : > { %v3466_v21 = vadd.f32 %v3465_v24, %v3464_v23  ;;  %v3496_v44 = vpop.f32.mrf.mxu0 }
 0x140   : > { %v3467_v26 = vpop.f32.mrf.mxu1  ;;  %v3497_v47 = vadd.f32 %v3496_v44, %v3495_v41 }
 0x141   : > { %v4630_v27 = vadd.f32 %v3466_v21, %v1214_v51  ;;  %v3498_v48 = vpop.f32.mrf.mxu0 }
 0x142   : > { %v3468_v3 = vpop.f32.mrf.mxu1 }
 0x143   : > { %v3469_v29 = vadd.f32 %v3468_v3, %v3467_v26  ;;  %v3499_v51 = vpop.f32.mrf.mxu0 }
 0x144   : > { %v3470_v0 = vpop.f32.mrf.mxu1 }
 0x145   : > { %v4632_v35 = vadd.f32 %v3469_v29, %v1217_v55  ;;  %v3501_v52 = vpop.f32.mrf.mxu0 }
 0x146   : > { %v3471_v31 = vpop.f32.mrf.mxu1 }
 0x147   : > { %v3472_v34 = vadd.f32 %v3471_v31, %v3470_v0  ;;  %v3502_v56 = vpop.f32.mrf.mxu0 }
 0x148   : > { %v3473_v38 = vpop.f32.mrf.mxu1 }
 0x149   : > { %v4634_v40 = vadd.f32 %v3472_v34, %v1222_v7  ;;  %v3504_v59 = vpop.f32.mrf.mxu0  ;;  %v3500_v34 = vadd.f32 %v3499_v51, %v3498_v48 }
 0x14a   : > { %v3474_v8 = vpop.f32.mrf.mxu1 }
 0x14b   : > { %v3475_v43 = vadd.f32 %v3474_v8, %v3473_v38  ;;  %v3505_v6 = vpop.f32.mrf.mxu0 }
 0x14c   : > { %v3532_v45 = vpop.f32.mrf.mxu1 }
 0x14d   : > { %v4636_v46 = vadd.f32 %v3475_v43, %v1225_v42  ;;  %v4638_v11 = vpop.f32.mrf.mxu0 }
 0x14e   : > { %v3533_v49 = vpop.f32.mrf.mxu1 }
 0x14f   : > { %v3534_v50 = vadd.f32 %v3533_v49, %v3532_v45  ;;  %v4640_v62 = vpop.f32.mrf.mxu0 }
 0x150   : > { %v3535_v1 = vpop.f32.mrf.mxu1 }
 0x151   : > { %v1699_v9 = vadd.f32 %v3534_v50, %v3494_v37  ;;  %v4642_v60 = vpop.f32.mrf.mxu0  ;;  %v4661_v37 = vld [vmem:[%s4794_s2] ss:$0 sm:$0xff] }
 0x152   : > { %v3536_v53 = vpop.f32.mrf.mxu1 }
 0x153   : > { %v1729_v54 = vadd.f32 %v1699_v9, %v1263_v15  ;;  %v3537_v55 = vadd.f32 %v3536_v53, %v3535_v1  ;;  %v4644_v15 = vpop.f32.mrf.mxu0  ;;  %v3503_v1 = vadd.f32 %v3502_v56, %v3501_v52 }
 0x154   : > { %v3538_v57 = vpop.f32.mrf.mxu1 }
 0x155   : > { %v1702_v58 = vadd.f32 %v3537_v55, %v3497_v47  ;;  %v4646_v18 = vpop.f32.mrf.mxu0 }
 0x156   : > { %v3539_v63 = vpop.f32.mrf.mxu1 }
 0x157   : > { %v1730_v4 = vadd.f32 %v1702_v58, %v1266_v17  ;;  %v4652_v36 = vpop.f32.mrf.mxu0  ;;  %v3540_v0 = vadd.f32 %v3539_v63, %v3538_v57 }
 0x158   : > { %v3541_v7 = vpop.f32.mrf.mxu1 }
 0x159   : > { %v3572_v61 = vpop.f32.mrf.mxu0  ;;  %v1707_v43 = vadd.f32 %v3540_v0, %v3500_v34 }
 0x15a   : > { %v3542_v12 = vpop.f32.mrf.mxu1 }
 0x15b   : > { %v3573_v13 = vpop.f32.mrf.mxu0  ;;  %v3543_v44 = vadd.f32 %v3542_v12, %v3541_v7  ;;  %v1731_v57 = vadd.f32 %v1707_v43, %v4626_v19 }
 0x15c   : > { %v3544_v14 = vpop.f32.mrf.mxu1  ;;  %v3574_v28 = vadd.f32 %v3573_v13, %v3572_v61  ;;  %v3506_v13 = vadd.f32 %v3505_v6, %v3504_v59 }
 0x15d   : > { %v3575_v23 = vpop.f32.mrf.mxu0  ;;  %v1710_v58 = vadd.f32 %v3543_v44, %v3503_v1 }
 0x15e   : > { %v3545_v30 = vpop.f32.mrf.mxu1 }
 0x15f   : > { %v3576_v24 = vpop.f32.mrf.mxu0  ;;  %v3546_v53 = vadd.f32 %v3545_v30, %v3544_v14  ;;  %v1732_v30 = vadd.f32 %v1710_v58, %v4628_v22 }
 0x160   : > { %v3547_v5 = vpop.f32.mrf.mxu1  ;;  %v3577_v38 = vadd.f32 %v3576_v24, %v3575_v23 }
 0x161   : > { %v1715_v52 = vadd.f32 %v3546_v53, %v3506_v13 }
 0x162   : > { %v3548_v16 = vpop.f32.mrf.mxu1 }
 0x163   : > { %v3549_v19 = vadd.f32 %v3548_v16, %v3547_v5  ;;  %v1733_v34 = vadd.f32 %v1715_v52, %v4630_v27  ;;  %v3512_v16 = vadd.f32 %v4644_v15, %v4642_v60  ;;  %v3515_v15 = vadd.f32 %v4652_v36, %v4646_v18 }
 0x164   : > { %v4648_v10 = vpop.f32.mrf.mxu1 }
 0x166   : > { %v4650_v17 = vpop.f32.mrf.mxu1 }
 0x167   : > { %v3552_v5 = vadd.f32 %v4650_v17, %v4648_v10 }
 0x168   : > { %v4654_v2 = vpop.f32.mrf.mxu1  ;;  %v3578_v29 = vpop.f32.mrf.mxu0 }
 0x169   : > { %v1723_v1 = vadd.f32 %v3552_v5, %v3512_v16  ;;  %v3847_v5 = vld [vmem:[%s4795_s3 + $0x70] sm:$0xff]  }
 0x16a   : > { %v4656_v20 = vpop.f32.mrf.mxu1  ;;  %v3579_v32 = vpop.f32.mrf.mxu0 }
 0x16b   : > { %v3580_v9 = vadd.f32 %v3579_v32, %v3578_v29 }
 0x16c   : > { %v3612_v21 = vpop.f32.mrf.mxu1  ;;  %v3581_v41 = vpop.f32.mrf.mxu0 }
 0x16e   : > { %v3613_v26 = vpop.f32.mrf.mxu1  ;;  %v3582_v49 = vpop.f32.mrf.mxu0 }
 0x16f   : > { %v3614_v3 = vadd.f32 %v3613_v26, %v3612_v21  ;;  %v3583_v7 = vadd.f32 %v3582_v49, %v3581_v41 }
 0x170   : > { %v3615_v25 = vpop.f32.mrf.mxu1 }
 0x171   : > { %v2366_v31 = vadd.f32 %v3614_v3, %v3574_v28  ;;  %v3509_v3 = vadd.f32 %v4640_v62, %v4638_v11 }
 0x172   : > { %v3616_v33 = vpop.f32.mrf.mxu1 }
 0x173   : > { %v2396_v39 = vadd.f32 %v2366_v31, %v1729_v54  ;;  %v3617_v8 = vadd.f32 %v3616_v33, %v3615_v25  ;;  %v3584_v54 = vpop.f32.mrf.mxu0  ;;  %v1718_v22 = vadd.f32 %v3549_v19, %v3509_v3 }
 0x174   : > { %v3618_v42 = vpop.f32.mrf.mxu1 }
 0x175   : > { %v2369_v45 = vadd.f32 %v3617_v8, %v3577_v38  ;;  %v2411_v47 = vadd.f32 %v4661_v37, %v2396_v39  ;;  %v3585_v12 = vpop.f32.mrf.mxu0  ;;  %v1734_v17 = vadd.f32 %v1718_v22, %v4632_v35  ;;  %v3846_v22 = vld [vmem:[%s4795_s3 + $0x68] sm:$0xff]  }
 0x176   : > { %v3619_v50 = vpop.f32.mrf.mxu1  ;;  %v3586_v31 = vadd.f32 %v3585_v12, %v3584_v54 }
 0x177   : > { %v2397_v48 = vadd.f32 %v2369_v45, %v1730_v4  ;;  %v3620_v51 = vadd.f32 %v3619_v50, %v3618_v42  ;;  %v2427_v24 = vmul.f32 0.2, %v2411_v47  ;;  %vm2419_vm2 = vcmp.ge.f32.partialorder %v2411_v47, 0.0  ;;  %v3587_v56 = vpop.f32.mrf.mxu0 }
 0x178   : > { %v3621_v55 = vpop.f32.mrf.mxu1 }
 0x179   : > { %v2412_v63 = vadd.f32 %v4661_v37, %v2397_v48  ;;  %v2374_v61 = vadd.f32 %v3620_v51, %v3580_v9  ;;  %v3588_v59 = vpop.f32.mrf.mxu0  ;;  %v2435_v29 = vsel %vm2419_vm2, %v2411_v47, %v2427_v24  ;;  %v3555_v47 = vadd.f32 %v4656_v20, %v4654_v2 }
 0x17a   : > { %v3622_v23 = vpop.f32.mrf.mxu1  ;;  %v3589_v41 = vadd.f32 %v3588_v59, %v3587_v56 }
 0x17b   : > { %v2398_v21 = vadd.f32 %v2374_v61, %v1731_v57  ;;  %v3623_v26 = vadd.f32 %v3622_v23, %v3621_v55  ;;  %vm2420_vm3 = vcmp.ge.f32.partialorder %v2412_v63, 0.0  ;;  %v2428_v14 = vmul.f32 0.2, %v2412_v63  ;;  %v3590_v38 = vpop.f32.mrf.mxu0 }
 0x17c   : > { %v3624_v4 = vpop.f32.mrf.mxu1  ;;  %v1726_v20 = vadd.f32 %v3555_v47, %v3515_v15  ;;  %v1735_v61 = vadd.f32 %v1723_v1, %v4634_v40 }
 0x17d   : > { %v2377_v28 = vadd.f32 %v3623_v26, %v3583_v7  ;;  %v2436_v25 = vsel %vm2420_vm3, %v2412_v63, %v2428_v14  ;;  %v2413_v0 = vadd.f32 %v4661_v37, %v2398_v21  ;;  %v3591_v42 = vpop.f32.mrf.mxu0 }
 0x17e   : > { %v3625_v6 = vpop.f32.mrf.mxu1  ;;  %v4671_v8 = vpack.c.bf16 %v2436_v25, %v2435_v29  ;;  %v3592_v53 = vadd.f32 %v3591_v42, %v3590_v38  ;;  %v1736_v21 = vadd.f32 %v1726_v20, %v4636_v46  ;;  %v3834_v46 = vld [vmem:[%s4795_s3 + $0x8] sm:$0xff]   ;;  %v3836_v29 = vld [vmem:[%s4795_s3 + $0x18] sm:$0xff]   ;;  %v3837_v25 = vld [vmem:[%s4795_s3 + $0x20] sm:$0xff]  }
 0x17f   : > { %v2399_v32 = vadd.f32 %v2377_v28, %v1732_v30  ;;  %v3626_v33 = vadd.f32 %v3625_v6, %v3624_v4  ;;  %v2429_v27 = vmul.f32 0.2, %v2413_v0  ;;  %v3593_v49 = vpop.f32.mrf.mxu0  ;;  %vm2421_vm5 = vcmp.ge.f32.partialorder %v2413_v0, 0.0  ;;  %v3843_v38 = vld [vmem:[%s4795_s3 + $0x50] sm:$0xff]  }
 0x180   : > { %v3627_v39 = vpop.f32.mrf.mxu1 }
 0x181   : > { %v2414_v11 = vadd.f32 %v4661_v37, %v2399_v32  ;;  %v2382_v62 = vadd.f32 %v3626_v33, %v3586_v31  ;;  %v3594_v55 = vpop.f32.mrf.mxu0  ;;  %v2437_v2 = vsel %vm2421_vm5, %v2413_v0, %v2429_v27  ;;  %v3838_v0 = vld [vmem:[%s4795_s3 + $0x28] sm:$0xff]   ;;  %v3839_v31 = vld [vmem:[%s4795_s3 + $0x30] sm:$0xff]   ;;  %v3840_v32 = vld [vmem:[%s4795_s3 + $0x38] sm:$0xff]  }
 0x182   : > { %v3628_v43 = vpop.f32.mrf.mxu1  ;;  %v3595_v12 = vadd.f32 %v3594_v55, %v3593_v49  ;;  %v3841_v33 = vld [vmem:[%s4795_s3 + $0x40] sm:$0xff]  }
 0x183   : > { %v2400_v44 = vadd.f32 %v2382_v62, %v1733_v34  ;;  %v3629_v45 = vadd.f32 %v3628_v43, %v3627_v39  ;;  %vm2422_vm4 = vcmp.ge.f32.partialorder %v2414_v11, 0.0  ;;  %v2430_v10 = vmul.f32 0.2, %v2414_v11  ;;  %v3842_v34 = vld [vmem:[%s4795_s3 + $0x48] sm:$0xff]   ;;  %v3844_v39 = vld [vmem:[%s4795_s3 + $0x58] sm:$0xff]  }
 0x184   : > { %v3630_v50 = vpop.f32.mrf.mxu1 }
 0x185   : > { %v2415_v9 = vadd.f32 %v4661_v37, %v2400_v44  ;;  %v2385_v60 = vadd.f32 %v3629_v45, %v3589_v41  ;;  %v2438_v51 = vsel %vm2422_vm4, %v2414_v11, %v2430_v10  ;;  %v3848_v11 = vld [vmem:[%s4795_s3 + $0x78] sm:$0xff]  }
 0x186   : > { %v3631_v48 = vpop.f32.mrf.mxu1  ;;  %v2476_v63 = vpack.c.bf16 %v2438_v51, %v2437_v2 }
 0x187   : > { %v2401_v54 = vadd.f32 %v2385_v60, %v1734_v17  ;;  %v3632_v57 = vadd.f32 %v3631_v48, %v3630_v50  ;;  %v2431_v7 = vmul.f32 0.2, %v2415_v9  ;;  %vm2423_vm6 = vcmp.ge.f32.partialorder %v2415_v9, 0.0 }
 0x188   : > { %v3633_v58 = vpop.f32.mrf.mxu1 }
 0x189   : > { %v2416_v35 = vadd.f32 %v4661_v37, %v2401_v54  ;;  %v2390_v13 = vadd.f32 %v3632_v57, %v3592_v53  ;;  %v2439_v56 = vsel %vm2423_vm6, %v2415_v9, %v2431_v7 }
 0x18a   : > { %v3634_v23 = vpop.f32.mrf.mxu1 }
 0x18b   : > { %v2402_v18 = vadd.f32 %v2390_v13, %v1735_v61  ;;  %v3635_v36 = vadd.f32 %v3634_v23, %v3633_v58  ;;  %vm2424_vm7 = vcmp.ge.f32.partialorder %v2416_v35, 0.0  ;;  %v2432_v24 = vmul.f32 0.2, %v2416_v35 }
 0x18d   : > { %v2417_v26 = vadd.f32 %v4661_v37, %v2402_v18  ;;  %v2393_v52 = vadd.f32 %v3635_v36, %v3595_v12  ;;  %v2440_v4 = vsel %vm2424_vm7, %v2416_v35, %v2432_v24 }
 0x18e   : > { %v2477_v14 = vpack.c.bf16 %v2440_v4, %v2439_v56 }
 0x18f   : > { %v2403_v40 = vadd.f32 %v2393_v52, %v1736_v21  ;;  %v2433_v19 = vmul.f32 0.2, %v2417_v26  ;;  %vm2425_vm8 = vcmp.ge.f32.partialorder %v2417_v26, 0.0 }
 0x191   : > { %v2418_v30 = vadd.f32 %v4661_v37, %v2403_v40  ;;  %v2441_v3 = vsel %vm2425_vm8, %v2417_v26, %v2433_v19  ;;  %v3835_v37 = vld [vmem:[%s4795_s3 + $0x10] sm:$0xff]  }
 0x193   : > { %vm2426_vm9 = vcmp.ge.f32.partialorder %v2418_v30, 0.0  ;;  %v2434_v28 = vmul.f32 0.2, %v2418_v30 }
 0x195   : > { %v2442_v59 = vsel %vm2426_vm9, %v2418_v30, %v2434_v28 }
 0x196   : > { %v2478_v6 = vpack.c.bf16 %v2442_v59, %v2441_v3 }
 0x198   : > { %3656 = vmatprep.subr.bf16.mxu0 %v2478_v6 }
 0x199   : > { %3657 = vmatpush3.bf16.msra.mxu0 %v2478_v6 }
 0x19a   : > { %3658 = vmatprep.subr.bf16.mxu0 %v2477_v14 }
 0x19d   : > { %3659 = vmatpush3.bf16.msra.mxu0 %v2477_v14 }
 0x19e   : > { %3660 = vmatprep.subr.bf16.mxu0 %v2476_v63 }
 0x1a1   : > { %3661 = vmatpush3.bf16.msra.mxu0 %v2476_v63 }
 0x1a2   : > { %3662 = vmatprep.subr.bf16.mxu0 %v4671_v8 }
 0x1a5   : > { %3663 = vmatpush3.bf16.msra.mxu0 %v4671_v8  ;;  %v3845_v8 = vld [vmem:[%s4795_s3 + $0x60] sm:$0xff]  }
 0x1a8   : > { %3665 = vmatmul.mubr.msk.bf16.vlgmr.msra.gmra.mxu0 %vm2559_vm1, %v3834_v46 }
 0x1a9   : > { %3668 = vmatprep.mubr.msk.bf16.mxu0 %vm2559_vm1, %v3835_v37 }
 0x1b0   : > { %3669 = vmatmul.mubr.msk.bf16.gmra.mxu0 %vm2559_vm1, %v3836_v29 }
 0x1b1   : > { %3672 = vmatprep.mubr.msk.bf16.mxu0 %vm2559_vm1, %v3837_v25 }
 0x1b8   : > { %3673 = vmatmul.mubr.msk.bf16.gmra.mxu0 %vm2559_vm1, %v3838_v0 }
 0x1b9   : > { %3676 = vmatprep.mubr.msk.bf16.mxu0 %vm2559_vm1, %v3839_v31 }
 0x1c0   : > { %3677 = vmatmul.mubr.msk.bf16.gmra.mxu0 %vm2559_vm1, %v3840_v32 }
 0x1c1   : > { %3680 = vmatprep.mubr.msk.bf16.mxu0 %vm2559_vm1, %v3841_v33 }
 0x1c8   : > { %3681 = vmatmul.mubr.msk.bf16.gmra.mxu0 %vm2559_vm1, %v3842_v34 }
 0x1c9   : > { %3684 = vmatprep.mubr.msk.bf16.mxu0 %vm2559_vm1, %v3843_v38 }
 0x1d0   : > { %3685 = vmatmul.mubr.msk.bf16.gmra.mxu0 %vm2559_vm1, %v3844_v39 }
 0x1d1   : > { %3688 = vmatprep.mubr.msk.bf16.mxu0 %vm2559_vm1, %v3845_v8 }
 0x1d8   : > { %3689 = vmatmul.mubr.msk.bf16.gmra.mxu0 %vm2559_vm1, %v3846_v22 }
 0x1d9   : > { %3692 = vmatprep.mubr.msk.bf16.mxu0 %vm2559_vm1, %v3847_v5 }
 0x1e0   : > { %3693 = vmatmul.mubr.msk.bf16.gmra.mxu0 %vm2559_vm1, %v3848_v11 }
 0x268   : > { %v3666_v62 = vpop.f32.mrf.mxu0 }
 0x269   : > { %2771 = vst [vmem:[%s4755_s9 + $0x10] sm:$0xff] %v3666_v62 }
 0x26a   : > { %v2642_v16 = vpop.f32.mrf.mxu0 }
 0x26b   : > { %2769 = vst [vmem:[%s4755_s9] sm:$0xff] %v2642_v16 }
 0x26c   : > { %v3667_v41 = vpop.f32.mrf.mxu0 }
 0x26d   : > { %2772 = vst [vmem:[%s4755_s9 + $0x18] sm:$0xff] %v3667_v41 }
 0x26e   : > { %v2645_v42 = vpop.f32.mrf.mxu0 }
 0x26f   : > { %2770 = vst [vmem:[%s4755_s9 + $0x8] sm:$0xff] %v2645_v42 }
 0x270   : > { %v3670_v43 = vpop.f32.mrf.mxu0 }
 0x271   : > { %2775 = vst [vmem:[%s4755_s9 + $0x30] sm:$0xff] %v3670_v43 }
 0x272   : > { %v2658_v44 = vpop.f32.mrf.mxu0 }
 0x273   : > { %2773 = vst [vmem:[%s4755_s9 + $0x20] sm:$0xff] %v2658_v44 }
 0x274   : > { %v3671_v45 = vpop.f32.mrf.mxu0 }
 0x275   : > { %2776 = vst [vmem:[%s4755_s9 + $0x38] sm:$0xff] %v3671_v45 }
 0x276   : > { %v2661_v27 = vpop.f32.mrf.mxu0 }
 0x277   : > { %2774 = vst [vmem:[%s4755_s9 + $0x28] sm:$0xff] %v2661_v27 }
 0x278   : > { %v3674_v47 = vpop.f32.mrf.mxu0 }
 0x279   : > { %2779 = vst [vmem:[%s4755_s9 + $0x50] sm:$0xff] %v3674_v47 }
 0x27a   : > { %v2674_v49 = vpop.f32.mrf.mxu0 }
 0x27b   : > { %2777 = vst [vmem:[%s4755_s9 + $0x40] sm:$0xff] %v2674_v49 }
 0x27c   : > { %v3675_v50 = vpop.f32.mrf.mxu0 }
 0x27d   : > { %2780 = vst [vmem:[%s4755_s9 + $0x58] sm:$0xff] %v3675_v50 }
 0x27e   : > { %v2677_v10 = vpop.f32.mrf.mxu0 }
 0x27f   : > { %2778 = vst [vmem:[%s4755_s9 + $0x48] sm:$0xff] %v2677_v10 }
 0x280   : > { %v3678_v17 = vpop.f32.mrf.mxu0 }
 0x281   : > { %2783 = vst [vmem:[%s4755_s9 + $0x70] sm:$0xff] %v3678_v17 }
 0x282   : > { %v2690_v1 = vpop.f32.mrf.mxu0 }
 0x283   : > { %2781 = vst [vmem:[%s4755_s9 + $0x60] sm:$0xff] %v2690_v1 }
 0x284   : > { %v3679_v9 = vpop.f32.mrf.mxu0 }
 0x285   : > { %2784 = vst [vmem:[%s4755_s9 + $0x78] sm:$0xff] %v3679_v9 }
 0x286   : > { %v2693_v60 = vpop.f32.mrf.mxu0 }
 0x287   : > { %2782 = vst [vmem:[%s4755_s9 + $0x68] sm:$0xff] %v2693_v60 }
 0x288   : > { %v3682_v15 = vpop.f32.mrf.mxu0 }
 0x289   : > { %2787 = vst [vmem:[%s4755_s9 + $0x90] sm:$0xff] %v3682_v15 }
 0x28a   : > { %v2706_v48 = vpop.f32.mrf.mxu0 }
 0x28b   : > { %2785 = vst [vmem:[%s4755_s9 + $0x80] sm:$0xff] %v2706_v48 }
 0x28c   : > { %v3683_v51 = vpop.f32.mrf.mxu0 }
 0x28d   : > { %2788 = vst [vmem:[%s4755_s9 + $0x98] sm:$0xff] %v3683_v51 }
 0x28e   : > { %v2709_v53 = vpop.f32.mrf.mxu0 }
 0x28f   : > { %2786 = vst [vmem:[%s4755_s9 + $0x88] sm:$0xff] %v2709_v53 }
 0x290   : > { %v3686_v54 = vpop.f32.mrf.mxu0 }
 0x291   : > { %2791 = vst [vmem:[%s4755_s9 + $0xb0] sm:$0xff] %v3686_v54 }
 0x292   : > { %v2722_v55 = vpop.f32.mrf.mxu0 }
 0x293   : > { %2789 = vst [vmem:[%s4755_s9 + $0xa0] sm:$0xff] %v2722_v55 }
 0x294   : > { %v3687_v57 = vpop.f32.mrf.mxu0 }
 0x295   : > { %2792 = vst [vmem:[%s4755_s9 + $0xb8] sm:$0xff] %v3687_v57 }
 0x296   : > { %v2725_v2 = vpop.f32.mrf.mxu0 }
 0x297   : > { %2790 = vst [vmem:[%s4755_s9 + $0xa8] sm:$0xff] %v2725_v2 }
 0x298   : > { %v3690_v20 = vpop.f32.mrf.mxu0 }
 0x299   : > { %2795 = vst [vmem:[%s4755_s9 + $0xd0] sm:$0xff] %v3690_v20 }
 0x29a   : > { %v2738_v58 = vpop.f32.mrf.mxu0 }
 0x29b   : > { %2793 = vst [vmem:[%s4755_s9 + $0xc0] sm:$0xff] %v2738_v58 }
 0x29c   : > { %v3691_v63 = vpop.f32.mrf.mxu0 }
 0x29d   : > { %2796 = vst [vmem:[%s4755_s9 + $0xd8] sm:$0xff] %v3691_v63 }
 0x29e   : > { %v2741_v61 = vpop.f32.mrf.mxu0 }
 0x29f   : > { %2794 = vst [vmem:[%s4755_s9 + $0xc8] sm:$0xff] %v2741_v61 }
 0x2a0   : > { %v3694_v35 = vpop.f32.mrf.mxu0 }
 0x2a1   : > { %2799 = vst [vmem:[%s4755_s9 + $0xf0] sm:$0xff] %v3694_v35 }
 0x2a2   : > { %v2754_v13 = vpop.f32.mrf.mxu0 }
 0x2a3   : > { %2797 = vst [vmem:[%s4755_s9 + $0xe0] sm:$0xff] %v2754_v13 }
 0x2a4   : > { %v3695_v7 = vpop.f32.mrf.mxu0 }
 0x2a5   : > { %2800 = vst [vmem:[%s4755_s9 + $0xf8] sm:$0xff] %v3695_v7 }
 0x2a6   : > { %v2757_v12 = vpop.f32.mrf.mxu0 }
 0x2a7   : > { %2798 = vst [vmem:[%s4755_s9 + $0xe8] sm:$0xff] %v2757_v12 }
 0x2a8 PF: > { %s14_s15 = sadd.s32 1, %s3855_s15  }
 0x2a9   : > { %p11_p4 = scmp.ge.s32.totalorder %s14_s15, 4  }
 0x2ab   :  { %13 = sbr.rel (!%p11_p4) target bundleno = 1 (0x1), region = 70 }

// kernel: unet_disc_forward.9
= control target key start
LH: loop header
LB: loop body
LE: loop exit
PB: predicated region body
PF: predicated region fallthrough
CT: control target
= control target key end

     0   :  { %s4166_s12 = smov 0   ;;  %s5320_s0 = inlined_call_operand.vmem [shape: f32[2,18,18,128], index: 0, kind: input, shape index: {}]   ;;  %s5321_s1 = inlined_call_operand.vmem [shape: bf16[9,128,128], index: 1, kind: input, shape index: {}]   ;;  %s5322_s2 = inlined_call_operand.vmem [shape: f32[1,128], index: 2, kind: input, shape index: {}]   ;;  %s5323_s3 = inlined_call_operand.vmem [shape: f32[2,16,16,128], index: 3, kind: output, shape index: {}]  }
   0x1 LB: > { %s2989_s13 = sadd.s32 4294967295, %s4144_s12   ;;  %p2993_p0 = scmp.ge.s32.totalorder %s4144_s12, 1  ;;  %s4144_s12 = sphi %s4166_s12, %s13_s12  }
   0x2   : > { %p137_p1 = scmp.lt.s32.totalorder %s4144_s12, 3 }
   0x4   : > { %p138_p2 = pnand %p2993_p0, %p137_p1 }
   0x6   : > { %141 = sbr.rel (%p138_p2) target bundleno = 530 (0x212), region = 32 }
   0xb   : > { %v4066_v0 = vld [vmem:[%s5321_s1 + $0x78] sm:$0xff]   ;;  %p161_p3 = scmp.lt.s32.totalorder %s2989_s13, 1  ;;  %v4067_v1 = vld [vmem:[%s5321_s1 + $0x70] sm:$0xff]   ;;  %v4068_v2 = vld [vmem:[%s5321_s1 + $0x68] sm:$0xff]  }
   0xc   : > { %3609 = vmatprep.subr.bf16.mxu0 %v4066_v0  ;;  %4041 = vmatprep.subr.bf16.mxu1 %v4066_v0  ;;  %v4069_v3 = vld [vmem:[%s5321_s1 + $0x60] sm:$0xff]   ;;  %v4070_v10 = vld [vmem:[%s5321_s1 + $0x58] sm:$0xff]   ;;  %v4071_v11 = vld [vmem:[%s5321_s1 + $0x50] sm:$0xff]  }
   0xd   : > { %s5405_s13 = smov (!%p161_p3, %s2989_s13), 1  ;;  %3610 = vmatpush3.bf16.msra.mxu0 %v4066_v0  ;;  %4049 = vmatpush3.bf16.msra.mxu1 %v4066_v0  ;;  %v4072_v12 = vld [vmem:[%s5321_s1 + $0x48] sm:$0xff]   ;;  %v4073_v13 = vld [vmem:[%s5321_s1 + $0x40] sm:$0xff]   ;;  %v4074_v18 = vld [vmem:[%s5321_s1 + $0x38] sm:$0xff]  }
   0xe   : > { %3611 = vmatprep.subr.bf16.mxu0 %v4067_v1  ;;  %4042 = vmatprep.subr.bf16.mxu1 %v4067_v1  ;;  %s4057_s20 = smul.u32 432, %s5405_s13  ;;  %v4075_v19 = vld [vmem:[%s5321_s1 + $0xb8] sm:$0xff]   ;;  %v4076_v26 = vld [vmem:[%s5321_s1 + $0x30] sm:$0xff]   ;;  %v4078_v34 = vld [vmem:[%s5321_s1 + $0x28] sm:$0xff]  }
   0xf   : > { %v4077_v27 = vld [vmem:[%s5321_s1 + $0xb0] sm:$0xff]   ;;  %v4079_v35 = vld [vmem:[%s5321_s1 + $0xa8] sm:$0xff]   ;;  %v4080_v42 = vld [vmem:[%s5321_s1 + $0x20] sm:$0xff]  }
  0x10   : > { %s4189_s23 = scalar_lea.vmem %s5320_s0, %s4057_s20  ;;  %v4081_v43 = vld [vmem:[%s5321_s1 + $0xa0] sm:$0xff]   ;;  %v4082_v50 = vld [vmem:[%s5321_s1 + $0x18] sm:$0xff]   ;;  %v4084_v58 = vld [vmem:[%s5321_s1 + $0x10] sm:$0xff]  }
  0x11   : > { %3612 = vmatpush3.bf16.msra.mxu0 %v4067_v1  ;;  %4050 = vmatpush3.bf16.msra.mxu1 %v4067_v1  ;;  %v236_v4 = vld [vmem:[%s4189_s23 + $0x1] sm:$0xff]  ;;  %v237_v5 = vld [vmem:[%s4189_s23 + $0x9] sm:$0xff]  ;;  %v238_v14 = vld [vmem:[%s4189_s23 + $0x19] sm:$0xff] }
  0x12   : > { %3613 = vmatprep.subr.bf16.mxu0 %v4068_v2  ;;  %4043 = vmatprep.subr.bf16.mxu1 %v4068_v2  ;;  %v252_v6 = vld [vmem:[%s4189_s23 + $0xc1] sm:$0xff]  ;;  %v268_v7 = vpack.c.bf16 %v237_v5, %v236_v4  ;;  %v253_v8 = vld [vmem:[%s4189_s23 + $0xc9] sm:$0xff]  ;;  %v254_v16 = vld [vmem:[%s4189_s23 + $0xd9] sm:$0xff] }
  0x13   : > { %v4198_v9 = vpack.c.bf16 %v253_v8, %v252_v6  ;;  %v239_v15 = vld [vmem:[%s4189_s23 + $0x21] sm:$0xff]  ;;  %v240_v20 = vld [vmem:[%s4189_s23 + $0x31] sm:$0xff]  ;;  %v241_v21 = vld [vmem:[%s4189_s23 + $0x39] sm:$0xff] }
  0x14   : > { %3625 = vmatprep.mubr.bf16.mxu0 %v268_v7  ;;  %v255_v17 = vld [vmem:[%s4189_s23 + $0xe1] sm:$0xff]  ;;  %v4225_v22 = vpack.c.bf16 %v239_v15, %v238_v14  ;;  %v256_v24 = vld [vmem:[%s4189_s23 + $0xf1] sm:$0xff]  ;;  %v257_v25 = vld [vmem:[%s4189_s23 + $0xf9] sm:$0xff]  ;;  %v4237_v28 = vpack.c.bf16 %v241_v21, %v240_v20 }
  0x15   : > { %3614 = vmatpush3.bf16.msra.mxu0 %v4068_v2  ;;  %4051 = vmatpush3.bf16.msra.mxu1 %v4068_v2  ;;  %v4227_v23 = vpack.c.bf16 %v255_v17, %v254_v16  ;;  %v4239_v29 = vpack.c.bf16 %v257_v25, %v256_v24  ;;  %v242_v30 = vld [vmem:[%s4189_s23 + $0x49] sm:$0xff]  ;;  %v243_v31 = vld [vmem:[%s4189_s23 + $0x51] sm:$0xff]  ;;  %v244_v36 = vld [vmem:[%s4189_s23 + $0x61] sm:$0xff] }
  0x16   : > { %3615 = vmatprep.subr.bf16.mxu0 %v4069_v3  ;;  %4044 = vmatprep.subr.bf16.mxu1 %v4069_v3  ;;  %v258_v32 = vld [vmem:[%s4189_s23 + $0x109] sm:$0xff]  ;;  %v259_v33 = vld [vmem:[%s4189_s23 + $0x111] sm:$0xff]  ;;  %v260_v38 = vld [vmem:[%s4189_s23 + $0x121] sm:$0xff]  ;;  %v4258_v39 = vpack.c.bf16 %v243_v31, %v242_v30 }
  0x17   : > { %3641 = vmatprep.mubr.bf16.mxu1 %v4198_v9  ;;  %v245_v37 = vld [vmem:[%s4189_s23 + $0x69] sm:$0xff]  ;;  %v4260_v40 = vpack.c.bf16 %v259_v33, %v258_v32  ;;  %v246_v46 = vld [vmem:[%s4189_s23 + $0x79] sm:$0xff]  ;;  %v247_v47 = vld [vmem:[%s4189_s23 + $0x81] sm:$0xff] }
  0x18   : > { %v261_v41 = vld [vmem:[%s4189_s23 + $0x129] sm:$0xff]  ;;  %v4269_v44 = vpack.c.bf16 %v245_v37, %v244_v36  ;;  %v262_v48 = vld [vmem:[%s4189_s23 + $0x139] sm:$0xff]  ;;  %v263_v49 = vld [vmem:[%s4189_s23 + $0x141] sm:$0xff]  ;;  %v4289_v54 = vpack.c.bf16 %v247_v47, %v246_v46 }
  0x19   : > { %3616 = vmatpush3.bf16.msra.mxu0 %v4069_v3  ;;  %4052 = vmatpush3.bf16.msra.mxu1 %v4069_v3  ;;  %v4271_v45 = vpack.c.bf16 %v261_v41, %v260_v38  ;;  %v4083_v51 = vld [vmem:[%s5321_s1 + $0x98] sm:$0xff]   ;;  %v4291_v55 = vpack.c.bf16 %v263_v49, %v262_v48  ;;  %v4085_v59 = vld [vmem:[%s5321_s1 + $0x90] sm:$0xff]   ;;  %v4086_v2 = vld [vmem:[%s5321_s1 + $0x8] sm:$0xff]  }
  0x1a   : > { %3617 = vmatprep.subr.bf16.mxu0 %v4070_v10  ;;  %4045 = vmatprep.subr.bf16.mxu1 %v4070_v10  ;;  %v248_v52 = vld [vmem:[%s4189_s23 + $0x91] sm:$0xff]  ;;  %v249_v53 = vld [vmem:[%s4189_s23 + $0x99] sm:$0xff]  ;;  %v250_v62 = vld [vmem:[%s4189_s23 + $0xa9] sm:$0xff] }
  0x1b   : > { %v264_v56 = vld [vmem:[%s4189_s23 + $0x151] sm:$0xff]  ;;  %v265_v57 = vld [vmem:[%s4189_s23 + $0x159] sm:$0xff]  ;;  %v4301_v60 = vpack.c.bf16 %v249_v53, %v248_v52  ;;  %v266_v0 = vld [vmem:[%s4189_s23 + $0x169] sm:$0xff] }
  0x1c   : > { %v4303_v61 = vpack.c.bf16 %v265_v57, %v264_v56  ;;  %v251_v63 = vld [vmem:[%s4189_s23 + $0xb1] sm:$0xff]  ;;  %v4087_v3 = vld [vmem:[%s5321_s1 + $0x88] sm:$0xff]   ;;  %v172_v4 = vld [vmem:[%s4189_s23] sm:$0xff] }
  0x1d   : > { %3618 = vmatpush3.bf16.msra.mxu0 %v4070_v10  ;;  %4053 = vmatpush3.bf16.msra.mxu1 %v4070_v10  ;;  %v267_v1 = vld [vmem:[%s4189_s23 + $0x171] sm:$0xff]  ;;  %v4320_v5 = vpack.c.bf16 %v251_v63, %v250_v62  ;;  %v173_v7 = vld [vmem:[%s4189_s23 + $0x8] sm:$0xff]  ;;  %v175_v16 = vld [vmem:[%s4189_s23 + $0x20] sm:$0xff] }
  0x1e   : > { %3619 = vmatprep.subr.bf16.mxu0 %v4071_v11  ;;  %4046 = vmatprep.subr.bf16.mxu1 %v4071_v11  ;;  %v4322_v6 = vpack.c.bf16 %v267_v1, %v266_v0  ;;  %v719_v8 = vld [vmem:[%s4189_s23 + $0x2] sm:$0xff]  ;;  %v720_v10 = vld [vmem:[%s4189_s23 + $0xa] sm:$0xff]  ;;  %v174_v15 = vld [vmem:[%s4189_s23 + $0x18] sm:$0xff] }
  0x1f   : > { %v751_v14 = vpack.c.bf16 %v720_v10, %v719_v8  ;;  %v721_v17 = vld [vmem:[%s4189_s23 + $0x1a] sm:$0xff]  ;;  %v176_v21 = vld [vmem:[%s4189_s23 + $0x30] sm:$0xff]  ;;  %v4094_v47 = vld [vmem:[%s5321_s1 + $0xe8] sm:$0xff]  }
  0x20   : > { %v4091_v20 = vld [vmem:[%s5321_s1 + $0x138] sm:$0xff]   ;;  %v4092_v33 = vld [vmem:[%s5321_s1 + $0xf0] sm:$0xff]   ;;  %v180_v41 = vld [vmem:[%s4189_s23 + $0x60] sm:$0xff] }
  0x21   : > { %3620 = vmatpush3.bf16.msra.mxu0 %v4071_v11  ;;  %4054 = vmatpush3.bf16.msra.mxu1 %v4071_v11  ;;  %v4088_v11 = vld [vmem:[%s5321_s1] sm:$0xff]   ;;  %v177_v24 = vld [vmem:[%s4189_s23 + $0x38] sm:$0xff]  ;;  %v725_v36 = vld [vmem:[%s4189_s23 + $0x4a] sm:$0xff] }
  0x22   : > { %3621 = vmatprep.subr.bf16.mxu0 %v4072_v12  ;;  %4047 = vmatprep.subr.bf16.mxu1 %v4072_v12  ;;  %v723_v25 = vld [vmem:[%s4189_s23 + $0x32] sm:$0xff]  ;;  %v4353_v31 = vpack.c.bf16 %v177_v24, %v176_v21  ;;  %v728_v46 = vld [vmem:[%s4189_s23 + $0x6a] sm:$0xff]  ;;  %v4096_v53 = vld [vmem:[%s5321_s1 + $0xe0] sm:$0xff]  }
  0x23   : > { %v4093_v37 = vld [vmem:[%s5321_s1 + $0x130] sm:$0xff]   ;;  %v4095_v48 = vld [vmem:[%s5321_s1 + $0x128] sm:$0xff]   ;;  %v182_v56 = vld [vmem:[%s4189_s23 + $0x78] sm:$0xff] }
  0x24   : > { %v726_v38 = vld [vmem:[%s4189_s23 + $0x52] sm:$0xff]  ;;  %v183_v57 = vld [vmem:[%s4189_s23 + $0x80] sm:$0xff]  ;;  %v736_v21 = vld [vmem:[%s4189_s23 + $0xca] sm:$0xff] }
  0x25   : > { %3622 = vmatpush3.bf16.msra.mxu0 %v4072_v12  ;;  %4055 = vmatpush3.bf16.msra.mxu1 %v4072_v12  ;;  %v4089_v12 = vld [vmem:[%s5321_s1 + $0x80] sm:$0xff]   ;;  %v184_v63 = vld [vmem:[%s4189_s23 + $0x90] sm:$0xff]  ;;  %v185_v0 = vld [vmem:[%s4189_s23 + $0x98] sm:$0xff] }
  0x26   : > { %3623 = vmatprep.subr.bf16.mxu0 %v4073_v13  ;;  %4048 = vmatprep.subr.bf16.mxu1 %v4073_v13  ;;  %v4097_v62 = vld [vmem:[%s5321_s1 + $0x120] sm:$0xff]   ;;  %v731_v1 = vld [vmem:[%s4189_s23 + $0x92] sm:$0xff]  ;;  %v4417_v10 = vpack.c.bf16 %v185_v0, %v184_v63  ;;  %v4102_v24 = vld [vmem:[%s5321_s1 + $0xc8] sm:$0xff]  }
  0x27   : > { %v194_v0 = vld [vmem:[%s4189_s23 + $0x108] sm:$0xff] }
  0x29   : > { %3624 = vmatpush3.bf16.msra.mxu0 %v4073_v13  ;;  %4056 = vmatpush3.bf16.msra.mxu1 %v4073_v13  ;;  %v204_v13 = vpack.c.bf16 %v173_v7, %v172_v4  ;;  %v4099_v4 = vld [vmem:[%s5321_s1 + $0x118] sm:$0xff]   ;;  %v4413_v7 = vpack.c.bf16 %v183_v57, %v182_v56 }
  0x2a   : > { %3657 = vmatprep.subr.bf16.mxu1 %v4074_v18  ;;  %3705 = vmatprep.subr.bf16.mxu0 %v4075_v19  ;;  %v4106_v56 = vld [vmem:[%s5321_s1 + $0x178] sm:$0xff]  }
  0x2b   : > { %v4107_v57 = vld [vmem:[%s5321_s1 + $0x1b8] sm:$0xff]  }
  0x2c   : > { %3626 = vmatmul.mubr.bf16.vlgmr.msra.gmra.mxu0 %v4225_v22  ;;  %3642 = vmatmul.mubr.bf16.vlgmr.msra.gmra.mxu1 %v4227_v23 }
  0x2d   : > { %3658 = vmatpush3.bf16.msra.mxu1 %v4074_v18  ;;  %3706 = vmatpush3.bf16.msra.mxu0 %v4075_v19  ;;  %v722_v18 = vld [vmem:[%s4189_s23 + $0x22] sm:$0xff]  ;;  %v4090_v19 = vld [vmem:[%s5321_s1 + $0xf8] sm:$0xff]  }
  0x2e   : > { %3659 = vmatprep.subr.bf16.mxu1 %v4076_v26  ;;  %3707 = vmatprep.subr.bf16.mxu0 %v4077_v27  ;;  %v4351_v30 = vpack.c.bf16 %v722_v18, %v721_v17  ;;  %v4101_v17 = vld [vmem:[%s5321_s1 + $0x110] sm:$0xff]   ;;  %v188_v18 = vld [vmem:[%s4189_s23 + $0xc0] sm:$0xff] }
  0x2f   : > { %3629 = vmatprep.mubr.bf16.mxu0 %v4237_v28  ;;  %3645 = vmatprep.mubr.bf16.mxu1 %v4239_v29 }
  0x31   : > { %3660 = vmatpush3.bf16.msra.mxu1 %v4076_v26  ;;  %3708 = vmatpush3.bf16.msra.mxu0 %v4077_v27  ;;  %v724_v26 = vld [vmem:[%s4189_s23 + $0x3a] sm:$0xff]  ;;  %v4349_v27 = vpack.c.bf16 %v175_v16, %v174_v15  ;;  %v733_v15 = vld [vmem:[%s4189_s23 + $0xaa] sm:$0xff]  ;;  %v734_v16 = vld [vmem:[%s4189_s23 + $0xb2] sm:$0xff] }
  0x32   : > { %3661 = vmatprep.subr.bf16.mxu1 %v4078_v34  ;;  %3709 = vmatprep.subr.bf16.mxu0 %v4079_v35  ;;  %v4355_v32 = vpack.c.bf16 %v724_v26, %v723_v25  ;;  %v4103_v25 = vld [vmem:[%s5321_s1 + $0x108] sm:$0xff]  }
  0x34   : > { %3630 = vmatmul.mubr.bf16.gmra.mxu0 %v4258_v39  ;;  %3646 = vmatmul.mubr.bf16.gmra.mxu1 %v4260_v40 }
  0x35   : > { %3662 = vmatpush3.bf16.msra.mxu1 %v4078_v34  ;;  %3710 = vmatpush3.bf16.msra.mxu0 %v4079_v35  ;;  %v178_v34 = vld [vmem:[%s4189_s23 + $0x48] sm:$0xff]  ;;  %v179_v35 = vld [vmem:[%s4189_s23 + $0x50] sm:$0xff] }
  0x36   : > { %3663 = vmatprep.subr.bf16.mxu1 %v4080_v42  ;;  %3711 = vmatprep.subr.bf16.mxu0 %v4081_v43  ;;  %v4381_v49 = vpack.c.bf16 %v179_v35, %v178_v34 }
  0x37   : > { %3633 = vmatprep.mubr.bf16.mxu0 %v4269_v44  ;;  %3649 = vmatprep.mubr.bf16.mxu1 %v4271_v45 }
  0x39   : > { %3664 = vmatpush3.bf16.msra.mxu1 %v4080_v42  ;;  %3712 = vmatpush3.bf16.msra.mxu0 %v4081_v43  ;;  %v181_v42 = vld [vmem:[%s4189_s23 + $0x68] sm:$0xff] }
  0x3a   : > { %3665 = vmatprep.subr.bf16.mxu1 %v4082_v50  ;;  %3713 = vmatprep.subr.bf16.mxu0 %v4083_v51  ;;  %v727_v43 = vld [vmem:[%s4189_s23 + $0x62] sm:$0xff] }
  0x3b   : > { %v4387_v52 = vpack.c.bf16 %v728_v46, %v727_v43  ;;  %v4105_v43 = vld [vmem:[%s5321_s1 + $0x100] sm:$0xff]   ;;  %v192_v46 = vld [vmem:[%s4189_s23 + $0xf0] sm:$0xff] }
  0x3c   : > { %3634 = vmatmul.mubr.bf16.gmra.mxu0 %v4289_v54  ;;  %3650 = vmatmul.mubr.bf16.gmra.mxu1 %v4291_v55 }
  0x3d   : > { %3666 = vmatpush3.bf16.msra.mxu1 %v4082_v50  ;;  %3714 = vmatpush3.bf16.msra.mxu0 %v4083_v51  ;;  %v4383_v50 = vpack.c.bf16 %v726_v38, %v725_v36  ;;  %v4385_v51 = vpack.c.bf16 %v181_v42, %v180_v41  ;;  %v4104_v36 = vld [vmem:[%s5321_s1 + $0xc0] sm:$0xff]  }
  0x3e   : > { %3667 = vmatprep.subr.bf16.mxu1 %v4084_v58  ;;  %3715 = vmatprep.subr.bf16.mxu0 %v4085_v59  ;;  %v191_v38 = vld [vmem:[%s4189_s23 + $0xe0] sm:$0xff] }
  0x3f   : > { %3637 = vmatprep.mubr.bf16.mxu0 %v4301_v60  ;;  %3653 = vmatprep.mubr.bf16.mxu1 %v4303_v61  ;;  %v737_v41 = vld [vmem:[%s4189_s23 + $0xda] sm:$0xff]  ;;  %v738_v42 = vld [vmem:[%s4189_s23 + $0xe2] sm:$0xff] }
  0x41   : > { %3668 = vmatpush3.bf16.msra.mxu1 %v4084_v58  ;;  %3716 = vmatpush3.bf16.msra.mxu0 %v4085_v59  ;;  %v729_v58 = vld [vmem:[%s4189_s23 + $0x7a] sm:$0xff]  ;;  %v730_v59 = vld [vmem:[%s4189_s23 + $0x82] sm:$0xff] }
  0x42   : > { %3669 = vmatprep.subr.bf16.mxu1 %v4086_v2  ;;  %3717 = vmatprep.subr.bf16.mxu0 %v4087_v3  ;;  %v4415_v8 = vpack.c.bf16 %v730_v59, %v729_v58  ;;  %v4479_v59 = vpack.c.bf16 %v738_v42, %v737_v41 }
  0x44   : > { %3638 = vmatmul.mubr.bf16.gmra.mxu0 %v4320_v5  ;;  %3654 = vmatmul.mubr.bf16.gmra.mxu1 %v4322_v6 }
  0x45   : > { %3670 = vmatpush3.bf16.msra.mxu1 %v4086_v2  ;;  %3718 = vmatpush3.bf16.msra.mxu0 %v4087_v3  ;;  %v732_v2 = vld [vmem:[%s4189_s23 + $0x9a] sm:$0xff] }
  0x46   : > { %3671 = vmatprep.subr.bf16.mxu1 %v4088_v11  ;;  %3719 = vmatprep.subr.bf16.mxu0 %v4089_v12  ;;  %v4098_v3 = vld [vmem:[%s5321_s1 + $0xd8] sm:$0xff]  }
  0x47   : > { %3673 = vmatprep.mubr.bf16.mxu1 %v204_v13  ;;  %3721 = vmatprep.mubr.bf16.mxu0 %v751_v14  ;;  %v186_v13 = vld [vmem:[%s4189_s23 + $0xa8] sm:$0xff]  ;;  %v187_v14 = vld [vmem:[%s4189_s23 + $0xb0] sm:$0xff] }
  0x48   : > { %v4445_v26 = vpack.c.bf16 %v187_v14, %v186_v13  ;;  %v743_v13 = vld [vmem:[%s4189_s23 + $0x122] sm:$0xff]  ;;  %v744_v14 = vld [vmem:[%s4189_s23 + $0x12a] sm:$0xff] }
  0x49   : > { %3672 = vmatpush3.bf16.msra.mxu1 %v4088_v11  ;;  %3720 = vmatpush3.bf16.msra.mxu0 %v4089_v12  ;;  %v4419_v11 = vpack.c.bf16 %v732_v2, %v731_v1  ;;  %v4100_v12 = vld [vmem:[%s5321_s1 + $0xd0] sm:$0xff]  }
  0x4a   : > { %3753 = vmatprep.subr.bf16.mxu1 %v4090_v19  ;;  %3801 = vmatprep.subr.bf16.mxu0 %v4091_v20  ;;  %v195_v1 = vld [vmem:[%s4189_s23 + $0x110] sm:$0xff] }
  0x4b   : > { %v741_v2 = vld [vmem:[%s4189_s23 + $0x10a] sm:$0xff] }
  0x4c   : > { %3674 = vmatmul.mubr.bf16.vlgmr.msra.gmra.mxu1 %v4349_v27  ;;  %3722 = vmatmul.mubr.bf16.vlgmr.msra.gmra.mxu0 %v4351_v30 }
  0x4d   : > { %3754 = vmatpush3.bf16.msra.mxu1 %v4090_v19  ;;  %3802 = vmatpush3.bf16.msra.mxu0 %v4091_v20  ;;  %v189_v19 = vld [vmem:[%s4189_s23 + $0xc8] sm:$0xff] }
  0x4e   : > { %3677 = vmatprep.mubr.bf16.mxu1 %v4353_v31  ;;  %3725 = vmatprep.mubr.bf16.mxu0 %v4355_v32  ;;  %v735_v20 = vld [vmem:[%s4189_s23 + $0xc2] sm:$0xff]  ;;  %v4449_v34 = vpack.c.bf16 %v189_v19, %v188_v18  ;;  %v4503_v18 = vpack.c.bf16 %v744_v14, %v743_v13  ;;  %v198_v19 = vld [vmem:[%s4189_s23 + $0x138] sm:$0xff] }
  0x4f   : > { %3755 = vmatprep.subr.bf16.mxu1 %v4092_v33  ;;  %3803 = vmatprep.subr.bf16.mxu0 %v4093_v37  ;;  %v4451_v35 = vpack.c.bf16 %v736_v21, %v735_v20  ;;  %v199_v20 = vld [vmem:[%s4189_s23 + $0x140] sm:$0xff]  ;;  %v4119_v13 = vld [vmem:[%s5321_s1 + $0x188] sm:$0xff]   ;;  %v4122_v14 = vld [vmem:[%s5321_s1 + $0x1f8] sm:$0xff]  }
  0x50   : > { %v745_v21 = vld [vmem:[%s4189_s23 + $0x13a] sm:$0xff]  ;;  %v4517_v41 = vpack.c.bf16 %v199_v20, %v198_v19 }
  0x51   : > { %3756 = vmatpush3.bf16.msra.mxu1 %v4092_v33  ;;  %3804 = vmatpush3.bf16.msra.mxu0 %v4093_v37  ;;  %v4447_v33 = vpack.c.bf16 %v734_v16, %v733_v15  ;;  %v190_v37 = vld [vmem:[%s4189_s23 + $0xd8] sm:$0xff]  ;;  %v4497_v15 = vpack.c.bf16 %v195_v1, %v194_v0 }
  0x52   : > { %3757 = vmatprep.subr.bf16.mxu1 %v4094_v47  ;;  %3805 = vmatprep.subr.bf16.mxu0 %v4095_v48  ;;  %v4477_v58 = vpack.c.bf16 %v191_v38, %v190_v37  ;;  %v747_v37 = vld [vmem:[%s4189_s23 + $0x152] sm:$0xff]  ;;  %v748_v38 = vld [vmem:[%s4189_s23 + $0x15a] sm:$0xff] }
  0x53   : > { %v750_v0 = vld [vmem:[%s4189_s23 + $0x172] sm:$0xff] }
  0x54   : > { %3678 = vmatmul.mubr.bf16.gmra.mxu1 %v4381_v49  ;;  %3726 = vmatmul.mubr.bf16.gmra.mxu0 %v4383_v50  ;;  %v4123_v19 = vld [vmem:[%s5321_s1 + $0x238] sm:$0xff]  }
  0x55   : > { %3681 = vmatprep.mubr.bf16.mxu1 %v4385_v51  ;;  %3729 = vmatprep.mubr.bf16.mxu0 %v4387_v52 }
  0x56   : > { %3758 = vmatpush3.bf16.msra.mxu1 %v4094_v47  ;;  %3806 = vmatpush3.bf16.msra.mxu0 %v4095_v48  ;;  %v193_v47 = vld [vmem:[%s4189_s23 + $0xf8] sm:$0xff] }
  0x57   : > { %3759 = vmatprep.subr.bf16.mxu1 %v4096_v53  ;;  %3807 = vmatprep.subr.bf16.mxu0 %v4097_v62  ;;  %v739_v48 = vld [vmem:[%s4189_s23 + $0xf2] sm:$0xff] }
  0x5a   : > { %3760 = vmatpush3.bf16.msra.mxu1 %v4096_v53  ;;  %3808 = vmatpush3.bf16.msra.mxu0 %v4097_v62  ;;  %v740_v53 = vld [vmem:[%s4189_s23 + $0xfa] sm:$0xff]  ;;  %v4481_v62 = vpack.c.bf16 %v193_v47, %v192_v46  ;;  %v4523_v46 = vpack.c.bf16 %v748_v38, %v747_v37  ;;  %v202_v47 = vld [vmem:[%s4189_s23 + $0x168] sm:$0xff] }
  0x5b   : > { %3761 = vmatprep.subr.bf16.mxu1 %v4098_v3  ;;  %3809 = vmatprep.subr.bf16.mxu0 %v4099_v4  ;;  %v4483_v63 = vpack.c.bf16 %v740_v53, %v739_v48  ;;  %v203_v48 = vld [vmem:[%s4189_s23 + $0x170] sm:$0xff] }
  0x5c   : > { %3682 = vmatmul.mubr.bf16.gmra.mxu1 %v4413_v7  ;;  %3730 = vmatmul.mubr.bf16.gmra.mxu0 %v4415_v8  ;;  %v749_v53 = vld [vmem:[%s4189_s23 + $0x16a] sm:$0xff]  ;;  %v4533_v1 = vpack.c.bf16 %v203_v48, %v202_v47  ;;  %v3252_v47 = vld [vmem:[%s4189_s23 + $0x1a0] sm:$0xff] }
  0x5d   : > { %3685 = vmatprep.mubr.bf16.mxu1 %v4417_v10  ;;  %3733 = vmatprep.mubr.bf16.mxu0 %v4419_v11  ;;  %v3277_v48 = vld [vmem:[%s4189_s23 + $0x31] sm:$0xff] }
  0x5e   : > { %3762 = vmatpush3.bf16.msra.mxu1 %v4098_v3  ;;  %3810 = vmatpush3.bf16.msra.mxu0 %v4099_v4  ;;  %v742_v3 = vld [vmem:[%s4189_s23 + $0x112] sm:$0xff]  ;;  %v196_v4 = vld [vmem:[%s4189_s23 + $0x120] sm:$0xff] }
  0x5f   : > { %3763 = vmatprep.subr.bf16.mxu1 %v4100_v12  ;;  %3811 = vmatprep.subr.bf16.mxu0 %v4101_v17  ;;  %v4499_v16 = vpack.c.bf16 %v742_v3, %v741_v2  ;;  %v4535_v2 = vpack.c.bf16 %v750_v0, %v749_v53  ;;  %v4108_v3 = vld [vmem:[%s5321_s1 + $0x170] sm:$0xff]  }
  0x62   : > { %3764 = vmatpush3.bf16.msra.mxu1 %v4100_v12  ;;  %3812 = vmatpush3.bf16.msra.mxu0 %v4101_v17  ;;  %v197_v12 = vld [vmem:[%s4189_s23 + $0x128] sm:$0xff] }
  0x63   : > { %3765 = vmatprep.subr.bf16.mxu1 %v4102_v24  ;;  %3813 = vmatprep.subr.bf16.mxu0 %v4103_v25  ;;  %v4501_v17 = vpack.c.bf16 %v197_v12, %v196_v4  ;;  %v4109_v4 = vld [vmem:[%s5321_s1 + $0x1b0] sm:$0xff]   ;;  %v4118_v12 = vld [vmem:[%s5321_s1 + $0x148] sm:$0xff]  }
  0x64   : > { %3686 = vmatmul.mubr.bf16.gmra.mxu1 %v4445_v26  ;;  %3734 = vmatmul.mubr.bf16.gmra.mxu0 %v4447_v33 }
  0x65   : > { %3689 = vmatprep.mubr.bf16.mxu1 %v4449_v34  ;;  %3737 = vmatprep.mubr.bf16.mxu0 %v4451_v35 }
  0x66   : > { %3766 = vmatpush3.bf16.msra.mxu1 %v4102_v24  ;;  %3814 = vmatpush3.bf16.msra.mxu0 %v4103_v25  ;;  %v746_v24 = vld [vmem:[%s4189_s23 + $0x142] sm:$0xff]  ;;  %v200_v25 = vld [vmem:[%s4189_s23 + $0x150] sm:$0xff] }
  0x67   : > { %3767 = vmatprep.subr.bf16.mxu1 %v4104_v36  ;;  %3815 = vmatprep.subr.bf16.mxu0 %v4105_v43  ;;  %v4519_v42 = vpack.c.bf16 %v746_v24, %v745_v21 }
  0x6a   : > { %3768 = vmatpush3.bf16.msra.mxu1 %v4104_v36  ;;  %3816 = vmatpush3.bf16.msra.mxu0 %v4105_v43  ;;  %v201_v36 = vld [vmem:[%s4189_s23 + $0x158] sm:$0xff] }
  0x6b   : > { %3849 = vmatprep.subr.bf16.mxu1 %v4106_v56  ;;  %3897 = vmatprep.subr.bf16.mxu0 %v4107_v57  ;;  %v4521_v43 = vpack.c.bf16 %v201_v36, %v200_v25 }
  0x6c   : > { %3690 = vmatmul.mubr.bf16.gmra.mxu1 %v4477_v58  ;;  %3738 = vmatmul.mubr.bf16.gmra.mxu0 %v4479_v59 }
  0x6d   : > { %3693 = vmatprep.mubr.bf16.mxu1 %v4481_v62  ;;  %3741 = vmatprep.mubr.bf16.mxu0 %v4483_v63 }
  0x74   : > { %3694 = vmatmul.mubr.bf16.gmra.mxu1 %v4497_v15  ;;  %3742 = vmatmul.mubr.bf16.gmra.mxu0 %v4499_v16 }
  0x75   : > { %3697 = vmatprep.mubr.bf16.mxu1 %v4501_v17  ;;  %3745 = vmatprep.mubr.bf16.mxu0 %v4503_v18 }
  0x7c   : > { %3698 = vmatmul.mubr.bf16.gmra.mxu1 %v4517_v41  ;;  %3746 = vmatmul.mubr.bf16.gmra.mxu0 %v4519_v42 }
  0x7d   : > { %3701 = vmatprep.mubr.bf16.mxu1 %v4521_v43  ;;  %3749 = vmatprep.mubr.bf16.mxu0 %v4523_v46 }
  0x84   : > { %3702 = vmatmul.mubr.bf16.gmra.mxu1 %v4533_v1  ;;  %3750 = vmatmul.mubr.bf16.gmra.mxu0 %v4535_v2 }
  0x85   : > { %3769 = vmatprep.mubr.bf16.mxu1 %v4349_v27  ;;  %3817 = vmatprep.mubr.bf16.mxu0 %v4225_v22  ;;  %v4110_v22 = vld [vmem:[%s5321_s1 + $0x168] sm:$0xff]  }
  0x86   : > { %v4111_v27 = vld [vmem:[%s5321_s1 + $0x1a8] sm:$0xff]  }
  0x8c   : > { %3770 = vmatmul.mubr.bf16.vlgmr.msra.gmra.mxu1 %v4353_v31  ;;  %3818 = vmatmul.mubr.bf16.vlgmr.msra.gmra.mxu0 %v4237_v28  ;;  %v4112_v28 = vld [vmem:[%s5321_s1 + $0x160] sm:$0xff]  }
  0x8d   : > { %3850 = vmatpush3.bf16.msra.mxu1 %v4106_v56  ;;  %3898 = vmatpush3.bf16.msra.mxu0 %v4107_v57  ;;  %v4114_v56 = vld [vmem:[%s5321_s1 + $0x158] sm:$0xff]  }
  0x8e   : > { %3773 = vmatprep.mubr.bf16.mxu1 %v4381_v49  ;;  %3821 = vmatprep.mubr.bf16.mxu0 %v4258_v39  ;;  %v4113_v39 = vld [vmem:[%s5321_s1 + $0x1a0] sm:$0xff]   ;;  %v4115_v57 = vld [vmem:[%s5321_s1 + $0x198] sm:$0xff]  }
  0x8f   : > { %3851 = vmatprep.subr.bf16.mxu1 %v4108_v3  ;;  %3899 = vmatprep.subr.bf16.mxu0 %v4109_v4 }
  0x91   : > { %3852 = vmatpush3.bf16.msra.mxu1 %v4108_v3  ;;  %3900 = vmatpush3.bf16.msra.mxu0 %v4109_v4  ;;  %v3278_v3 = vld [vmem:[%s4189_s23 + $0x39] sm:$0xff] }
  0x92   : > { %3853 = vmatprep.subr.bf16.mxu1 %v4110_v22  ;;  %3901 = vmatprep.subr.bf16.mxu0 %v4111_v27  ;;  %v3333_v4 = vld [vmem:[%s4189_s23 + $0x32] sm:$0xff] }
  0x94   : > { %3774 = vmatmul.mubr.bf16.gmra.mxu1 %v4385_v51  ;;  %3822 = vmatmul.mubr.bf16.gmra.mxu0 %v4269_v44  ;;  %v4116_v44 = vld [vmem:[%s5321_s1 + $0x150] sm:$0xff]  }
  0x95   : > { %3777 = vmatprep.mubr.bf16.mxu1 %v4413_v7  ;;  %3825 = vmatprep.mubr.bf16.mxu0 %v4289_v54  ;;  %v4117_v54 = vld [vmem:[%s5321_s1 + $0x190] sm:$0xff]  }
  0x96   : > { %3854 = vmatpush3.bf16.msra.mxu1 %v4110_v22  ;;  %3902 = vmatpush3.bf16.msra.mxu0 %v4111_v27 }
  0x97   : > { %3855 = vmatprep.subr.bf16.mxu1 %v4112_v28  ;;  %3903 = vmatprep.subr.bf16.mxu0 %v4113_v39 }
  0x9a   : > { %3856 = vmatpush3.bf16.msra.mxu1 %v4112_v28  ;;  %3904 = vmatpush3.bf16.msra.mxu0 %v4113_v39  ;;  %v2283_v28 = vpack.c.bf16 %v3278_v3, %v3277_v48  ;;  %v3341_v48 = vld [vmem:[%s4189_s23 + $0x92] sm:$0xff]  ;;  %v3342_v3 = vld [vmem:[%s4189_s23 + $0x9a] sm:$0xff] }
  0x9b   : > { %3857 = vmatprep.subr.bf16.mxu1 %v4114_v56  ;;  %3905 = vmatprep.subr.bf16.mxu0 %v4115_v57 }
  0x9c   : > { %3778 = vmatmul.mubr.bf16.gmra.mxu1 %v4417_v10  ;;  %3826 = vmatmul.mubr.bf16.gmra.mxu0 %v4301_v60  ;;  %v4120_v60 = vld [vmem:[%s5321_s1 + $0x140] sm:$0xff]  }
  0x9d   : > { %3781 = vmatprep.mubr.bf16.mxu1 %v4445_v26  ;;  %3829 = vmatprep.mubr.bf16.mxu0 %v4320_v5  ;;  %v4121_v5 = vld [vmem:[%s5321_s1 + $0x180] sm:$0xff]  }
  0x9e   : > { %3858 = vmatpush3.bf16.msra.mxu1 %v4114_v56  ;;  %3906 = vmatpush3.bf16.msra.mxu0 %v4115_v57 }
  0x9f   : > { %3859 = vmatprep.subr.bf16.mxu1 %v4116_v44  ;;  %3907 = vmatprep.subr.bf16.mxu0 %v4117_v54 }
  0xa2   : > { %3860 = vmatpush3.bf16.msra.mxu1 %v4116_v44  ;;  %3908 = vmatpush3.bf16.msra.mxu0 %v4117_v54 }
  0xa3   : > { %3861 = vmatprep.subr.bf16.mxu1 %v4118_v12  ;;  %3909 = vmatprep.subr.bf16.mxu0 %v4119_v13 }
  0xa4   : > { %3782 = vmatmul.mubr.bf16.gmra.mxu1 %v4449_v34  ;;  %3830 = vmatmul.mubr.bf16.gmra.mxu0 %v4198_v9  ;;  %v3083_v9 = vld [vmem:[%s4189_s23 + $0x180] sm:$0xff] }
  0xa5   : > { %3785 = vmatprep.mubr.bf16.mxu1 %v4477_v58  ;;  %3833 = vmatprep.mubr.bf16.mxu0 %v4227_v23  ;;  %v3084_v23 = vld [vmem:[%s4189_s23 + $0x188] sm:$0xff] }
  0xa6   : > { %3862 = vmatpush3.bf16.msra.mxu1 %v4118_v12  ;;  %3910 = vmatpush3.bf16.msra.mxu0 %v4119_v13  ;;  %v4621_v20 = vpack.c.bf16 %v3084_v23, %v3083_v9  ;;  %v3279_v12 = vld [vmem:[%s4189_s23 + $0x49] sm:$0xff]  ;;  %v3280_v13 = vld [vmem:[%s4189_s23 + $0x51] sm:$0xff] }
  0xa7   : > { %3863 = vmatprep.subr.bf16.mxu1 %v4120_v60  ;;  %3911 = vmatprep.subr.bf16.mxu0 %v4121_v5  ;;  %v3282_v23 = vld [vmem:[%s4189_s23 + $0x69] sm:$0xff] }
  0xaa   : > { %3864 = vmatpush3.bf16.msra.mxu1 %v4120_v60  ;;  %3912 = vmatpush3.bf16.msra.mxu0 %v4121_v5  ;;  %v3335_v60 = vld [vmem:[%s4189_s23 + $0x4a] sm:$0xff]  ;;  %v3336_v5 = vld [vmem:[%s4189_s23 + $0x52] sm:$0xff] }
  0xab   : > { %3945 = vmatprep.subr.bf16.mxu1 %v4122_v14  ;;  %3993 = vmatprep.subr.bf16.mxu0 %v4123_v19 }
  0xac   : > { %3786 = vmatmul.mubr.bf16.gmra.mxu1 %v4481_v62  ;;  %3834 = vmatmul.mubr.bf16.gmra.mxu0 %v4239_v29  ;;  %v3139_v29 = vld [vmem:[%s4189_s23 + $0x181] sm:$0xff] }
  0xad   : > { %3789 = vmatprep.mubr.bf16.mxu1 %v4497_v15  ;;  %3837 = vmatprep.mubr.bf16.mxu0 %v4260_v40  ;;  %v3140_v40 = vld [vmem:[%s4189_s23 + $0x189] sm:$0xff] }
  0xae   : > { %v4623_v21 = vpack.c.bf16 %v3140_v40, %v3139_v29  ;;  %v3337_v29 = vld [vmem:[%s4189_s23 + $0x62] sm:$0xff]  ;;  %v3338_v40 = vld [vmem:[%s4189_s23 + $0x6a] sm:$0xff] }
  0xb4   : > { %3790 = vmatmul.mubr.bf16.gmra.mxu1 %v4501_v17  ;;  %3838 = vmatmul.mubr.bf16.gmra.mxu0 %v4271_v45  ;;  %v4124_v45 = vld [vmem:[%s5321_s1 + $0x1f0] sm:$0xff]  }
  0xb5   : > { %3793 = vmatprep.mubr.bf16.mxu1 %v4517_v41  ;;  %3841 = vmatprep.mubr.bf16.mxu0 %v4291_v55  ;;  %v4125_v55 = vld [vmem:[%s5321_s1 + $0x230] sm:$0xff]  }
  0xbc   : > { %3794 = vmatmul.mubr.bf16.gmra.mxu1 %v4521_v43  ;;  %3842 = vmatmul.mubr.bf16.gmra.mxu0 %v4303_v61  ;;  %v4126_v61 = vld [vmem:[%s5321_s1 + $0x1e8] sm:$0xff]  }
  0xbd   : > { %3797 = vmatprep.mubr.bf16.mxu1 %v4533_v1  ;;  %3845 = vmatprep.mubr.bf16.mxu0 %v4322_v6  ;;  %v4127_v6 = vld [vmem:[%s5321_s1 + $0x228] sm:$0xff]  }
  0xc4   : > { %3798 = vmatmul.mubr.bf16.gmra.mxu1 %v4621_v20  ;;  %3846 = vmatmul.mubr.bf16.gmra.mxu0 %v4623_v21 }
  0xc5   : > { %3865 = vmatprep.mubr.bf16.mxu1 %v4351_v30  ;;  %3913 = vmatprep.mubr.bf16.mxu0 %v4353_v31  ;;  %v4128_v30 = vld [vmem:[%s5321_s1 + $0x1e0] sm:$0xff]  }
  0xc6   : > { %v4129_v31 = vld [vmem:[%s5321_s1 + $0x220] sm:$0xff]  }
  0xcc   : > { %3866 = vmatmul.mubr.bf16.vlgmr.msra.gmra.mxu1 %v4355_v32  ;;  %3914 = vmatmul.mubr.bf16.vlgmr.msra.gmra.mxu0 %v4381_v49  ;;  %v4130_v32 = vld [vmem:[%s5321_s1 + $0x1d8] sm:$0xff]  }
  0xcd   : > { %3946 = vmatpush3.bf16.msra.mxu1 %v4122_v14  ;;  %3994 = vmatpush3.bf16.msra.mxu0 %v4123_v19  ;;  %v4131_v49 = vld [vmem:[%s5321_s1 + $0x218] sm:$0xff]   ;;  %v3281_v14 = vld [vmem:[%s4189_s23 + $0x61] sm:$0xff] }
  0xce   : > { %3869 = vmatprep.mubr.bf16.mxu1 %v4383_v50  ;;  %3917 = vmatprep.mubr.bf16.mxu0 %v4385_v51  ;;  %v4132_v50 = vld [vmem:[%s5321_s1 + $0x1d0] sm:$0xff]  }
  0xcf   : > { %3947 = vmatprep.subr.bf16.mxu1 %v4124_v45  ;;  %3995 = vmatprep.subr.bf16.mxu0 %v4125_v55  ;;  %v4133_v51 = vld [vmem:[%s5321_s1 + $0x210] sm:$0xff]  }
  0xd1   : > { %3948 = vmatpush3.bf16.msra.mxu1 %v4124_v45  ;;  %3996 = vmatpush3.bf16.msra.mxu0 %v4125_v55  ;;  %v2284_v55 = vpack.c.bf16 %v3280_v13, %v3279_v12 }
  0xd2   : > { %3949 = vmatprep.subr.bf16.mxu1 %v4126_v61  ;;  %3997 = vmatprep.subr.bf16.mxu0 %v4127_v6 }
  0xd4   : > { %3870 = vmatmul.mubr.bf16.gmra.mxu1 %v4387_v52  ;;  %3918 = vmatmul.mubr.bf16.gmra.mxu0 %v4413_v7  ;;  %v4134_v52 = vld [vmem:[%s5321_s1 + $0x1c8] sm:$0xff]  }
  0xd5   : > { %3873 = vmatprep.mubr.bf16.mxu1 %v4415_v8  ;;  %3921 = vmatprep.mubr.bf16.mxu0 %v4417_v10  ;;  %v4135_v7 = vld [vmem:[%s5321_s1 + $0x208] sm:$0xff]   ;;  %v4136_v8 = vld [vmem:[%s5321_s1 + $0x1c0] sm:$0xff]  }
  0xd6   : > { %3950 = vmatpush3.bf16.msra.mxu1 %v4126_v61  ;;  %3998 = vmatpush3.bf16.msra.mxu0 %v4127_v6  ;;  %v4137_v10 = vld [vmem:[%s5321_s1 + $0x200] sm:$0xff]   ;;  %v2590_v61 = vpack.c.bf16 %v3336_v5, %v3335_v60  ;;  %v2285_v6 = vpack.c.bf16 %v3282_v23, %v3281_v14  ;;  %v2593_v5 = vpack.c.bf16 %v3342_v3, %v3341_v48 }
  0xd7   : > { %3951 = vmatprep.subr.bf16.mxu1 %v4128_v30  ;;  %3999 = vmatprep.subr.bf16.mxu0 %v4129_v31 }
  0xda   : > { %3952 = vmatpush3.bf16.msra.mxu1 %v4128_v30  ;;  %4000 = vmatpush3.bf16.msra.mxu0 %v4129_v31  ;;  %v2591_v30 = vpack.c.bf16 %v3338_v40, %v3337_v29 }
  0xdb   : > { %3953 = vmatprep.subr.bf16.mxu1 %v4130_v32  ;;  %4001 = vmatprep.subr.bf16.mxu0 %v4131_v49 }
  0xdc   : > { %3874 = vmatmul.mubr.bf16.gmra.mxu1 %v4419_v11  ;;  %3922 = vmatmul.mubr.bf16.gmra.mxu0 %v4445_v26 }
  0xdd   : > { %3877 = vmatprep.mubr.bf16.mxu1 %v4447_v33  ;;  %3925 = vmatprep.mubr.bf16.mxu0 %v4449_v34 }
  0xde   : > { %3954 = vmatpush3.bf16.msra.mxu1 %v4130_v32  ;;  %4002 = vmatpush3.bf16.msra.mxu0 %v4131_v49 }
  0xdf   : > { %3955 = vmatprep.subr.bf16.mxu1 %v4132_v50  ;;  %4003 = vmatprep.subr.bf16.mxu0 %v4133_v51 }
  0xe2   : > { %3956 = vmatpush3.bf16.msra.mxu1 %v4132_v50  ;;  %4004 = vmatpush3.bf16.msra.mxu0 %v4133_v51  ;;  %v3283_v51 = vld [vmem:[%s4189_s23 + $0x79] sm:$0xff] }
  0xe3   : > { %3957 = vmatprep.subr.bf16.mxu1 %v4134_v52  ;;  %4005 = vmatprep.subr.bf16.mxu0 %v4135_v7 }
  0xe4   : > { %3878 = vmatmul.mubr.bf16.gmra.mxu1 %v4451_v35  ;;  %3926 = vmatmul.mubr.bf16.gmra.mxu0 %v4477_v58 }
  0xe5   : > { %3881 = vmatprep.mubr.bf16.mxu1 %v4479_v59  ;;  %3929 = vmatprep.mubr.bf16.mxu0 %v4481_v62 }
  0xe6   : > { %3958 = vmatpush3.bf16.msra.mxu1 %v4134_v52  ;;  %4006 = vmatpush3.bf16.msra.mxu0 %v4135_v7  ;;  %v3284_v52 = vld [vmem:[%s4189_s23 + $0x81] sm:$0xff] }
  0xe7   : > { %3959 = vmatprep.subr.bf16.mxu1 %v4136_v8  ;;  %4007 = vmatprep.subr.bf16.mxu0 %v4137_v10 }
  0xea   : > { %3960 = vmatpush3.bf16.msra.mxu1 %v4136_v8  ;;  %4008 = vmatpush3.bf16.msra.mxu0 %v4137_v10  ;;  %v3339_v8 = vld [vmem:[%s4189_s23 + $0x7a] sm:$0xff]  ;;  %v3340_v10 = vld [vmem:[%s4189_s23 + $0x82] sm:$0xff] }
  0xec   : > { %v4687_v11 = vpop.f32.mrf.mxu0  ;;  %v4689_v26 = vpop.f32.mrf.mxu1  ;;  %3882 = vmatmul.mubr.bf16.gmra.mxu1 %v4483_v63  ;;  %3930 = vmatmul.mubr.bf16.gmra.mxu0 %v4497_v15 }
  0xed   : > { %3885 = vmatprep.mubr.bf16.mxu1 %v4499_v16  ;;  %3933 = vmatprep.mubr.bf16.mxu0 %v4501_v17 }
  0xee   : > { %v4695_v33 = vpop.f32.mrf.mxu0  ;;  %v4697_v34 = vpop.f32.mrf.mxu1 }
  0xf0   : > { %v4699_v35 = vpop.f32.mrf.mxu0  ;;  %v4701_v58 = vpop.f32.mrf.mxu1 }
  0xf2   : > { %v4703_v59 = vpop.f32.mrf.mxu0  ;;  %v4705_v62 = vpop.f32.mrf.mxu1 }
  0xf4   : > { %v4707_v24 = vpop.f32.mrf.mxu0  ;;  %v4709_v63 = vpop.f32.mrf.mxu1  ;;  %3886 = vmatmul.mubr.bf16.gmra.mxu1 %v4503_v18  ;;  %3934 = vmatmul.mubr.bf16.gmra.mxu0 %v4517_v41  ;;  %v3195_v41 = vld [vmem:[%s4189_s23 + $0x182] sm:$0xff] }
  0xf5   : > { %3889 = vmatprep.mubr.bf16.mxu1 %v4519_v42  ;;  %3937 = vmatprep.mubr.bf16.mxu0 %v4521_v43  ;;  %v3196_v42 = vld [vmem:[%s4189_s23 + $0x18a] sm:$0xff]  ;;  %v3251_v43 = vld [vmem:[%s4189_s23 + $0x198] sm:$0xff] }
  0xf6   : > { %v4715_v15 = vpop.f32.mrf.mxu0  ;;  %v4717_v16 = vpop.f32.mrf.mxu1  ;;  %v1992_v27 = vpack.c.bf16 %v3252_v47, %v3251_v43  ;;  %v3286_v47 = vld [vmem:[%s4189_s23 + $0x99] sm:$0xff] }
  0xf8   : > { %v4719_v17 = vpop.f32.mrf.mxu0  ;;  %v4721_v25 = vpop.f32.mrf.mxu1 }
  0xfa   : > { %v4723_v36 = vpop.f32.mrf.mxu0  ;;  %v4725_v18 = vpop.f32.mrf.mxu1 }
  0xfc   : > { %v4727_v37 = vpop.f32.mrf.mxu0  ;;  %v4729_v38 = vpop.f32.mrf.mxu1  ;;  %3890 = vmatmul.mubr.bf16.gmra.mxu1 %v4523_v46  ;;  %3938 = vmatmul.mubr.bf16.gmra.mxu0 %v4533_v1  ;;  %v3334_v46 = vld [vmem:[%s4189_s23 + $0x3a] sm:$0xff] }
  0xfd   : > { %3893 = vmatprep.mubr.bf16.mxu1 %v4535_v2  ;;  %3941 = vmatprep.mubr.bf16.mxu0 %v4621_v20  ;;  %v4751_v2 = vpack.c.bf16 %v3196_v42, %v3195_v41  ;;  %v2589_v39 = vpack.c.bf16 %v3334_v46, %v3333_v4  ;;  %v3285_v41 = vld [vmem:[%s4189_s23 + $0x91] sm:$0xff] }
  0xfe   : > { %v4740_v53 = vpop.f32.mrf.mxu0  ;;  %v4742_v0 = vpop.f32.mrf.mxu1  ;;  %v2287_v60 = vpack.c.bf16 %v3286_v47, %v3285_v41 }
 0x100   : > { %v4747_v22 = vpop.f32.mrf.mxu0  ;;  %v4749_v1 = vpop.f32.mrf.mxu1 }
 0x102   : > { %v4753_v56 = vpop.f32.mrf.mxu0  ;;  %v4755_v57 = vpop.f32.mrf.mxu1 }
 0x104   : > { %v4757_v44 = vpop.f32.mrf.mxu0  ;;  %v4759_v54 = vpop.f32.mrf.mxu1  ;;  %3894 = vmatmul.mubr.bf16.gmra.mxu1 %v4751_v2  ;;  %3942 = vmatmul.mubr.bf16.gmra.mxu0 %v1992_v27 }
 0x105   : > { %3961 = vmatprep.mubr.bf16.mxu1 %v2283_v28  ;;  %4009 = vmatprep.mubr.bf16.mxu0 %v2589_v39  ;;  %v2286_v39 = vpack.c.bf16 %v3284_v52, %v3283_v51  ;;  %v3289_v51 = vld [vmem:[%s4189_s23 + $0xc1] sm:$0xff] }
 0x106   : > { %v4767_v19 = vpop.f32.mrf.mxu0  ;;  %v4769_v9 = vpop.f32.mrf.mxu1 }
 0x108   : > { %v4774_v20 = vpop.f32.mrf.mxu0  ;;  %v4776_v45 = vpop.f32.mrf.mxu1 }
 0x10a   : > { %v4778_v31 = vpop.f32.mrf.mxu0  ;;  %v4780_v32 = vpop.f32.mrf.mxu1 }
 0x10c   : > { %v3675_v49 = vpop.f32.mrf.mxu1  ;;  %v3723_v50 = vpop.f32.mrf.mxu0  ;;  %3962 = vmatmul.mubr.bf16.vlgmr.msra.gmra.mxu1 %v2284_v55  ;;  %4010 = vmatmul.mubr.bf16.vlgmr.msra.gmra.mxu0 %v2590_v61  ;;  %v3287_v61 = vld [vmem:[%s4189_s23 + $0xa9] sm:$0xff] }
 0x10d   : > { %v601_v7 = vadd.f32 %v3675_v49, %v4687_v11  ;;  %3965 = vmatprep.mubr.bf16.mxu1 %v2285_v6  ;;  %4013 = vmatprep.mubr.bf16.mxu0 %v2591_v30  ;;  %v2592_v11 = vpack.c.bf16 %v3340_v10, %v3339_v8  ;;  %v3343_v49 = vld [vmem:[%s4189_s23 + $0xaa] sm:$0xff]  ;;  %v3345_v8 = vld [vmem:[%s4189_s23 + $0xc2] sm:$0xff] }
 0x10e   : > { %v592_v42 = vpop.f32.mrf.mxu1  ;;  %v866_v43 = vpop.f32.mrf.mxu0  ;;  %v3346_v10 = vld [vmem:[%s4189_s23 + $0xca] sm:$0xff] }
 0x10f   : > { %v4791_v4 = vadd.f32 %v3723_v50, %v601_v7  ;;  %v593_v46 = vadd.f32 %v592_v42, %v4695_v33  ;;  %v3344_v50 = vld [vmem:[%s4189_s23 + $0xb2] sm:$0xff]  ;;  %v3290_v7 = vld [vmem:[%s4189_s23 + $0xc9] sm:$0xff] }
 0x110   : > { %v3676_v27 = vpop.f32.mrf.mxu1  ;;  %v3724_v28 = vpop.f32.mrf.mxu0 }
 0x111   : > { %v4794_v12 = vadd.f32 %v866_v43, %v593_v46  ;;  %v604_v13 = vadd.f32 %v3676_v27, %v4699_v35  ;;  %v3288_v35 = vld [vmem:[%s4189_s23 + $0xb1] sm:$0xff]  ;;  %v2289_v27 = vpack.c.bf16 %v3290_v7, %v3289_v51 }
 0x112   : > { %v595_v14 = vpop.f32.mrf.mxu1  ;;  %v869_v23 = vpop.f32.mrf.mxu0  ;;  %v2288_v48 = vpack.c.bf16 %v3288_v35, %v3287_v61  ;;  %v3293_v61 = vld [vmem:[%s4189_s23 + $0xf1] sm:$0xff] }
 0x113   : > { %v4797_v29 = vadd.f32 %v3724_v28, %v604_v13  ;;  %v596_v33 = vadd.f32 %v595_v14, %v4703_v59  ;;  %v2595_v28 = vpack.c.bf16 %v3346_v10, %v3345_v8  ;;  %v3291_v14 = vld [vmem:[%s4189_s23 + $0xd9] sm:$0xff] }
 0x114   : > { %v3679_v40 = vpop.f32.mrf.mxu1  ;;  %v3727_v55 = vpop.f32.mrf.mxu0  ;;  %3966 = vmatmul.mubr.bf16.gmra.mxu1 %v2286_v39  ;;  %4014 = vmatmul.mubr.bf16.gmra.mxu0 %v2592_v11 }
 0x115   : > { %v4802_v6 = vadd.f32 %v869_v23, %v596_v33  ;;  %v617_v30 = vadd.f32 %v3679_v40, %v4707_v24  ;;  %3969 = vmatprep.mubr.bf16.mxu1 %v2287_v60  ;;  %4017 = vmatprep.mubr.bf16.mxu0 %v2593_v5  ;;  %v2594_v24 = vpack.c.bf16 %v3344_v50, %v3343_v49  ;;  %v3347_v40 = vld [vmem:[%s4189_s23 + $0xda] sm:$0xff]  ;;  %v3349_v49 = vld [vmem:[%s4189_s23 + $0xf2] sm:$0xff] }
 0x116   : > { %v608_v52 = vpop.f32.mrf.mxu1  ;;  %v882_v59 = vpop.f32.mrf.mxu0  ;;  %v3350_v50 = vld [vmem:[%s4189_s23 + $0xfa] sm:$0xff] }
 0x117   : > { %v4811_v41 = vadd.f32 %v3727_v55, %v617_v30  ;;  %v609_v42 = vadd.f32 %v608_v52, %v4715_v15  ;;  %v3348_v55 = vld [vmem:[%s4189_s23 + $0xe2] sm:$0xff]  ;;  %v3294_v30 = vld [vmem:[%s4189_s23 + $0xf9] sm:$0xff] }
 0x118   : > { %v3680_v43 = vpop.f32.mrf.mxu1  ;;  %v3728_v47 = vpop.f32.mrf.mxu0 }
 0x119   : > { %v4814_v3 = vadd.f32 %v882_v59, %v609_v42  ;;  %v620_v46 = vadd.f32 %v3680_v43, %v4719_v17  ;;  %v3292_v17 = vld [vmem:[%s4189_s23 + $0xe1] sm:$0xff]  ;;  %v2291_v43 = vpack.c.bf16 %v3294_v30, %v3293_v61 }
 0x11a   : > { %v611_v39 = vpop.f32.mrf.mxu1  ;;  %v885_v11 = vpop.f32.mrf.mxu0  ;;  %v2290_v8 = vpack.c.bf16 %v3292_v17, %v3291_v14  ;;  %v3297_v14 = vld [vmem:[%s4189_s23 + $0x121] sm:$0xff] }
 0x11b   : > { %v4817_v13 = vadd.f32 %v3728_v47, %v620_v46  ;;  %v612_v15 = vadd.f32 %v611_v39, %v4723_v36  ;;  %v2597_v47 = vpack.c.bf16 %v3350_v50, %v3349_v49  ;;  %v3295_v39 = vld [vmem:[%s4189_s23 + $0x109] sm:$0xff] }
 0x11c   : > { %v3683_v60 = vpop.f32.mrf.mxu1  ;;  %v3731_v5 = vpop.f32.mrf.mxu0  ;;  %3970 = vmatmul.mubr.bf16.gmra.mxu1 %v2288_v48  ;;  %4018 = vmatmul.mubr.bf16.gmra.mxu0 %v2594_v24 }
 0x11d   : > { %v4822_v23 = vadd.f32 %v885_v11, %v612_v15  ;;  %v633_v33 = vadd.f32 %v3683_v60, %v4727_v37  ;;  %3973 = vmatprep.mubr.bf16.mxu1 %v2289_v27  ;;  %4021 = vmatprep.mubr.bf16.mxu0 %v2595_v28  ;;  %v2596_v37 = vpack.c.bf16 %v3348_v55, %v3347_v40  ;;  %v3351_v60 = vld [vmem:[%s4189_s23 + $0x10a] sm:$0xff]  ;;  %v3353_v40 = vld [vmem:[%s4189_s23 + $0x122] sm:$0xff] }
 0x11e   : > { %v624_v35 = vpop.f32.mrf.mxu1  ;;  %v898_v36 = vpop.f32.mrf.mxu0  ;;  %v3354_v55 = vld [vmem:[%s4189_s23 + $0x12a] sm:$0xff] }
 0x11f   : > { %v4831_v51 = vadd.f32 %v3731_v5, %v633_v33  ;;  %v625_v52 = vadd.f32 %v624_v35, %v4740_v53  ;;  %v3352_v5 = vld [vmem:[%s4189_s23 + $0x112] sm:$0xff]  ;;  %v3298_v33 = vld [vmem:[%s4189_s23 + $0x129] sm:$0xff] }
 0x120   : > { %v3684_v59 = vpop.f32.mrf.mxu1  ;;  %v3732_v7 = vpop.f32.mrf.mxu0 }
 0x121   : > { %v4834_v10 = vadd.f32 %v898_v36, %v625_v52  ;;  %v636_v42 = vadd.f32 %v3684_v59, %v4747_v22  ;;  %v3296_v22 = vld [vmem:[%s4189_s23 + $0x111] sm:$0xff]  ;;  %v2293_v59 = vpack.c.bf16 %v3298_v33, %v3297_v14 }
 0x122   : > { %v627_v48 = vpop.f32.mrf.mxu1  ;;  %v901_v24 = vpop.f32.mrf.mxu0  ;;  %v2292_v49 = vpack.c.bf16 %v3296_v22, %v3295_v39  ;;  %v3301_v39 = vld [vmem:[%s4189_s23 + $0x151] sm:$0xff] }
 0x123   : > { %v4837_v46 = vadd.f32 %v3732_v7, %v636_v42  ;;  %v628_v53 = vadd.f32 %v627_v48, %v4753_v56  ;;  %v2599_v7 = vpack.c.bf16 %v3354_v55, %v3353_v40  ;;  %v3299_v48 = vld [vmem:[%s4189_s23 + $0x139] sm:$0xff] }
 0x124   : > { %v3687_v27 = vpop.f32.mrf.mxu1  ;;  %v3735_v28 = vpop.f32.mrf.mxu0  ;;  %3974 = vmatmul.mubr.bf16.gmra.mxu1 %v2290_v8  ;;  %4022 = vmatmul.mubr.bf16.gmra.mxu0 %v2596_v37 }
 0x125   : > { %v4842_v11 = vadd.f32 %v901_v24, %v628_v53  ;;  %v649_v15 = vadd.f32 %v3687_v27, %v4757_v44  ;;  %3977 = vmatprep.mubr.bf16.mxu1 %v2291_v43  ;;  %4025 = vmatprep.mubr.bf16.mxu0 %v2597_v47  ;;  %v2598_v44 = vpack.c.bf16 %v3352_v5, %v3351_v60  ;;  %v3355_v27 = vld [vmem:[%s4189_s23 + $0x13a] sm:$0xff]  ;;  %v3357_v60 = vld [vmem:[%s4189_s23 + $0x152] sm:$0xff] }
 0x126   : > { %v640_v17 = vpop.f32.mrf.mxu1  ;;  %v914_v56 = vpop.f32.mrf.mxu0  ;;  %v3358_v5 = vld [vmem:[%s4189_s23 + $0x15a] sm:$0xff] }
 0x127   : > { %v4851_v61 = vadd.f32 %v3735_v28, %v649_v15  ;;  %v641_v35 = vadd.f32 %v640_v17, %v4767_v19  ;;  %v3356_v28 = vld [vmem:[%s4189_s23 + $0x142] sm:$0xff]  ;;  %v3302_v15 = vld [vmem:[%s4189_s23 + $0x159] sm:$0xff] }
 0x128   : > { %v3688_v36 = vpop.f32.mrf.mxu1  ;;  %v3736_v30 = vpop.f32.mrf.mxu0  ;;  %v2600_v55 = vpack.c.bf16 %v3356_v28, %v3355_v27 }
 0x129   : > { %v4854_v50 = vadd.f32 %v914_v56, %v641_v35  ;;  %v652_v52 = vadd.f32 %v3688_v36, %v4774_v20  ;;  %v3300_v20 = vld [vmem:[%s4189_s23 + $0x141] sm:$0xff]  ;;  %v2295_v36 = vpack.c.bf16 %v3302_v15, %v3301_v39 }
 0x12a   : > { %v643_v8 = vpop.f32.mrf.mxu1  ;;  %v917_v37 = vpop.f32.mrf.mxu0  ;;  %v2294_v40 = vpack.c.bf16 %v3300_v20, %v3299_v48 }
 0x12b   : > { %v4857_v42 = vadd.f32 %v3736_v30, %v652_v52  ;;  %v644_v19 = vadd.f32 %v643_v8, %v4778_v31  ;;  %v2601_v30 = vpack.c.bf16 %v3358_v5, %v3357_v60  ;;  %v3303_v8 = vld [vmem:[%s4189_s23 + $0x169] sm:$0xff] }
 0x12c   : > { %v3691_v43 = vpop.f32.mrf.mxu1  ;;  %v3739_v47 = vpop.f32.mrf.mxu0  ;;  %3978 = vmatmul.mubr.bf16.gmra.mxu1 %v2292_v49  ;;  %4026 = vmatmul.mubr.bf16.gmra.mxu0 %v2598_v44 }
 0x12d   : > { %v4862_v24 = vadd.f32 %v917_v37, %v644_v19  ;;  %v665_v53 = vadd.f32 %v3691_v43, %v4689_v26  ;;  %3981 = vmatprep.mubr.bf16.mxu1 %v2293_v59  ;;  %4029 = vmatprep.mubr.bf16.mxu0 %v2599_v7  ;;  %v3304_v19 = vld [vmem:[%s4189_s23 + $0x171] sm:$0xff] }
 0x12e   : > { %v656_v22 = vpop.f32.mrf.mxu1  ;;  %v930_v31 = vpop.f32.mrf.mxu0  ;;  %v3359_v43 = vld [vmem:[%s4189_s23 + $0x16a] sm:$0xff]  ;;  %v2296_v39 = vpack.c.bf16 %v3304_v19, %v3303_v8 }
 0x12f   : > { %v4871_v14 = vadd.f32 %v3739_v47, %v665_v53  ;;  %v657_v17 = vadd.f32 %v656_v22, %v4697_v34  ;;  %v3360_v47 = vld [vmem:[%s4189_s23 + $0x172] sm:$0xff] }
 0x130   : > { %v3692_v56 = vpop.f32.mrf.mxu1  ;;  %v3740_v33 = vpop.f32.mrf.mxu0  ;;  %v2602_v22 = vpack.c.bf16 %v3360_v47, %v3359_v43 }
 0x131   : > { %v4874_v26 = vadd.f32 %v930_v31, %v657_v17  ;;  %v668_v35 = vadd.f32 %v3692_v56, %v4701_v58 }
 0x132   : > { %v659_v49 = vpop.f32.mrf.mxu1  ;;  %v933_v44 = vpop.f32.mrf.mxu0 }
 0x133   : > { %v4877_v52 = vadd.f32 %v3740_v33, %v668_v35  ;;  %v660_v34 = vadd.f32 %v659_v49, %v4705_v62  ;;  %v3363_v35 = vld [vmem:[%s4189_s23 + $0x19a] sm:$0xff] }
 0x134   : > { %v3695_v59 = vpop.f32.mrf.mxu1  ;;  %v3743_v7 = vpop.f32.mrf.mxu0  ;;  %3982 = vmatmul.mubr.bf16.gmra.mxu1 %v2294_v40  ;;  %4030 = vmatmul.mubr.bf16.gmra.mxu0 %v2600_v55 }
 0x135   : > { %v4881_v37 = vadd.f32 %v933_v44, %v660_v34  ;;  %v681_v58 = vadd.f32 %v3695_v59, %v4709_v63  ;;  %3985 = vmatprep.mubr.bf16.mxu1 %v2295_v36  ;;  %4033 = vmatprep.mubr.bf16.mxu0 %v2601_v30  ;;  %v3364_v36 = vld [vmem:[%s4189_s23 + $0x1a2] sm:$0xff] }
 0x136   : > { %v672_v48 = vpop.f32.mrf.mxu1  ;;  %v946_v20 = vpop.f32.mrf.mxu0  ;;  %v2604_v8 = vpack.c.bf16 %v3364_v36, %v3363_v35 }
 0x137   : > { %v4887_v53 = vadd.f32 %v3743_v7, %v681_v58  ;;  %v673_v62 = vadd.f32 %v672_v48, %v4717_v16  ;;  %v3307_v16 = vld [vmem:[%s4189_s23 + $0x199] sm:$0xff] }
 0x138   : > { %v3696_v27 = vpop.f32.mrf.mxu1  ;;  %v3744_v28 = vpop.f32.mrf.mxu0 }
 0x139   : > { %v4890_v31 = vadd.f32 %v946_v20, %v673_v62  ;;  %v684_v63 = vadd.f32 %v3696_v27, %v4721_v25  ;;  %v3308_v25 = vld [vmem:[%s4189_s23 + $0x1a1] sm:$0xff]  ;;  %s3392_s23 = sshll.u32 %s5405_s13, 8 }
 0x13a   : > { %v675_v15 = vpop.f32.mrf.mxu1  ;;  %v949_v60 = vpop.f32.mrf.mxu0  ;;  %v2298_v7 = vpack.c.bf16 %v3308_v25, %v3307_v16  ;;  %s5170_s13 = scalar_lea.vmem %s5323_s3, %s3392_s23 }
 0x13b   : > { %v4893_v5 = vadd.f32 %v3744_v28, %v684_v63  ;;  %v676_v17 = vadd.f32 %v675_v15, %v4725_v18 }
 0x13c   : > { %v3699_v56 = vpop.f32.mrf.mxu1  ;;  %v3747_v33 = vpop.f32.mrf.mxu0  ;;  %3986 = vmatmul.mubr.bf16.gmra.mxu1 %v2296_v39  ;;  %4034 = vmatmul.mubr.bf16.gmra.mxu0 %v2602_v22 }
 0x13d   : > { %v4897_v40 = vadd.f32 %v949_v60, %v676_v17  ;;  %v697_v55 = vadd.f32 %v3699_v56, %v4729_v38  ;;  %3989 = vmatprep.mubr.bf16.mxu1 %v4623_v21  ;;  %4037 = vmatprep.mubr.bf16.mxu0 %v4751_v2 }
 0x13e   : > { %v688_v30 = vpop.f32.mrf.mxu1  ;;  %v962_v49 = vpop.f32.mrf.mxu0 }
 0x13f   : > { %v4905_v44 = vadd.f32 %v3747_v33, %v697_v55  ;;  %v689_v18 = vadd.f32 %v688_v30, %v4742_v0 }
 0x140   : > { %v3700_v34 = vpop.f32.mrf.mxu1  ;;  %v3748_v59 = vpop.f32.mrf.mxu0 }
 0x141   : > { %v4908_v58 = vadd.f32 %v962_v49, %v689_v18  ;;  %v700_v38 = vadd.f32 %v3700_v34, %v4749_v1 }
 0x142   : > { %v691_v21 = vpop.f32.mrf.mxu1  ;;  %v965_v19 = vpop.f32.mrf.mxu0 }
 0x143   : > { %v4911_v2 = vadd.f32 %v3748_v59, %v700_v38  ;;  %v692_v43 = vadd.f32 %v691_v21, %v4755_v57 }
 0x144   : > { %v3703_v47 = vpop.f32.mrf.mxu1  ;;  %v3751_v48 = vpop.f32.mrf.mxu0  ;;  %3990 = vmatmul.mubr.bf16.gmra.mxu1 %v2298_v7  ;;  %4038 = vmatmul.mubr.bf16.gmra.mxu0 %v2604_v8 }
 0x145   : > { %v4914_v20 = vadd.f32 %v965_v19, %v692_v43  ;;  %v713_v0 = vadd.f32 %v3703_v47, %v4759_v54 }
 0x146   : > { %v704_v62 = vpop.f32.mrf.mxu1  ;;  %v978_v27 = vpop.f32.mrf.mxu0 }
 0x147   : > { %v4917_v28 = vadd.f32 %v3751_v48, %v713_v0  ;;  %v705_v1 = vadd.f32 %v704_v62, %v4769_v9 }
 0x148   : > { %v3704_v39 = vpop.f32.mrf.mxu1  ;;  %v3752_v22 = vpop.f32.mrf.mxu0 }
 0x149   : > { %v4920_v63 = vadd.f32 %v978_v27, %v705_v1  ;;  %v716_v57 = vadd.f32 %v3704_v39, %v4776_v45 }
 0x14a   : > { %v707_v15 = vpop.f32.mrf.mxu1  ;;  %v981_v60 = vpop.f32.mrf.mxu0 }
 0x14b   : > { %v4923_v17 = vadd.f32 %v3752_v22, %v716_v57  ;;  %v708_v56 = vadd.f32 %v707_v15, %v4780_v32 }
 0x14c   : > { %v3771_v33 = vpop.f32.mrf.mxu1  ;;  %v3819_v54 = vpop.f32.mrf.mxu0 }
 0x14d   : > { %v4926_v16 = vadd.f32 %v981_v60, %v708_v56  ;;  %v1302_v55 = vadd.f32 %v3771_v33, %v4791_v4 }
 0x14e   : > { %v1173_v25 = vpop.f32.mrf.mxu1  ;;  %v1479_v9 = vpop.f32.mrf.mxu0 }
 0x14f   : > { %v4929_v35 = vadd.f32 %v3819_v54, %v1302_v55  ;;  %v1300_v36 = vadd.f32 %v1173_v25, %v4794_v12 }
 0x150   : > { %v3772_v30 = vpop.f32.mrf.mxu1  ;;  %v3820_v45 = vpop.f32.mrf.mxu0 }
 0x151   : > { %v4932_v49 = vadd.f32 %v1479_v9, %v1300_v36  ;;  %v1303_v18 = vadd.f32 %v3772_v30, %v4797_v29 }
 0x152   : > { %v1176_v34 = vpop.f32.mrf.mxu1  ;;  %v1482_v32 = vpop.f32.mrf.mxu0 }
 0x153   : > { %v4935_v59 = vadd.f32 %v3820_v45, %v1303_v18  ;;  %v1301_v7 = vadd.f32 %v1176_v34, %v4802_v6 }
 0x154   : > { %v3775_v8 = vpop.f32.mrf.mxu1  ;;  %v3823_v4 = vpop.f32.mrf.mxu0 }
 0x155   : > { %v4938_v38 = vadd.f32 %v1482_v32, %v1301_v7  ;;  %v1306_v21 = vadd.f32 %v3775_v8, %v4811_v41 }
 0x156   : > { %v1189_v19 = vpop.f32.mrf.mxu1  ;;  %v1495_v12 = vpop.f32.mrf.mxu0 }
 0x157   : > { %v4941_v43 = vadd.f32 %v3823_v4, %v1306_v21  ;;  %v1304_v47 = vadd.f32 %v1189_v19, %v4814_v3 }
 0x158   : > { %v3776_v48 = vpop.f32.mrf.mxu1  ;;  %v3824_v29 = vpop.f32.mrf.mxu0 }
 0x159   : > { %v4944_v0 = vadd.f32 %v1495_v12, %v1304_v47  ;;  %v1307_v62 = vadd.f32 %v3776_v48, %v4817_v13 }
 0x15a   : > { %v1192_v27 = vpop.f32.mrf.mxu1  ;;  %v1498_v6 = vpop.f32.mrf.mxu0 }
 0x15b   : > { %v4947_v1 = vadd.f32 %v3824_v29, %v1307_v62  ;;  %v1305_v39 = vadd.f32 %v1192_v27, %v4822_v23 }
 0x15c   : > { %v3779_v22 = vpop.f32.mrf.mxu1  ;;  %v3827_v41 = vpop.f32.mrf.mxu0 }
 0x15d   : > { %v4950_v57 = vadd.f32 %v1498_v6, %v1305_v39  ;;  %v1310_v15 = vadd.f32 %v3779_v22, %v4831_v51 }
 0x15e   : > { %v1205_v60 = vpop.f32.mrf.mxu1  ;;  %v1511_v3 = vpop.f32.mrf.mxu0 }
 0x15f   : > { %v4953_v56 = vadd.f32 %v3827_v41, %v1310_v15  ;;  %v1308_v33 = vadd.f32 %v1205_v60, %v4834_v10 }
 0x160   : > { %v3780_v54 = vpop.f32.mrf.mxu1  ;;  %v3828_v13 = vpop.f32.mrf.mxu0 }
 0x161   : > { %v4956_v55 = vadd.f32 %v1511_v3, %v1308_v33  ;;  %v1311_v25 = vadd.f32 %v3780_v54, %v4837_v46 }
 0x162   : > { %v1208_v9 = vpop.f32.mrf.mxu1  ;;  %v1514_v23 = vpop.f32.mrf.mxu0 }
 0x163   : > { %v4959_v36 = vadd.f32 %v3828_v13, %v1311_v25  ;;  %v1309_v30 = vadd.f32 %v1208_v9, %v4842_v11 }
 0x164   : > { %v3783_v45 = vpop.f32.mrf.mxu1  ;;  %v3831_v51 = vpop.f32.mrf.mxu0 }
 0x165   : > { %v4962_v18 = vadd.f32 %v1514_v23, %v1309_v30  ;;  %v1314_v34 = vadd.f32 %v3783_v45, %v4851_v61 }
 0x166   : > { %v1221_v32 = vpop.f32.mrf.mxu1  ;;  %v1527_v10 = vpop.f32.mrf.mxu0 }
 0x167   : > { %v4965_v7 = vadd.f32 %v3831_v51, %v1314_v34  ;;  %v1312_v8 = vadd.f32 %v1221_v32, %v4854_v50 }
 0x168   : > { %v3784_v4 = vpop.f32.mrf.mxu1  ;;  %v3832_v46 = vpop.f32.mrf.mxu0 }
 0x169   : > { %v4968_v21 = vadd.f32 %v1527_v10, %v1312_v8  ;;  %v1315_v19 = vadd.f32 %v3784_v4, %v4857_v42 }
 0x16a   : > { %v1224_v12 = vpop.f32.mrf.mxu1  ;;  %v1530_v11 = vpop.f32.mrf.mxu0 }
 0x16b   : > { %v4971_v47 = vadd.f32 %v3832_v46, %v1315_v19  ;;  %v1313_v48 = vadd.f32 %v1224_v12, %v4862_v24 }
 0x16c   : > { %v3787_v29 = vpop.f32.mrf.mxu1  ;;  %v3835_v61 = vpop.f32.mrf.mxu0 }
 0x16d   : > { %v4974_v62 = vadd.f32 %v1530_v11, %v1313_v48  ;;  %v1318_v27 = vadd.f32 %v3787_v29, %v4871_v14 }
 0x16e   : > { %v1237_v6 = vpop.f32.mrf.mxu1  ;;  %v1543_v50 = vpop.f32.mrf.mxu0 }
 0x16f   : > { %v4977_v39 = vadd.f32 %v3835_v61, %v1318_v27  ;;  %v1316_v22 = vadd.f32 %v1237_v6, %v4874_v26 }
 0x170   : > { %v3788_v41 = vpop.f32.mrf.mxu1  ;;  %v3836_v42 = vpop.f32.mrf.mxu0 }
 0x171   : > { %v4980_v15 = vadd.f32 %v1543_v50, %v1316_v22  ;;  %v1319_v60 = vadd.f32 %v3788_v41, %v4877_v52 }
 0x172   : > { %v1240_v3 = vpop.f32.mrf.mxu1  ;;  %v1546_v24 = vpop.f32.mrf.mxu0 }
 0x173   : > { %v4983_v33 = vadd.f32 %v3836_v42, %v1319_v60  ;;  %v1317_v54 = vadd.f32 %v1240_v3, %v4881_v37 }
 0x174   : > { %v3791_v13 = vpop.f32.mrf.mxu1  ;;  %v3839_v14 = vpop.f32.mrf.mxu0 }
 0x175   : > { %5324 = vst [vmem:[#allocation2_spill] sm:$0xff] %v4983_v33  ;;  %v4986_v25 = vadd.f32 %v1546_v24, %v1317_v54  ;;  %v1322_v9 = vadd.f32 %v3791_v13, %v4887_v53 }
 0x176   : > { %v1253_v23 = vpop.f32.mrf.mxu1  ;;  %v1559_v26 = vpop.f32.mrf.mxu0 }
 0x177   : > { %5325 = vst [vmem:[#allocation3_spill] sm:$0xff] %v4986_v25  ;;  %v4989_v30 = vadd.f32 %v3839_v14, %v1322_v9  ;;  %v1320_v45 = vadd.f32 %v1253_v23, %v4890_v31 }
 0x178   : > { %v3792_v51 = vpop.f32.mrf.mxu1  ;;  %v3840_v52 = vpop.f32.mrf.mxu0 }
 0x179   : > { %5326 = vst [vmem:[#allocation4_spill] sm:$0xff] %v4989_v30  ;;  %v4992_v34 = vadd.f32 %v1559_v26, %v1320_v45  ;;  %v1323_v32 = vadd.f32 %v3792_v51, %v4893_v5 }
 0x17a   : > { %v1256_v10 = vpop.f32.mrf.mxu1  ;;  %v1562_v37 = vpop.f32.mrf.mxu0 }
 0x17b   : > { %5327 = vst [vmem:[#allocation5_spill] sm:$0xff] %v4992_v34  ;;  %v4995_v8 = vadd.f32 %v3840_v52, %v1323_v32  ;;  %v1321_v4 = vadd.f32 %v1256_v10, %v4897_v40 }
 0x17c   : > { %v3795_v46 = vpop.f32.mrf.mxu1  ;;  %v3843_v53 = vpop.f32.mrf.mxu0 }
 0x17d   : > { %5328 = vst [vmem:[#allocation6_spill] sm:$0xff] %v4995_v8  ;;  %v4998_v19 = vadd.f32 %v1562_v37, %v1321_v4  ;;  %v1326_v12 = vadd.f32 %v3795_v46, %v4905_v44 }
 0x17e   : > { %v1269_v11 = vpop.f32.mrf.mxu1  ;;  %v1575_v31 = vpop.f32.mrf.mxu0 }
 0x17f   : > { %5329 = vst [vmem:[#allocation7_spill] sm:$0xff] %v4998_v19  ;;  %v5001_v48 = vadd.f32 %v3843_v53, %v1326_v12  ;;  %v1324_v29 = vadd.f32 %v1269_v11, %v4908_v58 }
 0x180   : > { %v3796_v61 = vpop.f32.mrf.mxu1  ;;  %v3844_v5 = vpop.f32.mrf.mxu0 }
 0x181   : > { %5330 = vst [vmem:[#allocation8_spill] sm:$0xff] %v5001_v48  ;;  %v5004_v27 = vadd.f32 %v1575_v31, %v1324_v29  ;;  %v1327_v6 = vadd.f32 %v3796_v61, %v4911_v2 }
 0x182   : > { %v1272_v50 = vpop.f32.mrf.mxu1  ;;  %v1578_v40 = vpop.f32.mrf.mxu0 }
 0x183   : > { %5331 = vst [vmem:[#allocation9_spill] sm:$0xff] %v5004_v27  ;;  %v5007_v22 = vadd.f32 %v3844_v5, %v1327_v6  ;;  %v1325_v41 = vadd.f32 %v1272_v50, %v4914_v20 }
 0x184   : > { %v3799_v42 = vpop.f32.mrf.mxu1  ;;  %v3847_v44 = vpop.f32.mrf.mxu0 }
 0x185   : > { %5332 = vst [vmem:[#allocation10_spill] sm:$0xff] %v5007_v22  ;;  %v5010_v60 = vadd.f32 %v1578_v40, %v1325_v41  ;;  %v1330_v3 = vadd.f32 %v3799_v42, %v4917_v28 }
 0x186   : > { %v1285_v24 = vpop.f32.mrf.mxu1  ;;  %v1591_v58 = vpop.f32.mrf.mxu0 }
 0x187   : > { %5333 = vst [vmem:[#allocation11_spill] sm:$0xff] %v5010_v60  ;;  %v5013_v54 = vadd.f32 %v3847_v44, %v1330_v3  ;;  %v1328_v13 = vadd.f32 %v1285_v24, %v4920_v63 }
 0x188   : > { %v3800_v14 = vpop.f32.mrf.mxu1  ;;  %v3848_v2 = vpop.f32.mrf.mxu0 }
 0x189   : > { %5334 = vst [vmem:[#allocation12_spill] sm:$0xff] %v5013_v54  ;;  %v5016_v9 = vadd.f32 %v1591_v58, %v1328_v13  ;;  %v1331_v23 = vadd.f32 %v3800_v14, %v4923_v17 }
 0x18a   : > { %v1288_v26 = vpop.f32.mrf.mxu1  ;;  %v1594_v20 = vpop.f32.mrf.mxu0 }
 0x18b   : > { %5335 = vst [vmem:[#allocation13_spill] sm:$0xff] %v5016_v9  ;;  %v5019_v45 = vadd.f32 %v3848_v2, %v1331_v23  ;;  %v1329_v51 = vadd.f32 %v1288_v26, %v4926_v16 }
 0x18c   : > { %v3867_v52 = vpop.f32.mrf.mxu1  ;;  %v5022_v28 = vpop.f32.mrf.mxu0 }
 0x18d   : > { %5336 = vst [vmem:[#allocation14_spill] sm:$0xff] %v5019_v45  ;;  %v5024_v32 = vadd.f32 %v1594_v20, %v1329_v51 }
 0x18e   : > { %v1785_v10 = vpop.f32.mrf.mxu1  ;;  %v5026_v37 = vpop.f32.mrf.mxu0 }
 0x18f   : > { %5337 = vst [vmem:[#allocation15_spill] sm:$0xff] %v5024_v32 }
 0x190   : > { %v5028_v63 = vpop.f32.mrf.mxu1  ;;  %v5030_v4 = vpop.f32.mrf.mxu0 }
 0x192   : > { %v5032_v46 = vpop.f32.mrf.mxu1  ;;  %v5034_v17 = vpop.f32.mrf.mxu0 }
 0x194   : > { %v5036_v53 = vpop.f32.mrf.mxu1  ;;  %v5038_v12 = vpop.f32.mrf.mxu0 }
 0x196   : > { %v5040_v16 = vpop.f32.mrf.mxu1  ;;  %v5042_v11 = vpop.f32.mrf.mxu0 }
 0x198   : > { %v5044_v31 = vpop.f32.mrf.mxu1  ;;  %v5046_v29 = vpop.f32.mrf.mxu0 }
 0x19a   : > { %v5048_v61 = vpop.f32.mrf.mxu1  ;;  %v5050_v5 = vpop.f32.mrf.mxu0 }
 0x19c   : > { %v5052_v6 = vpop.f32.mrf.mxu1  ;;  %v5054_v50 = vpop.f32.mrf.mxu0 }
 0x19e   : > { %v5056_v40 = vpop.f32.mrf.mxu1  ;;  %v5058_v41 = vpop.f32.mrf.mxu0 }
 0x1a0   : > { %v5060_v42 = vpop.f32.mrf.mxu1  ;;  %v5062_v44 = vpop.f32.mrf.mxu0 }
 0x1a2   : > { %v5064_v3 = vpop.f32.mrf.mxu1  ;;  %v5066_v24 = vpop.f32.mrf.mxu0 }
 0x1a4   : > { %v5068_v58 = vpop.f32.mrf.mxu1  ;;  %v5070_v13 = vpop.f32.mrf.mxu0 }
 0x1a6   : > { %v5072_v14 = vpop.f32.mrf.mxu1  ;;  %v5074_v2 = vpop.f32.mrf.mxu0 }
 0x1a8   : > { %v5076_v23 = vpop.f32.mrf.mxu1  ;;  %v5078_v26 = vpop.f32.mrf.mxu0 }
 0x1aa   : > { %v5080_v20 = vpop.f32.mrf.mxu1  ;;  %v5082_v51 = vpop.f32.mrf.mxu0 }
 0x1ac   : > { %v5084_v32 = vpop.f32.mrf.mxu1  ;;  %v5086_v45 = vpop.f32.mrf.mxu0 }
 0x1ae   : > { %v5088_v9 = vpop.f32.mrf.mxu1  ;;  %v5090_v54 = vpop.f32.mrf.mxu0 }
 0x1af   : > { %5338 = vst [vmem:[#allocation16_spill] sm:$0xff] %v5090_v54 }
 0x1b0   : > { %v5092_v60 = vpop.f32.mrf.mxu1  ;;  %v5094_v22 = vpop.f32.mrf.mxu0 }
 0x1b1   : > { %5339 = vst [vmem:[#allocation17_spill] sm:$0xff] %v5092_v60  ;;  %5340 = vst [vmem:[#allocation18_spill] sm:$0xff] %v5094_v22 }
 0x1b2   : > { %v5096_v27 = vpop.f32.mrf.mxu1  ;;  %v5098_v48 = vpop.f32.mrf.mxu0 }
 0x1b3   : > { %5341 = vst [vmem:[#allocation19_spill] sm:$0xff] %v5096_v27  ;;  %5342 = vst [vmem:[#allocation20_spill] sm:$0xff] %v5098_v48 }
 0x1b4   : > { %v5100_v19 = vpop.f32.mrf.mxu1  ;;  %v5102_v8 = vpop.f32.mrf.mxu0 }
 0x1b5   : > { %5343 = vst [vmem:[#allocation21_spill] sm:$0xff] %v5100_v19  ;;  %5344 = vst [vmem:[#allocation22_spill] sm:$0xff] %v5102_v8 }
 0x1b6   : > { %v5104_v34 = vpop.f32.mrf.mxu1  ;;  %v5106_v30 = vpop.f32.mrf.mxu0 }
 0x1b7   : > { %5345 = vst [vmem:[#allocation23_spill] sm:$0xff] %v5104_v34  ;;  %5346 = vst [vmem:[#allocation24_spill] sm:$0xff] %v5106_v30 }
 0x1b8   : > { %v5108_v25 = vpop.f32.mrf.mxu1  ;;  %v5110_v33 = vpop.f32.mrf.mxu0 }
 0x1b9   : > { %5347 = vst [vmem:[#allocation25_spill] sm:$0xff] %v5108_v25  ;;  %5348 = vst [vmem:[#allocation26_spill] sm:$0xff] %v5110_v33 }
 0x1ba   : > { %v5112_v54 = vpop.f32.mrf.mxu1  ;;  %v5114_v60 = vpop.f32.mrf.mxu0 }
 0x1bb   : > { %5349 = vst [vmem:[#allocation27_spill] sm:$0xff] %v5112_v54  ;;  %5350 = vst [vmem:[#allocation28_spill] sm:$0xff] %v5114_v60 }
 0x1bc   : > { %v5116_v22 = vpop.f32.mrf.mxu1  ;;  %v5118_v27 = vpop.f32.mrf.mxu0 }
 0x1bd   : > { %5351 = vst [vmem:[#allocation29_spill] sm:$0xff] %v5116_v22  ;;  %5352 = vst [vmem:[#allocation30_spill] sm:$0xff] %v5118_v27 }
 0x1be   : > { %v5120_v48 = vpop.f32.mrf.mxu1  ;;  %v5122_v19 = vpop.f32.mrf.mxu0 }
 0x1bf   : > { %5353 = vst [vmem:[#allocation31_spill] sm:$0xff] %v5120_v48  ;;  %5354 = vst [vmem:[#allocation32_spill] sm:$0xff] %v5122_v19  ;;  %v1914_v48 = vadd.f32 %v3867_v52, %v4929_v35  ;;  %v1913_v35 = vadd.f32 %v5032_v46, %v4938_v38 }
 0x1c0   : > { %v5124_v8 = vpop.f32.mrf.mxu1  ;;  %v5126_v34 = vpop.f32.mrf.mxu0 }
 0x1c1   : > { %5355 = vst [vmem:[#allocation33_spill] sm:$0xff] %v5124_v8  ;;  %5356 = vst [vmem:[#allocation34_spill] sm:$0xff] %v5126_v34  ;;  %v1912_v34 = vadd.f32 %v1785_v10, %v4932_v49  ;;  %v1918_v49 = vadd.f32 %v5036_v53, %v4941_v43  ;;  %v5162_v10 = vld [vmem:[%s5322_s2] ss:$0 sm:$0xff] }
 0x1c2   : > { %v5128_v30 = vpop.f32.mrf.mxu1  ;;  %v5130_v25 = vpop.f32.mrf.mxu0 }
 0x1c3   : > { %5357 = vst [vmem:[#allocation35_spill] sm:$0xff] %v5128_v30  ;;  %5358 = vst [vmem:[#allocation36_spill] sm:$0xff] %v5130_v25 }
 0x1c4   : > { %v5132_v33 = vpop.f32.mrf.mxu1  ;;  %v5134_v54 = vpop.f32.mrf.mxu0 }
 0x1c5   : > { %5359 = vst [vmem:[#allocation37_spill] sm:$0xff] %v5132_v33  ;;  %5360 = vst [vmem:[#allocation38_spill] sm:$0xff] %v5134_v54  ;;  %v2221_v33 = vadd.f32 %v5022_v28, %v1914_v48  ;;  %v1915_v54 = vadd.f32 %v5028_v63, %v4935_v59 }
 0x1c6   : > { %v5136_v60 = vpop.f32.mrf.mxu1  ;;  %v5138_v27 = vpop.f32.mrf.mxu0 }
 0x1c7   : > { %5361 = vst [vmem:[#allocation39_spill] sm:$0xff] %v5136_v60  ;;  %5362 = vst [vmem:[#allocation40_spill] sm:$0xff] %v5138_v27  ;;  %v2219_v27 = vadd.f32 %v5026_v37, %v1912_v34  ;;  %v2222_v59 = vadd.f32 %v5030_v4, %v1915_v54  ;;  %v1916_v34 = vadd.f32 %v5040_v16, %v4944_v0 }
 0x1c8   : > { %v5141_v19 = vpop.f32.mrf.mxu1  ;;  %v5143_v8 = vpop.f32.mrf.mxu0  ;;  %v1919_v0 = vadd.f32 %v5044_v31, %v4947_v1  ;;  %v1922_v1 = vadd.f32 %v5052_v6, %v4953_v56 }
 0x1ca   : > { %v5146_v30 = vpop.f32.mrf.mxu1  ;;  %v5148_v25 = vpop.f32.mrf.mxu0 }
 0x1cb   : > { %5363 = vst [vmem:[#allocation41_spill] sm:$0xff] %v5148_v25 }
 0x1cc   : > { %v3963_v60 = vpop.f32.mrf.mxu1  ;;  %v4011_v22 = vpop.f32.mrf.mxu0 }
 0x1cd   : > { %v2527_v52 = vadd.f32 %v3963_v60, %v2221_v33  ;;  %v2220_v33 = vadd.f32 %v5034_v17, %v1913_v35  ;;  %v2223_v17 = vadd.f32 %v5042_v11, %v1916_v34 }
 0x1ce   : > { %v2398_v48 = vpop.f32.mrf.mxu1  ;;  %v2704_v28 = vpop.f32.mrf.mxu0 }
 0x1cf   : > { %v2833_v63 = vadd.f32 %v4011_v22, %v2527_v52  ;;  %v2525_v25 = vadd.f32 %v2398_v48, %v2219_v27  ;;  %v2225_v27 = vadd.f32 %v5038_v12, %v1918_v49 }
 0x1d0   : > { %v3964_v38 = vpop.f32.mrf.mxu1  ;;  %v4012_v43 = vpop.f32.mrf.mxu0 }
 0x1d1   : > { %v2872_v60 = vadd.f32 %v5162_v10, %v2833_v63  ;;  %v2831_v37 = vadd.f32 %v2704_v28, %v2525_v25  ;;  %v2528_v54 = vadd.f32 %v3964_v38, %v2222_v59  ;;  %v1917_v25 = vadd.f32 %v5048_v61, %v4950_v57 }
 0x1d2   : > { %v2401_v22 = vpop.f32.mrf.mxu1  ;;  %v2707_v4 = vpop.f32.mrf.mxu0  ;;  %v2226_v59 = vadd.f32 %v5046_v29, %v1919_v0  ;;  %v1920_v57 = vadd.f32 %v5056_v40, %v4956_v55  ;;  %v2229_v29 = vadd.f32 %v5054_v50, %v1922_v1  ;;  %v1921_v0 = vadd.f32 %v5064_v3, %v4962_v18 }
 0x1d3   : > { %2904 = vst [vmem:[%s5170_s13 + $0x10] sm:$0xff] %v2872_v60  ;;  %v2870_v46 = vadd.f32 %v5162_v10, %v2831_v37  ;;  %v2834_v53 = vadd.f32 %v4012_v43, %v2528_v54  ;;  %v2526_v16 = vadd.f32 %v2401_v22, %v2220_v33  ;;  %v2224_v43 = vadd.f32 %v5050_v5, %v1917_v25 }
 0x1d4   : > { %v3967_v35 = vpop.f32.mrf.mxu1  ;;  %v4015_v52 = vpop.f32.mrf.mxu0  ;;  %v1923_v54 = vadd.f32 %v5060_v42, %v4959_v36  ;;  %v2227_v5 = vadd.f32 %v5058_v41, %v1920_v57  ;;  %v1926_v36 = vadd.f32 %v5068_v58, %v4965_v7  ;;  %v1924_v18 = vadd.f32 %v5072_v14, %v4968_v21 }
 0x1d5   : > { %2902 = vst [vmem:[%s5170_s13] sm:$0xff] %v2870_v46  ;;  %v2873_v12 = vadd.f32 %v5162_v10, %v2834_v53  ;;  %v2832_v49 = vadd.f32 %v2707_v4, %v2526_v16  ;;  %v2531_v48 = vadd.f32 %v3967_v35, %v2225_v27 }
 0x1d6   : > { %v2414_v31 = vpop.f32.mrf.mxu1  ;;  %v2720_v28 = vpop.f32.mrf.mxu0 }
 0x1d7   : > { %2905 = vst [vmem:[%s5170_s13 + $0x18] sm:$0xff] %v2873_v12  ;;  %v2871_v11 = vadd.f32 %v5162_v10, %v2832_v49  ;;  %v2837_v63 = vadd.f32 %v4015_v52, %v2531_v48  ;;  %v2529_v34 = vadd.f32 %v2414_v31, %v2223_v17  ;;  %v2230_v17 = vadd.f32 %v5062_v44, %v1923_v54  ;;  %v5364_v54 = vld [vmem:[#allocation2_spill] sm:$0xff] }
 0x1d8   : > { %v3968_v61 = vpop.f32.mrf.mxu1  ;;  %v4016_v38 = vpop.f32.mrf.mxu0  ;;  %v2228_v12 = vadd.f32 %v5066_v24, %v1921_v0  ;;  %v2233_v44 = vadd.f32 %v5070_v13, %v1926_v36  ;;  %v1927_v31 = vadd.f32 %v5076_v23, %v4971_v47  ;;  %v2231_v24 = vadd.f32 %v5074_v2, %v1924_v18  ;;  %v5367_v0 = vld [vmem:[#allocation3_spill] sm:$0xff] }
 0x1d9   : > { %2903 = vst [vmem:[%s5170_s13 + $0x8] sm:$0xff] %v2871_v11  ;;  %v2876_v56 = vadd.f32 %v5162_v10, %v2837_v63  ;;  %v2835_v6 = vadd.f32 %v2720_v28, %v2529_v34  ;;  %v2532_v33 = vadd.f32 %v3968_v61, %v2226_v59  ;;  %v1925_v63 = vadd.f32 %v5080_v20, %v4974_v62 }
 0x1da   : > { %v2417_v60 = vpop.f32.mrf.mxu1  ;;  %v2723_v37 = vpop.f32.mrf.mxu0  ;;  %v1930_v47 = vadd.f32 %v5084_v32, %v4977_v39  ;;  %v1928_v62 = vadd.f32 %v5088_v9, %v4980_v15 }
 0x1db   : > { %2908 = vst [vmem:[%s5170_s13 + $0x30] sm:$0xff] %v2876_v56  ;;  %v2874_v55 = vadd.f32 %v5162_v10, %v2835_v6  ;;  %v2838_v40 = vadd.f32 %v4016_v38, %v2532_v33  ;;  %v2530_v27 = vadd.f32 %v2417_v60, %v2224_v43  ;;  %v2234_v38 = vadd.f32 %v5078_v26, %v1927_v31 }
 0x1dc   : > { %v3971_v22 = vpop.f32.mrf.mxu1  ;;  %v4019_v4 = vpop.f32.mrf.mxu0  ;;  %v2232_v33 = vadd.f32 %v5082_v51, %v1925_v63  ;;  %v2237_v26 = vadd.f32 %v5086_v45, %v1930_v47  ;;  %v5366_v51 = vld [vmem:[#allocation16_spill] sm:$0xff] }
 0x1dd   : > { %2906 = vst [vmem:[%s5170_s13 + $0x20] sm:$0xff] %v2874_v55  ;;  %v2877_v50 = vadd.f32 %v5162_v10, %v2838_v40  ;;  %v2836_v46 = vadd.f32 %v2723_v37, %v2530_v27  ;;  %v2535_v53 = vadd.f32 %v3971_v22, %v2229_v29  ;;  %v5365_v55 = vld [vmem:[#allocation17_spill] sm:$0xff] }
 0x1de   : > { %v2430_v42 = vpop.f32.mrf.mxu1  ;;  %v2736_v16 = vpop.f32.mrf.mxu0  ;;  %v1931_v40 = vadd.f32 %v5365_v55, %v5364_v54  ;;  %v5383_v55 = vld [vmem:[#allocation26_spill] sm:$0xff] }
 0x1df   : > { %2909 = vst [vmem:[%s5170_s13 + $0x38] sm:$0xff] %v2877_v50  ;;  %v2875_v41 = vadd.f32 %v5162_v10, %v2836_v46  ;;  %v2841_v35 = vadd.f32 %v4019_v4, %v2535_v53  ;;  %v2533_v52 = vadd.f32 %v2430_v42, %v2227_v5  ;;  %v2235_v5 = vadd.f32 %v5366_v51, %v1928_v62  ;;  %v5368_v50 = vld [vmem:[#allocation19_spill] sm:$0xff]  ;;  %v5369_v42 = vld [vmem:[#allocation4_spill] sm:$0xff]  ;;  %v5384_v51 = vld [vmem:[#allocation9_spill] sm:$0xff] }
 0x1e0   : > { %v3972_v3 = vpop.f32.mrf.mxu1  ;;  %v4020_v25 = vpop.f32.mrf.mxu0  ;;  %v1929_v46 = vadd.f32 %v5368_v50, %v5367_v0  ;;  %v5379_v62 = vld [vmem:[#allocation7_spill] sm:$0xff]  ;;  %v5386_v50 = vld [vmem:[#allocation28_spill] sm:$0xff] }
 0x1e1   : > { %2907 = vst [vmem:[%s5170_s13 + $0x28] sm:$0xff] %v2875_v41  ;;  %v2880_v7 = vadd.f32 %v5162_v10, %v2841_v35  ;;  %v2839_v58 = vadd.f32 %v2736_v16, %v2533_v52  ;;  %v2536_v49 = vadd.f32 %v3972_v3, %v2230_v17  ;;  %v5370_v16 = vld [vmem:[#allocation21_spill] sm:$0xff]  ;;  %v5371_v52 = vld [vmem:[#allocation18_spill] sm:$0xff] }
 0x1e2   : > { %v2433_v48 = vpop.f32.mrf.mxu1  ;;  %v2739_v1 = vpop.f32.mrf.mxu0  ;;  %v1934_v17 = vadd.f32 %v5370_v16, %v5369_v42  ;;  %v2238_v18 = vadd.f32 %v5371_v52, %v1931_v40  ;;  %v5387_v42 = vld [vmem:[#allocation30_spill] sm:$0xff]  ;;  %v5389_v52 = vld [vmem:[#allocation33_spill] sm:$0xff] }
 0x1e3   : > { %2912 = vst [vmem:[%s5170_s13 + $0x50] sm:$0xff] %v2880_v7  ;;  %v2878_v21 = vadd.f32 %v5162_v10, %v2839_v58  ;;  %v2842_v14 = vadd.f32 %v4020_v25, %v2536_v49  ;;  %v2534_v28 = vadd.f32 %v2433_v48, %v2228_v12  ;;  %v5372_v7 = vld [vmem:[#allocation5_spill] sm:$0xff]  ;;  %v5373_v58 = vld [vmem:[#allocation23_spill] sm:$0xff] }
 0x1e4   : > { %v3975_v59 = vpop.f32.mrf.mxu1  ;;  %v4023_v11 = vpop.f32.mrf.mxu0  ;;  %v1932_v49 = vadd.f32 %v5373_v58, %v5372_v7  ;;  %v5390_v7 = vld [vmem:[#allocation32_spill] sm:$0xff] }
 0x1e5   : > { %2910 = vst [vmem:[%s5170_s13 + $0x40] sm:$0xff] %v2878_v21  ;;  %v2881_v13 = vadd.f32 %v5162_v10, %v2842_v14  ;;  %v2840_v34 = vadd.f32 %v2739_v1, %v2534_v28  ;;  %v2539_v57 = vadd.f32 %v3975_v59, %v2233_v44  ;;  %v5374_v1 = vld [vmem:[#allocation20_spill] sm:$0xff] }
 0x1e6   : > { %v2446_v23 = vpop.f32.mrf.mxu1  ;;  %v2752_v61 = vpop.f32.mrf.mxu0  ;;  %v2236_v31 = vadd.f32 %v5374_v1, %v1929_v46  ;;  %v5392_v1 = vld [vmem:[#allocation35_spill] sm:$0xff] }
 0x1e7   : > { %2913 = vst [vmem:[%s5170_s13 + $0x58] sm:$0xff] %v2881_v13  ;;  %v2879_v2 = vadd.f32 %v5162_v10, %v2840_v34  ;;  %v2845_v43 = vadd.f32 %v4023_v11, %v2539_v57  ;;  %v2537_v56 = vadd.f32 %v2446_v23, %v2231_v24  ;;  %v5375_v24 = vld [vmem:[#allocation22_spill] sm:$0xff]  ;;  %v5377_v34 = vld [vmem:[#allocation25_spill] sm:$0xff] }
 0x1e8   : > { %v3976_v20 = vpop.f32.mrf.mxu1  ;;  %v4024_v6 = vpop.f32.mrf.mxu0  ;;  %v2241_v59 = vadd.f32 %v5375_v24, %v1934_v17  ;;  %v5376_v13 = vld [vmem:[#allocation6_spill] sm:$0xff]  ;;  %v5393_v24 = vld [vmem:[#allocation12_spill] sm:$0xff] }
 0x1e9   : > { %2911 = vst [vmem:[%s5170_s13 + $0x48] sm:$0xff] %v2879_v2  ;;  %v2884_v39 = vadd.f32 %v5162_v10, %v2845_v43  ;;  %v2843_v32 = vadd.f32 %v2752_v61, %v2537_v56  ;;  %v2540_v29 = vadd.f32 %v3976_v20, %v2234_v38  ;;  %v1935_v57 = vadd.f32 %v5377_v34, %v5376_v13  ;;  %v5378_v38 = vld [vmem:[#allocation24_spill] sm:$0xff]  ;;  %v5380_v20 = vld [vmem:[#allocation27_spill] sm:$0xff]  ;;  %v5395_v34 = vld [vmem:[#allocation34_spill] sm:$0xff] }
 0x1ea   : > { %v2449_v60 = vpop.f32.mrf.mxu1  ;;  %v2755_v37 = vpop.f32.mrf.mxu0  ;;  %v2239_v2 = vadd.f32 %v5378_v38, %v1932_v49  ;;  %v5396_v38 = vld [vmem:[#allocation13_spill] sm:$0xff] }
 0x1eb   : > { %2916 = vst [vmem:[%s5170_s13 + $0x70] sm:$0xff] %v2884_v39  ;;  %v2882_v15 = vadd.f32 %v5162_v10, %v2843_v32  ;;  %v2846_v9 = vadd.f32 %v4024_v6, %v2540_v29  ;;  %v2538_v27 = vadd.f32 %v2449_v60, %v2232_v33  ;;  %v1933_v6 = vadd.f32 %v5380_v20, %v5379_v62  ;;  %v5381_v29 = vld [vmem:[#allocation8_spill] sm:$0xff] }
 0x1ec   : > { %v3979_v22 = vpop.f32.mrf.mxu1  ;;  %v4027_v4 = vpop.f32.mrf.mxu0  ;;  %v2242_v40 = vadd.f32 %v5383_v55, %v1935_v57  ;;  %v5398_v20 = vld [vmem:[#allocation36_spill] sm:$0xff] }
 0x1ed   : > { %2914 = vst [vmem:[%s5170_s13 + $0x60] sm:$0xff] %v2882_v15  ;;  %v2885_v45 = vadd.f32 %v5162_v10, %v2846_v9  ;;  %v2844_v53 = vadd.f32 %v2755_v37, %v2538_v27  ;;  %v2543_v36 = vadd.f32 %v3979_v22, %v2237_v26  ;;  %v5382_v26 = vld [vmem:[#allocation29_spill] sm:$0xff]  ;;  %v2240_v46 = vadd.f32 %v5386_v50, %v1933_v6 }
 0x1ee   : > { %v2462_v41 = vpop.f32.mrf.mxu1  ;;  %v2768_v35 = vpop.f32.mrf.mxu0  ;;  %v1938_v60 = vadd.f32 %v5382_v26, %v5381_v29  ;;  %v5399_v29 = vld [vmem:[#allocation38_spill] sm:$0xff] }
 0x1ef   : > { %2917 = vst [vmem:[%s5170_s13 + $0x78] sm:$0xff] %v2885_v45  ;;  %v2883_v3 = vadd.f32 %v5162_v10, %v2844_v53  ;;  %v2849_v25 = vadd.f32 %v4027_v4, %v2543_v36  ;;  %v2541_v12 = vadd.f32 %v2462_v41, %v2235_v5  ;;  %v5385_v5 = vld [vmem:[#allocation31_spill] sm:$0xff] }
 0x1f0   : > { %v3980_v44 = vpop.f32.mrf.mxu1  ;;  %v4028_v48 = vpop.f32.mrf.mxu0  ;;  %v1936_v22 = vadd.f32 %v5385_v5, %v5384_v51  ;;  %v2245_v16 = vadd.f32 %v5387_v42, %v1938_v60 }
 0x1f1   : > { %2915 = vst [vmem:[%s5170_s13 + $0x68] sm:$0xff] %v2883_v3  ;;  %v2888_v21 = vadd.f32 %v5162_v10, %v2849_v25  ;;  %v2847_v14 = vadd.f32 %v2768_v35, %v2541_v12  ;;  %v2544_v28 = vadd.f32 %v3980_v44, %v2238_v18  ;;  %v5388_v35 = vld [vmem:[#allocation10_spill] sm:$0xff] }
 0x1f2   : > { %v2465_v11 = vpop.f32.mrf.mxu1  ;;  %v2771_v63 = vpop.f32.mrf.mxu0  ;;  %v1939_v18 = vadd.f32 %v5389_v52, %v5388_v35  ;;  %v2243_v58 = vadd.f32 %v5390_v7, %v1936_v22 }
 0x1f3   : > { %2920 = vst [vmem:[%s5170_s13 + $0x90] sm:$0xff] %v2888_v21  ;;  %v2886_v47 = vadd.f32 %v5162_v10, %v2847_v14  ;;  %v2850_v23 = vadd.f32 %v4028_v48, %v2544_v28  ;;  %v2542_v61 = vadd.f32 %v2465_v11, %v2236_v31  ;;  %v5391_v48 = vld [vmem:[#allocation11_spill] sm:$0xff] }
 0x1f4   : > { %v3983_v43 = vpop.f32.mrf.mxu1  ;;  %v4031_v56 = vpop.f32.mrf.mxu0  ;;  %v1937_v31 = vadd.f32 %v5392_v1, %v5391_v48  ;;  %v2246_v57 = vadd.f32 %v5395_v34, %v1939_v18 }
 0x1f5   : > { %2918 = vst [vmem:[%s5170_s13 + $0x80] sm:$0xff] %v2886_v47  ;;  %v2889_v33 = vadd.f32 %v5162_v10, %v2850_v23  ;;  %v2848_v39 = vadd.f32 %v2771_v63, %v2542_v61  ;;  %v2547_v32 = vadd.f32 %v3983_v43, %v2241_v59  ;;  %v5394_v59 = vld [vmem:[#allocation37_spill] sm:$0xff] }
 0x1f6   : > { %v2478_v37 = vpop.f32.mrf.mxu1  ;;  %v2784_v54 = vpop.f32.mrf.mxu0  ;;  %v1942_v11 = vadd.f32 %v5394_v59, %v5393_v24  ;;  %v2244_v6 = vadd.f32 %v5398_v20, %v1937_v31 }
 0x1f7   : > { %2921 = vst [vmem:[%s5170_s13 + $0x98] sm:$0xff] %v2889_v33  ;;  %v2887_v15 = vadd.f32 %v5162_v10, %v2848_v39  ;;  %v2853_v9 = vadd.f32 %v4031_v56, %v2547_v32  ;;  %v2545_v27 = vadd.f32 %v2478_v37, %v2239_v2  ;;  %v5397_v2 = vld [vmem:[#allocation39_spill] sm:$0xff] }
 0x1f8   : > { %v3984_v4 = vpop.f32.mrf.mxu1  ;;  %v4032_v0 = vpop.f32.mrf.mxu0  ;;  %v1940_v43 = vadd.f32 %v5397_v2, %v5396_v38  ;;  %v2249_v26 = vadd.f32 %v5399_v29, %v1942_v11 }
 0x1f9   : > { %2919 = vst [vmem:[%s5170_s13 + $0x88] sm:$0xff] %v2887_v15  ;;  %v2892_v45 = vadd.f32 %v5162_v10, %v2853_v9  ;;  %v2851_v53 = vadd.f32 %v2784_v54, %v2545_v27  ;;  %v2548_v36 = vadd.f32 %v3984_v4, %v2242_v40  ;;  %v5400_v54 = vld [vmem:[#allocation14_spill] sm:$0xff]  ;;  %v5401_v27 = vld [vmem:[#allocation40_spill] sm:$0xff]  ;;  %v5402_v4 = vld [vmem:[#allocation15_spill] sm:$0xff] }
 0x1fa   : > { %v2481_v17 = vpop.f32.mrf.mxu1  ;;  %v2787_v41 = vpop.f32.mrf.mxu0  ;;  %v1943_v55 = vadd.f32 %v5141_v19, %v5400_v54  ;;  %v2247_v51 = vadd.f32 %v5401_v27, %v1940_v43 }
 0x1fb   : > { %2924 = vst [vmem:[%s5170_s13 + $0xb0] sm:$0xff] %v2892_v45  ;;  %v2890_v3 = vadd.f32 %v5162_v10, %v2851_v53  ;;  %v2854_v25 = vadd.f32 %v4032_v0, %v2548_v36  ;;  %v2546_v12 = vadd.f32 %v2481_v17, %v2240_v46  ;;  %v1941_v0 = vadd.f32 %v5146_v30, %v5402_v4  ;;  %v5403_v30 = vld [vmem:[#allocation41_spill] sm:$0xff] }
 0x1fc   : > { %v3987_v49 = vpop.f32.mrf.mxu1  ;;  %v4035_v44 = vpop.f32.mrf.mxu0  ;;  %v2250_v36 = vadd.f32 %v5143_v8, %v1943_v55 }
 0x1fd   : > { %2922 = vst [vmem:[%s5170_s13 + $0xa0] sm:$0xff] %v2890_v3  ;;  %v2893_v21 = vadd.f32 %v5162_v10, %v2854_v25  ;;  %v2852_v14 = vadd.f32 %v2787_v41, %v2546_v12  ;;  %v2551_v28 = vadd.f32 %v3987_v49, %v2245_v16  ;;  %v2248_v52 = vadd.f32 %v5403_v30, %v1941_v0 }
 0x1fe   : > { %v2494_v63 = vpop.f32.mrf.mxu1  ;;  %v2800_v13 = vpop.f32.mrf.mxu0 }
 0x1ff   : > { %2925 = vst [vmem:[%s5170_s13 + $0xb8] sm:$0xff] %v2893_v21  ;;  %v2891_v47 = vadd.f32 %v5162_v10, %v2852_v14  ;;  %v2857_v23 = vadd.f32 %v4035_v44, %v2551_v28  ;;  %v2549_v61 = vadd.f32 %v2494_v63, %v2243_v58 }
 0x200   : > { %v3988_v56 = vpop.f32.mrf.mxu1  ;;  %v4036_v62 = vpop.f32.mrf.mxu0 }
 0x201   : > { %2923 = vst [vmem:[%s5170_s13 + $0xa8] sm:$0xff] %v2891_v47  ;;  %v2896_v33 = vadd.f32 %v5162_v10, %v2857_v23  ;;  %v2855_v39 = vadd.f32 %v2800_v13, %v2549_v61  ;;  %v2552_v32 = vadd.f32 %v3988_v56, %v2246_v57 }
 0x202   : > { %v2497_v60 = vpop.f32.mrf.mxu1  ;;  %v2803_v37 = vpop.f32.mrf.mxu0 }
 0x203   : > { %2928 = vst [vmem:[%s5170_s13 + $0xd0] sm:$0xff] %v2896_v33  ;;  %v2894_v40 = vadd.f32 %v5162_v10, %v2855_v39  ;;  %v2858_v15 = vadd.f32 %v4036_v62, %v2552_v32  ;;  %v2550_v9 = vadd.f32 %v2497_v60, %v2244_v6 }
 0x204   : > { %v3991_v5 = vpop.f32.mrf.mxu1  ;;  %v4039_v22 = vpop.f32.mrf.mxu0 }
 0x205   : > { %2926 = vst [vmem:[%s5170_s13 + $0xc0] sm:$0xff] %v2894_v40  ;;  %v2897_v50 = vadd.f32 %v5162_v10, %v2858_v15  ;;  %v2856_v46 = vadd.f32 %v2803_v37, %v2550_v9  ;;  %v2555_v45 = vadd.f32 %v3991_v5, %v2249_v26 }
 0x206   : > { %v2510_v19 = vpop.f32.mrf.mxu1  ;;  %v2816_v53 = vpop.f32.mrf.mxu0 }
 0x207   : > { %2929 = vst [vmem:[%s5170_s13 + $0xd8] sm:$0xff] %v2897_v50  ;;  %v2895_v42 = vadd.f32 %v5162_v10, %v2856_v46  ;;  %v2861_v16 = vadd.f32 %v4039_v22, %v2555_v45  ;;  %v2553_v17 = vadd.f32 %v2510_v19, %v2247_v51 }
 0x208   : > { %v3992_v41 = vpop.f32.mrf.mxu1  ;;  %v4040_v35 = vpop.f32.mrf.mxu0 }
 0x209   : > { %2927 = vst [vmem:[%s5170_s13 + $0xc8] sm:$0xff] %v2895_v42  ;;  %v2900_v18 = vadd.f32 %v5162_v10, %v2861_v16  ;;  %v2859_v3 = vadd.f32 %v2816_v53, %v2553_v17  ;;  %v2556_v25 = vadd.f32 %v3992_v41, %v2250_v36 }
 0x20a   : > { %v2513_v12 = vpop.f32.mrf.mxu1  ;;  %v2819_v49 = vpop.f32.mrf.mxu0 }
 0x20b   : > { %2932 = vst [vmem:[%s5170_s13 + $0xf0] sm:$0xff] %v2900_v18  ;;  %v2898_v8 = vadd.f32 %v5162_v10, %v2859_v3  ;;  %v2862_v7 = vadd.f32 %v4040_v35, %v2556_v25  ;;  %v2554_v58 = vadd.f32 %v2513_v12, %v2248_v52 }
 0x20d   : > { %2930 = vst [vmem:[%s5170_s13 + $0xe0] sm:$0xff] %v2898_v8  ;;  %v2901_v44 = vadd.f32 %v5162_v10, %v2862_v7  ;;  %v2860_v48 = vadd.f32 %v2819_v49, %v2554_v58 }
 0x20f   : > { %2933 = vst [vmem:[%s5170_s13 + $0xf8] sm:$0xff] %v2901_v44  ;;  %v2899_v1 = vadd.f32 %v5162_v10, %v2860_v48 }
 0x211   : > { %2931 = vst [vmem:[%s5170_s13 + $0xe8] sm:$0xff] %v2899_v1 }
 0x212 PF: > { %s13_s12 = sadd.s32 1, %s4144_s12  }
 0x213   : > { %p10_p4 = scmp.ge.s32.totalorder %s13_s12, 4  }
 0x215   :  { %12 = sbr.rel (!%p10_p4) target bundleno = 1 (0x1), region = 72 }

</bundles_post_ra>
